<compile_context>
chip_gen: v5e
topology: v5e:2x2
jax: 0.10.0
libtpu: 0.0.40
codegen_flags: <defaults>
</compile_context>

<pallas_src>
import functools

import jax
import jax.numpy as jnp
from jax.experimental import pallas as pl
from jax.experimental.pallas import tpu as pltpu


# ----------------------------------------------------------------------------
# Fused Pallas kernel: entire OGCRNN forward
# ----------------------------------------------------------------------------
def _ogcrnn_kernel(x_ref, sup_ref, hpar_ref, bn_shift_ref, bn_scale_ref,
                   e_ref, et_ref, blkmask_ref, w_in_ref, w_hid_ref,
                   gcn_b_ref, conv_w_ref, conv_b_ref,
                   a_ref, out_ref, px_scr,
                   *, B, N, T, c_in, c_out, K, out_pad):
    f32 = jnp.float32
    bf16 = jnp.bfloat16
    G = 4 * c_out            # gate width
    TG = T * G
    BN = B * N

    # ---- adjacency normalization: A = diag(1/(rowsum+1e-4)) @ (h + support) ----
    A = hpar_ref[...] + sup_ref[...]
    d = 1.0 / (jnp.sum(A, axis=-1, keepdims=True) + 1e-4)
    A = d * A
    a_ref[...] = A
    # TODO(synk): F.dropout(A, 0.5) (functional default training=True) treated as a no-op
    #             (inference semantics).

    # ---- Chebyshev matrices T_k(A) on (N, N), computed ONCE ----
    eye = (jax.lax.broadcasted_iota(jnp.int32, (N, N), 0) ==
           jax.lax.broadcasted_iota(jnp.int32, (N, N), 1)).astype(f32)
    cheb = [eye]
    if K > 1:
        cheb.append(A)
    for _ in range(2, K):
        cheb.append(2.0 * jnp.dot(A, cheb[-1], preferred_element_type=f32) - cheb[-2])

    # ---- block-diagonal embedding  I_B (x) T_k(A)  for k >= 1 (batch folded into rows) ----
    E = e_ref[...]                 # (BN, N): stacked identities
    Et = et_ref[...]               # (N, BN)
    blkmask = blkmask_ref[...]     # (BN, BN): same-batch-block indicator
    cbd_f32, cbd_b16 = [], []
    for k in range(1, K):
        tiled = jnp.dot(E, jnp.dot(cheb[k], Et, preferred_element_type=f32),
                        preferred_element_type=f32)            # tile(T_k, (B, B))
        cb = blkmask * tiled                                   # block-diag(T_k, ..., T_k)
        cbd_f32.append(cb)
        cbd_b16.append(cb.astype(bf16))

    # ---- BatchNorm2d(affine=False) eval + hoisted input path (independent of h) ----
    # pre_x[:, t*G:(t+1)*G] = sum_k Cbd_k @ (x_t @ W_in_k); computed once, stored in VMEM.
    xn = (x_ref[...] - bn_shift_ref[...]) * bn_scale_ref[...]          # (BN, T*c_in)
    px_scr[...] = jnp.dot(xn, w_in_ref[:, :TG], preferred_element_type=f32)   # k=0, T_0 = I
    for k in range(1, K):
        xwk = jnp.dot(xn, w_in_ref[:, k * TG:(k + 1) * TG], preferred_element_type=f32)
        px_scr[...] = px_scr[...] + jnp.dot(cbd_f32[k - 1], xwk,
                                            preferred_element_type=f32)

    # ---- loop-invariant reads hoisted out of the unrolled time loop ----
    w_hid = w_hid_ref[...]        # (c_out, K*G) bf16, columns = (k, gate-out)
    gcn_b = gcn_b_ref[...]        # (1, G)
    conv_b = conv_b_ref[...]      # (1, out_pad)

    # ---- ST_BLOCK_5: graph-conv LSTM over T steps, batch folded into rows ----
    h = jnp.zeros((BN, c_out), f32)
    c = jnp.zeros((BN, c_out), f32)
    acc = jnp.zeros((BN, out_pad), f32)       # fused lane-dense (1,T)-conv accumulator
    for t in range(T):
        # one matmul for all K hop weights, then K-1 block-diag Chebyshev applications
        hw = jnp.dot(h.astype(bf16), w_hid, preferred_element_type=f32)     # (BN, K*G)
        fea = px_scr[:, t * G:(t + 1) * G] + gcn_b + hw[:, :G]
        for k in range(1, K):
            fea = fea + jnp.dot(cbd_b16[k - 1],
                                hw[:, k * G:(k + 1) * G].astype(bf16),
                                preferred_element_type=f32)
        # gates (host-reordered to [i, f, o, j]) -> lane-dense sigmoid / tanh
        sig = jax.nn.sigmoid(fea[:, :3 * c_out])
        i_g = sig[:, :c_out]
        f_g = sig[:, c_out:2 * c_out]
        o_g = sig[:, 2 * c_out:3 * c_out]
        j_g = jnp.tanh(fea[:, 3 * c_out:])
        c = c * f_g + i_g * j_g
        h = jnp.tanh(c) * o_g
        # fused epilogue: accumulate final Conv2d(c_out, out_dim, (1, T)), 128-lane padded
        acc = acc + jnp.dot(h.astype(bf16),
                            conv_w_ref[t * c_out:(t + 1) * c_out, :],
                            preferred_element_type=f32)
    out_ref[...] = acc + conv_b


# ----------------------------------------------------------------------------
# Host wrapper: layout plumbing only (one-time); all compute is in-kernel
# ----------------------------------------------------------------------------
def ogcrnn_forward(x, support, params):
    B, c_in, N, T = x.shape
    gcn_w = params["gcn_w"].astype(jnp.float32)
    c_out = gcn_w.shape[0] // 4
    c_tot = c_in + c_out
    K = gcn_w.shape[1] // c_tot
    out_dim = params["conv1_b"].shape[0]
    G = 4 * c_out
    BN = B * N
    out_pad = ((out_dim + 127) // 128) * 128          # lane-dense output width

    # input rows = (b, n), columns = (t, c)
    x2 = x.transpose(0, 2, 3, 1).reshape(BN, T * c_in).astype(jnp.float32)

    # BatchNorm2d(affine=False) eval-mode shift/scale, tiled to the (t, c) column layout
    eps = 1e-5
    scale = 1.0 / jnp.sqrt(params["bn_var"].astype(jnp.float32) + eps)
    bn_scale = jnp.tile(scale, T).reshape(1, T * c_in)
    bn_shift = jnp.tile(params["bn_mean"].astype(jnp.float32), T).reshape(1, T * c_in)

    # gate reorder [i, j, f, o] -> [i, f, o, j] so sigmoid/tanh run on contiguous blocks
    perm = jnp.concatenate([jnp.arange(0, c_out),
                            jnp.arange(2 * c_out, 3 * c_out),
                            jnp.arange(3 * c_out, 4 * c_out),
                            jnp.arange(c_out, 2 * c_out)])
    # gcn_conv_hop Conv1d weight [4*c_out, K*c_tot], input index = c*K + k
    w_full = gcn_w.reshape(G, c_tot, K)[perm]                         # [o, c, k], out-perm
    # hidden weights fused over K hops: rows = hidden channel, columns = (k, gate-out)
    w_hid = (w_full[:, c_in:, :].transpose(1, 2, 0)
             .reshape(c_out, K * G).astype(jnp.bfloat16))
    # input weights: per-k kron(I_T, W_in_k), concatenated along lanes -> (T*c_in, K*T*G)
    eyeT = jnp.eye(T, dtype=jnp.float32)
    w_in_blocks = []
    for k in range(K):
        w_in_k = w_full[:, :c_in, k].T                                # (c_in, G)
        w_in_blocks.append(jnp.kron(eyeT, w_in_k))                    # (T*c_in, T*G)
    w_in = jnp.concatenate(w_in_blocks, axis=1)
    gcn_b = params["gcn_b"].astype(jnp.float32)[perm].reshape(1, G)

    # final Conv2d(c_out, out_dim, (1, T)) weight [o, c, 1, t] -> rows = (t, c), lane = o
    conv_w = (params["conv1_w"].astype(jnp.float32)
              .reshape(out_dim, c_out, T).transpose(2, 1, 0).reshape(T * c_out, out_dim))
    conv_w = jnp.pad(conv_w, ((0, 0), (0, out_pad - out_dim))).astype(jnp.bfloat16)
    conv_b = jnp.pad(params["conv1_b"].astype(jnp.float32),
                     (0, out_pad - out_dim)).reshape(1, out_pad)

    # constants used to build the block-diagonal Chebyshev operators in-kernel
    E = jnp.tile(jnp.eye(N, dtype=jnp.float32), (B, 1))               # (BN, N)
    Et = E.T                                                          # (N, BN)
    blkmask = jnp.kron(jnp.eye(B, dtype=jnp.float32),
                       jnp.ones((N, N), jnp.float32))                 # (BN, BN)

    kern = functools.partial(_ogcrnn_kernel, B=B, N=N, T=T, c_in=c_in,
                             c_out=c_out, K=K, out_pad=out_pad)
    vmem = pl.BlockSpec(memory_space=pltpu.MemorySpace.VMEM)
    a_norm, out2 = pl.pallas_call(
        kern,
        out_shape=(jax.ShapeDtypeStruct((N, N), jnp.float32),
                   jax.ShapeDtypeStruct((BN, out_pad), jnp.float32)),
        in_specs=[vmem] * 13,
        out_specs=(vmem, vmem),
        scratch_shapes=[pltpu.VMEM((BN, T * G), jnp.float32)],
    )(x2, support.astype(jnp.float32), params["h"].astype(jnp.float32),
      bn_shift, bn_scale, E, Et, blkmask, w_in, w_hid, gcn_b, conv_w, conv_b)

    out = out2[:, :out_dim].reshape(B, N, out_dim).transpose(0, 2, 1)[..., None]
    return out, a_norm, a_norm


# ----------------------------------------------------------------------------
# Deterministic parameter init (PyTorch conv-style uniform bounds)
# ----------------------------------------------------------------------------
def _uniform(key, shape, bound):
    return jax.random.uniform(key, shape, jnp.float32, -bound, bound)


def init_ogcrnn(key, num_nodes, length, in_dim, dilation_channels, out_dim, K):
    c_in, c_out, T = in_dim, dilation_channels, length
    c_tot = c_in + c_out
    kh, k1, k2, k3, k4 = jax.random.split(key, 5)
    g_bound = 1.0 / float(jnp.sqrt(jnp.float32(K * c_tot)))     # Conv1d(K*c_tot, 4*c_out, 1)
    c_bound = 1.0 / float(jnp.sqrt(jnp.float32(c_out * T)))     # Conv2d(c_out, out_dim, (1,T))
    return {
        # nn.init.uniform_(h, a=0, b=0.0001)
        "h": jax.random.uniform(kh, (num_nodes, num_nodes), jnp.float32, 0.0, 1e-4),
        # BatchNorm2d(in_dim, affine=False) running stats (eval mode)
        "bn_mean": jnp.zeros((c_in,), jnp.float32),
        "bn_var": jnp.ones((c_in,), jnp.float32),
        # gcn_conv_hop Conv1d weight [4*c_out, K*(c_in+c_out)], column index = c*K + k
        "gcn_w": _uniform(k1, (4 * c_out, K * c_tot), g_bound),
        "gcn_b": _uniform(k2, (4 * c_out,), g_bound),
        # final Conv2d weight (out_dim, c_out, 1, T)
        "conv1_w": _uniform(k3, (out_dim, c_out, 1, T), c_bound),
        "conv1_b": _uniform(k4, (out_dim,), c_bound),
    }


if __name__ == "__main__":
    key = jax.random.PRNGKey(0)
    B, N, T, in_dim, C, K, out_dim = 2, 16, 12, 1, 32, 3, 12
    kx, ks, kp = jax.random.split(key, 3)

    x = jax.random.normal(kx, (B, in_dim, N, T), jnp.float32)
    raw = jax.random.uniform(ks, (N, N), jnp.float32)
    support = jnp.where(raw > 0.5, raw, 0.0)          # supports[0]

    params = init_ogcrnn(kp, num_nodes=N, length=T, in_dim=in_dim,
                         dilation_channels=C, out_dim=out_dim, K=K)

    out, A1, A2 = jax.jit(ogcrnn_forward)(x, support, params)
    jax.block_until_ready(out)

    assert out.shape == (B, out_dim, N, 1), out.shape
    assert A1.shape == (N, N), A1.shape
    assert bool(jnp.all(jnp.isfinite(out)))
    assert bool(jnp.all(jnp.isfinite(A1)))
    print("KERNEL_OK")
</pallas_src>

<mosaic_0001>
module attributes {stable_mosaic.version = 11 : i64} {
  func.func @_ogcrnn_kernel(%arg0: memref<32x12xf32, #tpu.memory_space<vmem>>, %arg1: memref<16x16xf32, #tpu.memory_space<vmem>>, %arg2: memref<16x16xf32, #tpu.memory_space<vmem>>, %arg3: memref<1x12xf32, #tpu.memory_space<vmem>>, %arg4: memref<1x12xf32, #tpu.memory_space<vmem>>, %arg5: memref<32x16xf32, #tpu.memory_space<vmem>>, %arg6: memref<16x32xf32, #tpu.memory_space<vmem>>, %arg7: memref<32x32xf32, #tpu.memory_space<vmem>>, %arg8: memref<12x4608xf32, #tpu.memory_space<vmem>>, %arg9: memref<32x384xbf16, #tpu.memory_space<vmem>>, %arg10: memref<1x128xf32, #tpu.memory_space<vmem>>, %arg11: memref<384x128xbf16, #tpu.memory_space<vmem>>, %arg12: memref<1x128xf32, #tpu.memory_space<vmem>>, %arg13: memref<16x16xf32, #tpu.memory_space<vmem>>, %arg14: memref<32x128xf32, #tpu.memory_space<vmem>>, %arg15: memref<32x1536xf32, #tpu.memory_space<vmem>>) attributes {dimension_semantics = [], scalar_prefetch = 0 : i64, scratch_operands = 1 : i64, tpu.core_type = #tpu.core_type<tc>} {
    %c0 = arith.constant 0 : index
    %c0_0 = arith.constant 0 : index
    %0 = vector.load %arg2[%c0, %c0_0] : memref<16x16xf32, #tpu.memory_space<vmem>>, vector<16x16xf32>
    %c0_1 = arith.constant 0 : index
    %c0_2 = arith.constant 0 : index
    %1 = vector.load %arg1[%c0_1, %c0_2] : memref<16x16xf32, #tpu.memory_space<vmem>>, vector<16x16xf32>
    %2 = arith.addf %0, %1 : vector<16x16xf32>
    %cst = arith.constant dense<0.000000e+00> : vector<16xf32>
    %3 = vector.multi_reduction <add>, %2, %cst [1] : vector<16x16xf32> to vector<16xf32>
    %4 = vector.shape_cast %3 : vector<16xf32> to vector<16x1xf32>
    %cst_3 = arith.constant 9.99999974E-5 : f32
    %5 = vector.broadcast %cst_3 : f32 to vector<16x1xf32>
    %6 = arith.addf %4, %5 : vector<16x1xf32>
    %cst_4 = arith.constant 1.000000e+00 : f32
    %7 = vector.broadcast %cst_4 : f32 to vector<16x1xf32>
    %8 = arith.divf %7, %6 : vector<16x1xf32>
    %9 = vector.broadcast %8 : vector<16x1xf32> to vector<16x16xf32>
    %10 = arith.mulf %9, %2 : vector<16x16xf32>
    %c0_5 = arith.constant 0 : index
    %c0_6 = arith.constant 0 : index
    %11 = vector.load %arg13[%c0_5, %c0_6] : memref<16x16xf32, #tpu.memory_space<vmem>>, vector<16x16xf32>
    tpu.vector_store %arg13[%c0_5, %c0_6], %10 {strides = array<i32>} : memref<16x16xf32, #tpu.memory_space<vmem>>, vector<16x16xf32>,
    %12 = tpu.iota {dimensions = array<i32: 0>} : vector<16x16xi32>
    %13 = tpu.iota {dimensions = array<i32: 1>} : vector<16x16xi32>
    %14 = arith.cmpi eq, %12, %13 : vector<16x16xi32>
    %15 = arith.extui %14 : vector<16x16xi1> to vector<16x16xi32>
    %16 = arith.sitofp %15 : vector<16x16xi32> to vector<16x16xf32>
    %cst_7 = arith.constant dense<0.000000e+00> : vector<16x16xf32>
    %17 = tpu.matmul %10, %10, %cst_7 {dimension_numbers = #tpu.dot_dimension_numbers<[1], [0], [0], [1], [0, 0, 1, 1], [], []>} : vector<16x16xf32>, vector<16x16xf32>, vector<16x16xf32> -> vector<16x16xf32>
    %cst_8 = arith.constant 2.000000e+00 : f32
    %18 = vector.broadcast %cst_8 : f32 to vector<16x16xf32>
    %19 = arith.mulf %18, %17 : vector<16x16xf32>
    %20 = arith.subf %19, %16 : vector<16x16xf32>
    %c0_9 = arith.constant 0 : index
    %c0_10 = arith.constant 0 : index
    %21 = vector.load %arg5[%c0_9, %c0_10] : memref<32x16xf32, #tpu.memory_space<vmem>>, vector<32x16xf32>
    %c0_11 = arith.constant 0 : index
    %c0_12 = arith.constant 0 : index
    %22 = vector.load %arg6[%c0_11, %c0_12] : memref<16x32xf32, #tpu.memory_space<vmem>>, vector<16x32xf32>
    %c0_13 = arith.constant 0 : index
    %c0_14 = arith.constant 0 : index
    %23 = vector.load %arg7[%c0_13, %c0_14] : memref<32x32xf32, #tpu.memory_space<vmem>>, vector<32x32xf32>
    %cst_15 = arith.constant dense<0.000000e+00> : vector<16x32xf32>
    %24 = tpu.matmul %10, %22, %cst_15 {dimension_numbers = #tpu.dot_dimension_numbers<[1], [0], [0], [1], [0, 0, 1, 1], [], []>} : vector<16x16xf32>, vector<16x32xf32>, vector<16x32xf32> -> vector<16x32xf32>
    %cst_16 = arith.constant dense<0.000000e+00> : vector<32x32xf32>
    %25 = tpu.matmul %21, %24, %cst_16 {dimension_numbers = #tpu.dot_dimension_numbers<[1], [0], [0], [1], [0, 0, 1, 1], [], []>} : vector<32x16xf32>, vector<16x32xf32>, vector<32x32xf32> -> vector<32x32xf32>
    %26 = arith.mulf %23, %25 : vector<32x32xf32>
    %27 = arith.truncf %26 : vector<32x32xf32> to vector<32x32xbf16>
    %cst_17 = arith.constant dense<0.000000e+00> : vector<16x32xf32>
    %28 = tpu.matmul %20, %22, %cst_17 {dimension_numbers = #tpu.dot_dimension_numbers<[1], [0], [0], [1], [0, 0, 1, 1], [], []>} : vector<16x16xf32>, vector<16x32xf32>, vector<16x32xf32> -> vector<16x32xf32>
    %cst_18 = arith.constant dense<0.000000e+00> : vector<32x32xf32>
    %29 = tpu.matmul %21, %28, %cst_18 {dimension_numbers = #tpu.dot_dimension_numbers<[1], [0], [0], [1], [0, 0, 1, 1], [], []>} : vector<32x16xf32>, vector<16x32xf32>, vector<32x32xf32> -> vector<32x32xf32>
    %30 = arith.mulf %23, %29 : vector<32x32xf32>
    %31 = arith.truncf %30 : vector<32x32xf32> to vector<32x32xbf16>
    %c0_19 = arith.constant 0 : index
    %c0_20 = arith.constant 0 : index
    %32 = vector.load %arg0[%c0_19, %c0_20] : memref<32x12xf32, #tpu.memory_space<vmem>>, vector<32x12xf32>
    %c0_21 = arith.constant 0 : index
    %c0_22 = arith.constant 0 : index
    %33 = vector.load %arg3[%c0_21, %c0_22] : memref<1x12xf32, #tpu.memory_space<vmem>>, vector<1x12xf32>
    %34 = vector.broadcast %33 : vector<1x12xf32> to vector<32x12xf32>
    %35 = arith.subf %32, %34 : vector<32x12xf32>
    %c0_23 = arith.constant 0 : index
    %c0_24 = arith.constant 0 : index
    %36 = vector.load %arg4[%c0_23, %c0_24] : memref<1x12xf32, #tpu.memory_space<vmem>>, vector<1x12xf32>
    %37 = vector.broadcast %36 : vector<1x12xf32> to vector<32x12xf32>
    %38 = arith.mulf %35, %37 : vector<32x12xf32>
    %c0_25 = arith.constant 0 : index
    %c0_26 = arith.constant 0 : index
    %39 = vector.load %arg8[%c0_25, %c0_26] : memref<12x4608xf32, #tpu.memory_space<vmem>>, vector<12x1536xf32>
    %cst_27 = arith.constant dense<0.000000e+00> : vector<32x1536xf32>
    %40 = tpu.matmul %38, %39, %cst_27 {dimension_numbers = #tpu.dot_dimension_numbers<[1], [0], [0], [1], [0, 0, 1, 1], [], []>} : vector<32x12xf32>, vector<12x1536xf32>, vector<32x1536xf32> -> vector<32x1536xf32>
    %c0_28 = arith.constant 0 : index
    %c0_29 = arith.constant 0 : index
    %41 = vector.load %arg15[%c0_28, %c0_29] : memref<32x1536xf32, #tpu.memory_space<vmem>>, vector<32x1536xf32>
    tpu.vector_store %arg15[%c0_28, %c0_29], %40 {strides = array<i32>} : memref<32x1536xf32, #tpu.memory_space<vmem>>, vector<32x1536xf32>,
    %c0_30 = arith.constant 0 : index
    %c1536 = arith.constant 1536 : index
    %42 = vector.load %arg8[%c0_30, %c1536] : memref<12x4608xf32, #tpu.memory_space<vmem>>, vector<12x1536xf32>
    %cst_31 = arith.constant dense<0.000000e+00> : vector<32x1536xf32>
    %43 = tpu.matmul %38, %42, %cst_31 {dimension_numbers = #tpu.dot_dimension_numbers<[1], [0], [0], [1], [0, 0, 1, 1], [], []>} : vector<32x12xf32>, vector<12x1536xf32>, vector<32x1536xf32> -> vector<32x1536xf32>
    %c0_32 = arith.constant 0 : index
    %c0_33 = arith.constant 0 : index
    %44 = vector.load %arg15[%c0_32, %c0_33] : memref<32x1536xf32, #tpu.memory_space<vmem>>, vector<32x1536xf32>
    %cst_34 = arith.constant dense<0.000000e+00> : vector<32x1536xf32>
    %45 = tpu.matmul %26, %43, %cst_34 {dimension_numbers = #tpu.dot_dimension_numbers<[1], [0], [0], [1], [0, 0, 1, 1], [], []>} : vector<32x32xf32>, vector<32x1536xf32>, vector<32x1536xf32> -> vector<32x1536xf32>
    %46 = arith.addf %44, %45 : vector<32x1536xf32>
    %c0_35 = arith.constant 0 : index
    %c0_36 = arith.constant 0 : index
    %47 = vector.load %arg15[%c0_35, %c0_36] : memref<32x1536xf32, #tpu.memory_space<vmem>>, vector<32x1536xf32>
    tpu.vector_store %arg15[%c0_35, %c0_36], %46 {strides = array<i32>} : memref<32x1536xf32, #tpu.memory_space<vmem>>, vector<32x1536xf32>,
    %c0_37 = arith.constant 0 : index
    %c3072 = arith.constant 3072 : index
    %48 = vector.load %arg8[%c0_37, %c3072] : memref<12x4608xf32, #tpu.memory_space<vmem>>, vector<12x1536xf32>
    %cst_38 = arith.constant dense<0.000000e+00> : vector<32x1536xf32>
    %49 = tpu.matmul %38, %48, %cst_38 {dimension_numbers = #tpu.dot_dimension_numbers<[1], [0], [0], [1], [0, 0, 1, 1], [], []>} : vector<32x12xf32>, vector<12x1536xf32>, vector<32x1536xf32> -> vector<32x1536xf32>
    %c0_39 = arith.constant 0 : index
    %c0_40 = arith.constant 0 : index
    %50 = vector.load %arg15[%c0_39, %c0_40] : memref<32x1536xf32, #tpu.memory_space<vmem>>, vector<32x1536xf32>
    %cst_41 = arith.constant dense<0.000000e+00> : vector<32x1536xf32>
    %51 = tpu.matmul %30, %49, %cst_41 {dimension_numbers = #tpu.dot_dimension_numbers<[1], [0], [0], [1], [0, 0, 1, 1], [], []>} : vector<32x32xf32>, vector<32x1536xf32>, vector<32x1536xf32> -> vector<32x1536xf32>
    %52 = arith.addf %50, %51 : vector<32x1536xf32>
    %c0_42 = arith.constant 0 : index
    %c0_43 = arith.constant 0 : index
    %53 = vector.load %arg15[%c0_42, %c0_43] : memref<32x1536xf32, #tpu.memory_space<vmem>>, vector<32x1536xf32>
    tpu.vector_store %arg15[%c0_42, %c0_43], %52 {strides = array<i32>} : memref<32x1536xf32, #tpu.memory_space<vmem>>, vector<32x1536xf32>,
    %c0_44 = arith.constant 0 : index
    %c0_45 = arith.constant 0 : index
    %54 = vector.load %arg9[%c0_44, %c0_45] : memref<32x384xbf16, #tpu.memory_space<vmem>>, vector<32x384xbf16>
    %c0_46 = arith.constant 0 : index
    %c0_47 = arith.constant 0 : index
    %55 = vector.load %arg10[%c0_46, %c0_47] : memref<1x128xf32, #tpu.memory_space<vmem>>, vector<1x128xf32>
    %c0_48 = arith.constant 0 : index
    %c0_49 = arith.constant 0 : index
    %56 = vector.load %arg12[%c0_48, %c0_49] : memref<1x128xf32, #tpu.memory_space<vmem>>, vector<1x128xf32>
    %cst_50 = arith.constant 0.000000e+00 : f32
    %57 = vector.broadcast %cst_50 : f32 to vector<32x32xf32>
    %cst_51 = arith.constant 0.000000e+00 : f32
    %58 = vector.broadcast %cst_51 : f32 to vector<32x32xf32>
    %cst_52 = arith.constant 0.000000e+00 : f32
    %59 = vector.broadcast %cst_52 : f32 to vector<32x128xf32>
    %60 = arith.truncf %57 : vector<32x32xf32> to vector<32x32xbf16>
    %cst_53 = arith.constant dense<0.000000e+00> : vector<32x384xf32>
    %61 = tpu.matmul %60, %54, %cst_53 {dimension_numbers = #tpu.dot_dimension_numbers<[1], [0], [0], [1], [0, 0, 1, 1], [], []>} : vector<32x32xbf16>, vector<32x384xbf16>, vector<32x384xf32> -> vector<32x384xf32>
    %c0_54 = arith.constant 0 : index
    %c0_55 = arith.constant 0 : index
    %62 = vector.load %arg15[%c0_54, %c0_55] : memref<32x1536xf32, #tpu.memory_space<vmem>>, vector<32x128xf32>
    %63 = vector.broadcast %55 : vector<1x128xf32> to vector<32x128xf32>
    %64 = arith.addf %62, %63 : vector<32x128xf32>
    %65 = vector.extract_strided_slice %61 {offsets = [0, 0], sizes = [32, 128], strides = [1, 1]} : vector<32x384xf32> to vector<32x128xf32>
    %66 = arith.addf %64, %65 : vector<32x128xf32>
    %67 = vector.extract_strided_slice %61 {offsets = [0, 128], sizes = [32, 128], strides = [1, 1]} : vector<32x384xf32> to vector<32x128xf32>
    %68 = arith.truncf %67 : vector<32x128xf32> to vector<32x128xbf16>
    %cst_56 = arith.constant dense<0.000000e+00> : vector<32x128xf32>
    %69 = tpu.matmul %27, %68, %cst_56 {dimension_numbers = #tpu.dot_dimension_numbers<[1], [0], [0], [1], [0, 0, 1, 1], [], []>} : vector<32x32xbf16>, vector<32x128xbf16>, vector<32x128xf32> -> vector<32x128xf32>
    %70 = arith.addf %66, %69 : vector<32x128xf32>
    %71 = vector.extract_strided_slice %61 {offsets = [0, 256], sizes = [32, 128], strides = [1, 1]} : vector<32x384xf32> to vector<32x128xf32>
    %72 = arith.truncf %71 : vector<32x128xf32> to vector<32x128xbf16>
    %cst_57 = arith.constant dense<0.000000e+00> : vector<32x128xf32>
    %73 = tpu.matmul %31, %72, %cst_57 {dimension_numbers = #tpu.dot_dimension_numbers<[1], [0], [0], [1], [0, 0, 1, 1], [], []>} : vector<32x32xbf16>, vector<32x128xbf16>, vector<32x128xf32> -> vector<32x128xf32>
    %74 = arith.addf %70, %73 : vector<32x128xf32>
    %75 = vector.extract_strided_slice %74 {offsets = [0, 0], sizes = [32, 96], strides = [1, 1]} : vector<32x128xf32> to vector<32x96xf32>
    %76 = arith.negf %75 : vector<32x96xf32>
    %77 = math.exp %76 : vector<32x96xf32>
    %cst_58 = arith.constant 1.000000e+00 : f32
    %78 = vector.broadcast %cst_58 : f32 to vector<32x96xf32>
    %79 = arith.addf %78, %77 : vector<32x96xf32>
    %80 = arith.divf %78, %79 : vector<32x96xf32>
    %81 = vector.extract_strided_slice %80 {offsets = [0, 0], sizes = [32, 32], strides = [1, 1]} : vector<32x96xf32> to vector<32x32xf32>
    %82 = vector.extract_strided_slice %80 {offsets = [0, 32], sizes = [32, 32], strides = [1, 1]} : vector<32x96xf32> to vector<32x32xf32>
    %83 = vector.extract_strided_slice %80 {offsets = [0, 64], sizes = [32, 32], strides = [1, 1]} : vector<32x96xf32> to vector<32x32xf32>
    %84 = vector.extract_strided_slice %74 {offsets = [0, 96], sizes = [32, 32], strides = [1, 1]} : vector<32x128xf32> to vector<32x32xf32>
    %85 = math.tanh %84 : vector<32x32xf32>
    %86 = arith.mulf %58, %82 : vector<32x32xf32>
    %87 = arith.mulf %81, %85 : vector<32x32xf32>
    %88 = arith.addf %86, %87 : vector<32x32xf32>
    %89 = math.tanh %88 : vector<32x32xf32>
    %90 = arith.mulf %89, %83 : vector<32x32xf32>
    %91 = arith.truncf %90 : vector<32x32xf32> to vector<32x32xbf16>
    %c0_59 = arith.constant 0 : index
    %c0_60 = arith.constant 0 : index
    %92 = vector.load %arg11[%c0_59, %c0_60] : memref<384x128xbf16, #tpu.memory_space<vmem>>, vector<32x128xbf16>
    %cst_61 = arith.constant dense<0.000000e+00> : vector<32x128xf32>
    %93 = tpu.matmul %91, %92, %cst_61 {dimension_numbers = #tpu.dot_dimension_numbers<[1], [0], [0], [1], [0, 0, 1, 1], [], []>} : vector<32x32xbf16>, vector<32x128xbf16>, vector<32x128xf32> -> vector<32x128xf32>
    %94 = arith.addf %59, %93 : vector<32x128xf32>
    %95 = arith.truncf %90 : vector<32x32xf32> to vector<32x32xbf16>
    %cst_62 = arith.constant dense<0.000000e+00> : vector<32x384xf32>
    %96 = tpu.matmul %95, %54, %cst_62 {dimension_numbers = #tpu.dot_dimension_numbers<[1], [0], [0], [1], [0, 0, 1, 1], [], []>} : vector<32x32xbf16>, vector<32x384xbf16>, vector<32x384xf32> -> vector<32x384xf32>
    %c0_63 = arith.constant 0 : index
    %c128 = arith.constant 128 : index
    %97 = vector.load %arg15[%c0_63, %c128] : memref<32x1536xf32, #tpu.memory_space<vmem>>, vector<32x128xf32>
    %98 = vector.broadcast %55 : vector<1x128xf32> to vector<32x128xf32>
    %99 = arith.addf %97, %98 : vector<32x128xf32>
    %100 = vector.extract_strided_slice %96 {offsets = [0, 0], sizes = [32, 128], strides = [1, 1]} : vector<32x384xf32> to vector<32x128xf32>
    %101 = arith.addf %99, %100 : vector<32x128xf32>
    %102 = vector.extract_strided_slice %96 {offsets = [0, 128], sizes = [32, 128], strides = [1, 1]} : vector<32x384xf32> to vector<32x128xf32>
    %103 = arith.truncf %102 : vector<32x128xf32> to vector<32x128xbf16>
    %cst_64 = arith.constant dense<0.000000e+00> : vector<32x128xf32>
    %104 = tpu.matmul %27, %103, %cst_64 {dimension_numbers = #tpu.dot_dimension_numbers<[1], [0], [0], [1], [0, 0, 1, 1], [], []>} : vector<32x32xbf16>, vector<32x128xbf16>, vector<32x128xf32> -> vector<32x128xf32>
    %105 = arith.addf %101, %104 : vector<32x128xf32>
    %106 = vector.extract_strided_slice %96 {offsets = [0, 256], sizes = [32, 128], strides = [1, 1]} : vector<32x384xf32> to vector<32x128xf32>
    %107 = arith.truncf %106 : vector<32x128xf32> to vector<32x128xbf16>
    %cst_65 = arith.constant dense<0.000000e+00> : vector<32x128xf32>
    %108 = tpu.matmul %31, %107, %cst_65 {dimension_numbers = #tpu.dot_dimension_numbers<[1], [0], [0], [1], [0, 0, 1, 1], [], []>} : vector<32x32xbf16>, vector<32x128xbf16>, vector<32x128xf32> -> vector<32x128xf32>
    %109 = arith.addf %105, %108 : vector<32x128xf32>
    %110 = vector.extract_strided_slice %109 {offsets = [0, 0], sizes = [32, 96], strides = [1, 1]} : vector<32x128xf32> to vector<32x96xf32>
    %111 = arith.negf %110 : vector<32x96xf32>
    %112 = math.exp %111 : vector<32x96xf32>
    %cst_66 = arith.constant 1.000000e+00 : f32
    %113 = vector.broadcast %cst_66 : f32 to vector<32x96xf32>
    %114 = arith.addf %113, %112 : vector<32x96xf32>
    %115 = arith.divf %113, %114 : vector<32x96xf32>
    %116 = vector.extract_strided_slice %115 {offsets = [0, 0], sizes = [32, 32], strides = [1, 1]} : vector<32x96xf32> to vector<32x32xf32>
    %117 = vector.extract_strided_slice %115 {offsets = [0, 32], sizes = [32, 32], strides = [1, 1]} : vector<32x96xf32> to vector<32x32xf32>
    %118 = vector.extract_strided_slice %115 {offsets = [0, 64], sizes = [32, 32], strides = [1, 1]} : vector<32x96xf32> to vector<32x32xf32>
    %119 = vector.extract_strided_slice %109 {offsets = [0, 96], sizes = [32, 32], strides = [1, 1]} : vector<32x128xf32> to vector<32x32xf32>
    %120 = math.tanh %119 : vector<32x32xf32>
    %121 = arith.mulf %88, %117 : vector<32x32xf32>
    %122 = arith.mulf %116, %120 : vector<32x32xf32>
    %123 = arith.addf %121, %122 : vector<32x32xf32>
    %124 = math.tanh %123 : vector<32x32xf32>
    %125 = arith.mulf %124, %118 : vector<32x32xf32>
    %126 = arith.truncf %125 : vector<32x32xf32> to vector<32x32xbf16>
    %c32 = arith.constant 32 : index
    %c0_67 = arith.constant 0 : index
    %127 = vector.load %arg11[%c32, %c0_67] : memref<384x128xbf16, #tpu.memory_space<vmem>>, vector<32x128xbf16>
    %cst_68 = arith.constant dense<0.000000e+00> : vector<32x128xf32>
    %128 = tpu.matmul %126, %127, %cst_68 {dimension_numbers = #tpu.dot_dimension_numbers<[1], [0], [0], [1], [0, 0, 1, 1], [], []>} : vector<32x32xbf16>, vector<32x128xbf16>, vector<32x128xf32> -> vector<32x128xf32>
    %129 = arith.addf %94, %128 : vector<32x128xf32>
    %130 = arith.truncf %125 : vector<32x32xf32> to vector<32x32xbf16>
    %cst_69 = arith.constant dense<0.000000e+00> : vector<32x384xf32>
    %131 = tpu.matmul %130, %54, %cst_69 {dimension_numbers = #tpu.dot_dimension_numbers<[1], [0], [0], [1], [0, 0, 1, 1], [], []>} : vector<32x32xbf16>, vector<32x384xbf16>, vector<32x384xf32> -> vector<32x384xf32>
    %c0_70 = arith.constant 0 : index
    %c256 = arith.constant 256 : index
    %132 = vector.load %arg15[%c0_70, %c256] : memref<32x1536xf32, #tpu.memory_space<vmem>>, vector<32x128xf32>
    %133 = vector.broadcast %55 : vector<1x128xf32> to vector<32x128xf32>
    %134 = arith.addf %132, %133 : vector<32x128xf32>
    %135 = vector.extract_strided_slice %131 {offsets = [0, 0], sizes = [32, 128], strides = [1, 1]} : vector<32x384xf32> to vector<32x128xf32>
    %136 = arith.addf %134, %135 : vector<32x128xf32>
    %137 = vector.extract_strided_slice %131 {offsets = [0, 128], sizes = [32, 128], strides = [1, 1]} : vector<32x384xf32> to vector<32x128xf32>
    %138 = arith.truncf %137 : vector<32x128xf32> to vector<32x128xbf16>
    %cst_71 = arith.constant dense<0.000000e+00> : vector<32x128xf32>
    %139 = tpu.matmul %27, %138, %cst_71 {dimension_numbers = #tpu.dot_dimension_numbers<[1], [0], [0], [1], [0, 0, 1, 1], [], []>} : vector<32x32xbf16>, vector<32x128xbf16>, vector<32x128xf32> -> vector<32x128xf32>
    %140 = arith.addf %136, %139 : vector<32x128xf32>
    %141 = vector.extract_strided_slice %131 {offsets = [0, 256], sizes = [32, 128], strides = [1, 1]} : vector<32x384xf32> to vector<32x128xf32>
    %142 = arith.truncf %141 : vector<32x128xf32> to vector<32x128xbf16>
    %cst_72 = arith.constant dense<0.000000e+00> : vector<32x128xf32>
    %143 = tpu.matmul %31, %142, %cst_72 {dimension_numbers = #tpu.dot_dimension_numbers<[1], [0], [0], [1], [0, 0, 1, 1], [], []>} : vector<32x32xbf16>, vector<32x128xbf16>, vector<32x128xf32> -> vector<32x128xf32>
    %144 = arith.addf %140, %143 : vector<32x128xf32>
    %145 = vector.extract_strided_slice %144 {offsets = [0, 0], sizes = [32, 96], strides = [1, 1]} : vector<32x128xf32> to vector<32x96xf32>
    %146 = arith.negf %145 : vector<32x96xf32>
    %147 = math.exp %146 : vector<32x96xf32>
    %cst_73 = arith.constant 1.000000e+00 : f32
    %148 = vector.broadcast %cst_73 : f32 to vector<32x96xf32>
    %149 = arith.addf %148, %147 : vector<32x96xf32>
    %150 = arith.divf %148, %149 : vector<32x96xf32>
    %151 = vector.extract_strided_slice %150 {offsets = [0, 0], sizes = [32, 32], strides = [1, 1]} : vector<32x96xf32> to vector<32x32xf32>
    %152 = vector.extract_strided_slice %150 {offsets = [0, 32], sizes = [32, 32], strides = [1, 1]} : vector<32x96xf32> to vector<32x32xf32>
    %153 = vector.extract_strided_slice %150 {offsets = [0, 64], sizes = [32, 32], strides = [1, 1]} : vector<32x96xf32> to vector<32x32xf32>
    %154 = vector.extract_strided_slice %144 {offsets = [0, 96], sizes = [32, 32], strides = [1, 1]} : vector<32x128xf32> to vector<32x32xf32>
    %155 = math.tanh %154 : vector<32x32xf32>
    %156 = arith.mulf %123, %152 : vector<32x32xf32>
    %157 = arith.mulf %151, %155 : vector<32x32xf32>
    %158 = arith.addf %156, %157 : vector<32x32xf32>
    %159 = math.tanh %158 : vector<32x32xf32>
    %160 = arith.mulf %159, %153 : vector<32x32xf32>
    %161 = arith.truncf %160 : vector<32x32xf32> to vector<32x32xbf16>
    %c64 = arith.constant 64 : index
    %c0_74 = arith.constant 0 : index
    %162 = vector.load %arg11[%c64, %c0_74] : memref<384x128xbf16, #tpu.memory_space<vmem>>, vector<32x128xbf16>
    %cst_75 = arith.constant dense<0.000000e+00> : vector<32x128xf32>
    %163 = tpu.matmul %161, %162, %cst_75 {dimension_numbers = #tpu.dot_dimension_numbers<[1], [0], [0], [1], [0, 0, 1, 1], [], []>} : vector<32x32xbf16>, vector<32x128xbf16>, vector<32x128xf32> -> vector<32x128xf32>
    %164 = arith.addf %129, %163 : vector<32x128xf32>
    %165 = arith.truncf %160 : vector<32x32xf32> to vector<32x32xbf16>
    %cst_76 = arith.constant dense<0.000000e+00> : vector<32x384xf32>
    %166 = tpu.matmul %165, %54, %cst_76 {dimension_numbers = #tpu.dot_dimension_numbers<[1], [0], [0], [1], [0, 0, 1, 1], [], []>} : vector<32x32xbf16>, vector<32x384xbf16>, vector<32x384xf32> -> vector<32x384xf32>
    %c0_77 = arith.constant 0 : index
    %c384 = arith.constant 384 : index
    %167 = vector.load %arg15[%c0_77, %c384] : memref<32x1536xf32, #tpu.memory_space<vmem>>, vector<32x128xf32>
    %168 = vector.broadcast %55 : vector<1x128xf32> to vector<32x128xf32>
    %169 = arith.addf %167, %168 : vector<32x128xf32>
    %170 = vector.extract_strided_slice %166 {offsets = [0, 0], sizes = [32, 128], strides = [1, 1]} : vector<32x384xf32> to vector<32x128xf32>
    %171 = arith.addf %169, %170 : vector<32x128xf32>
    %172 = vector.extract_strided_slice %166 {offsets = [0, 128], sizes = [32, 128], strides = [1, 1]} : vector<32x384xf32> to vector<32x128xf32>
    %173 = arith.truncf %172 : vector<32x128xf32> to vector<32x128xbf16>
    %cst_78 = arith.constant dense<0.000000e+00> : vector<32x128xf32>
    %174 = tpu.matmul %27, %173, %cst_78 {dimension_numbers = #tpu.dot_dimension_numbers<[1], [0], [0], [1], [0, 0, 1, 1], [], []>} : vector<32x32xbf16>, vector<32x128xbf16>, vector<32x128xf32> -> vector<32x128xf32>
    %175 = arith.addf %171, %174 : vector<32x128xf32>
    %176 = vector.extract_strided_slice %166 {offsets = [0, 256], sizes = [32, 128], strides = [1, 1]} : vector<32x384xf32> to vector<32x128xf32>
    %177 = arith.truncf %176 : vector<32x128xf32> to vector<32x128xbf16>
    %cst_79 = arith.constant dense<0.000000e+00> : vector<32x128xf32>
    %178 = tpu.matmul %31, %177, %cst_79 {dimension_numbers = #tpu.dot_dimension_numbers<[1], [0], [0], [1], [0, 0, 1, 1], [], []>} : vector<32x32xbf16>, vector<32x128xbf16>, vector<32x128xf32> -> vector<32x128xf32>
    %179 = arith.addf %175, %178 : vector<32x128xf32>
    %180 = vector.extract_strided_slice %179 {offsets = [0, 0], sizes = [32, 96], strides = [1, 1]} : vector<32x128xf32> to vector<32x96xf32>
    %181 = arith.negf %180 : vector<32x96xf32>
    %182 = math.exp %181 : vector<32x96xf32>
    %cst_80 = arith.constant 1.000000e+00 : f32
    %183 = vector.broadcast %cst_80 : f32 to vector<32x96xf32>
    %184 = arith.addf %183, %182 : vector<32x96xf32>
    %185 = arith.divf %183, %184 : vector<32x96xf32>
    %186 = vector.extract_strided_slice %185 {offsets = [0, 0], sizes = [32, 32], strides = [1, 1]} : vector<32x96xf32> to vector<32x32xf32>
    %187 = vector.extract_strided_slice %185 {offsets = [0, 32], sizes = [32, 32], strides = [1, 1]} : vector<32x96xf32> to vector<32x32xf32>
    %188 = vector.extract_strided_slice %185 {offsets = [0, 64], sizes = [32, 32], strides = [1, 1]} : vector<32x96xf32> to vector<32x32xf32>
    %189 = vector.extract_strided_slice %179 {offsets = [0, 96], sizes = [32, 32], strides = [1, 1]} : vector<32x128xf32> to vector<32x32xf32>
    %190 = math.tanh %189 : vector<32x32xf32>
    %191 = arith.mulf %158, %187 : vector<32x32xf32>
    %192 = arith.mulf %186, %190 : vector<32x32xf32>
    %193 = arith.addf %191, %192 : vector<32x32xf32>
    %194 = math.tanh %193 : vector<32x32xf32>
    %195 = arith.mulf %194, %188 : vector<32x32xf32>
    %196 = arith.truncf %195 : vector<32x32xf32> to vector<32x32xbf16>
    %c96 = arith.constant 96 : index
    %c0_81 = arith.constant 0 : index
    %197 = vector.load %arg11[%c96, %c0_81] : memref<384x128xbf16, #tpu.memory_space<vmem>>, vector<32x128xbf16>
    %cst_82 = arith.constant dense<0.000000e+00> : vector<32x128xf32>
    %198 = tpu.matmul %196, %197, %cst_82 {dimension_numbers = #tpu.dot_dimension_numbers<[1], [0], [0], [1], [0, 0, 1, 1], [], []>} : vector<32x32xbf16>, vector<32x128xbf16>, vector<32x128xf32> -> vector<32x128xf32>
    %199 = arith.addf %164, %198 : vector<32x128xf32>
    %200 = arith.truncf %195 : vector<32x32xf32> to vector<32x32xbf16>
    %cst_83 = arith.constant dense<0.000000e+00> : vector<32x384xf32>
    %201 = tpu.matmul %200, %54, %cst_83 {dimension_numbers = #tpu.dot_dimension_numbers<[1], [0], [0], [1], [0, 0, 1, 1], [], []>} : vector<32x32xbf16>, vector<32x384xbf16>, vector<32x384xf32> -> vector<32x384xf32>
    %c0_84 = arith.constant 0 : index
    %c512 = arith.constant 512 : index
    %202 = vector.load %arg15[%c0_84, %c512] : memref<32x1536xf32, #tpu.memory_space<vmem>>, vector<32x128xf32>
    %203 = vector.broadcast %55 : vector<1x128xf32> to vector<32x128xf32>
    %204 = arith.addf %202, %203 : vector<32x128xf32>
    %205 = vector.extract_strided_slice %201 {offsets = [0, 0], sizes = [32, 128], strides = [1, 1]} : vector<32x384xf32> to vector<32x128xf32>
    %206 = arith.addf %204, %205 : vector<32x128xf32>
    %207 = vector.extract_strided_slice %201 {offsets = [0, 128], sizes = [32, 128], strides = [1, 1]} : vector<32x384xf32> to vector<32x128xf32>
    %208 = arith.truncf %207 : vector<32x128xf32> to vector<32x128xbf16>
    %cst_85 = arith.constant dense<0.000000e+00> : vector<32x128xf32>
    %209 = tpu.matmul %27, %208, %cst_85 {dimension_numbers = #tpu.dot_dimension_numbers<[1], [0], [0], [1], [0, 0, 1, 1], [], []>} : vector<32x32xbf16>, vector<32x128xbf16>, vector<32x128xf32> -> vector<32x128xf32>
    %210 = arith.addf %206, %209 : vector<32x128xf32>
    %211 = vector.extract_strided_slice %201 {offsets = [0, 256], sizes = [32, 128], strides = [1, 1]} : vector<32x384xf32> to vector<32x128xf32>
    %212 = arith.truncf %211 : vector<32x128xf32> to vector<32x128xbf16>
    %cst_86 = arith.constant dense<0.000000e+00> : vector<32x128xf32>
    %213 = tpu.matmul %31, %212, %cst_86 {dimension_numbers = #tpu.dot_dimension_numbers<[1], [0], [0], [1], [0, 0, 1, 1], [], []>} : vector<32x32xbf16>, vector<32x128xbf16>, vector<32x128xf32> -> vector<32x128xf32>
    %214 = arith.addf %210, %213 : vector<32x128xf32>
    %215 = vector.extract_strided_slice %214 {offsets = [0, 0], sizes = [32, 96], strides = [1, 1]} : vector<32x128xf32> to vector<32x96xf32>
    %216 = arith.negf %215 : vector<32x96xf32>
    %217 = math.exp %216 : vector<32x96xf32>
    %cst_87 = arith.constant 1.000000e+00 : f32
    %218 = vector.broadcast %cst_87 : f32 to vector<32x96xf32>
    %219 = arith.addf %218, %217 : vector<32x96xf32>
    %220 = arith.divf %218, %219 : vector<32x96xf32>
    %221 = vector.extract_strided_slice %220 {offsets = [0, 0], sizes = [32, 32], strides = [1, 1]} : vector<32x96xf32> to vector<32x32xf32>
    %222 = vector.extract_strided_slice %220 {offsets = [0, 32], sizes = [32, 32], strides = [1, 1]} : vector<32x96xf32> to vector<32x32xf32>
    %223 = vector.extract_strided_slice %220 {offsets = [0, 64], sizes = [32, 32], strides = [1, 1]} : vector<32x96xf32> to vector<32x32xf32>
    %224 = vector.extract_strided_slice %214 {offsets = [0, 96], sizes = [32, 32], strides = [1, 1]} : vector<32x128xf32> to vector<32x32xf32>
    %225 = math.tanh %224 : vector<32x32xf32>
    %226 = arith.mulf %193, %222 : vector<32x32xf32>
    %227 = arith.mulf %221, %225 : vector<32x32xf32>
    %228 = arith.addf %226, %227 : vector<32x32xf32>
    %229 = math.tanh %228 : vector<32x32xf32>
    %230 = arith.mulf %229, %223 : vector<32x32xf32>
    %231 = arith.truncf %230 : vector<32x32xf32> to vector<32x32xbf16>
    %c128_88 = arith.constant 128 : index
    %c0_89 = arith.constant 0 : index
    %232 = vector.load %arg11[%c128_88, %c0_89] : memref<384x128xbf16, #tpu.memory_space<vmem>>, vector<32x128xbf16>
    %cst_90 = arith.constant dense<0.000000e+00> : vector<32x128xf32>
    %233 = tpu.matmul %231, %232, %cst_90 {dimension_numbers = #tpu.dot_dimension_numbers<[1], [0], [0], [1], [0, 0, 1, 1], [], []>} : vector<32x32xbf16>, vector<32x128xbf16>, vector<32x128xf32> -> vector<32x128xf32>
    %234 = arith.addf %199, %233 : vector<32x128xf32>
    %235 = arith.truncf %230 : vector<32x32xf32> to vector<32x32xbf16>
    %cst_91 = arith.constant dense<0.000000e+00> : vector<32x384xf32>
    %236 = tpu.matmul %235, %54, %cst_91 {dimension_numbers = #tpu.dot_dimension_numbers<[1], [0], [0], [1], [0, 0, 1, 1], [], []>} : vector<32x32xbf16>, vector<32x384xbf16>, vector<32x384xf32> -> vector<32x384xf32>
    %c0_92 = arith.constant 0 : index
    %c640 = arith.constant 640 : index
    %237 = vector.load %arg15[%c0_92, %c640] : memref<32x1536xf32, #tpu.memory_space<vmem>>, vector<32x128xf32>
    %238 = vector.broadcast %55 : vector<1x128xf32> to vector<32x128xf32>
    %239 = arith.addf %237, %238 : vector<32x128xf32>
    %240 = vector.extract_strided_slice %236 {offsets = [0, 0], sizes = [32, 128], strides = [1, 1]} : vector<32x384xf32> to vector<32x128xf32>
    %241 = arith.addf %239, %240 : vector<32x128xf32>
    %242 = vector.extract_strided_slice %236 {offsets = [0, 128], sizes = [32, 128], strides = [1, 1]} : vector<32x384xf32> to vector<32x128xf32>
    %243 = arith.truncf %242 : vector<32x128xf32> to vector<32x128xbf16>
    %cst_93 = arith.constant dense<0.000000e+00> : vector<32x128xf32>
    %244 = tpu.matmul %27, %243, %cst_93 {dimension_numbers = #tpu.dot_dimension_numbers<[1], [0], [0], [1], [0, 0, 1, 1], [], []>} : vector<32x32xbf16>, vector<32x128xbf16>, vector<32x128xf32> -> vector<32x128xf32>
    %245 = arith.addf %241, %244 : vector<32x128xf32>
    %246 = vector.extract_strided_slice %236 {offsets = [0, 256], sizes = [32, 128], strides = [1, 1]} : vector<32x384xf32> to vector<32x128xf32>
    %247 = arith.truncf %246 : vector<32x128xf32> to vector<32x128xbf16>
    %cst_94 = arith.constant dense<0.000000e+00> : vector<32x128xf32>
    %248 = tpu.matmul %31, %247, %cst_94 {dimension_numbers = #tpu.dot_dimension_numbers<[1], [0], [0], [1], [0, 0, 1, 1], [], []>} : vector<32x32xbf16>, vector<32x128xbf16>, vector<32x128xf32> -> vector<32x128xf32>
    %249 = arith.addf %245, %248 : vector<32x128xf32>
    %250 = vector.extract_strided_slice %249 {offsets = [0, 0], sizes = [32, 96], strides = [1, 1]} : vector<32x128xf32> to vector<32x96xf32>
    %251 = arith.negf %250 : vector<32x96xf32>
    %252 = math.exp %251 : vector<32x96xf32>
    %cst_95 = arith.constant 1.000000e+00 : f32
    %253 = vector.broadcast %cst_95 : f32 to vector<32x96xf32>
    %254 = arith.addf %253, %252 : vector<32x96xf32>
    %255 = arith.divf %253, %254 : vector<32x96xf32>
    %256 = vector.extract_strided_slice %255 {offsets = [0, 0], sizes = [32, 32], strides = [1, 1]} : vector<32x96xf32> to vector<32x32xf32>
    %257 = vector.extract_strided_slice %255 {offsets = [0, 32], sizes = [32, 32], strides = [1, 1]} : vector<32x96xf32> to vector<32x32xf32>
    %258 = vector.extract_strided_slice %255 {offsets = [0, 64], sizes = [32, 32], strides = [1, 1]} : vector<32x96xf32> to vector<32x32xf32>
    %259 = vector.extract_strided_slice %249 {offsets = [0, 96], sizes = [32, 32], strides = [1, 1]} : vector<32x128xf32> to vector<32x32xf32>
    %260 = math.tanh %259 : vector<32x32xf32>
    %261 = arith.mulf %228, %257 : vector<32x32xf32>
    %262 = arith.mulf %256, %260 : vector<32x32xf32>
    %263 = arith.addf %261, %262 : vector<32x32xf32>
    %264 = math.tanh %263 : vector<32x32xf32>
    %265 = arith.mulf %264, %258 : vector<32x32xf32>
    %266 = arith.truncf %265 : vector<32x32xf32> to vector<32x32xbf16>
    %c160 = arith.constant 160 : index
    %c0_96 = arith.constant 0 : index
    %267 = vector.load %arg11[%c160, %c0_96] : memref<384x128xbf16, #tpu.memory_space<vmem>>, vector<32x128xbf16>
    %cst_97 = arith.constant dense<0.000000e+00> : vector<32x128xf32>
    %268 = tpu.matmul %266, %267, %cst_97 {dimension_numbers = #tpu.dot_dimension_numbers<[1], [0], [0], [1], [0, 0, 1, 1], [], []>} : vector<32x32xbf16>, vector<32x128xbf16>, vector<32x128xf32> -> vector<32x128xf32>
    %269 = arith.addf %234, %268 : vector<32x128xf32>
    %270 = arith.truncf %265 : vector<32x32xf32> to vector<32x32xbf16>
    %cst_98 = arith.constant dense<0.000000e+00> : vector<32x384xf32>
    %271 = tpu.matmul %270, %54, %cst_98 {dimension_numbers = #tpu.dot_dimension_numbers<[1], [0], [0], [1], [0, 0, 1, 1], [], []>} : vector<32x32xbf16>, vector<32x384xbf16>, vector<32x384xf32> -> vector<32x384xf32>
    %c0_99 = arith.constant 0 : index
    %c768 = arith.constant 768 : index
    %272 = vector.load %arg15[%c0_99, %c768] : memref<32x1536xf32, #tpu.memory_space<vmem>>, vector<32x128xf32>
    %273 = vector.broadcast %55 : vector<1x128xf32> to vector<32x128xf32>
    %274 = arith.addf %272, %273 : vector<32x128xf32>
    %275 = vector.extract_strided_slice %271 {offsets = [0, 0], sizes = [32, 128], strides = [1, 1]} : vector<32x384xf32> to vector<32x128xf32>
    %276 = arith.addf %274, %275 : vector<32x128xf32>
    %277 = vector.extract_strided_slice %271 {offsets = [0, 128], sizes = [32, 128], strides = [1, 1]} : vector<32x384xf32> to vector<32x128xf32>
    %278 = arith.truncf %277 : vector<32x128xf32> to vector<32x128xbf16>
    %cst_100 = arith.constant dense<0.000000e+00> : vector<32x128xf32>
    %279 = tpu.matmul %27, %278, %cst_100 {dimension_numbers = #tpu.dot_dimension_numbers<[1], [0], [0], [1], [0, 0, 1, 1], [], []>} : vector<32x32xbf16>, vector<32x128xbf16>, vector<32x128xf32> -> vector<32x128xf32>
    %280 = arith.addf %276, %279 : vector<32x128xf32>
    %281 = vector.extract_strided_slice %271 {offsets = [0, 256], sizes = [32, 128], strides = [1, 1]} : vector<32x384xf32> to vector<32x128xf32>
    %282 = arith.truncf %281 : vector<32x128xf32> to vector<32x128xbf16>
    %cst_101 = arith.constant dense<0.000000e+00> : vector<32x128xf32>
    %283 = tpu.matmul %31, %282, %cst_101 {dimension_numbers = #tpu.dot_dimension_numbers<[1], [0], [0], [1], [0, 0, 1, 1], [], []>} : vector<32x32xbf16>, vector<32x128xbf16>, vector<32x128xf32> -> vector<32x128xf32>
    %284 = arith.addf %280, %283 : vector<32x128xf32>
    %285 = vector.extract_strided_slice %284 {offsets = [0, 0], sizes = [32, 96], strides = [1, 1]} : vector<32x128xf32> to vector<32x96xf32>
    %286 = arith.negf %285 : vector<32x96xf32>
    %287 = math.exp %286 : vector<32x96xf32>
    %cst_102 = arith.constant 1.000000e+00 : f32
    %288 = vector.broadcast %cst_102 : f32 to vector<32x96xf32>
    %289 = arith.addf %288, %287 : vector<32x96xf32>
    %290 = arith.divf %288, %289 : vector<32x96xf32>
    %291 = vector.extract_strided_slice %290 {offsets = [0, 0], sizes = [32, 32], strides = [1, 1]} : vector<32x96xf32> to vector<32x32xf32>
    %292 = vector.extract_strided_slice %290 {offsets = [0, 32], sizes = [32, 32], strides = [1, 1]} : vector<32x96xf32> to vector<32x32xf32>
    %293 = vector.extract_strided_slice %290 {offsets = [0, 64], sizes = [32, 32], strides = [1, 1]} : vector<32x96xf32> to vector<32x32xf32>
    %294 = vector.extract_strided_slice %284 {offsets = [0, 96], sizes = [32, 32], strides = [1, 1]} : vector<32x128xf32> to vector<32x32xf32>
    %295 = math.tanh %294 : vector<32x32xf32>
    %296 = arith.mulf %263, %292 : vector<32x32xf32>
    %297 = arith.mulf %291, %295 : vector<32x32xf32>
    %298 = arith.addf %296, %297 : vector<32x32xf32>
    %299 = math.tanh %298 : vector<32x32xf32>
    %300 = arith.mulf %299, %293 : vector<32x32xf32>
    %301 = arith.truncf %300 : vector<32x32xf32> to vector<32x32xbf16>
    %c192 = arith.constant 192 : index
    %c0_103 = arith.constant 0 : index
    %302 = vector.load %arg11[%c192, %c0_103] : memref<384x128xbf16, #tpu.memory_space<vmem>>, vector<32x128xbf16>
    %cst_104 = arith.constant dense<0.000000e+00> : vector<32x128xf32>
    %303 = tpu.matmul %301, %302, %cst_104 {dimension_numbers = #tpu.dot_dimension_numbers<[1], [0], [0], [1], [0, 0, 1, 1], [], []>} : vector<32x32xbf16>, vector<32x128xbf16>, vector<32x128xf32> -> vector<32x128xf32>
    %304 = arith.addf %269, %303 : vector<32x128xf32>
    %305 = arith.truncf %300 : vector<32x32xf32> to vector<32x32xbf16>
    %cst_105 = arith.constant dense<0.000000e+00> : vector<32x384xf32>
    %306 = tpu.matmul %305, %54, %cst_105 {dimension_numbers = #tpu.dot_dimension_numbers<[1], [0], [0], [1], [0, 0, 1, 1], [], []>} : vector<32x32xbf16>, vector<32x384xbf16>, vector<32x384xf32> -> vector<32x384xf32>
    %c0_106 = arith.constant 0 : index
    %c896 = arith.constant 896 : index
    %307 = vector.load %arg15[%c0_106, %c896] : memref<32x1536xf32, #tpu.memory_space<vmem>>, vector<32x128xf32>
    %308 = vector.broadcast %55 : vector<1x128xf32> to vector<32x128xf32>
    %309 = arith.addf %307, %308 : vector<32x128xf32>
    %310 = vector.extract_strided_slice %306 {offsets = [0, 0], sizes = [32, 128], strides = [1, 1]} : vector<32x384xf32> to vector<32x128xf32>
    %311 = arith.addf %309, %310 : vector<32x128xf32>
    %312 = vector.extract_strided_slice %306 {offsets = [0, 128], sizes = [32, 128], strides = [1, 1]} : vector<32x384xf32> to vector<32x128xf32>
    %313 = arith.truncf %312 : vector<32x128xf32> to vector<32x128xbf16>
    %cst_107 = arith.constant dense<0.000000e+00> : vector<32x128xf32>
    %314 = tpu.matmul %27, %313, %cst_107 {dimension_numbers = #tpu.dot_dimension_numbers<[1], [0], [0], [1], [0, 0, 1, 1], [], []>} : vector<32x32xbf16>, vector<32x128xbf16>, vector<32x128xf32> -> vector<32x128xf32>
    %315 = arith.addf %311, %314 : vector<32x128xf32>
    %316 = vector.extract_strided_slice %306 {offsets = [0, 256], sizes = [32, 128], strides = [1, 1]} : vector<32x384xf32> to vector<32x128xf32>
    %317 = arith.truncf %316 : vector<32x128xf32> to vector<32x128xbf16>
    %cst_108 = arith.constant dense<0.000000e+00> : vector<32x128xf32>
    %318 = tpu.matmul %31, %317, %cst_108 {dimension_numbers = #tpu.dot_dimension_numbers<[1], [0], [0], [1], [0, 0, 1, 1], [], []>} : vector<32x32xbf16>, vector<32x128xbf16>, vector<32x128xf32> -> vector<32x128xf32>
    %319 = arith.addf %315, %318 : vector<32x128xf32>
    %320 = vector.extract_strided_slice %319 {offsets = [0, 0], sizes = [32, 96], strides = [1, 1]} : vector<32x128xf32> to vector<32x96xf32>
    %321 = arith.negf %320 : vector<32x96xf32>
    %322 = math.exp %321 : vector<32x96xf32>
    %cst_109 = arith.constant 1.000000e+00 : f32
    %323 = vector.broadcast %cst_109 : f32 to vector<32x96xf32>
    %324 = arith.addf %323, %322 : vector<32x96xf32>
    %325 = arith.divf %323, %324 : vector<32x96xf32>
    %326 = vector.extract_strided_slice %325 {offsets = [0, 0], sizes = [32, 32], strides = [1, 1]} : vector<32x96xf32> to vector<32x32xf32>
    %327 = vector.extract_strided_slice %325 {offsets = [0, 32], sizes = [32, 32], strides = [1, 1]} : vector<32x96xf32> to vector<32x32xf32>
    %328 = vector.extract_strided_slice %325 {offsets = [0, 64], sizes = [32, 32], strides = [1, 1]} : vector<32x96xf32> to vector<32x32xf32>
    %329 = vector.extract_strided_slice %319 {offsets = [0, 96], sizes = [32, 32], strides = [1, 1]} : vector<32x128xf32> to vector<32x32xf32>
    %330 = math.tanh %329 : vector<32x32xf32>
    %331 = arith.mulf %298, %327 : vector<32x32xf32>
    %332 = arith.mulf %326, %330 : vector<32x32xf32>
    %333 = arith.addf %331, %332 : vector<32x32xf32>
    %334 = math.tanh %333 : vector<32x32xf32>
    %335 = arith.mulf %334, %328 : vector<32x32xf32>
    %336 = arith.truncf %335 : vector<32x32xf32> to vector<32x32xbf16>
    %c224 = arith.constant 224 : index
    %c0_110 = arith.constant 0 : index
    %337 = vector.load %arg11[%c224, %c0_110] : memref<384x128xbf16, #tpu.memory_space<vmem>>, vector<32x128xbf16>
    %cst_111 = arith.constant dense<0.000000e+00> : vector<32x128xf32>
    %338 = tpu.matmul %336, %337, %cst_111 {dimension_numbers = #tpu.dot_dimension_numbers<[1], [0], [0], [1], [0, 0, 1, 1], [], []>} : vector<32x32xbf16>, vector<32x128xbf16>, vector<32x128xf32> -> vector<32x128xf32>
    %339 = arith.addf %304, %338 : vector<32x128xf32>
    %340 = arith.truncf %335 : vector<32x32xf32> to vector<32x32xbf16>
    %cst_112 = arith.constant dense<0.000000e+00> : vector<32x384xf32>
    %341 = tpu.matmul %340, %54, %cst_112 {dimension_numbers = #tpu.dot_dimension_numbers<[1], [0], [0], [1], [0, 0, 1, 1], [], []>} : vector<32x32xbf16>, vector<32x384xbf16>, vector<32x384xf32> -> vector<32x384xf32>
    %c0_113 = arith.constant 0 : index
    %c1024 = arith.constant 1024 : index
    %342 = vector.load %arg15[%c0_113, %c1024] : memref<32x1536xf32, #tpu.memory_space<vmem>>, vector<32x128xf32>
    %343 = vector.broadcast %55 : vector<1x128xf32> to vector<32x128xf32>
    %344 = arith.addf %342, %343 : vector<32x128xf32>
    %345 = vector.extract_strided_slice %341 {offsets = [0, 0], sizes = [32, 128], strides = [1, 1]} : vector<32x384xf32> to vector<32x128xf32>
    %346 = arith.addf %344, %345 : vector<32x128xf32>
    %347 = vector.extract_strided_slice %341 {offsets = [0, 128], sizes = [32, 128], strides = [1, 1]} : vector<32x384xf32> to vector<32x128xf32>
    %348 = arith.truncf %347 : vector<32x128xf32> to vector<32x128xbf16>
    %cst_114 = arith.constant dense<0.000000e+00> : vector<32x128xf32>
    %349 = tpu.matmul %27, %348, %cst_114 {dimension_numbers = #tpu.dot_dimension_numbers<[1], [0], [0], [1], [0, 0, 1, 1], [], []>} : vector<32x32xbf16>, vector<32x128xbf16>, vector<32x128xf32> -> vector<32x128xf32>
    %350 = arith.addf %346, %349 : vector<32x128xf32>
    %351 = vector.extract_strided_slice %341 {offsets = [0, 256], sizes = [32, 128], strides = [1, 1]} : vector<32x384xf32> to vector<32x128xf32>
    %352 = arith.truncf %351 : vector<32x128xf32> to vector<32x128xbf16>
    %cst_115 = arith.constant dense<0.000000e+00> : vector<32x128xf32>
    %353 = tpu.matmul %31, %352, %cst_115 {dimension_numbers = #tpu.dot_dimension_numbers<[1], [0], [0], [1], [0, 0, 1, 1], [], []>} : vector<32x32xbf16>, vector<32x128xbf16>, vector<32x128xf32> -> vector<32x128xf32>
    %354 = arith.addf %350, %353 : vector<32x128xf32>
    %355 = vector.extract_strided_slice %354 {offsets = [0, 0], sizes = [32, 96], strides = [1, 1]} : vector<32x128xf32> to vector<32x96xf32>
    %356 = arith.negf %355 : vector<32x96xf32>
    %357 = math.exp %356 : vector<32x96xf32>
    %cst_116 = arith.constant 1.000000e+00 : f32
    %358 = vector.broadcast %cst_116 : f32 to vector<32x96xf32>
    %359 = arith.addf %358, %357 : vector<32x96xf32>
    %360 = arith.divf %358, %359 : vector<32x96xf32>
    %361 = vector.extract_strided_slice %360 {offsets = [0, 0], sizes = [32, 32], strides = [1, 1]} : vector<32x96xf32> to vector<32x32xf32>
    %362 = vector.extract_strided_slice %360 {offsets = [0, 32], sizes = [32, 32], strides = [1, 1]} : vector<32x96xf32> to vector<32x32xf32>
    %363 = vector.extract_strided_slice %360 {offsets = [0, 64], sizes = [32, 32], strides = [1, 1]} : vector<32x96xf32> to vector<32x32xf32>
    %364 = vector.extract_strided_slice %354 {offsets = [0, 96], sizes = [32, 32], strides = [1, 1]} : vector<32x128xf32> to vector<32x32xf32>
    %365 = math.tanh %364 : vector<32x32xf32>
    %366 = arith.mulf %333, %362 : vector<32x32xf32>
    %367 = arith.mulf %361, %365 : vector<32x32xf32>
    %368 = arith.addf %366, %367 : vector<32x32xf32>
    %369 = math.tanh %368 : vector<32x32xf32>
    %370 = arith.mulf %369, %363 : vector<32x32xf32>
    %371 = arith.truncf %370 : vector<32x32xf32> to vector<32x32xbf16>
    %c256_117 = arith.constant 256 : index
    %c0_118 = arith.constant 0 : index
    %372 = vector.load %arg11[%c256_117, %c0_118] : memref<384x128xbf16, #tpu.memory_space<vmem>>, vector<32x128xbf16>
    %cst_119 = arith.constant dense<0.000000e+00> : vector<32x128xf32>
    %373 = tpu.matmul %371, %372, %cst_119 {dimension_numbers = #tpu.dot_dimension_numbers<[1], [0], [0], [1], [0, 0, 1, 1], [], []>} : vector<32x32xbf16>, vector<32x128xbf16>, vector<32x128xf32> -> vector<32x128xf32>
    %374 = arith.addf %339, %373 : vector<32x128xf32>
    %375 = arith.truncf %370 : vector<32x32xf32> to vector<32x32xbf16>
    %cst_120 = arith.constant dense<0.000000e+00> : vector<32x384xf32>
    %376 = tpu.matmul %375, %54, %cst_120 {dimension_numbers = #tpu.dot_dimension_numbers<[1], [0], [0], [1], [0, 0, 1, 1], [], []>} : vector<32x32xbf16>, vector<32x384xbf16>, vector<32x384xf32> -> vector<32x384xf32>
    %c0_121 = arith.constant 0 : index
    %c1152 = arith.constant 1152 : index
    %377 = vector.load %arg15[%c0_121, %c1152] : memref<32x1536xf32, #tpu.memory_space<vmem>>, vector<32x128xf32>
    %378 = vector.broadcast %55 : vector<1x128xf32> to vector<32x128xf32>
    %379 = arith.addf %377, %378 : vector<32x128xf32>
    %380 = vector.extract_strided_slice %376 {offsets = [0, 0], sizes = [32, 128], strides = [1, 1]} : vector<32x384xf32> to vector<32x128xf32>
    %381 = arith.addf %379, %380 : vector<32x128xf32>
    %382 = vector.extract_strided_slice %376 {offsets = [0, 128], sizes = [32, 128], strides = [1, 1]} : vector<32x384xf32> to vector<32x128xf32>
    %383 = arith.truncf %382 : vector<32x128xf32> to vector<32x128xbf16>
    %cst_122 = arith.constant dense<0.000000e+00> : vector<32x128xf32>
    %384 = tpu.matmul %27, %383, %cst_122 {dimension_numbers = #tpu.dot_dimension_numbers<[1], [0], [0], [1], [0, 0, 1, 1], [], []>} : vector<32x32xbf16>, vector<32x128xbf16>, vector<32x128xf32> -> vector<32x128xf32>
    %385 = arith.addf %381, %384 : vector<32x128xf32>
    %386 = vector.extract_strided_slice %376 {offsets = [0, 256], sizes = [32, 128], strides = [1, 1]} : vector<32x384xf32> to vector<32x128xf32>
    %387 = arith.truncf %386 : vector<32x128xf32> to vector<32x128xbf16>
    %cst_123 = arith.constant dense<0.000000e+00> : vector<32x128xf32>
    %388 = tpu.matmul %31, %387, %cst_123 {dimension_numbers = #tpu.dot_dimension_numbers<[1], [0], [0], [1], [0, 0, 1, 1], [], []>} : vector<32x32xbf16>, vector<32x128xbf16>, vector<32x128xf32> -> vector<32x128xf32>
    %389 = arith.addf %385, %388 : vector<32x128xf32>
    %390 = vector.extract_strided_slice %389 {offsets = [0, 0], sizes = [32, 96], strides = [1, 1]} : vector<32x128xf32> to vector<32x96xf32>
    %391 = arith.negf %390 : vector<32x96xf32>
    %392 = math.exp %391 : vector<32x96xf32>
    %cst_124 = arith.constant 1.000000e+00 : f32
    %393 = vector.broadcast %cst_124 : f32 to vector<32x96xf32>
    %394 = arith.addf %393, %392 : vector<32x96xf32>
    %395 = arith.divf %393, %394 : vector<32x96xf32>
    %396 = vector.extract_strided_slice %395 {offsets = [0, 0], sizes = [32, 32], strides = [1, 1]} : vector<32x96xf32> to vector<32x32xf32>
    %397 = vector.extract_strided_slice %395 {offsets = [0, 32], sizes = [32, 32], strides = [1, 1]} : vector<32x96xf32> to vector<32x32xf32>
    %398 = vector.extract_strided_slice %395 {offsets = [0, 64], sizes = [32, 32], strides = [1, 1]} : vector<32x96xf32> to vector<32x32xf32>
    %399 = vector.extract_strided_slice %389 {offsets = [0, 96], sizes = [32, 32], strides = [1, 1]} : vector<32x128xf32> to vector<32x32xf32>
    %400 = math.tanh %399 : vector<32x32xf32>
    %401 = arith.mulf %368, %397 : vector<32x32xf32>
    %402 = arith.mulf %396, %400 : vector<32x32xf32>
    %403 = arith.addf %401, %402 : vector<32x32xf32>
    %404 = math.tanh %403 : vector<32x32xf32>
    %405 = arith.mulf %404, %398 : vector<32x32xf32>
    %406 = arith.truncf %405 : vector<32x32xf32> to vector<32x32xbf16>
    %c288 = arith.constant 288 : index
    %c0_125 = arith.constant 0 : index
    %407 = vector.load %arg11[%c288, %c0_125] : memref<384x128xbf16, #tpu.memory_space<vmem>>, vector<32x128xbf16>
    %cst_126 = arith.constant dense<0.000000e+00> : vector<32x128xf32>
    %408 = tpu.matmul %406, %407, %cst_126 {dimension_numbers = #tpu.dot_dimension_numbers<[1], [0], [0], [1], [0, 0, 1, 1], [], []>} : vector<32x32xbf16>, vector<32x128xbf16>, vector<32x128xf32> -> vector<32x128xf32>
    %409 = arith.addf %374, %408 : vector<32x128xf32>
    %410 = arith.truncf %405 : vector<32x32xf32> to vector<32x32xbf16>
    %cst_127 = arith.constant dense<0.000000e+00> : vector<32x384xf32>
    %411 = tpu.matmul %410, %54, %cst_127 {dimension_numbers = #tpu.dot_dimension_numbers<[1], [0], [0], [1], [0, 0, 1, 1], [], []>} : vector<32x32xbf16>, vector<32x384xbf16>, vector<32x384xf32> -> vector<32x384xf32>
    %c0_128 = arith.constant 0 : index
    %c1280 = arith.constant 1280 : index
    %412 = vector.load %arg15[%c0_128, %c1280] : memref<32x1536xf32, #tpu.memory_space<vmem>>, vector<32x128xf32>
    %413 = vector.broadcast %55 : vector<1x128xf32> to vector<32x128xf32>
    %414 = arith.addf %412, %413 : vector<32x128xf32>
    %415 = vector.extract_strided_slice %411 {offsets = [0, 0], sizes = [32, 128], strides = [1, 1]} : vector<32x384xf32> to vector<32x128xf32>
    %416 = arith.addf %414, %415 : vector<32x128xf32>
    %417 = vector.extract_strided_slice %411 {offsets = [0, 128], sizes = [32, 128], strides = [1, 1]} : vector<32x384xf32> to vector<32x128xf32>
    %418 = arith.truncf %417 : vector<32x128xf32> to vector<32x128xbf16>
    %cst_129 = arith.constant dense<0.000000e+00> : vector<32x128xf32>
    %419 = tpu.matmul %27, %418, %cst_129 {dimension_numbers = #tpu.dot_dimension_numbers<[1], [0], [0], [1], [0, 0, 1, 1], [], []>} : vector<32x32xbf16>, vector<32x128xbf16>, vector<32x128xf32> -> vector<32x128xf32>
    %420 = arith.addf %416, %419 : vector<32x128xf32>
    %421 = vector.extract_strided_slice %411 {offsets = [0, 256], sizes = [32, 128], strides = [1, 1]} : vector<32x384xf32> to vector<32x128xf32>
    %422 = arith.truncf %421 : vector<32x128xf32> to vector<32x128xbf16>
    %cst_130 = arith.constant dense<0.000000e+00> : vector<32x128xf32>
    %423 = tpu.matmul %31, %422, %cst_130 {dimension_numbers = #tpu.dot_dimension_numbers<[1], [0], [0], [1], [0, 0, 1, 1], [], []>} : vector<32x32xbf16>, vector<32x128xbf16>, vector<32x128xf32> -> vector<32x128xf32>
    %424 = arith.addf %420, %423 : vector<32x128xf32>
    %425 = vector.extract_strided_slice %424 {offsets = [0, 0], sizes = [32, 96], strides = [1, 1]} : vector<32x128xf32> to vector<32x96xf32>
    %426 = arith.negf %425 : vector<32x96xf32>
    %427 = math.exp %426 : vector<32x96xf32>
    %cst_131 = arith.constant 1.000000e+00 : f32
    %428 = vector.broadcast %cst_131 : f32 to vector<32x96xf32>
    %429 = arith.addf %428, %427 : vector<32x96xf32>
    %430 = arith.divf %428, %429 : vector<32x96xf32>
    %431 = vector.extract_strided_slice %430 {offsets = [0, 0], sizes = [32, 32], strides = [1, 1]} : vector<32x96xf32> to vector<32x32xf32>
    %432 = vector.extract_strided_slice %430 {offsets = [0, 32], sizes = [32, 32], strides = [1, 1]} : vector<32x96xf32> to vector<32x32xf32>
    %433 = vector.extract_strided_slice %430 {offsets = [0, 64], sizes = [32, 32], strides = [1, 1]} : vector<32x96xf32> to vector<32x32xf32>
    %434 = vector.extract_strided_slice %424 {offsets = [0, 96], sizes = [32, 32], strides = [1, 1]} : vector<32x128xf32> to vector<32x32xf32>
    %435 = math.tanh %434 : vector<32x32xf32>
    %436 = arith.mulf %403, %432 : vector<32x32xf32>
    %437 = arith.mulf %431, %435 : vector<32x32xf32>
    %438 = arith.addf %436, %437 : vector<32x32xf32>
    %439 = math.tanh %438 : vector<32x32xf32>
    %440 = arith.mulf %439, %433 : vector<32x32xf32>
    %441 = arith.truncf %440 : vector<32x32xf32> to vector<32x32xbf16>
    %c320 = arith.constant 320 : index
    %c0_132 = arith.constant 0 : index
    %442 = vector.load %arg11[%c320, %c0_132] : memref<384x128xbf16, #tpu.memory_space<vmem>>, vector<32x128xbf16>
    %cst_133 = arith.constant dense<0.000000e+00> : vector<32x128xf32>
    %443 = tpu.matmul %441, %442, %cst_133 {dimension_numbers = #tpu.dot_dimension_numbers<[1], [0], [0], [1], [0, 0, 1, 1], [], []>} : vector<32x32xbf16>, vector<32x128xbf16>, vector<32x128xf32> -> vector<32x128xf32>
    %444 = arith.addf %409, %443 : vector<32x128xf32>
    %445 = arith.truncf %440 : vector<32x32xf32> to vector<32x32xbf16>
    %cst_134 = arith.constant dense<0.000000e+00> : vector<32x384xf32>
    %446 = tpu.matmul %445, %54, %cst_134 {dimension_numbers = #tpu.dot_dimension_numbers<[1], [0], [0], [1], [0, 0, 1, 1], [], []>} : vector<32x32xbf16>, vector<32x384xbf16>, vector<32x384xf32> -> vector<32x384xf32>
    %c0_135 = arith.constant 0 : index
    %c1408 = arith.constant 1408 : index
    %447 = vector.load %arg15[%c0_135, %c1408] : memref<32x1536xf32, #tpu.memory_space<vmem>>, vector<32x128xf32>
    %448 = vector.broadcast %55 : vector<1x128xf32> to vector<32x128xf32>
    %449 = arith.addf %447, %448 : vector<32x128xf32>
    %450 = vector.extract_strided_slice %446 {offsets = [0, 0], sizes = [32, 128], strides = [1, 1]} : vector<32x384xf32> to vector<32x128xf32>
    %451 = arith.addf %449, %450 : vector<32x128xf32>
    %452 = vector.extract_strided_slice %446 {offsets = [0, 128], sizes = [32, 128], strides = [1, 1]} : vector<32x384xf32> to vector<32x128xf32>
    %453 = arith.truncf %452 : vector<32x128xf32> to vector<32x128xbf16>
    %cst_136 = arith.constant dense<0.000000e+00> : vector<32x128xf32>
    %454 = tpu.matmul %27, %453, %cst_136 {dimension_numbers = #tpu.dot_dimension_numbers<[1], [0], [0], [1], [0, 0, 1, 1], [], []>} : vector<32x32xbf16>, vector<32x128xbf16>, vector<32x128xf32> -> vector<32x128xf32>
    %455 = arith.addf %451, %454 : vector<32x128xf32>
    %456 = vector.extract_strided_slice %446 {offsets = [0, 256], sizes = [32, 128], strides = [1, 1]} : vector<32x384xf32> to vector<32x128xf32>
    %457 = arith.truncf %456 : vector<32x128xf32> to vector<32x128xbf16>
    %cst_137 = arith.constant dense<0.000000e+00> : vector<32x128xf32>
    %458 = tpu.matmul %31, %457, %cst_137 {dimension_numbers = #tpu.dot_dimension_numbers<[1], [0], [0], [1], [0, 0, 1, 1], [], []>} : vector<32x32xbf16>, vector<32x128xbf16>, vector<32x128xf32> -> vector<32x128xf32>
    %459 = arith.addf %455, %458 : vector<32x128xf32>
    %460 = vector.extract_strided_slice %459 {offsets = [0, 0], sizes = [32, 96], strides = [1, 1]} : vector<32x128xf32> to vector<32x96xf32>
    %461 = arith.negf %460 : vector<32x96xf32>
    %462 = math.exp %461 : vector<32x96xf32>
    %cst_138 = arith.constant 1.000000e+00 : f32
    %463 = vector.broadcast %cst_138 : f32 to vector<32x96xf32>
    %464 = arith.addf %463, %462 : vector<32x96xf32>
    %465 = arith.divf %463, %464 : vector<32x96xf32>
    %466 = vector.extract_strided_slice %465 {offsets = [0, 0], sizes = [32, 32], strides = [1, 1]} : vector<32x96xf32> to vector<32x32xf32>
    %467 = vector.extract_strided_slice %465 {offsets = [0, 32], sizes = [32, 32], strides = [1, 1]} : vector<32x96xf32> to vector<32x32xf32>
    %468 = vector.extract_strided_slice %465 {offsets = [0, 64], sizes = [32, 32], strides = [1, 1]} : vector<32x96xf32> to vector<32x32xf32>
    %469 = vector.extract_strided_slice %459 {offsets = [0, 96], sizes = [32, 32], strides = [1, 1]} : vector<32x128xf32> to vector<32x32xf32>
    %470 = math.tanh %469 : vector<32x32xf32>
    %471 = arith.mulf %438, %467 : vector<32x32xf32>
    %472 = arith.mulf %466, %470 : vector<32x32xf32>
    %473 = arith.addf %471, %472 : vector<32x32xf32>
    %474 = math.tanh %473 : vector<32x32xf32>
    %475 = arith.mulf %474, %468 : vector<32x32xf32>
    %476 = arith.truncf %475 : vector<32x32xf32> to vector<32x32xbf16>
    %c352 = arith.constant 352 : index
    %c0_139 = arith.constant 0 : index
    %477 = vector.load %arg11[%c352, %c0_139] : memref<384x128xbf16, #tpu.memory_space<vmem>>, vector<32x128xbf16>
    %cst_140 = arith.constant dense<0.000000e+00> : vector<32x128xf32>
    %478 = tpu.matmul %476, %477, %cst_140 {dimension_numbers = #tpu.dot_dimension_numbers<[1], [0], [0], [1], [0, 0, 1, 1], [], []>} : vector<32x32xbf16>, vector<32x128xbf16>, vector<32x128xf32> -> vector<32x128xf32>
    %479 = arith.addf %444, %478 : vector<32x128xf32>
    %480 = vector.broadcast %56 : vector<1x128xf32> to vector<32x128xf32>
    %481 = arith.addf %479, %480 : vector<32x128xf32>
    %c0_141 = arith.constant 0 : index
    %c0_142 = arith.constant 0 : index
    %482 = vector.load %arg14[%c0_141, %c0_142] : memref<32x128xf32, #tpu.memory_space<vmem>>, vector<32x128xf32>
    tpu.vector_store %arg14[%c0_141, %c0_142], %481 {strides = array<i32>} : memref<32x128xf32, #tpu.memory_space<vmem>>, vector<32x128xf32>,
    return
  }
}

</mosaic_0001>

<bundles_post_ra>
// kernel: tile.29
= control target key start
LH: loop header
LB: loop body
LE: loop exit
PB: predicated region body
PF: predicated region fallthrough
CT: control target
= control target key end

     0   :  { %vm68_vm0 = vcmask 1047556   ;;  %vm70_vm1 = vcmask 130048   ;;  %vm89_vm2 = vcmask 261248   ;;  %s195_s0 = inlined_call_operand.vmem [shape: f32[2,16,16], index: 0, kind: input, shape index: {}]   ;;  %s196_s1 = inlined_call_operand.vmem [shape: f32[32,16], index: 1, kind: output, shape index: {}]  }
   0x1   :  { %v110_v0 = vld [vmem:[%s195_s0 + $0xe] sm:$0x3]  ;;  %v111_v1 = vld [vmem:[%s195_s0 + $0xc] sm:$0x3]  ;;  %v112_v2 = vld [vmem:[%s195_s0 + $0xa] sm:$0x3] }
   0x2   :  { %39 = vst [vmem:[#allocation0 + $0x38] sm:$0x3] %v110_v0  ;;  %v113_v3 = vld [vmem:[%s195_s0 + $0x8] sm:$0x3]  ;;  %v114_v4 = vld [vmem:[%s195_s0 + $0x6] sm:$0x3] }
   0x3   :  { %43 = vst [vmem:[#allocation0 + $0x30] sm:$0x3] %v111_v1  ;;  %v115_v5 = vld [vmem:[%s195_s0 + $0x4] sm:$0x3]  ;;  %v116_v6 = vld [vmem:[%s195_s0 + $0x2] sm:$0x3] }
   0x4   :  { %47 = vst [vmem:[#allocation0 + $0x28] sm:$0x3] %v112_v2  ;;  %v64_v7 = vld [vmem:[%s195_s0] sm:$0x3]  ;;  %v102_v8 = vld [vmem:[%s195_s0 + $0x1e] sm:$0x3] }
   0x5   :  { %51 = vst [vmem:[#allocation0 + $0x20] sm:$0x3] %v113_v3  ;;  %v103_v9 = vld [vmem:[%s195_s0 + $0x1c] sm:$0x3]  ;;  %v104_v10 = vld [vmem:[%s195_s0 + $0x1a] sm:$0x3] }
   0x6   :  { %55 = vst [vmem:[#allocation0 + $0x18] sm:$0x3] %v114_v4  ;;  %v105_v11 = vld [vmem:[%s195_s0 + $0x18] sm:$0x3]  ;;  %v106_v12 = vld [vmem:[%s195_s0 + $0x16] sm:$0x3] }
   0x7   :  { %59 = vst [vmem:[#allocation0 + $0x10] sm:$0x3] %v115_v5  ;;  %v107_v13 = vld [vmem:[%s195_s0 + $0x14] sm:$0x3]  ;;  %v108_v14 = vld [vmem:[%s195_s0 + $0x12] sm:$0x3] }
   0x8   :  { %63 = vst [vmem:[#allocation0 + $0x8] sm:$0x3] %v116_v6  ;;  %v109_v15 = vld [vmem:[%s195_s0 + $0x10] sm:$0x3]  ;;  %s120_s0 = smov 16  }
   0x9   :  { %65 = vst [vmem:[#allocation0] sm:$0x3] %v64_v7 }
   0xa   :  { %7 = vst [vmem:[#allocation0 + $0x78] sm:$0x3] %v102_v8 }
   0xb   :  { %11 = vst [vmem:[#allocation0 + $0x70] sm:$0x3] %v103_v9 }
   0xc   :  { %15 = vst [vmem:[#allocation0 + $0x68] sm:$0x3] %v104_v10  ;;  %v84_v16 = vld [vmem:[#allocation0 + $0x1] ss:$8 sm:$0xf0]  }
   0xd   :  { %19 = vst [vmem:[#allocation0 + $0x60] sm:$0x3] %v105_v11  ;;  %v67_v23 = vld [vmem:[#allocation0] ss:$8 sm:$0xf0]  }
   0xe   :  { %23 = vst [vmem:[#allocation0 + $0x58] sm:$0x3] %v106_v12 }
   0xf   :  { %27 = vst [vmem:[#allocation0 + $0x50] sm:$0x3] %v107_v13 }
  0x10   :  { %v82_v17 = vld [vmem:[#allocation0 + $0x1] ss:$8 sm:$0xf]   ;;  %31 = vst [vmem:[#allocation0 + $0x48] sm:$0x3] %v108_v14 }
  0x11   :  { %v86_v18 = vsel %vm68_vm0, %v84_v16, %v82_v17  ;;  %35 = vst [vmem:[#allocation0 + $0x40] sm:$0x3] %v109_v15  ;;  %v66_v22 = vld [vmem:[#allocation0] ss:$8 sm:$0xf]  }
  0x12   :  { %87 = vrot.lane.b32.xlu0 %v86_v18, %s120_s0  ;;  %v69_v24 = vsel %vm68_vm0, %v67_v23, %v66_v22 }
  0x13   :  { %71 = vst.msk [vmem:[%s196_s1] sm:$0xff] %vm70_vm1, %v69_v24  }
  0x14   :  { %v94_v19 = vld [vmem:[#allocation0 + $0x41] ss:$8 sm:$0xf0]   ;;  %v75_v26 = vld [vmem:[#allocation0 + $0x40] ss:$8 sm:$0xf0]  }
  0x18   :  { %v92_v20 = vld [vmem:[#allocation0 + $0x41] ss:$8 sm:$0xf]   ;;  %v73_v25 = vld [vmem:[#allocation0 + $0x40] ss:$8 sm:$0xf]  }
  0x19   :  { %v96_v21 = vsel %vm68_vm0, %v94_v19, %v92_v20  ;;  %v77_v27 = vsel %vm68_vm0, %v75_v26, %v73_v25 }
  0x1a   :  { %97 = vrot.lane.b32.xlu0 %v96_v21, %s120_s0  ;;  %117 = vst.msk [vmem:[%s196_s1 + $0x8] sm:$0xff] %vm70_vm1, %v77_v27  }
  0x84   :  { %v88_v28 = vpop.permute.xlu0 %87  }
  0x85   :  { %90 = vst.msk [vmem:[%s196_s1] sm:$0xff] %vm89_vm2, %v88_v28  }
  0x8c   :  { %v98_v29 = vpop.permute.xlu0 %97  }
  0x8d   :  { %118 = vst.msk [vmem:[%s196_s1 + $0x8] sm:$0xff] %vm89_vm2, %v98_v29  }

// kernel: ogcrnn_forward.1
= control target key start
LH: loop header
LB: loop body
LE: loop exit
PB: predicated region body
PF: predicated region fallthrough
CT: control target
= control target key end

     0   :  { %vm53_vm0 = vcmask 130048   ;;  %vm341_vm9 = vcmask 1043456   ;;  %vm328_vm10 = vcmask 97280   ;;  %v96_v60 = vlaneseq  ;;  %s7539_s28 = smov 32   ;;  %s7540_s29 = smov 96   ;;  %s9942_s1 = inlined_call_operand.vmem [shape: f32[16,16], index: 1, kind: input, shape index: {}]   ;;  %s9943_s2 = inlined_call_operand.vmem [shape: f32[16,16], index: 2, kind: input, shape index: {}]   ;;  %s9944_s3 = inlined_call_operand.vmem [shape: f32[1,12], index: 3, kind: input, shape index: {}]   ;;  %s9945_s4 = inlined_call_operand.vmem [shape: f32[1,12], index: 4, kind: input, shape index: {}]   ;;  %s9946_s6 = inlined_call_operand.vmem [shape: f32[16,32], index: 6, kind: input, shape index: {}]   ;;  %s9947_s13 = inlined_call_operand.vmem [shape: f32[16,16], index: 13, kind: output, shape index: {0}]   ;;  %s9948_s8 = inlined_call_operand.vmem [shape: f32[12,4608], index: 8, kind: input, shape index: {}]   ;;  %s9949_s0 = inlined_call_operand.vmem [shape: f32[32,12], index: 0, kind: input, shape index: {}]   ;;  %s9950_s5 = inlined_call_operand.vmem [shape: f32[32,16], index: 5, kind: input, shape index: {}]   ;;  %s9951_s7 = inlined_call_operand.vmem [shape: f32[32,32], index: 7, kind: input, shape index: {}]   ;;  %s9952_s10 = inlined_call_operand.vmem [shape: f32[1,128], index: 10, kind: input, shape index: {}]   ;;  %s9953_s9 = inlined_call_operand.vmem [shape: bf16[32,384], index: 9, kind: input, shape index: {}]   ;;  %s9954_s11 = inlined_call_operand.vmem [shape: bf16[384,128], index: 11, kind: input, shape index: {}]   ;;  %s9955_s12 = inlined_call_operand.vmem [shape: f32[1,128], index: 12, kind: input, shape index: {}]   ;;  %s9956_s14 = inlined_call_operand.vmem [shape: f32[32,128], index: 14, kind: output, shape index: {1}]  }
   0x1   :  { %v48_v0 = vld [vmem:[%s9943_s2 + $0x8] sm:$0xff]  ;;  %v47_v3 = vld [vmem:[%s9943_s2] sm:$0xff]  ;;  %v286_v48 = vld [vmem:[%s9949_s0 + $0x10] sm:$0xff]  ;;  %v7537_v63 = vmov 0.0   ;;  %vm1230_vm13 = vcmask 261120  }
   0x2   :  { %v50_v1 = vld [vmem:[%s9942_s1 + $0x8] sm:$0xff]  ;;  %v49_v4 = vld [vmem:[%s9942_s1] sm:$0xff]  ;;  %v287_v51 = vld [vmem:[%s9949_s0 + $0x18] sm:$0xff]  ;;  %v97_v61 = vshrl.u32 %v96_v60, 7  ;;  %v100_v62 = vand.u32 127, %v96_v60 }
   0x3   :  { %v52_v2 = vadd.f32 %v50_v1, %v48_v0  ;;  %v51_v6 = vadd.f32 %v49_v4, %v47_v3  ;;  %v145_v10 = vld [vmem:[%s9946_s6 + $0x8] sm:$0xff]  ;;  %v144_v14 = vld [vmem:[%s9946_s6] sm:$0xff]  ;;  %v792_v60 = vld [vmem:[%s9948_s8 + $0x1b0] sm:$0xf] }
   0x4   :  { %240 = vmatpush.msra.mxu3 %v145_v10  ;;  %v316_v36 = vld [vmem:[%s9948_s8 + $0x120] sm:$0xf]  ;;  %v285_v45 = vld [vmem:[%s9949_s0 + $0x8] sm:$0xff]  ;;  %vm101_vm11 = vcmp.eq.s32.totalorder %v97_v61, %v100_v62  ;;  %v98_v4 = vadd.s32 8, %v97_v61 }
   0x5   :  { %v57_v5 = vsel %vm53_vm0, %v52_v2, 0.0  ;;  %v54_v7 = vsel %vm53_vm0, %v51_v6, 0.0  ;;  %v304_v37 = vld [vmem:[%s9948_s8] sm:$0xff]  ;;  %v317_v58 = vld [vmem:[%s9948_s8 + $0x128] sm:$0xf]  ;;  %v6510_v0 = vsel %vm101_vm11, 1.0, %v7537_v63 }
   0x6   :  { %58 = vadd.xlane.f32.xlu0 %v57_v5  ;;  %241 = vmatpush.msra.mxu3 %v144_v14  ;;  %v7142_v38 = vld [vmem:[%s9944_s3] ss:$0 sm:$0xff]  ;;  %v305_v59 = vld [vmem:[%s9948_s8 + $0x8] sm:$0xff]  ;;  %vm102_vm12 = vcmp.eq.s32.totalorder %v98_v4, %v100_v62 }
   0x7   :  { %v284_v39 = vld [vmem:[%s9949_s0] sm:$0xff]  ;;  %v293_v46 = vsub.f32 %v285_v45, %v7142_v38  ;;  %v294_v49 = vsub.f32 %v286_v48, %v7142_v38  ;;  %v295_v52 = vsub.f32 %v287_v51, %v7142_v38  ;;  %v788_v45 = vld [vmem:[%s9948_s8 + $0x190] sm:$0xf] }
   0x8   :  { %v292_v40 = vsub.f32 %v284_v39, %v7142_v38  ;;  %v7143_v41 = vld [vmem:[%s9945_s4] ss:$0 sm:$0xff]  ;;  %6531 = vmatpush.msk.msrb.mxu3 %vm341_vm9, %v317_v58  ;;  %v314_v38 = vld [vmem:[%s9948_s8 + $0x50] sm:$0xff]  ;;  %v783_v58 = vld [vmem:[%s9948_s8 + $0xa8] sm:$0xff] }
   0x9   :  { %v320_v42 = vld [vmem:[%s9948_s8 + $0x140] sm:$0xf]  ;;  %v7678_v47 = vmul.f32 %v7143_v41, %v293_v46  ;;  %v7685_v50 = vmul.f32 %v7143_v41, %v294_v49  ;;  %v7692_v53 = vmul.f32 %v7143_v41, %v295_v52  ;;  %v776_v48 = vld [vmem:[%s9948_s8 + $0x70] sm:$0xff] }
   0xa   :  { %v308_v43 = vld [vmem:[%s9948_s8 + $0x20] sm:$0xff]  ;;  %v7671_v44 = vmul.f32 %v7143_v41, %v292_v40  ;;  %422 = vmatpush.msrb.mxu3 %v305_v59  ;;  %v307_v59 = vld [vmem:[%s9948_s8 + $0x18] sm:$0xff] }
   0xb   :  { %v324_v54 = vld [vmem:[%s9948_s8 + $0x160] sm:$0xf] }
   0xc   :  { %v312_v55 = vld [vmem:[%s9948_s8 + $0x40] sm:$0xff] }
   0xd   :  { %v786_v56 = vld [vmem:[%s9948_s8 + $0x180] sm:$0xf] }
   0xe   :  { %55 = vadd.xlane.f32.xlu0 %v54_v7  ;;  %v774_v57 = vld [vmem:[%s9948_s8 + $0x60] sm:$0xff]  ;;  %v6511_v7 = vsel %vm102_vm12, 1.0, %v7537_v63  ;;  %v780_v63 = vld [vmem:[%s9948_s8 + $0x90] sm:$0xff] }
  0x79   :  { %v59_v8 = vpop.xlane.xlu0 %58 }
  0x7a   :  { %v61_v9 = vadd.f32 0.0001, %v59_v8 }
  0x7c   :  { %7146 = vrcp.f32 %v61_v9  ;;  %v88_v17 = vand.u32 2147483648, %v61_v9  ;;  %v86_v19 = vand.u32 2147483647, %v61_v9  ;;  %vm82_vm2 = vweird.f32 %v61_v9 }
  0x7e   :  { %v89_v22 = vor.u32 1.1754944e-38, %v88_v17  ;;  %vm87_vm4 = vcmp.eq.f32.partialorder %v86_v19, 8.507059e+37  ;;  %v306_v17 = vld [vmem:[%s9948_s8 + $0x10] sm:$0xff]  ;;  %v794_v19 = vld [vmem:[%s9948_s8 + $0x1c0] sm:$0xf] }
  0x81   :  { %v56_v11 = vpop.xlane.xlu0 %55 }
  0x82   :  { %v7147_v12 = vpop.eup %7146  ;;  %v60_v13 = vadd.f32 0.0001, %v56_v11 }
  0x83   :  { %v78_v15 = vmul.f32 %v7147_v12, %v61_v9  ;;  %vm83_vm1 = vweird.f32 %v7147_v12 }
  0x84   :  { %7148 = vrcp.f32 %v60_v13  ;;  %vm84_vm3 = vmor %vm82_vm2, %vm83_vm1  ;;  %v73_v28 = vand.u32 2147483648, %v60_v13  ;;  %v71_v30 = vand.u32 2147483647, %v60_v13  ;;  %vm67_vm6 = vweird.f32 %v60_v13 }
  0x85   :  { %v79_v16 = vsub.f32 1.0, %v78_v15  ;;  %v7760_v15 = vld [vmem:[%s9950_s5] sm:$0xff] }
  0x86   :  { %v74_v32 = vor.u32 1.1754944e-38, %v73_v28  ;;  %vm72_vm8 = vcmp.eq.f32.partialorder %v71_v30, 8.507059e+37  ;;  %v322_v28 = vld [vmem:[%s9948_s8 + $0x150] sm:$0xf] }
  0x87   :  { %v80_v18 = vmul.f32 %v7147_v12, %v79_v16  ;;  %v318_v16 = vld [vmem:[%s9948_s8 + $0x130] sm:$0xf] }
  0x88   :  { %v310_v30 = vld [vmem:[%s9948_s8 + $0x30] sm:$0xff] }
  0x89   :  { %v81_v20 = vadd.f32 %v7147_v12, %v80_v18 }
  0x8a   :  { %v7149_v21 = vpop.eup %7148 }
  0x8b   :  { %v63_v23 = vmul.f32 %v7149_v21, %v60_v13  ;;  %v85_v24 = vsel %vm84_vm3, %v7147_v12, %v81_v20  ;;  %vm68_vm5 = vweird.f32 %v7149_v21  ;;  %v321_v12 = vld [vmem:[%s9948_s8 + $0x148] sm:$0xf] }
  0x8c   :  { %v90_v25 = vsel %vm87_vm4, %v89_v22, %v85_v24  ;;  %vm69_vm7 = vmor %vm67_vm6, %vm68_vm5  ;;  %v309_v13 = vld [vmem:[%s9948_s8 + $0x28] sm:$0xff] }
  0x8d   :  { %v64_v26 = vsub.f32 1.0, %v63_v23  ;;  %v93_v27 = vmul.f32 %v90_v25, %v52_v2  ;;  %v790_v2 = vld [vmem:[%s9948_s8 + $0x1a0] sm:$0xf]  ;;  %v7783_v20 = vld [vmem:[%s9950_s5 + $0x8] sm:$0xff]  ;;  %v7800_v23 = vld [vmem:[%s9950_s5 + $0x10] sm:$0xff] }
  0x8e   :  { %v325_v25 = vld [vmem:[%s9948_s8 + $0x168] sm:$0xf] }
  0x8f   :  { %v65_v29 = vmul.f32 %v7149_v21, %v64_v26  ;;  %95 = vst.msk [vmem:[%s9947_s13 + $0x8] sm:$0xff] %vm53_vm0, %v93_v27  ;;  %127 = vmatpush.msra.mxu1 %v93_v27  ;;  %v7816_v26 = vld [vmem:[%s9950_s5 + $0x18] sm:$0xff] }
  0x91   :  { %v66_v31 = vadd.f32 %v7149_v21, %v65_v29 }
  0x93   :  { %v70_v33 = vsel %vm69_vm7, %v7149_v21, %v66_v31  ;;  %v782_v21 = vld [vmem:[%s9948_s8 + $0xa0] sm:$0xff] }
  0x94   :  { %v75_v34 = vsel %vm72_vm8, %v74_v32, %v70_v33 }
  0x95   :  { %v92_v35 = vmul.f32 %v75_v34, %v51_v6  ;;  %v778_v6 = vld [vmem:[%s9948_s8 + $0x80] sm:$0xff]  ;;  %v787_v34 = vld [vmem:[%s9948_s8 + $0x188] sm:$0xf] }
  0x97   :  { %94 = vst.msk [vmem:[%s9947_s13] sm:$0xff] %vm53_vm0, %v92_v35  ;;  %128 = vmatpush.msra.mxu1 %v92_v35 }
  0x98   :  { %6512 = vmatmul.msk.f32.vlgmr.msra.gmra.mxu1 %vm53_vm0, %v92_v35 }
  0x99   :  { %164 = vmatpush.msrb.mxu1 %v145_v10 }
  0x9b   :  { %165 = vmatpush.msrb.mxu1 %v144_v14 }
  0x9d   :  { %6526 = vmatpush.msk.msra.mxu1 %vm341_vm9, %v316_v36  ;;  %v326_v36 = vld [vmem:[%s9948_s8 + $0x170] sm:$0xf] }
  0x9f   :  { %393 = vmatpush.msra.mxu1 %v304_v37 }
  0xa0   :  { %6513 = vmatmul.msk.f32.gmra.mxu1 %vm53_vm0, %v93_v27 }
  0xa8   :  { %6514 = vmatmul.msk.f32.vlgmr.msrb.gmra.mxu1 %vm53_vm0, %v92_v35  ;;  %v775_v35 = vld [vmem:[%s9948_s8 + $0x68] sm:$0xff] }
  0xa9   :  { %6546 = vmatpush.msk.msrb.mxu1 %vm341_vm9, %v320_v42  ;;  %v791_v42 = vld [vmem:[%s9948_s8 + $0x1a8] sm:$0xf] }
  0xab   :  { %509 = vmatpush.msrb.mxu1 %v308_v43  ;;  %v779_v43 = vld [vmem:[%s9948_s8 + $0x88] sm:$0xff] }
  0xb0   :  { %6515 = vmatmul.msk.f32.gmra.mxu1 %vm53_vm0, %v93_v27  ;;  %v313_v27 = vld [vmem:[%s9948_s8 + $0x48] sm:$0xff] }
  0xb8   :  { %6527 = vmatmul.msk.f32.vlgmr.msra.gmra.mxu1 %vm328_vm10, %v7671_v44 }
  0xb9   :  { %6566 = vmatpush.msk.msra.mxu1 %vm341_vm9, %v324_v54 }
  0xbb   :  { %625 = vmatpush.msra.mxu1 %v312_v55 }
  0xc0   :  { %6528 = vmatmul.msk.f32.gmra.mxu1 %vm328_vm10, %v7678_v47 }
  0xc8   :  { %6529 = vmatmul.msk.f32.gmra.mxu1 %vm328_vm10, %v7685_v50 }
  0xd0   :  { %6530 = vmatmul.msk.f32.gmra.mxu1 %vm328_vm10, %v7692_v53 }
  0xd8   :  { %6547 = vmatmul.msk.f32.vlgmr.msrb.gmra.mxu1 %vm328_vm10, %v7671_v44 }
  0xd9   :  { %6586 = vmatpush.msk.msrb.mxu1 %vm341_vm9, %v786_v56  ;;  %v795_v56 = vld [vmem:[%s9948_s8 + $0x1c8] sm:$0xf] }
  0xdb   :  { %849 = vmatpush.msrb.mxu1 %v774_v57  ;;  %v319_v57 = vld [vmem:[%s9948_s8 + $0x138] sm:$0xf] }
  0xe0   :  { %6548 = vmatmul.msk.f32.gmra.mxu1 %vm328_vm10, %v7678_v47 }
  0xe8   :  { %6549 = vmatmul.msk.f32.gmra.mxu1 %vm328_vm10, %v7685_v50 }
  0xf0   :  { %6550 = vmatmul.msk.f32.gmra.mxu1 %vm328_vm10, %v7692_v53 }
  0xf8   :  { %6567 = vmatmul.msk.f32.vlgmr.msra.gmra.mxu1 %vm328_vm10, %v7671_v44 }
  0xf9   :  { %6606 = vmatpush.msk.msra.mxu1 %vm341_vm9, %v790_v2 }
  0xfb   :  { %965 = vmatpush.msra.mxu1 %v778_v6 }
 0x100   :  { %6568 = vmatmul.msk.f32.gmra.mxu1 %vm328_vm10, %v7678_v47 }
 0x108   :  { %6569 = vmatmul.msk.f32.gmra.mxu1 %vm328_vm10, %v7685_v50 }
 0x110   :  { %6570 = vmatmul.msk.f32.gmra.mxu1 %vm328_vm10, %v7692_v53 }
 0x115   :  { %v130_v1 = vpop.f32.mrf.mxu1 }
 0x116   :  { %v136_v3 = vmul.f32 2.0, %v130_v1 }
 0x118   :  { %v138_v5 = vsub.f32 %v136_v3, %v6510_v0  ;;  %6587 = vmatmul.msk.f32.vlgmr.msrb.gmra.mxu1 %vm328_vm10, %v7671_v44  ;;  %v7973_v0 = vld [vmem:[%s9951_s7] sm:$0xff] }
 0x119   :  { %6626 = vmatpush.msk.msrb.mxu1 %vm341_vm9, %v794_v19  ;;  %v8037_v19 = vld [vmem:[%s9951_s7 + $0x18] sm:$0xff] }
 0x11a   :  { %6520 = vmatmul.msk.f32.vlgmr.msra.gmra.mxu3 %vm53_vm0, %v138_v5  ;;  %v7991_v5 = vld [vmem:[%s9951_s7 + $0x8] sm:$0xff] }
 0x11b   :  { %6551 = vmatpush.msk.msra.mxu3 %vm341_vm9, %v321_v12  ;;  %1081 = vmatpush.msrb.mxu1 %v782_v21 }
 0x11d   :  { %v133_v8 = vpop.f32.mrf.mxu1  ;;  %538 = vmatpush.msra.mxu3 %v309_v13 }
 0x11e   :  { %v137_v9 = vmul.f32 2.0, %v133_v8 }
 0x120   :  { %v139_v10 = vsub.f32 %v137_v9, %v6511_v7  ;;  %6588 = vmatmul.msk.f32.gmra.mxu1 %vm328_vm10, %v7678_v47 }
 0x122   :  { %6521 = vmatmul.msk.f32.gmra.mxu3 %vm53_vm0, %v139_v10  ;;  %v8009_v10 = vld [vmem:[%s9951_s7 + $0x10] sm:$0xff] }
 0x125   :  { %v167_v11 = vpop.f32.mrf.mxu1 }
 0x128   :  { %6589 = vmatmul.msk.f32.gmra.mxu1 %vm328_vm10, %v7685_v50 }
 0x12a   :  { %6532 = vmatmul.msk.f32.vlgmr.msrb.gmra.mxu3 %vm328_vm10, %v7671_v44 }
 0x12b   :  { %6571 = vmatpush.msk.msrb.mxu3 %vm341_vm9, %v325_v25 }
 0x12d   :  { %v170_v14 = vpop.f32.mrf.mxu1  ;;  %654 = vmatpush.msrb.mxu3 %v313_v27 }
 0x12e   :  { %199 = vmatpush.msra.mxu2 %v170_v14 }
 0x130   :  { %200 = vmatpush.msra.mxu2 %v167_v11  ;;  %6590 = vmatmul.msk.f32.gmra.mxu1 %vm328_vm10, %v7692_v53 }
 0x131   :  { %6516 = vmatmul.msk.f32.vlgmr.msra.gmra.mxu2 %vm53_vm0, %v7760_v15 }
 0x132   :  { %6533 = vmatmul.msk.f32.gmra.mxu3 %vm328_vm10, %v7678_v47  ;;  %6536 = vmatpush.msk.msrb.mxu2 %vm341_vm9, %v318_v16  ;;  %v311_v16 = vld [vmem:[%s9948_s8 + $0x38] sm:$0xff] }
 0x134   :  { %451 = vmatpush.msrb.mxu2 %v306_v17  ;;  %v796_v17 = vld [vmem:[%s9948_s8 + $0x1d0] sm:$0xf] }
 0x135   :  { %v7775_v18 = vpop.f32.mrf.mxu1 }
 0x136   :  { %6556 = vmatpush.msk.msra.mxu2 %vm341_vm9, %v322_v28 }
 0x138   :  { %6607 = vmatmul.msk.f32.vlgmr.msra.gmra.mxu1 %vm328_vm10, %v7671_v44  ;;  %567 = vmatpush.msra.mxu2 %v310_v30 }
 0x139   :  { %6517 = vmatmul.msk.f32.gmra.mxu2 %vm53_vm0, %v7783_v20 }
 0x13a   :  { %6534 = vmatmul.msk.f32.gmra.mxu3 %vm328_vm10, %v7685_v50 }
 0x13d   :  { %v7795_v22 = vpop.f32.mrf.mxu1 }
 0x140   :  { %6608 = vmatmul.msk.f32.gmra.mxu1 %vm328_vm10, %v7678_v47 }
 0x141   :  { %6518 = vmatmul.msk.f32.gmra.mxu2 %vm53_vm0, %v7800_v23 }
 0x142   :  { %6535 = vmatmul.msk.f32.gmra.mxu3 %vm328_vm10, %v7692_v53 }
 0x145   :  { %v7808_v24 = vpop.f32.mrf.mxu1 }
 0x148   :  { %6609 = vmatmul.msk.f32.gmra.mxu1 %vm328_vm10, %v7685_v50 }
 0x149   :  { %6519 = vmatmul.msk.f32.gmra.mxu2 %vm53_vm0, %v7816_v26 }
 0x14a   :  { %6552 = vmatmul.msk.f32.vlgmr.msra.gmra.mxu3 %vm328_vm10, %v7671_v44 }
 0x14b   :  { %6591 = vmatpush.msk.msra.mxu3 %vm341_vm9, %v787_v34 }
 0x14d   :  { %v7832_v29 = vpop.f32.mrf.mxu1  ;;  %878 = vmatpush.msra.mxu3 %v775_v35 }
 0x150   :  { %6610 = vmatmul.msk.f32.gmra.mxu1 %vm328_vm10, %v7692_v53 }
 0x151   :  { %6537 = vmatmul.msk.f32.vlgmr.msrb.gmra.mxu2 %vm328_vm10, %v7671_v44 }
 0x152   :  { %6553 = vmatmul.msk.f32.gmra.mxu3 %vm328_vm10, %v7678_v47  ;;  %6576 = vmatpush.msk.msrb.mxu2 %vm341_vm9, %v326_v36 }
 0x154   :  { %683 = vmatpush.msrb.mxu2 %v314_v38 }
 0x155   :  { %v7843_v31 = vpop.f32.mrf.mxu1 }
 0x156   :  { %9959 = vst [vmem:[#allocation3_spill] sm:$0xff] %v7843_v31 }
 0x158   :  { %6627 = vmatmul.msk.f32.vlgmr.msrb.gmra.mxu1 %vm328_vm10, %v7671_v44 }
 0x159   :  { %6538 = vmatmul.msk.f32.gmra.mxu2 %vm328_vm10, %v7678_v47 }
 0x15a   :  { %6554 = vmatmul.msk.f32.gmra.mxu3 %vm328_vm10, %v7685_v50 }
 0x15d   :  { %v7851_v32 = vpop.f32.mrf.mxu1 }
 0x15e   :  { %9960 = vst [vmem:[#allocation4_spill] sm:$0xff] %v7851_v32 }
 0x160   :  { %6628 = vmatmul.msk.f32.gmra.mxu1 %vm328_vm10, %v7678_v47 }
 0x161   :  { %6539 = vmatmul.msk.f32.gmra.mxu2 %vm328_vm10, %v7685_v50 }
 0x162   :  { %6555 = vmatmul.msk.f32.gmra.mxu3 %vm328_vm10, %v7692_v53 }
 0x165   :  { %v7859_v33 = vpop.f32.mrf.mxu1 }
 0x166   :  { %9961 = vst [vmem:[#allocation5_spill] sm:$0xff] %v7859_v33 }
 0x168   :  { %6629 = vmatmul.msk.f32.gmra.mxu1 %vm328_vm10, %v7685_v50 }
 0x169   :  { %6540 = vmatmul.msk.f32.gmra.mxu2 %vm328_vm10, %v7692_v53 }
 0x16a   :  { %6572 = vmatmul.msk.f32.vlgmr.msrb.gmra.mxu3 %vm328_vm10, %v7671_v44 }
 0x16b   :  { %6611 = vmatpush.msk.msrb.mxu3 %vm341_vm9, %v791_v42 }
 0x16d   :  { %v7878_v37 = vpop.f32.mrf.mxu1  ;;  %994 = vmatpush.msrb.mxu3 %v779_v43 }
 0x16e   :  { %9962 = vst [vmem:[#allocation6_spill] sm:$0xff] %v7878_v37 }
 0x170   :  { %6630 = vmatmul.msk.f32.gmra.mxu1 %vm328_vm10, %v7692_v53 }
 0x171   :  { %6557 = vmatmul.msk.f32.vlgmr.msra.gmra.mxu2 %vm328_vm10, %v7671_v44 }
 0x172   :  { %6573 = vmatmul.msk.f32.gmra.mxu3 %vm328_vm10, %v7678_v47  ;;  %6596 = vmatpush.msk.msra.mxu2 %vm341_vm9, %v788_v45  ;;  %v327_v45 = vld [vmem:[%s9948_s8 + $0x178] sm:$0xf] }
 0x174   :  { %907 = vmatpush.msra.mxu2 %v776_v48  ;;  %v315_v48 = vld [vmem:[%s9948_s8 + $0x58] sm:$0xff] }
 0x175   :  { %v7889_v39 = vpop.f32.mrf.mxu1 }
 0x176   :  { %9963 = vst [vmem:[#allocation7_spill] sm:$0xff] %v7889_v39 }
 0x179   :  { %6558 = vmatmul.msk.f32.gmra.mxu2 %vm328_vm10, %v7678_v47 }
 0x17a   :  { %6574 = vmatmul.msk.f32.gmra.mxu3 %vm328_vm10, %v7685_v50 }
 0x17d   :  { %v7895_v40 = vpop.f32.mrf.mxu1 }
 0x17e   :  { %9964 = vst [vmem:[#allocation8_spill] sm:$0xff] %v7895_v40 }
 0x181   :  { %6559 = vmatmul.msk.f32.gmra.mxu2 %vm328_vm10, %v7685_v50 }
 0x182   :  { %6575 = vmatmul.msk.f32.gmra.mxu3 %vm328_vm10, %v7692_v53 }
 0x185   :  { %v7901_v41 = vpop.f32.mrf.mxu1 }
 0x186   :  { %9965 = vst [vmem:[#allocation9_spill] sm:$0xff] %v7901_v41 }
 0x189   :  { %6560 = vmatmul.msk.f32.gmra.mxu2 %vm328_vm10, %v7692_v53 }
 0x18a   :  { %6592 = vmatmul.msk.f32.vlgmr.msra.gmra.mxu3 %vm328_vm10, %v7671_v44 }
 0x18b   :  { %6631 = vmatpush.msk.msra.mxu3 %vm341_vm9, %v795_v56 }
 0x18d   :  { %v7918_v46 = vpop.f32.mrf.mxu1  ;;  %1110 = vmatpush.msra.mxu3 %v783_v58 }
 0x18e   :  { %9966 = vst [vmem:[#allocation10_spill] sm:$0xff] %v7918_v46 }
 0x191   :  { %6577 = vmatmul.msk.f32.vlgmr.msrb.gmra.mxu2 %vm328_vm10, %v7671_v44 }
 0x192   :  { %6593 = vmatmul.msk.f32.gmra.mxu3 %vm328_vm10, %v7678_v47  ;;  %6616 = vmatpush.msk.msrb.mxu2 %vm341_vm9, %v792_v60 }
 0x194   :  { %1023 = vmatpush.msrb.mxu2 %v780_v63  ;;  %v789_v63 = vld [vmem:[%s9948_s8 + $0x198] sm:$0xf] }
 0x195   :  { %v851_v49 = vpop.f32.mrf.mxu1 }
 0x199   :  { %6578 = vmatmul.msk.f32.gmra.mxu2 %vm328_vm10, %v7678_v47 }
 0x19a   :  { %6594 = vmatmul.msk.f32.gmra.mxu3 %vm328_vm10, %v7685_v50 }
 0x19d   :  { %v243_v51 = vpop.f32.mrf.mxu3  ;;  %v854_v52 = vpop.f32.mrf.mxu1 }
 0x1a1   :  { %6579 = vmatmul.msk.f32.gmra.mxu2 %vm328_vm10, %v7685_v50 }
 0x1a2   :  { %6595 = vmatmul.msk.f32.gmra.mxu3 %vm328_vm10, %v7692_v53 }
 0x1a5   :  { %v246_v54 = vpop.f32.mrf.mxu3  ;;  %v857_v55 = vpop.f32.mrf.mxu1 }
 0x1a6   :  { %263 = vmatpush.msra.mxu0 %v246_v54  ;;  %v1699_v54 = vld [vmem:[%s9948_s8 + $0x1e0] sm:$0xf] }
 0x1a8   :  { %264 = vmatpush.msra.mxu0 %v243_v51 }
 0x1a9   :  { %6522 = vmatmul.msk.f32.vlgmr.msra.gmra.mxu0 %vm53_vm0, %v7760_v15  ;;  %6580 = vmatmul.msk.f32.gmra.mxu2 %vm328_vm10, %v7692_v53  ;;  %v323_v15 = vld [vmem:[%s9948_s8 + $0x158] sm:$0xf] }
 0x1aa   :  { %6612 = vmatmul.msk.f32.vlgmr.msrb.gmra.mxu3 %vm328_vm10, %v7671_v44  ;;  %6541 = vmatpush.msk.msrb.mxu0 %vm341_vm9, %v319_v57  ;;  %v1687_v57 = vld [vmem:[%s9948_s8 + $0xc0] sm:$0xff] }
 0x1ac   :  { %480 = vmatpush.msrb.mxu0 %v307_v59 }
 0x1ad   :  { %v7959_v61 = vpop.f32.mrf.mxu3  ;;  %v860_v62 = vpop.f32.mrf.mxu1 }
 0x1ae   :  { %1255 = vmatpush.msra.mxu1 %v860_v62  ;;  %6561 = vmatpush.msk.msra.mxu0 %vm341_vm9, %v323_v15  ;;  %v1691_v15 = vld [vmem:[%s9948_s8 + $0xe0] sm:$0xff] }
 0x1b0   :  { %1256 = vmatpush.msra.mxu1 %v857_v55  ;;  %596 = vmatpush.msra.mxu0 %v311_v16 }
 0x1b1   :  { %6523 = vmatmul.msk.f32.gmra.mxu0 %vm53_vm0, %v7783_v20  ;;  %6597 = vmatmul.msk.f32.vlgmr.msra.gmra.mxu2 %vm328_vm10, %v7671_v44 }
 0x1b2   :  { %6613 = vmatmul.msk.f32.gmra.mxu3 %vm328_vm10, %v7678_v47  ;;  %1257 = vmatpush.msra.mxu1 %v854_v52 }
 0x1b3   :  { %6636 = vmatpush.msk.msra.mxu2 %vm341_vm9, %v796_v17 }
 0x1b4   :  { %v202_v1 = vpop.f32.mrf.mxu2  ;;  %1258 = vmatpush.msra.mxu1 %v851_v49 }
 0x1b5   :  { %v7976_v2 = vmul.f32 %v202_v1, %v7973_v0  ;;  %v7978_v3 = vpop.f32.mrf.mxu3  ;;  %v967_v4 = vpop.f32.mrf.mxu1  ;;  %v777_v1 = vld [vmem:[%s9948_s8 + $0x78] sm:$0xff] }
 0x1b7   :  { %6646 = vmatmul.msk.f32.vlgmr.msra.gmra.mxu1 %vm1230_vm13, %v7976_v2 }
 0x1b9   :  { %6524 = vmatmul.msk.f32.gmra.mxu0 %vm53_vm0, %v7800_v23  ;;  %6598 = vmatmul.msk.f32.gmra.mxu2 %vm328_vm10, %v7678_v47 }
 0x1ba   :  { %6614 = vmatmul.msk.f32.gmra.mxu3 %vm328_vm10, %v7685_v50 }
 0x1bc   :  { %v205_v6 = vpop.f32.mrf.mxu2 }
 0x1bd   :  { %v7994_v7 = vmul.f32 %v205_v6, %v7991_v5  ;;  %v7996_v8 = vpop.f32.mrf.mxu3  ;;  %v970_v9 = vpop.f32.mrf.mxu1 }
 0x1bf   :  { %6647 = vmatmul.msk.f32.gmra.mxu1 %vm1230_vm13, %v7994_v7 }
 0x1c1   :  { %6525 = vmatmul.msk.f32.gmra.mxu0 %vm53_vm0, %v7816_v26  ;;  %6599 = vmatmul.msk.f32.gmra.mxu2 %vm328_vm10, %v7685_v50  ;;  %v784_v26 = vld [vmem:[%s9948_s8 + $0xb0] sm:$0xff] }
 0x1c2   :  { %6615 = vmatmul.msk.f32.gmra.mxu3 %vm328_vm10, %v7692_v53  ;;  %1139 = vmatpush.msra.mxu2 %v784_v26  ;;  %v793_v26 = vld [vmem:[%s9948_s8 + $0x1b8] sm:$0xf] }
 0x1c4   :  { %v208_v11 = vpop.f32.mrf.mxu2 }
 0x1c5   :  { %v8012_v12 = vmul.f32 %v208_v11, %v8009_v10  ;;  %v8014_v13 = vpop.f32.mrf.mxu3  ;;  %v973_v14 = vpop.f32.mrf.mxu1 }
 0x1c7   :  { %6648 = vmatmul.msk.f32.gmra.mxu1 %vm1230_vm13, %v8012_v12 }
 0x1c9   :  { %6542 = vmatmul.msk.f32.vlgmr.msrb.gmra.mxu0 %vm328_vm10, %v7671_v44  ;;  %6600 = vmatmul.msk.f32.gmra.mxu2 %vm328_vm10, %v7692_v53 }
 0x1ca   :  { %6632 = vmatmul.msk.f32.vlgmr.msra.gmra.mxu3 %vm328_vm10, %v7671_v44  ;;  %6581 = vmatpush.msk.msrb.mxu0 %vm341_vm9, %v327_v45 }
 0x1cc   :  { %v211_v20 = vpop.f32.mrf.mxu2  ;;  %712 = vmatpush.msrb.mxu0 %v315_v48 }
 0x1cd   :  { %v8041_v21 = vmul.f32 %v211_v20, %v8037_v19  ;;  %v8043_v23 = vpop.f32.mrf.mxu3  ;;  %v976_v25 = vpop.f32.mrf.mxu1 }
 0x1ce   :  { %9967 = vst [vmem:[#allocation11_spill] sm:$0xff] %v8043_v23  ;;  %1371 = vmatpush.msrb.mxu1 %v976_v25 }
 0x1cf   :  { %6649 = vmatmul.msk.f32.gmra.mxu1 %vm1230_vm13, %v8041_v21 }
 0x1d0   :  { %1372 = vmatpush.msrb.mxu1 %v973_v14 }
 0x1d1   :  { %6543 = vmatmul.msk.f32.gmra.mxu0 %vm328_vm10, %v7678_v47  ;;  %6617 = vmatmul.msk.f32.vlgmr.msrb.gmra.mxu2 %vm328_vm10, %v7671_v44 }
 0x1d2   :  { %6633 = vmatmul.msk.f32.gmra.mxu3 %vm328_vm10, %v7678_v47  ;;  %1373 = vmatpush.msrb.mxu1 %v970_v9  ;;  %v1703_v9 = vld [vmem:[%s9948_s8 + $0x200] sm:$0xf] }
 0x1d4   :  { %v8056_v27 = vpop.f32.mrf.mxu2  ;;  %1374 = vmatpush.msrb.mxu1 %v967_v4 }
 0x1d5   :  { %v8058_v28 = vpop.f32.mrf.mxu3  ;;  %v1083_v30 = vpop.f32.mrf.mxu1 }
 0x1d6   :  { %9968 = vst [vmem:[#allocation12_spill] sm:$0xff] %v8058_v28 }
 0x1d7   :  { %6662 = vmatmul.msk.f32.vlgmr.msrb.gmra.mxu1 %vm1230_vm13, %v7976_v2 }
 0x1d9   :  { %6544 = vmatmul.msk.f32.gmra.mxu0 %vm328_vm10, %v7685_v50  ;;  %6618 = vmatmul.msk.f32.gmra.mxu2 %vm328_vm10, %v7678_v47 }
 0x1da   :  { %6634 = vmatmul.msk.f32.gmra.mxu3 %vm328_vm10, %v7685_v50 }
 0x1dc   :  { %v8068_v34 = vpop.f32.mrf.mxu2 }
 0x1dd   :  { %v8070_v35 = vpop.f32.mrf.mxu3  ;;  %v1086_v36 = vpop.f32.mrf.mxu1 }
 0x1de   :  { %9969 = vst [vmem:[#allocation13_spill] sm:$0xff] %v8070_v35 }
 0x1df   :  { %6663 = vmatmul.msk.f32.gmra.mxu1 %vm1230_vm13, %v7994_v7 }
 0x1e1   :  { %6545 = vmatmul.msk.f32.gmra.mxu0 %vm328_vm10, %v7692_v53  ;;  %6619 = vmatmul.msk.f32.gmra.mxu2 %vm328_vm10, %v7685_v50 }
 0x1e2   :  { %6635 = vmatmul.msk.f32.gmra.mxu3 %vm328_vm10, %v7692_v53 }
 0x1e4   :  { %v8080_v38 = vpop.f32.mrf.mxu2 }
 0x1e5   :  { %v8082_v42 = vpop.f32.mrf.mxu3  ;;  %v1089_v43 = vpop.f32.mrf.mxu1 }
 0x1e6   :  { %9970 = vst [vmem:[#allocation14_spill] sm:$0xff] %v8082_v42 }
 0x1e7   :  { %6664 = vmatmul.msk.f32.gmra.mxu1 %vm1230_vm13, %v8012_v12 }
 0x1e9   :  { %6562 = vmatmul.msk.f32.vlgmr.msra.gmra.mxu0 %vm328_vm10, %v7671_v44  ;;  %6620 = vmatmul.msk.f32.gmra.mxu2 %vm328_vm10, %v7692_v53 }
 0x1ea   :  { %6601 = vmatpush.msk.msra.mxu0 %vm341_vm9, %v789_v63 }
 0x1ec   :  { %v8097_v49 = vpop.f32.mrf.mxu2  ;;  %936 = vmatpush.msra.mxu0 %v777_v1  ;;  %v1695_v1 = vld [vmem:[%s9948_s8 + $0x100] sm:$0xff] }
 0x1ed   :  { %v8099_v51 = vpop.f32.mrf.mxu3  ;;  %v1092_v52 = vpop.f32.mrf.mxu1 }
 0x1ee   :  { %9971 = vst [vmem:[#allocation15_spill] sm:$0xff] %v8099_v51  ;;  %1487 = vmatpush.msra.mxu1 %v1092_v52  ;;  %v1707_v52 = vld [vmem:[%s9948_s8 + $0x220] sm:$0xf]  ;;  %v1700_v51 = vld [vmem:[%s9948_s8 + $0x1e8] sm:$0xf] }
 0x1ef   :  { %6665 = vmatmul.msk.f32.gmra.mxu1 %vm1230_vm13, %v8041_v21 }
 0x1f0   :  { %1488 = vmatpush.msra.mxu1 %v1089_v43 }
 0x1f1   :  { %6563 = vmatmul.msk.f32.gmra.mxu0 %vm328_vm10, %v7678_v47  ;;  %6637 = vmatmul.msk.f32.vlgmr.msra.gmra.mxu2 %vm328_vm10, %v7671_v44 }
 0x1f2   :  { %1489 = vmatpush.msra.mxu1 %v1086_v36  ;;  %v781_v36 = vld [vmem:[%s9948_s8 + $0x98] sm:$0xff] }
 0x1f4   :  { %v8110_v55 = vpop.f32.mrf.mxu2  ;;  %1490 = vmatpush.msra.mxu1 %v1083_v30 }
 0x1f5   :  { %9972 = vst [vmem:[#allocation16_spill] sm:$0xff] %v8110_v55  ;;  %v8112_v56 = vpop.f32.mrf.mxu3 }
 0x1f6   :  { %9973 = vst [vmem:[#allocation17_spill] sm:$0xff] %v8112_v56  ;;  %6694 = vmatpush.msk.msrb.mxu1 %vm341_vm9, %v1699_v54 }
 0x1f7   :  { %6678 = vmatmul.msk.f32.vlgmr.msra.gmra.mxu1 %vm1230_vm13, %v7976_v2 }
 0x1f8   :  { %1762 = vmatpush.msrb.mxu1 %v1687_v57 }
 0x1f9   :  { %6564 = vmatmul.msk.f32.gmra.mxu0 %vm328_vm10, %v7685_v50  ;;  %6638 = vmatmul.msk.f32.gmra.mxu2 %vm328_vm10, %v7678_v47 }
 0x1fa   :  { %6714 = vmatpush.msk.msra.mxu1 %vm341_vm9, %v1703_v9 }
 0x1fc   :  { %v8124_v58 = vpop.f32.mrf.mxu2  ;;  %1878 = vmatpush.msra.mxu1 %v1691_v15 }
 0x1fd   :  { %9974 = vst [vmem:[#allocation18_spill] sm:$0xff] %v8124_v58  ;;  %v8126_v59 = vpop.f32.mrf.mxu3  ;;  %v7112_v58 = vld [vmem:[%s9953_s9 + $0x20] sm:$0xf0] }
 0x1fe   :  { %9975 = vst [vmem:[#allocation19_spill] sm:$0xff] %v8126_v59 }
 0x1ff   :  { %6679 = vmatmul.msk.f32.gmra.mxu1 %vm1230_vm13, %v7994_v7 }
 0x201   :  { %6565 = vmatmul.msk.f32.gmra.mxu0 %vm328_vm10, %v7692_v53  ;;  %6639 = vmatmul.msk.f32.gmra.mxu2 %vm328_vm10, %v7685_v50 }
 0x204   :  { %v8134_v60 = vpop.f32.mrf.mxu2 }
 0x205   :  { %9976 = vst [vmem:[#allocation20_spill] sm:$0xff] %v8134_v60  ;;  %v8136_v62 = vpop.f32.mrf.mxu3 }
 0x206   :  { %9977 = vst [vmem:[#allocation21_spill] sm:$0xff] %v8136_v62 }
 0x207   :  { %6680 = vmatmul.msk.f32.gmra.mxu1 %vm1230_vm13, %v8012_v12 }
 0x209   :  { %6582 = vmatmul.msk.f32.vlgmr.msrb.gmra.mxu0 %vm328_vm10, %v7671_v44  ;;  %6640 = vmatmul.msk.f32.gmra.mxu2 %vm328_vm10, %v7692_v53 }
 0x20a   :  { %6621 = vmatpush.msk.msrb.mxu0 %vm341_vm9, %v793_v26 }
 0x20c   :  { %v8151_v4 = vpop.f32.mrf.mxu2  ;;  %1052 = vmatpush.msrb.mxu0 %v781_v36 }
 0x20d   :  { %9978 = vst [vmem:[#allocation22_spill] sm:$0xff] %v8151_v4  ;;  %v880_v6 = vpop.f32.mrf.mxu3 }
 0x20f   :  { %6681 = vmatmul.msk.f32.gmra.mxu1 %vm1230_vm13, %v8041_v21 }
 0x211   :  { %6583 = vmatmul.msk.f32.gmra.mxu0 %vm328_vm10, %v7678_v47 }
 0x214   :  { %v8160_v11 = vpop.f32.mrf.mxu2 }
 0x215   :  { %9979 = vst [vmem:[#allocation23_spill] sm:$0xff] %v8160_v11  ;;  %v883_v14 = vpop.f32.mrf.mxu3 }
 0x217   :  { %6695 = vmatmul.msk.f32.vlgmr.msrb.gmra.mxu1 %vm328_vm10, %v7671_v44 }
 0x218   :  { %6734 = vmatpush.msk.msrb.mxu1 %vm341_vm9, %v1707_v52  ;;  %v797_v52 = vld [vmem:[%s9948_s8 + $0x1d8] sm:$0xf] }
 0x219   :  { %6584 = vmatmul.msk.f32.gmra.mxu0 %vm328_vm10, %v7685_v50 }
 0x21a   :  { %1994 = vmatpush.msrb.mxu1 %v1695_v1 }
 0x21c   :  { %v8170_v16 = vpop.f32.mrf.mxu2 }
 0x21d   :  { %9980 = vst [vmem:[#allocation24_spill] sm:$0xff] %v8170_v16  ;;  %v886_v17 = vpop.f32.mrf.mxu3 }
 0x21f   :  { %6696 = vmatmul.msk.f32.gmra.mxu1 %vm328_vm10, %v7678_v47 }
 0x221   :  { %6585 = vmatmul.msk.f32.gmra.mxu0 %vm328_vm10, %v7692_v53 }
 0x224   :  { %v8176_v20 = vpop.f32.mrf.mxu2 }
 0x225   :  { %9981 = vst [vmem:[#allocation25_spill] sm:$0xff] %v8176_v20  ;;  %v889_v25 = vpop.f32.mrf.mxu3 }
 0x226   :  { %v8181_v30 = vpop.f32.mrf.mxu0  ;;  %1284 = vmatpush.msrb.mxu3 %v889_v25 }
 0x227   :  { %6697 = vmatmul.msk.f32.gmra.mxu1 %vm328_vm10, %v7685_v50 }
 0x228   :  { %1285 = vmatpush.msrb.mxu3 %v886_v17 }
 0x229   :  { %6602 = vmatmul.msk.f32.vlgmr.msra.gmra.mxu0 %vm328_vm10, %v7671_v44 }
 0x22a   :  { %1286 = vmatpush.msrb.mxu3 %v883_v14  ;;  %6641 = vmatpush.msk.msra.mxu0 %vm341_vm9, %v797_v52 }
 0x22c   :  { %v8191_v43 = vpop.f32.mrf.mxu2  ;;  %1287 = vmatpush.msrb.mxu3 %v880_v6 }
 0x22d   :  { %9982 = vst [vmem:[#allocation26_spill] sm:$0xff] %v8191_v43  ;;  %v996_v45 = vpop.f32.mrf.mxu3  ;;  %6650 = vmatmul.msk.f32.vlgmr.msrb.gmra.mxu3 %vm1230_vm13, %v7976_v2  ;;  %v785_v43 = vld [vmem:[%s9948_s8 + $0xb8] sm:$0xff] }
 0x22e   :  { %v8195_v48 = vpop.f32.mrf.mxu0  ;;  %1168 = vmatpush.msra.mxu0 %v785_v43 }
 0x22f   :  { %6698 = vmatmul.msk.f32.gmra.mxu1 %vm328_vm10, %v7692_v53 }
 0x231   :  { %6603 = vmatmul.msk.f32.gmra.mxu0 %vm328_vm10, %v7678_v47 }
 0x234   :  { %v909_v54 = vpop.f32.mrf.mxu2  ;;  %v8204_v57 = vpop.f32.mrf.mxu1 }
 0x235   :  { %v999_v63 = vpop.f32.mrf.mxu3  ;;  %6651 = vmatmul.msk.f32.gmra.mxu3 %vm1230_vm13, %v7994_v7 }
 0x236   :  { %v8212_v6 = vpop.f32.mrf.mxu0 }
 0x237   :  { %6715 = vmatmul.msk.f32.vlgmr.msra.gmra.mxu1 %vm328_vm10, %v7671_v44 }
 0x239   :  { %6604 = vmatmul.msk.f32.gmra.mxu0 %vm328_vm10, %v7685_v50 }
 0x23c   :  { %v912_v9 = vpop.f32.mrf.mxu2  ;;  %v8218_v14 = vpop.f32.mrf.mxu1 }
 0x23d   :  { %v1002_v15 = vpop.f32.mrf.mxu3  ;;  %6652 = vmatmul.msk.f32.gmra.mxu3 %vm1230_vm13, %v8012_v12 }
 0x23e   :  { %v8222_v17 = vpop.f32.mrf.mxu0 }
 0x23f   :  { %6716 = vmatmul.msk.f32.gmra.mxu1 %vm328_vm10, %v7678_v47 }
 0x241   :  { %6605 = vmatmul.msk.f32.gmra.mxu0 %vm328_vm10, %v7692_v53 }
 0x244   :  { %v915_v25 = vpop.f32.mrf.mxu2  ;;  %v8228_v26 = vpop.f32.mrf.mxu1 }
 0x245   :  { %v1005_v36 = vpop.f32.mrf.mxu3  ;;  %6653 = vmatmul.msk.f32.gmra.mxu3 %vm1230_vm13, %v8041_v21 }
 0x246   :  { %v8235_v1 = vpop.f32.mrf.mxu0  ;;  %1400 = vmatpush.msra.mxu3 %v1005_v36 }
 0x247   :  { %9983 = vst [vmem:[#allocation27_spill] sm:$0xff] %v8235_v1  ;;  %6717 = vmatmul.msk.f32.gmra.mxu1 %vm328_vm10, %v7685_v50 }
 0x248   :  { %1401 = vmatpush.msra.mxu3 %v1002_v15 }
 0x249   :  { %6622 = vmatmul.msk.f32.vlgmr.msrb.gmra.mxu0 %vm328_vm10, %v7671_v44 }
 0x24a   :  { %1402 = vmatpush.msra.mxu3 %v999_v63 }
 0x24c   :  { %v918_v20 = vpop.f32.mrf.mxu2  ;;  %v8245_v16 = vpop.f32.mrf.mxu1  ;;  %1403 = vmatpush.msra.mxu3 %v996_v45 }
 0x24d   :  { %v1112_v36 = vpop.f32.mrf.mxu3  ;;  %1313 = vmatpush.msrb.mxu2 %v918_v20  ;;  %6666 = vmatmul.msk.f32.vlgmr.msra.gmra.mxu3 %vm1230_vm13, %v7976_v2 }
 0x24e   :  { %v8249_v52 = vpop.f32.mrf.mxu0 }
 0x24f   :  { %9984 = vst [vmem:[#allocation28_spill] sm:$0xff] %v8249_v52  ;;  %1314 = vmatpush.msrb.mxu2 %v915_v25  ;;  %6718 = vmatmul.msk.f32.gmra.mxu1 %vm328_vm10, %v7692_v53 }
 0x251   :  { %6623 = vmatmul.msk.f32.gmra.mxu0 %vm328_vm10, %v7678_v47  ;;  %1315 = vmatpush.msrb.mxu2 %v912_v9 }
 0x253   :  { %1316 = vmatpush.msrb.mxu2 %v909_v54 }
 0x254   :  { %v1025_v43 = vpop.f32.mrf.mxu2  ;;  %6654 = vmatmul.msk.f32.vlgmr.msrb.gmra.mxu2 %vm1230_vm13, %v7976_v2  ;;  %v8257_v45 = vpop.f32.mrf.mxu1 }
 0x255   :  { %9985 = vst [vmem:[#allocation29_spill] sm:$0xff] %v8257_v45  ;;  %v1115_v20 = vpop.f32.mrf.mxu3  ;;  %6667 = vmatmul.msk.f32.gmra.mxu3 %vm1230_vm13, %v7994_v7 }
 0x256   :  { %v8261_v63 = vpop.f32.mrf.mxu0 }
 0x257   :  { %9986 = vst [vmem:[#allocation30_spill] sm:$0xff] %v8261_v63  ;;  %6735 = vmatmul.msk.f32.vlgmr.msrb.gmra.mxu1 %vm328_vm10, %v7671_v44 }
 0x259   :  { %6624 = vmatmul.msk.f32.gmra.mxu0 %vm328_vm10, %v7685_v50 }
 0x25c   :  { %v1028_v9 = vpop.f32.mrf.mxu2  ;;  %6655 = vmatmul.msk.f32.gmra.mxu2 %vm1230_vm13, %v7994_v7  ;;  %v8269_v54 = vpop.f32.mrf.mxu1 }
 0x25d   :  { %9987 = vst [vmem:[#allocation31_spill] sm:$0xff] %v8269_v54  ;;  %v1118_v15 = vpop.f32.mrf.mxu3  ;;  %6668 = vmatmul.msk.f32.gmra.mxu3 %vm1230_vm13, %v8012_v12 }
 0x25e   :  { %v8273_v25 = vpop.f32.mrf.mxu0 }
 0x25f   :  { %9988 = vst [vmem:[#allocation32_spill] sm:$0xff] %v8273_v25  ;;  %6736 = vmatmul.msk.f32.gmra.mxu1 %vm328_vm10, %v7678_v47 }
 0x261   :  { %6625 = vmatmul.msk.f32.gmra.mxu0 %vm328_vm10, %v7692_v53 }
 0x264   :  { %v1031_v11 = vpop.f32.mrf.mxu2  ;;  %6656 = vmatmul.msk.f32.gmra.mxu2 %vm1230_vm13, %v8012_v12  ;;  %v8281_v62 = vpop.f32.mrf.mxu1 }
 0x265   :  { %9989 = vst [vmem:[#allocation33_spill] sm:$0xff] %v8281_v62  ;;  %v1121_v59 = vpop.f32.mrf.mxu3  ;;  %6669 = vmatmul.msk.f32.gmra.mxu3 %vm1230_vm13, %v8041_v21 }
 0x266   :  { %v8285_v56 = vpop.f32.mrf.mxu0  ;;  %1516 = vmatpush.msrb.mxu3 %v1121_v59  ;;  %v1688_v59 = vld [vmem:[%s9948_s8 + $0xc8] sm:$0xff] }
 0x267   :  { %9990 = vst [vmem:[#allocation34_spill] sm:$0xff] %v8285_v56  ;;  %6737 = vmatmul.msk.f32.gmra.mxu1 %vm328_vm10, %v7685_v50 }
 0x268   :  { %1517 = vmatpush.msrb.mxu3 %v1118_v15 }
 0x269   :  { %6642 = vmatmul.msk.f32.vlgmr.msra.gmra.mxu0 %vm328_vm10, %v7671_v44 }
 0x26a   :  { %1518 = vmatpush.msrb.mxu3 %v1115_v20 }
 0x26c   :  { %v1034_v46 = vpop.f32.mrf.mxu2  ;;  %6657 = vmatmul.msk.f32.gmra.mxu2 %vm1230_vm13, %v8041_v21  ;;  %v8296_v41 = vpop.f32.mrf.mxu1  ;;  %1519 = vmatpush.msrb.mxu3 %v1112_v36 }
 0x26d   :  { %9991 = vst [vmem:[#allocation35_spill] sm:$0xff] %v8296_v41  ;;  %1429 = vmatpush.msra.mxu2 %v1034_v46  ;;  %6682 = vmatmul.msk.f32.vlgmr.msrb.gmra.mxu3 %vm1230_vm13, %v7976_v2  ;;  %v6806_v41 = vld [vmem:[%s9953_s9 + $0xc] sm:$0xf0] }
 0x26e   :  { %v8303_v20 = vpop.f32.mrf.mxu0  ;;  %6699 = vmatpush.msk.msra.mxu3 %vm341_vm9, %v1700_v51 }
 0x26f   :  { %9992 = vst [vmem:[#allocation36_spill] sm:$0xff] %v8303_v20  ;;  %1430 = vmatpush.msra.mxu2 %v1031_v11  ;;  %6738 = vmatmul.msk.f32.gmra.mxu1 %vm328_vm10, %v7692_v53 }
 0x270   :  { %1791 = vmatpush.msra.mxu3 %v1688_v59 }
 0x271   :  { %6643 = vmatmul.msk.f32.gmra.mxu0 %vm328_vm10, %v7678_v47  ;;  %1431 = vmatpush.msra.mxu2 %v1028_v9 }
 0x273   :  { %1432 = vmatpush.msra.mxu2 %v1025_v43 }
 0x274   :  { %v1141_v46 = vpop.f32.mrf.mxu2  ;;  %6670 = vmatmul.msk.f32.vlgmr.msra.gmra.mxu2 %vm1230_vm13, %v7976_v2  ;;  %v8312_v36 = vpop.f32.mrf.mxu1 }
 0x275   :  { %9993 = vst [vmem:[#allocation37_spill] sm:$0xff] %v8312_v36  ;;  %6683 = vmatmul.msk.f32.gmra.mxu3 %vm1230_vm13, %v7994_v7  ;;  %v1692_v36 = vld [vmem:[%s9948_s8 + $0xe8] sm:$0xff] }
 0x276   :  { %v8316_v51 = vpop.f32.mrf.mxu0 }
 0x277   :  { %9994 = vst [vmem:[#allocation38_spill] sm:$0xff] %v8316_v51  ;;  %v1693_v51 = vld [vmem:[%s9948_s8 + $0xf0] sm:$0xff] }
 0x279   :  { %6644 = vmatmul.msk.f32.gmra.mxu0 %vm328_vm10, %v7685_v50 }
 0x27c   :  { %v1144_v11 = vpop.f32.mrf.mxu2  ;;  %6671 = vmatmul.msk.f32.gmra.mxu2 %vm1230_vm13, %v7994_v7  ;;  %v8322_v9 = vpop.f32.mrf.mxu1 }
 0x27d   :  { %9995 = vst [vmem:[#allocation39_spill] sm:$0xff] %v8322_v9  ;;  %6684 = vmatmul.msk.f32.gmra.mxu3 %vm1230_vm13, %v8012_v12  ;;  %v1704_v9 = vld [vmem:[%s9948_s8 + $0x208] sm:$0xf] }
 0x27e   :  { %v8326_v43 = vpop.f32.mrf.mxu0  ;;  %6719 = vmatpush.msk.msrb.mxu3 %vm341_vm9, %v1704_v9  ;;  %v1701_v9 = vld [vmem:[%s9948_s8 + $0x1f0] sm:$0xf] }
 0x27f   :  { %9996 = vst [vmem:[#allocation40_spill] sm:$0xff] %v8326_v43 }
 0x280   :  { %1907 = vmatpush.msrb.mxu3 %v1692_v36 }
 0x281   :  { %6645 = vmatmul.msk.f32.gmra.mxu0 %vm328_vm10, %v7692_v53 }
 0x284   :  { %v1147_v15 = vpop.f32.mrf.mxu2  ;;  %6672 = vmatmul.msk.f32.gmra.mxu2 %vm1230_vm13, %v8012_v12  ;;  %v8332_v59 = vpop.f32.mrf.mxu1 }
 0x285   :  { %9997 = vst [vmem:[#allocation41_spill] sm:$0xff] %v8332_v59  ;;  %6685 = vmatmul.msk.f32.gmra.mxu3 %vm1230_vm13, %v8041_v21 }
 0x286   :  { %v8336_v40 = vpop.f32.mrf.mxu0 }
 0x287   :  { %9998 = vst [vmem:[#allocation42_spill] sm:$0xff] %v8336_v40 }
 0x28c   :  { %v1150_v39 = vpop.f32.mrf.mxu2  ;;  %6673 = vmatmul.msk.f32.gmra.mxu2 %vm1230_vm13, %v8041_v21  ;;  %v8347_v59 = vpop.f32.mrf.mxu1 }
 0x28d   :  { %9999 = vst [vmem:[#allocation43_spill] sm:$0xff] %v8347_v59  ;;  %1545 = vmatpush.msrb.mxu2 %v1150_v39  ;;  %6700 = vmatmul.msk.f32.vlgmr.msra.gmra.mxu3 %vm328_vm10, %v7671_v44  ;;  %v1689_v39 = vld [vmem:[%s9948_s8 + $0xd0] sm:$0xff] }
 0x28e   :  { %v8351_v40 = vpop.f32.mrf.mxu0 }
 0x28f   :  { %10000 = vst [vmem:[#allocation44_spill] sm:$0xff] %v8351_v40  ;;  %1546 = vmatpush.msrb.mxu2 %v1147_v15  ;;  %v1705_v40 = vld [vmem:[%s9948_s8 + $0x210] sm:$0xf] }
 0x291   :  { %1547 = vmatpush.msrb.mxu2 %v1144_v11 }
 0x293   :  { %1548 = vmatpush.msrb.mxu2 %v1141_v46 }
 0x294   :  { %6686 = vmatmul.msk.f32.vlgmr.msrb.gmra.mxu2 %vm1230_vm13, %v7976_v2  ;;  %v1764_v43 = vpop.f32.mrf.mxu1 }
 0x295   :  { %6701 = vmatmul.msk.f32.gmra.mxu3 %vm328_vm10, %v7678_v47  ;;  %6704 = vmatpush.msk.msra.mxu2 %vm341_vm9, %v1701_v9 }
 0x296   :  { %v8364_v36 = vpop.f32.mrf.mxu0 }
 0x297   :  { %10001 = vst [vmem:[#allocation45_spill] sm:$0xff] %v8364_v36  ;;  %1820 = vmatpush.msra.mxu2 %v1689_v39  ;;  %v1708_v39 = vld [vmem:[%s9948_s8 + $0x228] sm:$0xf] }
 0x298   :  { %6739 = vmatpush.msk.msra.mxu3 %vm341_vm9, %v1708_v39  ;;  %v1696_v36 = vld [vmem:[%s9948_s8 + $0x108] sm:$0xff] }
 0x299   :  { %6724 = vmatpush.msk.msrb.mxu2 %vm341_vm9, %v1705_v40 }
 0x29a   :  { %2023 = vmatpush.msra.mxu3 %v1696_v36  ;;  %v8398_v36 = vmul.f32 %v8181_v30, %v7973_v0 }
 0x29b   :  { %1936 = vmatpush.msrb.mxu2 %v1693_v51 }
 0x29c   :  { %6687 = vmatmul.msk.f32.gmra.mxu2 %vm1230_vm13, %v7994_v7  ;;  %v1767_v46 = vpop.f32.mrf.mxu1 }
 0x29d   :  { %6702 = vmatmul.msk.f32.gmra.mxu3 %vm328_vm10, %v7685_v50 }
 0x29e   :  { %v8370_v11 = vpop.f32.mrf.mxu0 }
 0x29f   :  { %10002 = vst [vmem:[#allocation46_spill] sm:$0xff] %v8370_v11 }
 0x2a4   :  { %6688 = vmatmul.msk.f32.gmra.mxu2 %vm1230_vm13, %v8012_v12  ;;  %v1770_v15 = vpop.f32.mrf.mxu1 }
 0x2a5   :  { %6703 = vmatmul.msk.f32.gmra.mxu3 %vm328_vm10, %v7692_v53 }
 0x2a6   :  { %v938_v9 = vpop.f32.mrf.mxu0 }
 0x2ac   :  { %6689 = vmatmul.msk.f32.gmra.mxu2 %vm1230_vm13, %v8041_v21  ;;  %v1773_v11 = vpop.f32.mrf.mxu1 }
 0x2ad   :  { %6720 = vmatmul.msk.f32.vlgmr.msrb.gmra.mxu3 %vm328_vm10, %v7671_v44  ;;  %2167 = vmatpush.msra.mxu1 %v1773_v11 }
 0x2ae   :  { %v941_v59 = vpop.f32.mrf.mxu0 }
 0x2af   :  { %2168 = vmatpush.msra.mxu1 %v1770_v15  ;;  %v8410_v15 = vmul.f32 %v8195_v48, %v7991_v5 }
 0x2b0   :  { %v8391_v39 = vpop.f32.mrf.mxu3 }
 0x2b1   :  { %2169 = vmatpush.msra.mxu1 %v1767_v46  ;;  %v8824_v25 = vpack.c.bf16 %v8410_v15, %v8398_v36 }
 0x2b3   :  { %2170 = vmatpush.msra.mxu1 %v1764_v43  ;;  %v8422_v43 = vmul.f32 %v8212_v6, %v8009_v10  ;;  %v8436_v10 = vmul.f32 %v8222_v17, %v8037_v19  ;;  %v1697_v17 = vld [vmem:[%s9948_s8 + $0x110] sm:$0xff] }
 0x2b4   :  { %6705 = vmatmul.msk.f32.vlgmr.msra.gmra.mxu2 %vm328_vm10, %v7671_v44  ;;  %v1880_v11 = vpop.f32.mrf.mxu1  ;;  %6754 = vmatmul.msk.f32.vlgmr.msra.gmra.mxu1 %vm1230_vm13, %v8398_v36 }
 0x2b5   :  { %6721 = vmatmul.msk.f32.gmra.mxu3 %vm328_vm10, %v7678_v47 }
 0x2b6   :  { %v944_v40 = vpop.f32.mrf.mxu0 }
 0x2b8   :  { %v8406_v46 = vpop.f32.mrf.mxu3 }
 0x2bc   :  { %6706 = vmatmul.msk.f32.gmra.mxu2 %vm328_vm10, %v7678_v47  ;;  %v1883_v0 = vpop.f32.mrf.mxu1  ;;  %6755 = vmatmul.msk.f32.gmra.mxu1 %vm1230_vm13, %v8410_v15 }
 0x2bd   :  { %6722 = vmatmul.msk.f32.gmra.mxu3 %vm328_vm10, %v7685_v50 }
 0x2be   :  { %v947_v30 = vpop.f32.mrf.mxu0 }
 0x2bf   :  { %1342 = vmatpush.msrb.mxu0 %v947_v30 }
 0x2c0   :  { %v8418_v51 = vpop.f32.mrf.mxu3 }
 0x2c1   :  { %1343 = vmatpush.msrb.mxu0 %v944_v40 }
 0x2c3   :  { %1344 = vmatpush.msrb.mxu0 %v941_v59  ;;  %v1709_v59 = vld [vmem:[%s9948_s8 + $0x230] sm:$0xf] }
 0x2c4   :  { %6707 = vmatmul.msk.f32.gmra.mxu2 %vm328_vm10, %v7685_v50  ;;  %v1886_v5 = vpop.f32.mrf.mxu1  ;;  %6756 = vmatmul.msk.f32.gmra.mxu1 %vm1230_vm13, %v8422_v43 }
 0x2c5   :  { %1345 = vmatpush.msrb.mxu0 %v938_v9  ;;  %6723 = vmatmul.msk.f32.gmra.mxu3 %vm328_vm10, %v7692_v53 }
 0x2c6   :  { %v1054_v48 = vpop.f32.mrf.mxu0  ;;  %6658 = vmatmul.msk.f32.vlgmr.msrb.gmra.mxu0 %vm1230_vm13, %v7976_v2  ;;  %6744 = vmatpush.msk.msra.mxu2 %vm341_vm9, %v1709_v59 }
 0x2c8   :  { %v8432_v40 = vpop.f32.mrf.mxu3  ;;  %2052 = vmatpush.msra.mxu2 %v1697_v17 }
 0x2cc   :  { %6708 = vmatmul.msk.f32.gmra.mxu2 %vm328_vm10, %v7692_v53  ;;  %v1889_v6 = vpop.f32.mrf.mxu1  ;;  %6757 = vmatmul.msk.f32.gmra.mxu1 %vm1230_vm13, %v8436_v10 }
 0x2cd   :  { %6740 = vmatmul.msk.f32.vlgmr.msra.gmra.mxu3 %vm328_vm10, %v7671_v44  ;;  %2283 = vmatpush.msrb.mxu1 %v1889_v6 }
 0x2ce   :  { %v1057_v9 = vpop.f32.mrf.mxu0  ;;  %6659 = vmatmul.msk.f32.gmra.mxu0 %vm1230_vm13, %v7994_v7 }
 0x2cf   :  { %2284 = vmatpush.msrb.mxu1 %v1886_v5 }
 0x2d0   :  { %v8450_v19 = vpop.f32.mrf.mxu3 }
 0x2d1   :  { %10003 = vst [vmem:[#allocation47_spill] sm:$0xff] %v8450_v19  ;;  %2285 = vmatpush.msrb.mxu1 %v1883_v0  ;;  %v7111_v19 = vld [vmem:[%s9953_s9 + $0x1c] sm:$0xf] }
 0x2d3   :  { %2286 = vmatpush.msrb.mxu1 %v1880_v11 }
 0x2d4   :  { %6725 = vmatmul.msk.f32.vlgmr.msrb.gmra.mxu2 %vm328_vm10, %v7671_v44  ;;  %v1996_v30 = vpop.f32.mrf.mxu1  ;;  %6770 = vmatmul.msk.f32.vlgmr.msrb.gmra.mxu1 %vm1230_vm13, %v8398_v36 }
 0x2d5   :  { %6741 = vmatmul.msk.f32.gmra.mxu3 %vm328_vm10, %v7678_v47 }
 0x2d6   :  { %v1060_v5 = vpop.f32.mrf.mxu0  ;;  %6660 = vmatmul.msk.f32.gmra.mxu0 %vm1230_vm13, %v8012_v12 }
 0x2d7   :  { %v8463_v0 = vpop.f32.mrf.mxu2 }
 0x2d8   :  { %v8465_v6 = vpop.f32.mrf.mxu3 }
 0x2d9   :  { %10004 = vst [vmem:[#allocation48_spill] sm:$0xff] %v8465_v6 }
 0x2dc   :  { %6726 = vmatmul.msk.f32.gmra.mxu2 %vm328_vm10, %v7678_v47  ;;  %v1999_v11 = vpop.f32.mrf.mxu1  ;;  %6771 = vmatmul.msk.f32.gmra.mxu1 %vm1230_vm13, %v8410_v15 }
 0x2dd   :  { %6742 = vmatmul.msk.f32.gmra.mxu3 %vm328_vm10, %v7685_v50 }
 0x2de   :  { %v1063_v59 = vpop.f32.mrf.mxu0  ;;  %6661 = vmatmul.msk.f32.gmra.mxu0 %vm1230_vm13, %v8041_v21 }
 0x2df   :  { %v8475_v17 = vpop.f32.mrf.mxu2  ;;  %1458 = vmatpush.msra.mxu0 %v1063_v59 }
 0x2e0   :  { %v8477_v20 = vpop.f32.mrf.mxu3 }
 0x2e1   :  { %10005 = vst [vmem:[#allocation49_spill] sm:$0xff] %v8477_v20  ;;  %1459 = vmatpush.msra.mxu0 %v1060_v5  ;;  %v6816_v5 = vld [vmem:[%s9953_s9 + $0x18] sm:$0xf]  ;;  %v7109_v20 = vld [vmem:[%s9953_s9 + $0x8] sm:$0xf0] }
 0x2e2   :  { %v8507_v42 = vor.u32 %v7112_v58, %v6816_v5 }
 0x2e3   :  { %1460 = vmatpush.msra.mxu0 %v1057_v9 }
 0x2e4   :  { %6727 = vmatmul.msk.f32.gmra.mxu2 %vm328_vm10, %v7685_v50  ;;  %v2002_v56 = vpop.f32.mrf.mxu1  ;;  %6772 = vmatmul.msk.f32.gmra.mxu1 %vm1230_vm13, %v8422_v43 }
 0x2e5   :  { %1461 = vmatpush.msra.mxu0 %v1054_v48  ;;  %6743 = vmatmul.msk.f32.gmra.mxu3 %vm328_vm10, %v7692_v53 }
 0x2e6   :  { %v1170_v4 = vpop.f32.mrf.mxu0  ;;  %6674 = vmatmul.msk.f32.vlgmr.msra.gmra.mxu0 %vm1230_vm13, %v7976_v2 }
 0x2e7   :  { %v8487_v59 = vpop.f32.mrf.mxu2 }
 0x2e8   :  { %v8489_v60 = vpop.f32.mrf.mxu3 }
 0x2e9   :  { %10006 = vst [vmem:[#allocation50_spill] sm:$0xff] %v8489_v60 }
 0x2ec   :  { %6728 = vmatmul.msk.f32.gmra.mxu2 %vm328_vm10, %v7692_v53  ;;  %v2005_v9 = vpop.f32.mrf.mxu1  ;;  %6773 = vmatmul.msk.f32.gmra.mxu1 %vm1230_vm13, %v8436_v10 }
 0x2ed   :  { %2399 = vmatpush.msra.mxu1 %v2005_v9  ;;  %v6804_v9 = vld [vmem:[%s9953_s9] sm:$0xf] }
 0x2ee   :  { %v1173_v48 = vpop.f32.mrf.mxu0  ;;  %6675 = vmatmul.msk.f32.gmra.mxu0 %vm1230_vm13, %v7994_v7 }
 0x2ef   :  { %v8503_v55 = vpop.f32.mrf.mxu2  ;;  %2400 = vmatpush.msra.mxu1 %v2002_v56  ;;  %v8520_v56 = vor.u32 %v7109_v20, %v6804_v9 }
 0x2f0   :  { %v8505_v60 = vpop.f32.mrf.mxu3 }
 0x2f1   :  { %10007 = vst [vmem:[#allocation51_spill] sm:$0xff] %v8505_v60  ;;  %2401 = vmatpush.msra.mxu1 %v1999_v11  ;;  %v9957_v60 = vmov 0  }
 0x2f3   :  { %2402 = vmatpush.msra.mxu1 %v1996_v30 }
 0x2f4   :  { %6745 = vmatmul.msk.f32.vlgmr.msra.gmra.mxu2 %vm328_vm10, %v7671_v44  ;;  %6786 = vmatmul.msk.f32.vlgmr.msra.gmra.mxu1 %vm1230_vm13, %v8398_v36 }
 0x2f5   :  { %2650 = vmatpush.bf16.msrb.mxu1 %v8507_v42 }
 0x2f6   :  { %v1176_v58 = vpop.f32.mrf.mxu0  ;;  %6676 = vmatmul.msk.f32.gmra.mxu0 %vm1230_vm13, %v8012_v12 }
 0x2f7   :  { %v8524_v11 = vpop.f32.mrf.mxu2 }
 0x2f8   :  { %10008 = vst [vmem:[#allocation52_spill] sm:$0xff] %v8524_v11  ;;  %v8526_v5 = vpop.f32.mrf.mxu3 }
 0x2f9   :  { %10009 = vst [vmem:[#allocation53_spill] sm:$0xff] %v8526_v5  ;;  %2651 = vmatpush.bf16.msrb.mxu1 %v8520_v56  ;;  %v1702_v5 = vld [vmem:[%s9948_s8 + $0x1f8] sm:$0xf] }
 0x2fc   :  { %6746 = vmatmul.msk.f32.gmra.mxu2 %vm328_vm10, %v7678_v47  ;;  %6787 = vmatmul.msk.f32.gmra.mxu1 %vm1230_vm13, %v8410_v15 }
 0x2fe   :  { %v1179_v30 = vpop.f32.mrf.mxu0  ;;  %6677 = vmatmul.msk.f32.gmra.mxu0 %vm1230_vm13, %v8041_v21 }
 0x2ff   :  { %v8535_v20 = vpop.f32.mrf.mxu2  ;;  %1574 = vmatpush.msrb.mxu0 %v1179_v30  ;;  %v1690_v30 = vld [vmem:[%s9948_s8 + $0xd8] sm:$0xff] }
 0x300   :  { %10010 = vst [vmem:[#allocation54_spill] sm:$0xff] %v8535_v20  ;;  %v8537_v9 = vpop.f32.mrf.mxu3  ;;  %v1694_v20 = vld [vmem:[%s9948_s8 + $0xf8] sm:$0xff] }
 0x301   :  { %10011 = vst [vmem:[#allocation55_spill] sm:$0xff] %v8537_v9  ;;  %1575 = vmatpush.msrb.mxu0 %v1176_v58 }
 0x303   :  { %1576 = vmatpush.msrb.mxu0 %v1173_v48 }
 0x304   :  { %6747 = vmatmul.msk.f32.gmra.mxu2 %vm328_vm10, %v7685_v50  ;;  %6788 = vmatmul.msk.f32.gmra.mxu1 %vm1230_vm13, %v8422_v43 }
 0x305   :  { %1577 = vmatpush.msrb.mxu0 %v1170_v4 }
 0x306   :  { %6690 = vmatmul.msk.f32.vlgmr.msrb.gmra.mxu0 %vm1230_vm13, %v7976_v2 }
 0x307   :  { %v8551_v58 = vpop.f32.mrf.mxu2  ;;  %6709 = vmatpush.msk.msra.mxu0 %vm341_vm9, %v1702_v5 }
 0x308   :  { %10012 = vst [vmem:[#allocation56_spill] sm:$0xff] %v8551_v58  ;;  %v8554_v48 = vpop.f32.mrf.mxu3 }
 0x309   :  { %10013 = vst [vmem:[#allocation57_spill] sm:$0xff] %v8554_v48  ;;  %1849 = vmatpush.msra.mxu0 %v1690_v30 }
 0x30c   :  { %6748 = vmatmul.msk.f32.gmra.mxu2 %vm328_vm10, %v7692_v53  ;;  %6789 = vmatmul.msk.f32.gmra.mxu1 %vm1230_vm13, %v8436_v10 }
 0x30e   :  { %6691 = vmatmul.msk.f32.gmra.mxu0 %vm1230_vm13, %v7994_v7 }
 0x30f   :  { %v8562_v4 = vpop.f32.mrf.mxu2 }
 0x310   :  { %10014 = vst [vmem:[#allocation58_spill] sm:$0xff] %v8562_v4  ;;  %v1793_v9 = vpop.f32.mrf.mxu3  ;;  %v1706_v4 = vld [vmem:[%s9948_s8 + $0x218] sm:$0xf] }
 0x311   :  { %6729 = vmatpush.msk.msrb.mxu0 %vm341_vm9, %v1706_v4 }
 0x313   :  { %1965 = vmatpush.msrb.mxu0 %v1694_v20 }
 0x314   :  { %2652 = vmatmul.bf16.vlgmr.msrb.gmra.mxu1 %v9957_v60 }
 0x316   :  { %6692 = vmatmul.msk.f32.gmra.mxu0 %vm1230_vm13, %v8012_v12 }
 0x317   :  { %v8567_v5 = vpop.f32.mrf.mxu2 }
 0x318   :  { %10015 = vst [vmem:[#allocation59_spill] sm:$0xff] %v8567_v5  ;;  %v1796_v30 = vpop.f32.mrf.mxu3 }
 0x31e   :  { %6693 = vmatmul.msk.f32.gmra.mxu0 %vm1230_vm13, %v8041_v21 }
 0x31f   :  { %v8571_v48 = vpop.f32.mrf.mxu2 }
 0x320   :  { %10016 = vst [vmem:[#allocation60_spill] sm:$0xff] %v8571_v48  ;;  %v1799_v58 = vpop.f32.mrf.mxu3 }
 0x324   :  { %2657 = vmatmul.bf16.gmra.mxu1 %v9957_v60 }
 0x326   :  { %6710 = vmatmul.msk.f32.vlgmr.msra.gmra.mxu0 %vm328_vm10, %v7671_v44 }
 0x327   :  { %v8583_v5 = vpop.f32.mrf.mxu2 }
 0x328   :  { %10017 = vst [vmem:[#allocation61_spill] sm:$0xff] %v8583_v5  ;;  %v1802_v48 = vpop.f32.mrf.mxu3 }
 0x329   :  { %2196 = vmatpush.msrb.mxu3 %v1802_v48 }
 0x32b   :  { %2197 = vmatpush.msrb.mxu3 %v1799_v58 }
 0x32d   :  { %2198 = vmatpush.msrb.mxu3 %v1796_v30 }
 0x32e   :  { %6711 = vmatmul.msk.f32.gmra.mxu0 %vm328_vm10, %v7678_v47 }
 0x32f   :  { %v8587_v4 = vpop.f32.mrf.mxu2  ;;  %2199 = vmatpush.msrb.mxu3 %v1793_v9  ;;  %v1710_v9 = vld [vmem:[%s9948_s8 + $0x238] sm:$0xf] }
 0x330   :  { %10018 = vst [vmem:[#allocation62_spill] sm:$0xff] %v8587_v4  ;;  %v1909_v60 = vpop.f32.mrf.mxu3  ;;  %6758 = vmatmul.msk.f32.vlgmr.msrb.gmra.mxu3 %vm1230_vm13, %v8398_v36  ;;  %6749 = vmatpush.msk.msra.mxu0 %vm341_vm9, %v1710_v9  ;;  %v1698_v4 = vld [vmem:[%s9948_s8 + $0x118] sm:$0xff] }
 0x332   :  { %2081 = vmatpush.msra.mxu0 %v1698_v4 }
 0x336   :  { %6712 = vmatmul.msk.f32.gmra.mxu0 %vm328_vm10, %v7685_v50 }
 0x337   :  { %v1822_v20 = vpop.f32.mrf.mxu2 }
 0x338   :  { %v1912_v11 = vpop.f32.mrf.mxu3  ;;  %6759 = vmatmul.msk.f32.gmra.mxu3 %vm1230_vm13, %v8410_v15 }
 0x33e   :  { %6713 = vmatmul.msk.f32.gmra.mxu0 %vm328_vm10, %v7692_v53 }
 0x33f   :  { %v1825_v58 = vpop.f32.mrf.mxu2 }
 0x340   :  { %v1915_v48 = vpop.f32.mrf.mxu3  ;;  %6760 = vmatmul.msk.f32.gmra.mxu3 %vm1230_vm13, %v8422_v43 }
 0x343   :  { %v8602_v30 = vpop.f32.mrf.mxu0 }
 0x344   :  { %10019 = vst [vmem:[#allocation63_spill] sm:$0xff] %v8602_v30 }
 0x346   :  { %6730 = vmatmul.msk.f32.vlgmr.msrb.gmra.mxu0 %vm328_vm10, %v7671_v44 }
 0x347   :  { %v1828_v5 = vpop.f32.mrf.mxu2 }
 0x348   :  { %v1918_v35 = vpop.f32.mrf.mxu3  ;;  %6761 = vmatmul.msk.f32.gmra.mxu3 %vm1230_vm13, %v8436_v10 }
 0x349   :  { %2312 = vmatpush.msra.mxu3 %v1918_v35 }
 0x34b   :  { %v8612_v6 = vpop.f32.mrf.mxu0  ;;  %2313 = vmatpush.msra.mxu3 %v1915_v48 }
 0x34c   :  { %10020 = vst [vmem:[#allocation64_spill] sm:$0xff] %v8612_v6 }
 0x34d   :  { %2314 = vmatpush.msra.mxu3 %v1912_v11 }
 0x34e   :  { %6731 = vmatmul.msk.f32.gmra.mxu0 %vm328_vm10, %v7678_v47 }
 0x34f   :  { %v1831_v9 = vpop.f32.mrf.mxu2  ;;  %2315 = vmatpush.msra.mxu3 %v1909_v60 }
 0x350   :  { %v2025_v28 = vpop.f32.mrf.mxu3  ;;  %2225 = vmatpush.msrb.mxu2 %v1831_v9  ;;  %6774 = vmatmul.msk.f32.vlgmr.msra.gmra.mxu3 %vm1230_vm13, %v8398_v36 }
 0x352   :  { %2226 = vmatpush.msrb.mxu2 %v1828_v5 }
 0x353   :  { %v8618_v4 = vpop.f32.mrf.mxu0 }
 0x354   :  { %10021 = vst [vmem:[#allocation65_spill] sm:$0xff] %v8618_v4  ;;  %2227 = vmatpush.msrb.mxu2 %v1825_v58 }
 0x356   :  { %6732 = vmatmul.msk.f32.gmra.mxu0 %vm328_vm10, %v7685_v50  ;;  %2228 = vmatpush.msrb.mxu2 %v1822_v20 }
 0x357   :  { %v1938_v35 = vpop.f32.mrf.mxu2  ;;  %6762 = vmatmul.msk.f32.vlgmr.msrb.gmra.mxu2 %vm1230_vm13, %v8398_v36 }
 0x358   :  { %v2028_v11 = vpop.f32.mrf.mxu3  ;;  %6775 = vmatmul.msk.f32.gmra.mxu3 %vm1230_vm13, %v8410_v15 }
 0x35b   :  { %v8626_v60 = vpop.f32.mrf.mxu0 }
 0x35c   :  { %10022 = vst [vmem:[#allocation66_spill] sm:$0xff] %v8626_v60  ;;  %v8806_v60 = vpack.c.bf16 %v7994_v7, %v7976_v2 }
 0x35e   :  { %6733 = vmatmul.msk.f32.gmra.mxu0 %vm328_vm10, %v7692_v53 }
 0x35f   :  { %v1941_v5 = vpop.f32.mrf.mxu2  ;;  %6763 = vmatmul.msk.f32.gmra.mxu2 %vm1230_vm13, %v8410_v15 }
 0x360   :  { %v2031_v58 = vpop.f32.mrf.mxu3  ;;  %6776 = vmatmul.msk.f32.gmra.mxu3 %vm1230_vm13, %v8422_v43 }
 0x363   :  { %v8634_v20 = vpop.f32.mrf.mxu0 }
 0x364   :  { %10023 = vst [vmem:[#allocation67_spill] sm:$0xff] %v8634_v20  ;;  %v6818_v20 = vld [vmem:[%s9953_s9 + $0x24] sm:$0xf0] }
 0x366   :  { %6750 = vmatmul.msk.f32.vlgmr.msra.gmra.mxu0 %vm328_vm10, %v7671_v44  ;;  %v8650_v44 = vor.u32 %v7111_v19, %v6818_v20  ;;  %v7113_v20 = vld [vmem:[%s9953_s9 + $0x28] sm:$0xf0] }
 0x367   :  { %v1944_v48 = vpop.f32.mrf.mxu2  ;;  %6764 = vmatmul.msk.f32.gmra.mxu2 %vm1230_vm13, %v8422_v43 }
 0x368   :  { %v2034_v9 = vpop.f32.mrf.mxu3  ;;  %6777 = vmatmul.msk.f32.gmra.mxu3 %vm1230_vm13, %v8436_v10 }
 0x369   :  { %2428 = vmatpush.msrb.mxu3 %v2034_v9  ;;  %v7108_v9 = vld [vmem:[%s9953_s9 + $0x4] sm:$0xf] }
 0x36b   :  { %v8648_v23 = vpop.f32.mrf.mxu0  ;;  %2429 = vmatpush.msrb.mxu3 %v2031_v58  ;;  %v6824_v58 = vld [vmem:[%s9953_s9 + $0x20] sm:$0xf] }
 0x36c   :  { %10024 = vst [vmem:[#allocation68_spill] sm:$0xff] %v8648_v23 }
 0x36d   :  { %2430 = vmatpush.msrb.mxu3 %v2028_v11 }
 0x36e   :  { %6751 = vmatmul.msk.f32.gmra.mxu0 %vm328_vm10, %v7678_v47  ;;  %v8665_v47 = vor.u32 %v7108_v9, %v6806_v41  ;;  %v8705_v9 = vor.u32 %v7113_v20, %v6824_v58 }
 0x36f   :  { %v1947_v37 = vpop.f32.mrf.mxu2  ;;  %6765 = vmatmul.msk.f32.gmra.mxu2 %vm1230_vm13, %v8436_v10  ;;  %2431 = vmatpush.msrb.mxu3 %v2025_v28 }
 0x370   :  { %2341 = vmatpush.msra.mxu2 %v1947_v37  ;;  %6790 = vmatmul.msk.f32.vlgmr.msrb.gmra.mxu3 %vm1230_vm13, %v8398_v36 }
 0x371   :  { %2669 = vmatpush.bf16.msra.mxu3 %v8650_v44 }
 0x372   :  { %2342 = vmatpush.msra.mxu2 %v1944_v48 }
 0x373   :  { %v8667_v19 = vpop.f32.mrf.mxu0 }
 0x374   :  { %10025 = vst [vmem:[#allocation69_spill] sm:$0xff] %v8667_v19  ;;  %2343 = vmatpush.msra.mxu2 %v1941_v5 }
 0x375   :  { %2670 = vmatpush.bf16.msra.mxu3 %v8665_v47 }
 0x376   :  { %6752 = vmatmul.msk.f32.gmra.mxu0 %vm328_vm10, %v7685_v50  ;;  %2344 = vmatpush.msra.mxu2 %v1938_v35 }
 0x377   :  { %v2054_v11 = vpop.f32.mrf.mxu2  ;;  %6778 = vmatmul.msk.f32.vlgmr.msra.gmra.mxu2 %vm1230_vm13, %v8398_v36 }
 0x378   :  { %6791 = vmatmul.msk.f32.gmra.mxu3 %vm1230_vm13, %v8410_v15 }
 0x379   :  { %2950 = vmatpush.bf16.msrb.mxu3 %v8507_v42 }
 0x37b   :  { %v8677_v37 = vpop.f32.mrf.mxu0 }
 0x37c   :  { %10026 = vst [vmem:[#allocation70_spill] sm:$0xff] %v8677_v37 }
 0x37d   :  { %2951 = vmatpush.bf16.msrb.mxu3 %v8520_v56 }
 0x37e   :  { %6753 = vmatmul.msk.f32.gmra.mxu0 %vm328_vm10, %v7692_v53  ;;  %v10029_v53 = vmov 0  }
 0x37f   :  { %v2057_v41 = vpop.f32.mrf.mxu2  ;;  %6779 = vmatmul.msk.f32.gmra.mxu2 %vm1230_vm13, %v8410_v15 }
 0x380   :  { %6792 = vmatmul.msk.f32.gmra.mxu3 %vm1230_vm13, %v8422_v43 }
 0x383   :  { %v8686_v50 = vpop.f32.mrf.mxu0 }
 0x384   :  { %10027 = vst [vmem:[#allocation71_spill] sm:$0xff] %v8686_v50 }
 0x387   :  { %v2060_v28 = vpop.f32.mrf.mxu2  ;;  %6780 = vmatmul.msk.f32.gmra.mxu2 %vm1230_vm13, %v8422_v43 }
 0x388   :  { %6793 = vmatmul.msk.f32.gmra.mxu3 %vm1230_vm13, %v8436_v10 }
 0x38b   :  { %v8692_v35 = vpop.f32.mrf.mxu0 }
 0x38c   :  { %10028 = vst [vmem:[#allocation72_spill] sm:$0xff] %v8692_v35  ;;  %v7110_v35 = vld [vmem:[%s9953_s9 + $0x10] sm:$0xf0] }
 0x38f   :  { %v2063_v5 = vpop.f32.mrf.mxu2  ;;  %6781 = vmatmul.msk.f32.gmra.mxu2 %vm1230_vm13, %v8436_v10 }
 0x390   :  { %2457 = vmatpush.msrb.mxu2 %v2063_v5  ;;  %2671 = vmatmul.bf16.vlgmr.msra.gmra.mxu3 %v10029_v53  ;;  %v6812_v5 = vld [vmem:[%s9953_s9 + $0x8] sm:$0xf] }
 0x392   :  { %2458 = vmatpush.msrb.mxu2 %v2060_v28  ;;  %v8716_v28 = vor.u32 %v7110_v35, %v6812_v5 }
 0x393   :  { %v8703_v48 = vpop.f32.mrf.mxu0 }
 0x394   :  { %10030 = vst [vmem:[#allocation73_spill] sm:$0xff] %v8703_v48  ;;  %2459 = vmatpush.msrb.mxu2 %v2057_v41 }
 0x396   :  { %2460 = vmatpush.msrb.mxu2 %v2054_v11 }
 0x397   :  { %6794 = vmatmul.msk.f32.vlgmr.msrb.gmra.mxu2 %vm1230_vm13, %v8398_v36 }
 0x398   :  { %2688 = vmatpush.bf16.msra.mxu2 %v8705_v9 }
 0x39b   :  { %v8718_v48 = vpop.f32.mrf.mxu0 }
 0x39c   :  { %10031 = vst [vmem:[#allocation74_spill] sm:$0xff] %v8718_v48  ;;  %2689 = vmatpush.bf16.msra.mxu2 %v8716_v28 }
 0x39f   :  { %6795 = vmatmul.msk.f32.gmra.mxu2 %vm1230_vm13, %v8410_v15 }
 0x3a0   :  { %2969 = vmatpush.bf16.msrb.mxu2 %v8650_v44  ;;  %2676 = vmatmul.bf16.gmra.mxu3 %v10029_v53 }
 0x3a3   :  { %v1851_v11 = vpop.f32.mrf.mxu0 }
 0x3a4   :  { %2970 = vmatpush.bf16.msrb.mxu2 %v8665_v47 }
 0x3a7   :  { %6796 = vmatmul.msk.f32.gmra.mxu2 %vm1230_vm13, %v8422_v43 }
 0x3ab   :  { %v1854_v41 = vpop.f32.mrf.mxu0 }
 0x3af   :  { %6797 = vmatmul.msk.f32.gmra.mxu2 %vm1230_vm13, %v8436_v10 }
 0x3b3   :  { %v1857_v35 = vpop.f32.mrf.mxu0  ;;  %v8730_v58 = vpop.f32.mrf.mxu3 }
 0x3b7   :  { %2690 = vmatmul.bf16.vlgmr.msra.gmra.mxu2 %v10029_v53 }
 0x3bb   :  { %v1860_v20 = vpop.f32.mrf.mxu0  ;;  %v8733_v5 = vpop.f32.mrf.mxu3 }
 0x3bc   :  { %2254 = vmatpush.msrb.mxu0 %v1860_v20 }
 0x3be   :  { %2255 = vmatpush.msrb.mxu0 %v1857_v35 }
 0x3c0   :  { %2256 = vmatpush.msrb.mxu0 %v1854_v41 }
 0x3c2   :  { %2257 = vmatpush.msrb.mxu0 %v1851_v11 }
 0x3c3   :  { %v1967_v48 = vpop.f32.mrf.mxu0  ;;  %v8735_v50 = vpop.f32.mrf.mxu3  ;;  %6766 = vmatmul.msk.f32.vlgmr.msrb.gmra.mxu0 %vm1230_vm13, %v8398_v36 }
 0x3c7   :  { %2695 = vmatmul.bf16.gmra.mxu2 %v10029_v53 }
 0x3cb   :  { %v1970_v37 = vpop.f32.mrf.mxu0  ;;  %v8740_v19 = vpop.f32.mrf.mxu3  ;;  %6767 = vmatmul.msk.f32.gmra.mxu0 %vm1230_vm13, %v8410_v15 }
 0x3d3   :  { %v1973_v23 = vpop.f32.mrf.mxu0  ;;  %6768 = vmatmul.msk.f32.gmra.mxu0 %vm1230_vm13, %v8422_v43  ;;  %v8746_v41 = vpop.f32.mrf.mxu3 }
 0x3d4   :  { %10032 = vst [vmem:[#allocation75_spill] sm:$0xff] %v8746_v41 }
 0x3da   :  { %v8748_v11 = vpop.f32.mrf.mxu2 }
 0x3db   :  { %v1976_v35 = vpop.f32.mrf.mxu0  ;;  %6769 = vmatmul.msk.f32.gmra.mxu0 %vm1230_vm13, %v8436_v10  ;;  %v8752_v20 = vpop.f32.mrf.mxu3 }
 0x3dc   :  { %10033 = vst [vmem:[#allocation76_spill] sm:$0xff] %v8752_v20  ;;  %2370 = vmatpush.msra.mxu0 %v1976_v35 }
 0x3de   :  { %2371 = vmatpush.msra.mxu0 %v1973_v23 }
 0x3e0   :  { %2372 = vmatpush.msra.mxu0 %v1970_v37 }
 0x3e2   :  { %v8754_v53 = vpop.f32.mrf.mxu2  ;;  %2373 = vmatpush.msra.mxu0 %v1967_v48 }
 0x3e3   :  { %v2083_v62 = vpop.f32.mrf.mxu0  ;;  %v8756_v33 = vpop.f32.mrf.mxu3  ;;  %6782 = vmatmul.msk.f32.vlgmr.msra.gmra.mxu0 %vm1230_vm13, %v8398_v36 }
 0x3e4   :  { %10034 = vst [vmem:[#allocation77_spill] sm:$0xff] %v8756_v33 }
 0x3ea   :  { %v8760_v41 = vpop.f32.mrf.mxu2 }
 0x3eb   :  { %v2086_v54 = vpop.f32.mrf.mxu0  ;;  %v8762_v32 = vpop.f32.mrf.mxu3  ;;  %6783 = vmatmul.msk.f32.gmra.mxu0 %vm1230_vm13, %v8410_v15 }
 0x3ec   :  { %10035 = vst [vmem:[#allocation78_spill] sm:$0xff] %v8762_v32 }
 0x3f2   :  { %v8766_v35 = vpop.f32.mrf.mxu2 }
 0x3f3   :  { %10036 = vst [vmem:[#allocation79_spill] sm:$0xff] %v8766_v35  ;;  %v2089_v23 = vpop.f32.mrf.mxu0  ;;  %6784 = vmatmul.msk.f32.gmra.mxu0 %vm1230_vm13, %v8422_v43  ;;  %v8770_v37 = vpop.f32.mrf.mxu3 }
 0x3f4   :  { %10037 = vst [vmem:[#allocation80_spill] sm:$0xff] %v8770_v37 }
 0x3fa   :  { %v8772_v48 = vpop.f32.mrf.mxu2 }
 0x3fb   :  { %10038 = vst [vmem:[#allocation81_spill] sm:$0xff] %v8772_v48  ;;  %v2092_v33 = vpop.f32.mrf.mxu0  ;;  %6785 = vmatmul.msk.f32.gmra.mxu0 %vm1230_vm13, %v8436_v10  ;;  %v8776_v20 = vpop.f32.mrf.mxu3 }
 0x3fc   :  { %10039 = vst [vmem:[#allocation82_spill] sm:$0xff] %v8776_v20  ;;  %2486 = vmatpush.msrb.mxu0 %v2092_v33 }
 0x3fe   :  { %2487 = vmatpush.msrb.mxu0 %v2089_v23 }
 0x400   :  { %2488 = vmatpush.msrb.mxu0 %v2086_v54 }
 0x402   :  { %v8778_v32 = vpop.f32.mrf.mxu2  ;;  %2489 = vmatpush.msrb.mxu0 %v2083_v62 }
 0x403   :  { %10040 = vst [vmem:[#allocation83_spill] sm:$0xff] %v8778_v32  ;;  %v8780_v45 = vpop.f32.mrf.mxu3  ;;  %6798 = vmatmul.msk.f32.vlgmr.msrb.gmra.mxu0 %vm1230_vm13, %v8398_v36 }
 0x404   :  { %10041 = vst [vmem:[#allocation84_spill] sm:$0xff] %v8780_v45 }
 0x40a   :  { %v8784_v37 = vpop.f32.mrf.mxu2 }
 0x40b   :  { %10042 = vst [vmem:[#allocation85_spill] sm:$0xff] %v8784_v37  ;;  %v8786_v48 = vpop.f32.mrf.mxu3  ;;  %6799 = vmatmul.msk.f32.gmra.mxu0 %vm1230_vm13, %v8410_v15 }
 0x40c   :  { %10043 = vst [vmem:[#allocation86_spill] sm:$0xff] %v8786_v48 }
 0x412   :  { %v8790_v31 = vpop.f32.mrf.mxu2 }
 0x413   :  { %10044 = vst [vmem:[#allocation87_spill] sm:$0xff] %v8790_v31  ;;  %6800 = vmatmul.msk.f32.gmra.mxu0 %vm1230_vm13, %v8422_v43  ;;  %v2672_v33 = vpop.f32.mrf.mxu3 }
 0x41a   :  { %v8794_v54 = vpop.f32.mrf.mxu2 }
 0x41b   :  { %10045 = vst [vmem:[#allocation88_spill] sm:$0xff] %v8794_v54  ;;  %6801 = vmatmul.msk.f32.gmra.mxu0 %vm1230_vm13, %v8436_v10  ;;  %v2674_v62 = vpop.f32.mrf.mxu3 }
 0x41c   :  { %v2716_v32 = vpack.c.bf16 %v2674_v62, %v2672_v33 }
 0x422   :  { %v8798_v23 = vpop.f32.mrf.mxu2 }
 0x423   :  { %10046 = vst [vmem:[#allocation89_spill] sm:$0xff] %v8798_v23  ;;  %v2677_v45 = vpop.f32.mrf.mxu3 }
 0x42a   :  { %v8800_v20 = vpop.f32.mrf.mxu2 }
 0x42b   :  { %10047 = vst [vmem:[#allocation90_spill] sm:$0xff] %v8800_v20  ;;  %v2679_v48 = vpop.f32.mrf.mxu3  ;;  %v2172_v20 = vpop.f32.mrf.mxu1 }
 0x42c   :  { %v2717_v37 = vpack.c.bf16 %v2679_v48, %v2677_v45  ;;  %v8814_v45 = vpack.c.bf16 %v8041_v21, %v8012_v12 }
 0x42e   :  { %2730 = vmatpush.bf16.msra.mxu0 %v2717_v37 }
 0x432   :  { %v8802_v31 = vpop.f32.mrf.mxu2  ;;  %2731 = vmatpush.bf16.msra.mxu0 %v2716_v32 }
 0x433   :  { %10048 = vst [vmem:[#allocation91_spill] sm:$0xff] %v8802_v31  ;;  %v2175_v37 = vpop.f32.mrf.mxu1 }
 0x435   :  { %6826 = vmatmul.msk.bf16.vlgmr.msra.gmra.mxu0 %vm1230_vm13, %v8806_v60 }
 0x436   :  { %2988 = vmatpush.bf16.msrb.mxu0 %v8705_v9 }
 0x43a   :  { %2989 = vmatpush.bf16.msrb.mxu0 %v8716_v28  ;;  %v2691_v23 = vpop.f32.mrf.mxu2 }
 0x43b   :  { %v2178_v2 = vpop.f32.mrf.mxu1 }
 0x440   :  { %v8820_v31 = vpop.f32.mrf.mxu0 }
 0x441   :  { %10049 = vst [vmem:[#allocation92_spill] sm:$0xff] %v8820_v31 }
 0x442   :  { %v2693_v54 = vpop.f32.mrf.mxu2 }
 0x443   :  { %v2747_v33 = vpack.c.bf16 %v2693_v54, %v2691_v23  ;;  %v8818_v62 = vpop.f32.mrf.mxu1 }
 0x445   :  { %6827 = vmatmul.msk.bf16.gmra.mxu0 %vm1230_vm13, %v8814_v45 }
 0x448   :  { %v8830_v21 = vpop.f32.mrf.mxu0 }
 0x449   :  { %10051 = vst [vmem:[#allocation94_spill] sm:$0xff] %v8830_v21 }
 0x44a   :  { %v2696_v32 = vpop.f32.mrf.mxu2 }
 0x44b   :  { %v8828_v12 = vpop.f32.mrf.mxu1 }
 0x44c   :  { %10050 = vst [vmem:[#allocation93_spill] sm:$0xff] %v8828_v12 }
 0x450   :  { %v8840_v23 = vpop.f32.mrf.mxu0 }
 0x451   :  { %10053 = vst [vmem:[#allocation96_spill] sm:$0xff] %v8840_v23 }
 0x452   :  { %v2698_v7 = vpop.f32.mrf.mxu2 }
 0x453   :  { %v2748_v48 = vpack.c.bf16 %v2698_v7, %v2696_v32  ;;  %v8834_v32 = vpack.c.bf16 %v8436_v10, %v8422_v43  ;;  %v8838_v54 = vpop.f32.mrf.mxu1 }
 0x454   :  { %10052 = vst [vmem:[#allocation95_spill] sm:$0xff] %v8838_v54 }
 0x455   :  { %2761 = vmatpush.bf16.msra.mxu1 %v2748_v48 }
 0x458   :  { %v8844_v15 = vpop.f32.mrf.mxu0 }
 0x459   :  { %2762 = vmatpush.bf16.msra.mxu1 %v2747_v33  ;;  %10055 = vst [vmem:[#allocation98_spill] sm:$0xff] %v8844_v15 }
 0x45b   :  { %v8842_v36 = vpop.f32.mrf.mxu1 }
 0x45c   :  { %6828 = vmatmul.msk.bf16.vlgmr.msra.gmra.mxu1 %vm1230_vm13, %v8824_v25  ;;  %10054 = vst [vmem:[#allocation97_spill] sm:$0xff] %v8842_v36 }
 0x460   :  { %v8848_v48 = vpop.f32.mrf.mxu0 }
 0x461   :  { %10057 = vst [vmem:[#allocation100_spill] sm:$0xff] %v8848_v48 }
 0x463   :  { %v8846_v7 = vpop.f32.mrf.mxu1 }
 0x464   :  { %10056 = vst [vmem:[#allocation99_spill] sm:$0xff] %v8846_v7 }
 0x468   :  { %v8852_v12 = vpop.f32.mrf.mxu0 }
 0x469   :  { %10059 = vst [vmem:[#allocation102_spill] sm:$0xff] %v8852_v12 }
 0x46b   :  { %v8850_v33 = vpop.f32.mrf.mxu1 }
 0x46c   :  { %6829 = vmatmul.msk.bf16.gmra.mxu1 %vm1230_vm13, %v8834_v32  ;;  %10058 = vst [vmem:[#allocation101_spill] sm:$0xff] %v8850_v33 }
 0x470   :  { %v8856_v10 = vpop.f32.mrf.mxu0 }
 0x471   :  { %10061 = vst [vmem:[#allocation104_spill] sm:$0xff] %v8856_v10 }
 0x473   :  { %v8854_v43 = vpop.f32.mrf.mxu1 }
 0x474   :  { %10060 = vst [vmem:[#allocation103_spill] sm:$0xff] %v8854_v43  ;;  %v1591_v43 = vadd.f32 %v8204_v57, %v7775_v18 }
 0x478   :  { %v8860_v54 = vpop.f32.mrf.mxu0 }
 0x479   :  { %10063 = vst [vmem:[#allocation106_spill] sm:$0xff] %v8860_v54 }
 0x47b   :  { %v8858_v4 = vpop.f32.mrf.mxu1 }
 0x47c   :  { %10062 = vst [vmem:[#allocation105_spill] sm:$0xff] %v8858_v4  ;;  %v2503_v4 = vadd.f32 %v2172_v20, %v1591_v43  ;;  %v1615_v20 = vadd.f32 %v8228_v26, %v7808_v24 }
 0x47e   :  { %v2527_v30 = vadd.f32 %v2178_v2, %v1615_v20 }
 0x480   :  { %v8864_v36 = vpop.f32.mrf.mxu0 }
 0x481   :  { %10065 = vst [vmem:[#allocation108_spill] sm:$0xff] %v8864_v36 }
 0x483   :  { %v8862_v23 = vpop.f32.mrf.mxu1 }
 0x484   :  { %10064 = vst [vmem:[#allocation107_spill] sm:$0xff] %v8862_v23  ;;  %v8877_v23 = vld [vmem:[%s9952_s10] ss:$0 sm:$0xff] }
 0x485   :  { %v2708_v54 = vadd.f32 %v8877_v23, %v2503_v4 }
 0x488   :  { %v8866_v7 = vpop.f32.mrf.mxu0 }
 0x489   :  { %10066 = vst [vmem:[#allocation109_spill] sm:$0xff] %v8866_v7  ;;  %v1603_v7 = vadd.f32 %v8218_v14, %v7795_v22 }
 0x48b   :  { %v2653_v15 = vpop.f32.mrf.mxu1  ;;  %v2515_v21 = vadd.f32 %v2175_v37, %v1603_v7 }
 0x48d   :  { %v2709_v18 = vadd.f32 %v8877_v23, %v2515_v21 }
 0x490   :  { %v8868_v63 = vpop.f32.mrf.mxu0 }
 0x491   :  { %10067 = vst [vmem:[#allocation110_spill] sm:$0xff] %v8868_v63  ;;  %v2712_v63 = vadd.f32 %v2708_v54, %v2653_v15 }
 0x493   :  { %v2655_v48 = vpop.f32.mrf.mxu1 }
 0x494   :  { %v2713_v43 = vadd.f32 %v2709_v18, %v2655_v48 }
 0x498   :  { %v8870_v12 = vpop.f32.mrf.mxu0 }
 0x499   :  { %10068 = vst [vmem:[#allocation111_spill] sm:$0xff] %v8870_v12 }
 0x49b   :  { %v2658_v33 = vpop.f32.mrf.mxu1 }
 0x4a3   :  { %v2660_v36 = vpop.f32.mrf.mxu1 }
 0x4b2   :  { %v2733_v10 = vpop.f32.mrf.mxu0 }
 0x4b3   :  { %v2743_v6 = vadd.f32 %v2733_v10, %v2712_v63 }
 0x4ba   :  { %v2735_v12 = vpop.f32.mrf.mxu0 }
 0x4bb   :  { %v2744_v4 = vadd.f32 %v2735_v12, %v2713_v43 }
 0x4c2   :  { %v2738_v14 = vpop.f32.mrf.mxu0 }
 0x4d9   :  { %v2764_v52 = vpop.f32.mrf.mxu1 }
 0x4da   :  { %v2774_v31 = vadd.f32 %v2764_v52, %v2743_v6  ;;  %v2710_v52 = vadd.f32 %v8877_v23, %v2527_v30  ;;  %v2740_v30 = vpop.f32.mrf.mxu0 }
 0x4dc   :  { %v6830_v57 = vmul.f32 -1.442695, %v2774_v31  ;;  %7150 = vtanh.f32 %v2774_v31  ;;  %v1627_v31 = vadd.f32 %v8245_v16, %v7832_v29  ;;  %v2714_v24 = vadd.f32 %v2710_v52, %v2658_v33 }
 0x4de   :  { %7152 = vpow2.f32 %v6830_v57  ;;  %v2539_v26 = vadd.f32 %v8818_v62, %v1627_v31  ;;  %v2745_v37 = vadd.f32 %v2738_v14, %v2714_v24 }
 0x4e1   :  { %v2766_v1 = vpop.f32.mrf.mxu1 }
 0x4e2   :  { %v7151_v35 = vpop.eup %7150  ;;  %v2775_v22 = vadd.f32 %v2766_v1, %v2744_v4 }
 0x4e3   :  { %2866 = vrot.lane.b32.xlu1 %v7151_v35, %s7539_s28  ;;  %v2711_v35 = vadd.f32 %v8877_v23, %v2539_v26 }
 0x4e4   :  { %v7153_v63 = vpop.eup %7152  ;;  %7154 = vtanh.f32 %v2775_v22  ;;  %v6831_v31 = vmul.f32 -1.442695, %v2775_v22 }
 0x4e5   :  { %v2790_v6 = vadd.f32 1.0, %v7153_v63  ;;  %v2715_v54 = vadd.f32 %v2711_v35, %v2660_v36 }
 0x4e7   :  { %7156 = vrcp.f32 %v2790_v6  ;;  %v2746_v7 = vadd.f32 %v2740_v30, %v2715_v54  ;;  %v2805_v57 = vand.u32 2147483648, %v2790_v6  ;;  %vm2799_vm15 = vweird.f32 %v2790_v6 }
 0x4e8   :  { %v2803_v20 = vand.u32 2147483647, %v2790_v6 }
 0x4e9   :  { %v2769_v2 = vpop.f32.mrf.mxu1  ;;  %v2806_v43 = vor.u32 1.1754944e-38, %v2805_v57 }
 0x4ea   :  { %v7155_v12 = vpop.eup %7154  ;;  %v2776_v1 = vadd.f32 %v2769_v2, %v2745_v37  ;;  %vm2804_vm1 = vcmp.eq.f32.partialorder %v2803_v20, 8.507059e+37 }
 0x4eb   :  { %2868 = vrot.lane.b32.xlu1 %v7155_v12, %s7539_s28 }
 0x4ec   :  { %7158 = vtanh.f32 %v2776_v1  ;;  %v6832_v14 = vmul.f32 -1.442695, %v2776_v1 }
 0x4ed   :  { %v7157_v21 = vpop.eup %7156 }
 0x4ee   :  { %v2795_v15 = vmul.f32 %v7157_v21, %v2790_v6  ;;  %vm2800_vm14 = vweird.f32 %v7157_v21 }
 0x4ef   :  { %vm2801_vm0 = vmor %vm2799_vm15, %vm2800_vm14 }
 0x4f0   :  { %v2796_v62 = vsub.f32 1.0, %v2795_v15 }
 0x4f1   :  { %v2771_v48 = vpop.f32.mrf.mxu1 }
 0x4f2   :  { %v7159_v29 = vpop.eup %7158  ;;  %v2777_v16 = vadd.f32 %v2771_v48, %v2746_v7  ;;  %v2797_v33 = vmul.f32 %v7157_v21, %v2796_v62 }
 0x4f3   :  { %2870 = vrot.lane.b32.xlu2 %v7159_v29, %s7539_s28 }
 0x4f4   :  { %7160 = vtanh.f32 %v2777_v16  ;;  %v2798_v18 = vadd.f32 %v7157_v21, %v2797_v33  ;;  %v6833_v24 = vmul.f32 -1.442695, %v2777_v16 }
 0x4f5   :  { %7162 = vpow2.f32 %v6832_v14 }
 0x4f6   :  { %v2802_v36 = vsel %vm2801_vm0, %v7157_v21, %v2798_v18 }
 0x4f7   :  { %v8894_v4 = vsel %vm2804_vm1, %v2806_v43, %v2802_v36 }
 0x4fa   :  { %v7161_v10 = vpop.eup %7160 }
 0x4fb   :  { %2872 = vrot.lane.b32.xlu2 %v7161_v10, %s7539_s28  ;;  %v7163_v63 = vpop.eup %7162 }
 0x4fc   :  { %v2792_v52 = vadd.f32 1.0, %v7163_v63 }
 0x4fe   :  { %7164 = vrcp.f32 %v2792_v52  ;;  %v2835_v15 = vand.u32 2147483648, %v2792_v52  ;;  %vm2829_vm3 = vweird.f32 %v2792_v52  ;;  %v2833_v22 = vand.u32 2147483647, %v2792_v52 }
 0x4ff   :  { %7166 = vpow2.f32 %v6831_v31 }
 0x500   :  { %7168 = vpow2.f32 %v6833_v24  ;;  %v2836_v16 = vor.u32 1.1754944e-38, %v2835_v15  ;;  %vm2834_vm5 = vcmp.eq.f32.partialorder %v2833_v22, 8.507059e+37 }
 0x503   :  { %2910 = vrot.lane.b32.xlu2 %v8894_v4, %s7540_s29 }
 0x504   :  { %v7165_v6 = vpop.eup %7164 }
 0x505   :  { %v7167_v26 = vpop.eup %7166  ;;  %v2825_v37 = vmul.f32 %v7165_v6, %v2792_v52  ;;  %vm2830_vm2 = vweird.f32 %v7165_v6 }
 0x506   :  { %v7169_v2 = vpop.eup %7168  ;;  %v2791_v12 = vadd.f32 1.0, %v7167_v26  ;;  %vm2831_vm4 = vmor %vm2829_vm3, %vm2830_vm2 }
 0x507   :  { %v2826_v35 = vsub.f32 1.0, %v2825_v37  ;;  %v2793_v21 = vadd.f32 1.0, %v7169_v2 }
 0x508   :  { %7170 = vrcp.f32 %v2791_v12  ;;  %v2820_v31 = vand.u32 2147483648, %v2791_v12  ;;  %vm2814_vm8 = vweird.f32 %v2791_v12 }
 0x509   :  { %v2827_v30 = vmul.f32 %v7165_v6, %v2826_v35  ;;  %7172 = vrcp.f32 %v2793_v21  ;;  %v2850_v26 = vand.u32 2147483648, %v2793_v21  ;;  %vm2844_vm10 = vweird.f32 %v2793_v21 }
 0x50a   :  { %v2848_v37 = vand.u32 2147483647, %v2793_v21  ;;  %v2821_v35 = vor.u32 1.1754944e-38, %v2820_v31 }
 0x50b   :  { %v2828_v54 = vadd.f32 %v7165_v6, %v2827_v30 }
 0x50c   :  { %vm2849_vm14 = vcmp.eq.f32.partialorder %v2848_v37, 8.507059e+37 }
 0x50d   :  { %v2832_v48 = vsel %vm2831_vm4, %v7165_v6, %v2828_v54  ;;  %v2818_v6 = vand.u32 2147483647, %v2791_v12  ;;  %v2851_v54 = vor.u32 1.1754944e-38, %v2850_v26 }
 0x50e   :  { %v7171_v1 = vpop.eup %7170  ;;  %v2837_v10 = vsel %vm2834_vm5, %v2836_v16, %v2832_v48 }
 0x50f   :  { %v7173_v7 = vpop.eup %7172  ;;  %v2810_v29 = vmul.f32 %v7171_v1, %v2791_v12  ;;  %vm2815_vm6 = vweird.f32 %v7171_v1  ;;  %vm2819_vm12 = vcmp.eq.f32.partialorder %v2818_v6, 8.507059e+37  ;;  %v2860_v31 = vmul.f32 0.0, %v2837_v10 }
 0x510   :  { %v2840_v62 = vmul.f32 %v7173_v7, %v2793_v21  ;;  %vm2845_vm7 = vweird.f32 %v7173_v7  ;;  %vm2816_vm9 = vmor %vm2814_vm8, %vm2815_vm6 }
 0x511   :  { %v2811_v57 = vsub.f32 1.0, %v2810_v29  ;;  %vm2846_vm11 = vmor %vm2844_vm10, %vm2845_vm7 }
 0x512   :  { %v2841_v20 = vsub.f32 1.0, %v2840_v62 }
 0x513   :  { %v2812_v36 = vmul.f32 %v7171_v1, %v2811_v57 }
 0x514   :  { %v2842_v43 = vmul.f32 %v7173_v7, %v2841_v20 }
 0x515   :  { %v2813_v52 = vadd.f32 %v7171_v1, %v2812_v36 }
 0x516   :  { %v2843_v24 = vadd.f32 %v7173_v7, %v2842_v43 }
 0x517   :  { %v2817_v2 = vsel %vm2816_vm9, %v7171_v1, %v2813_v52  ;;  %v2858_v1 = vmul.f32 0.0, %v8894_v4 }
 0x518   :  { %v2847_v30 = vsel %vm2846_vm11, %v7173_v7, %v2843_v24  ;;  %v2822_v22 = vsel %vm2819_vm12, %v2821_v35, %v2817_v2 }
 0x519   :  { %v2852_v29 = vsel %vm2849_vm14, %v2851_v54, %v2847_v30  ;;  %v2859_v62 = vmul.f32 0.0, %v2822_v22 }
 0x51a   :  { %v2861_v6 = vmul.f32 0.0, %v2852_v29 }
 0x54d   :  { %v2871_v33 = vpop.permute.xlu2 %2870 }
 0x54e   :  { %v2880_v18 = vmul.f32 %v2871_v33, %v2837_v10 }
 0x550   :  { %2890 = vrot.lane.b32.xlu2 %v2880_v18, %s7539_s28 }
 0x555   :  { %v2867_v14 = vpop.permute.xlu1 %2866  ;;  %v2873_v12 = vpop.permute.xlu2 %2872 }
 0x556   :  { %v2878_v63 = vmul.f32 %v2867_v14, %v8894_v4  ;;  %v2881_v16 = vmul.f32 %v2873_v12, %v2852_v29 }
 0x558   :  { %2886 = vrot.lane.b32.xlu0 %v2878_v63, %s7539_s28  ;;  %2914 = vrot.lane.b32.xlu2 %v2837_v10, %s7540_s29 }
 0x55d   :  { %v2869_v15 = vpop.permute.xlu1 %2868  ;;  %v2911_v57 = vpop.permute.xlu2 %2910 }
 0x55e   :  { %v2879_v48 = vmul.f32 %v2869_v15, %v2822_v22 }
 0x560   :  { %2888 = vrot.lane.b32.xlu1 %v2879_v48, %s7539_s28  ;;  %2916 = vrot.lane.b32.xlu0 %v2852_v29, %s7540_s29  ;;  %v7115_v48 = vld [vmem:[%s9954_s11 + $0x8] sm:$0xff]  ;;  %v7114_v29 = vld [vmem:[%s9954_s11] sm:$0xff] }
 0x561   :  { %3278 = vmatpush.bf16.msra.mxu0 %v7115_v48 }
 0x565   :  { %3279 = vmatpush.bf16.msra.mxu0 %v7114_v29 }
 0x568   :  { %2912 = vrot.lane.b32.xlu1 %v2822_v22, %s7540_s29 }
 0x570   :  { %2892 = vrot.lane.b32.xlu1 %v2881_v16, %s7539_s28 }
 0x5aa   :  { %v2891_v14 = vpop.permute.xlu2 %2890 }
 0x5ab   :  { %v8913_v4 = vadd.f32 %v2891_v14, %v2860_v31 }
 0x5b2   :  { %v2915_v35 = vpop.permute.xlu2 %2914 }
 0x5ca   :  { %v2887_v21 = vpop.permute.xlu0 %2886 }
 0x5cb   :  { %v8907_v7 = vadd.f32 %v2887_v21, %v2858_v1 }
 0x5cd   :  { %7174 = vtanh.f32 %v8907_v7 }
 0x5d2   :  { %v2889_v33 = vpop.permute.xlu1 %2888  ;;  %v2917_v54 = vpop.permute.xlu0 %2916 }
 0x5d3   :  { %v8910_v18 = vadd.f32 %v2889_v33, %v2859_v62  ;;  %v7175_v20 = vpop.eup %7174 }
 0x5d4   :  { %v2922_v63 = vmul.f32 %v7175_v20, %v2911_v57 }
 0x5d5   :  { %7176 = vtanh.f32 %v8910_v18 }
 0x5d6   :  { %7178 = vtanh.f32 %v8913_v4 }
 0x5da   :  { %v2913_v36 = vpop.permute.xlu1 %2912 }
 0x5db   :  { %v7177_v43 = vpop.eup %7176 }
 0x5dc   :  { %v2923_v52 = vmul.f32 %v7177_v43, %v2913_v36  ;;  %v7179_v2 = vpop.eup %7178 }
 0x5dd   :  { %v2924_v15 = vmul.f32 %v7179_v2, %v2915_v35  ;;  %v1592_v2 = vadd.f32 %v8391_v39, %v7959_v61  ;;  %v1616_v61 = vadd.f32 %v8418_v51, %v7996_v8 }
 0x5de   :  { %v2926_v24 = vpack.c.bf16 %v2923_v52, %v2922_v63 }
 0x5df   :  { %v2504_v35 = vadd.f32 %v8730_v58, %v1592_v2 }
 0x5e0   :  { %2934 = vrot.lane.b32.xlu1 %v2926_v24, %s7540_s29 }
 0x5e2   :  { %v2893_v26 = vpop.permute.xlu1 %2892 }
 0x5e3   :  { %v8917_v37 = vadd.f32 %v2893_v26, %v2861_v6 }
 0x5e5   :  { %7180 = vtanh.f32 %v8917_v37 }
 0x5eb   :  { %v7181_v30 = vpop.eup %7180 }
 0x5ec   :  { %v2925_v22 = vmul.f32 %v7181_v30, %v2917_v54  ;;  %v3005_v54 = vadd.f32 %v8877_v23, %v2504_v35 }
 0x5ee   :  { %v2927_v10 = vpack.c.bf16 %v2925_v22, %v2924_v15  ;;  %v1604_v15 = vadd.f32 %v8406_v46, %v7978_v3 }
 0x5f0   :  { %2936 = vrot.lane.b32.xlu2 %v2927_v10, %s7540_s29  ;;  %v2516_v48 = vadd.f32 %v8733_v5, %v1604_v15 }
 0x64a   :  { %v2937_v16 = vpop.permute.xlu2 %2936 }
 0x652   :  { %v2935_v12 = vpop.permute.xlu1 %2934 }
 0x653   :  { %6834 = vmatmul.msk.bf16.vlgmr.msrb.gmra.mxu3 %vm1230_vm13, %v2935_v12  ;;  %6836 = vmatmul.msk.bf16.vlgmr.msrb.gmra.mxu2 %vm1230_vm13, %v2935_v12 }
 0x654   :  { %6838 = vmatmul.msk.bf16.vlgmr.msrb.gmra.mxu0 %vm1230_vm13, %v2935_v12 }
 0x663   :  { %6835 = vmatmul.msk.bf16.gmra.mxu3 %vm1230_vm13, %v2937_v16  ;;  %6837 = vmatmul.msk.bf16.gmra.mxu2 %vm1230_vm13, %v2937_v16 }
 0x664   :  { %6839 = vmatmul.msk.bf16.gmra.mxu0 %vm1230_vm13, %v2937_v16 }
 0x674   :  { %6866 = vmatmul.msk.bf16.vlgmr.msra.gmra.mxu0 %vm1230_vm13, %v2935_v12 }
 0x684   :  { %6867 = vmatmul.msk.bf16.gmra.mxu0 %vm1230_vm13, %v2937_v16 }
 0x6d1   :  { %v2991_v21 = vpop.f32.mrf.mxu0 }
 0x6d6   :  { %v2972_v1 = vpop.f32.mrf.mxu2  ;;  %v2953_v24 = vpop.f32.mrf.mxu3 }
 0x6d7   :  { %v3009_v22 = vadd.f32 %v3005_v54, %v2953_v24 }
 0x6d9   :  { %v2993_v62 = vpop.f32.mrf.mxu0 }
 0x6da   :  { %v3038_v14 = vpack.c.bf16 %v2993_v62, %v2991_v21  ;;  %v3006_v21 = vadd.f32 %v8877_v23, %v2516_v48  ;;  %v2528_v62 = vadd.f32 %v8735_v50, %v1616_v61 }
 0x6de   :  { %v2974_v33 = vpop.f32.mrf.mxu2  ;;  %v2955_v6 = vpop.f32.mrf.mxu3 }
 0x6df   :  { %v3013_v31 = vpack.c.bf16 %v2974_v33, %v2972_v1  ;;  %v3010_v39 = vadd.f32 %v3006_v21, %v2955_v6 }
 0x6e1   :  { %v2996_v57 = vpop.f32.mrf.mxu0 }
 0x6e6   :  { %v2977_v20 = vpop.f32.mrf.mxu2  ;;  %v2958_v26 = vpop.f32.mrf.mxu3 }
 0x6e9   :  { %v2998_v36 = vpop.f32.mrf.mxu0 }
 0x6ea   :  { %v3039_v43 = vpack.c.bf16 %v2998_v36, %v2996_v57 }
 0x6ec   :  { %3046 = vmatpush.bf16.msra.mxu3 %v3039_v43  ;;  %v1628_v43 = vadd.f32 %v8432_v40, %v8014_v13 }
 0x6ee   :  { %v2979_v63 = vpop.f32.mrf.mxu2  ;;  %v2960_v30 = vpop.f32.mrf.mxu3 }
 0x6ef   :  { %v3014_v52 = vpack.c.bf16 %v2979_v63, %v2977_v20  ;;  %v3007_v20 = vadd.f32 %v8877_v23, %v2528_v62 }
 0x6f0   :  { %3047 = vmatpush.bf16.msra.mxu3 %v3038_v14  ;;  %v2540_v14 = vadd.f32 %v8740_v19, %v1628_v43 }
 0x6f1   :  { %3021 = vmatpush.bf16.msrb.mxu1 %v3014_v52  ;;  %v3011_v8 = vadd.f32 %v3007_v20, %v2958_v26 }
 0x6f2   :  { %v3008_v24 = vadd.f32 %v8877_v23, %v2540_v14 }
 0x6f3   :  { %6842 = vmatmul.msk.bf16.vlgmr.msra.gmra.mxu3 %vm1230_vm13, %v8824_v25 }
 0x6f4   :  { %3316 = vmatpush.bf16.msrb.mxu3 %v8650_v44  ;;  %v3012_v2 = vadd.f32 %v3008_v24, %v2960_v30 }
 0x6f5   :  { %3022 = vmatpush.bf16.msrb.mxu1 %v3013_v31 }
 0x6f8   :  { %3317 = vmatpush.bf16.msrb.mxu3 %v8665_v47  ;;  %6840 = vmatmul.msk.bf16.vlgmr.msrb.gmra.mxu1 %vm1230_vm13, %v8806_v60 }
 0x6f9   :  { %3297 = vmatpush.bf16.msra.mxu1 %v8507_v42 }
 0x6fd   :  { %3298 = vmatpush.bf16.msra.mxu1 %v8520_v56 }
 0x703   :  { %6843 = vmatmul.msk.bf16.gmra.mxu3 %vm1230_vm13, %v8834_v32 }
 0x708   :  { %6841 = vmatmul.msk.bf16.gmra.mxu1 %vm1230_vm13, %v8814_v45 }
 0x775   :  { %v3024_v10 = vpop.f32.mrf.mxu1 }
 0x776   :  { %v3034_v29 = vadd.f32 %v3024_v10, %v3009_v22  ;;  %v3049_v12 = vpop.f32.mrf.mxu3 }
 0x778   :  { %v3059_v16 = vadd.f32 %v3049_v12, %v3034_v29 }
 0x77a   :  { %v6844_v1 = vmul.f32 -1.442695, %v3059_v16  ;;  %7182 = vtanh.f32 %v3059_v16 }
 0x77c   :  { %7184 = vpow2.f32 %v6844_v1 }
 0x77d   :  { %v3026_v58 = vpop.f32.mrf.mxu1 }
 0x77e   :  { %v3035_v3 = vadd.f32 %v3026_v58, %v3010_v39  ;;  %v3051_v46 = vpop.f32.mrf.mxu3 }
 0x780   :  { %v7183_v33 = vpop.eup %7182  ;;  %v3060_v57 = vadd.f32 %v3051_v46, %v3035_v3 }
 0x781   :  { %3151 = vrot.lane.b32.xlu0 %v7183_v33, %s7539_s28 }
 0x782   :  { %v7185_v5 = vpop.eup %7184  ;;  %7186 = vtanh.f32 %v3060_v57  ;;  %v6845_v1 = vmul.f32 -1.442695, %v3060_v57 }
 0x783   :  { %v3075_v36 = vadd.f32 1.0, %v7185_v5 }
 0x785   :  { %7188 = vrcp.f32 %v3075_v36  ;;  %v3029_v51 = vpop.f32.mrf.mxu1  ;;  %v3090_v29 = vand.u32 2147483648, %v3075_v36  ;;  %vm3084_vm0 = vweird.f32 %v3075_v36  ;;  %v3088_v12 = vand.u32 2147483647, %v3075_v36 }
 0x786   :  { %v3036_v50 = vadd.f32 %v3029_v51, %v3011_v8  ;;  %v3054_v63 = vpop.f32.mrf.mxu3 }
 0x787   :  { %v3091_v16 = vor.u32 1.1754944e-38, %v3090_v29  ;;  %vm3089_vm2 = vcmp.eq.f32.partialorder %v3088_v12, 8.507059e+37 }
 0x788   :  { %v7187_v52 = vpop.eup %7186  ;;  %v3061_v31 = vadd.f32 %v3054_v63, %v3036_v50 }
 0x789   :  { %3153 = vrot.lane.b32.xlu1 %v7187_v52, %s7539_s28 }
 0x78a   :  { %7190 = vtanh.f32 %v3061_v31  ;;  %v6846_v61 = vmul.f32 -1.442695, %v3061_v31 }
 0x78b   :  { %v7189_v6 = vpop.eup %7188 }
 0x78c   :  { %v3080_v54 = vmul.f32 %v7189_v6, %v3075_v36  ;;  %vm3085_vm15 = vweird.f32 %v7189_v6 }
 0x78d   :  { %v3031_v35 = vpop.f32.mrf.mxu1  ;;  %vm3086_vm1 = vmor %vm3084_vm0, %vm3085_vm15 }
 0x78e   :  { %v3037_v15 = vadd.f32 %v3031_v35, %v3012_v2  ;;  %v3056_v13 = vpop.f32.mrf.mxu3  ;;  %v3081_v19 = vsub.f32 1.0, %v3080_v54 }
 0x790   :  { %v7191_v40 = vpop.eup %7190  ;;  %v3062_v26 = vadd.f32 %v3056_v13, %v3037_v15  ;;  %v3082_v22 = vmul.f32 %v7189_v6, %v3081_v19 }
 0x791   :  { %3155 = vrot.lane.b32.xlu2 %v7191_v40, %s7539_s28 }
 0x792   :  { %7192 = vtanh.f32 %v3062_v26  ;;  %v3083_v48 = vadd.f32 %v7189_v6, %v3082_v22  ;;  %v6847_v62 = vmul.f32 -1.442695, %v3062_v26 }
 0x793   :  { %7194 = vpow2.f32 %v6845_v1 }
 0x794   :  { %v3087_v30 = vsel %vm3086_vm1, %v7189_v6, %v3083_v48  ;;  %7196 = vpow2.f32 %v6846_v61 }
 0x795   :  { %v8967_v21 = vsel %vm3089_vm2, %v3091_v16, %v3087_v30 }
 0x798   :  { %v7193_v10 = vpop.eup %7192 }
 0x799   :  { %3157 = vrot.lane.b32.xlu0 %v7193_v10, %s7539_s28  ;;  %v7195_v39 = vpop.eup %7194 }
 0x79a   :  { %v3076_v58 = vadd.f32 1.0, %v7195_v39  ;;  %v7197_v3 = vpop.eup %7196 }
 0x79b   :  { %v3077_v46 = vadd.f32 1.0, %v7197_v3 }
 0x79c   :  { %7198 = vrcp.f32 %v3076_v58  ;;  %v3105_v24 = vand.u32 2147483648, %v3076_v58  ;;  %vm3099_vm4 = vweird.f32 %v3076_v58  ;;  %v3103_v6 = vand.u32 2147483647, %v3076_v58 }
 0x79d   :  { %7200 = vpow2.f32 %v6847_v62  ;;  %v3120_v10 = vand.u32 2147483648, %v3077_v46  ;;  %vm3114_vm8 = vweird.f32 %v3077_v46  ;;  %v3118_v48 = vand.u32 2147483647, %v3077_v46 }
 0x79e   :  { %7202 = vrcp.f32 %v3077_v46  ;;  %v3106_v15 = vor.u32 1.1754944e-38, %v3105_v24  ;;  %vm3104_vm6 = vcmp.eq.f32.partialorder %v3103_v6, 8.507059e+37 }
 0x79f   :  { %v3121_v16 = vor.u32 1.1754944e-38, %v3120_v10  ;;  %vm3119_vm10 = vcmp.eq.f32.partialorder %v3118_v48, 8.507059e+37 }
 0x7a1   :  { %3195 = vrot.lane.b32.xlu0 %v8967_v21, %s7540_s29 }
 0x7a2   :  { %v7199_v33 = vpop.eup %7198 }
 0x7a3   :  { %v7201_v5 = vpop.eup %7200  ;;  %v3095_v20 = vmul.f32 %v7199_v33, %v3076_v58  ;;  %vm3100_vm3 = vweird.f32 %v7199_v33 }
 0x7a4   :  { %v3078_v36 = vadd.f32 1.0, %v7201_v5  ;;  %v7203_v8 = vpop.eup %7202  ;;  %vm3101_vm5 = vmor %vm3099_vm4, %vm3100_vm3 }
 0x7a5   :  { %v3096_v43 = vsub.f32 1.0, %v3095_v20  ;;  %v3110_v51 = vmul.f32 %v7203_v8, %v3077_v46  ;;  %vm3115_vm7 = vweird.f32 %v7203_v8 }
 0x7a6   :  { %7204 = vrcp.f32 %v3078_v36  ;;  %vm3116_vm9 = vmor %vm3114_vm8, %vm3115_vm7  ;;  %v3135_v58 = vand.u32 2147483648, %v3078_v36  ;;  %vm3129_vm12 = vweird.f32 %v3078_v36  ;;  %v3133_v62 = vand.u32 2147483647, %v3078_v36 }
 0x7a7   :  { %v3097_v57 = vmul.f32 %v7199_v33, %v3096_v43  ;;  %v3111_v50 = vsub.f32 1.0, %v3110_v51 }
 0x7a8   :  { %v3136_v46 = vor.u32 1.1754944e-38, %v3135_v58  ;;  %vm3134_vm15 = vcmp.eq.f32.partialorder %v3133_v62, 8.507059e+37 }
 0x7a9   :  { %v3098_v52 = vadd.f32 %v7199_v33, %v3097_v57  ;;  %v3112_v2 = vmul.f32 %v7203_v8, %v3111_v50  ;;  %v3143_v57 = vmul.f32 %v8967_v21, %v8907_v7  ;;  %v7117_v50 = vld [vmem:[%s9954_s11 + $0x18] sm:$0xff] }
 0x7aa   :  { %3247 = vmatpush.bf16.msra.mxu2 %v7117_v50  ;;  %v9038_v50 = vpop.f32.mrf.mxu0 }
 0x7ab   :  { %v3102_v35 = vsel %vm3101_vm5, %v7199_v33, %v3098_v52  ;;  %v3113_v26 = vadd.f32 %v7203_v8, %v3112_v2 }
 0x7ac   :  { %v7205_v31 = vpop.eup %7204  ;;  %v3107_v40 = vsel %vm3104_vm6, %v3106_v15, %v3102_v35 }
 0x7ad   :  { %v3125_v54 = vmul.f32 %v7205_v31, %v3078_v36  ;;  %v3117_v29 = vsel %vm3116_vm9, %v7203_v8, %v3113_v26  ;;  %vm3130_vm11 = vweird.f32 %v7205_v31  ;;  %v3144_v8 = vmul.f32 %v3107_v40, %v8910_v18  ;;  %v7116_v18 = vld [vmem:[%s9954_s11 + $0x10] sm:$0xff] }
 0x7ae   :  { %v3122_v1 = vsel %vm3119_vm10, %v3121_v16, %v3117_v29  ;;  %vm3131_vm14 = vmor %vm3129_vm12, %vm3130_vm11  ;;  %3248 = vmatpush.bf16.msra.mxu2 %v7116_v18 }
 0x7af   :  { %v3126_v22 = vsub.f32 1.0, %v3125_v54  ;;  %v3145_v35 = vmul.f32 %v3122_v1, %v8913_v4 }
 0x7b1   :  { %v3127_v12 = vmul.f32 %v7205_v31, %v3126_v22 }
 0x7b2   :  { %3335 = vmatpush.bf16.msrb.mxu2 %v8705_v9 }
 0x7b3   :  { %v3128_v39 = vadd.f32 %v7205_v31, %v3127_v12 }
 0x7b5   :  { %v3132_v3 = vsel %vm3131_vm14, %v7205_v31, %v3128_v39 }
 0x7b6   :  { %v3137_v5 = vsel %vm3134_vm15, %v3136_v46, %v3132_v3  ;;  %3336 = vmatpush.bf16.msrb.mxu2 %v8716_v28 }
 0x7b7   :  { %v3146_v15 = vmul.f32 %v3137_v5, %v8917_v37 }
 0x7eb   :  { %v3156_v30 = vpop.permute.xlu2 %3155 }
 0x7ec   :  { %v3165_v61 = vmul.f32 %v3156_v30, %v3122_v1 }
 0x7f3   :  { %v3152_v14 = vpop.permute.xlu0 %3151 }
 0x7f4   :  { %v3163_v63 = vmul.f32 %v3152_v14, %v8967_v21 }
 0x7f6   :  { %3171 = vrot.lane.b32.xlu1 %v3163_v63, %s7539_s28 }
 0x7fb   :  { %v3154_v13 = vpop.permute.xlu1 %3153 }
 0x7fc   :  { %v3164_v19 = vmul.f32 %v3154_v13, %v3107_v40 }
 0x7fe   :  { %3197 = vrot.lane.b32.xlu1 %v3107_v40, %s7540_s29  ;;  %3173 = vrot.lane.b32.xlu2 %v3164_v19, %s7539_s28 }
 0x806   :  { %3199 = vrot.lane.b32.xlu1 %v3122_v1, %s7540_s29  ;;  %3175 = vrot.lane.b32.xlu2 %v3165_v61, %s7539_s28 }
 0x80b   :  { %v3158_v33 = vpop.permute.xlu0 %3157 }
 0x80c   :  { %v3166_v20 = vmul.f32 %v3158_v33, %v3137_v5 }
 0x80e   :  { %3201 = vrot.lane.b32.xlu2 %v3137_v5, %s7540_s29  ;;  %3177 = vrot.lane.b32.xlu0 %v3166_v20, %s7539_s28 }
 0x813   :  { %v3196_v7 = vpop.permute.xlu0 %3195 }
 0x858   :  { %v3174_v43 = vpop.permute.xlu2 %3173 }
 0x859   :  { %v8980_v51 = vadd.f32 %v3174_v43, %v3144_v8 }
 0x85b   :  { %7206 = vtanh.f32 %v8980_v51 }
 0x860   :  { %v3176_v2 = vpop.permute.xlu2 %3175 }
 0x861   :  { %v7207_v63 = vpop.eup %7206  ;;  %v8998_v54 = vadd.f32 %v3176_v2, %v3145_v35 }
 0x868   :  { %v3172_v36 = vpop.permute.xlu1 %3171  ;;  %v3202_v10 = vpop.permute.xlu2 %3201 }
 0x869   :  { %v8984_v14 = vadd.f32 %v3172_v36, %v3143_v57 }
 0x86b   :  { %7208 = vtanh.f32 %v8984_v14 }
 0x86c   :  { %7210 = vtanh.f32 %v8998_v54 }
 0x870   :  { %v3198_v52 = vpop.permute.xlu1 %3197 }
 0x871   :  { %v7209_v31 = vpop.eup %7208  ;;  %v3208_v21 = vmul.f32 %v7207_v63, %v3198_v52  ;;  %v9040_v63 = vpop.f32.mrf.mxu0 }
 0x872   :  { %v3207_v24 = vmul.f32 %v7209_v31, %v3196_v7  ;;  %v7211_v19 = vpop.eup %7210 }
 0x874   :  { %v3211_v6 = vpack.c.bf16 %v3208_v21, %v3207_v24  ;;  %v1593_v24 = vadd.f32 %v8463_v0, %v8056_v27  ;;  %v1617_v27 = vadd.f32 %v8487_v59, %v8080_v38  ;;  %v10069_v59 = vld [vmem:[#allocation79_spill] sm:$0xff] }
 0x876   :  { %3219 = vrot.lane.b32.xlu0 %v3211_v6, %s7540_s29  ;;  %v2505_v2 = vadd.f32 %v8748_v11, %v1593_v24  ;;  %v2529_v11 = vadd.f32 %v8760_v41, %v1617_v27 }
 0x878   :  { %v3200_v26 = vpop.permute.xlu1 %3199 }
 0x879   :  { %v3209_v48 = vmul.f32 %v7211_v19, %v3200_v26  ;;  %v9042_v18 = vpop.f32.mrf.mxu0 }
 0x880   :  { %v3178_v13 = vpop.permute.xlu0 %3177 }
 0x881   :  { %v9001_v40 = vadd.f32 %v3178_v13, %v3146_v15  ;;  %v9044_v7 = vpop.f32.mrf.mxu0  ;;  %v3352_v15 = vadd.f32 %v8877_v23, %v2505_v2  ;;  %v1605_v13 = vadd.f32 %v8475_v17, %v8068_v34 }
 0x883   :  { %7212 = vtanh.f32 %v9001_v40  ;;  %v2517_v19 = vadd.f32 %v8754_v53, %v1605_v13 }
 0x889   :  { %v7213_v22 = vpop.eup %7212 }
 0x88a   :  { %v3210_v29 = vmul.f32 %v7213_v22, %v3202_v10 }
 0x88c   :  { %v3212_v12 = vpack.c.bf16 %v3210_v29, %v3209_v48 }
 0x88e   :  { %3221 = vrot.lane.b32.xlu1 %v3212_v12, %s7540_s29  ;;  %v3353_v12 = vadd.f32 %v8877_v23, %v2517_v19 }
 0x8e8   :  { %v3220_v4 = vpop.permute.xlu0 %3219 }
 0x8e9   :  { %6856 = vmatmul.msk.bf16.vlgmr.msra.gmra.mxu2 %vm1230_vm13, %v3220_v4  ;;  %6868 = vmatmul.msk.bf16.vlgmr.msra.gmra.mxu1 %vm1230_vm13, %v3220_v4 }
 0x8ea   :  { %6870 = vmatmul.msk.bf16.vlgmr.msrb.gmra.mxu3 %vm1230_vm13, %v3220_v4  ;;  %3617 = vmatpush.bf16.msra.mxu2 %v8507_v42 }
 0x8ee   :  { %3618 = vmatpush.bf16.msra.mxu2 %v8520_v56 }
 0x900   :  { %v3222_v37 = vpop.permute.xlu1 %3221 }
 0x901   :  { %6857 = vmatmul.msk.bf16.gmra.mxu2 %vm1230_vm13, %v3222_v37  ;;  %6869 = vmatmul.msk.bf16.gmra.mxu1 %vm1230_vm13, %v3222_v37 }
 0x902   :  { %6871 = vmatmul.msk.bf16.gmra.mxu3 %vm1230_vm13, %v3222_v37 }
 0x911   :  { %6872 = vmatmul.msk.bf16.vlgmr.msrb.gmra.mxu2 %vm1230_vm13, %v3220_v4 }
 0x921   :  { %6873 = vmatmul.msk.bf16.gmra.mxu2 %vm1230_vm13, %v3222_v37 }
 0x966   :  { %v3300_v52 = vpop.f32.mrf.mxu1 }
 0x967   :  { %v3356_v26 = vadd.f32 %v3352_v15, %v3300_v52 }
 0x96c   :  { %v9016_v30 = vpop.f32.mrf.mxu2 }
 0x96d   :  { %v3319_v16 = vpop.f32.mrf.mxu3 }
 0x96e   :  { %v3302_v31 = vpop.f32.mrf.mxu1 }
 0x96f   :  { %v3357_v0 = vadd.f32 %v3353_v12, %v3302_v31 }
 0x974   :  { %v9018_v1 = vpop.f32.mrf.mxu2 }
 0x975   :  { %v3321_v61 = vpop.f32.mrf.mxu3 }
 0x976   :  { %v3360_v33 = vpack.c.bf16 %v3321_v61, %v3319_v16 }
 0x97e   :  { %v3305_v21 = vpop.f32.mrf.mxu1 }
 0x984   :  { %v9020_v39 = vpop.f32.mrf.mxu2 }
 0x985   :  { %v3324_v58 = vpop.f32.mrf.mxu3 }
 0x986   :  { %v3307_v35 = vpop.f32.mrf.mxu1 }
 0x98c   :  { %v9022_v62 = vpop.f32.mrf.mxu2 }
 0x98d   :  { %v3326_v3 = vpop.f32.mrf.mxu3 }
 0x98e   :  { %v3361_v46 = vpack.c.bf16 %v3326_v3, %v3324_v58  ;;  %v3354_v58 = vadd.f32 %v8877_v23, %v2529_v11 }
 0x990   :  { %3368 = vmatpush.bf16.msrb.mxu0 %v3361_v46  ;;  %v1629_v46 = vadd.f32 %v8503_v55, %v8097_v49  ;;  %v3358_v38 = vadd.f32 %v3354_v58, %v3305_v21 }
 0x994   :  { %3369 = vmatpush.bf16.msrb.mxu0 %v3360_v33  ;;  %v3338_v5 = vpop.f32.mrf.mxu2  ;;  %v2541_v33 = vadd.f32 %v10069_v59, %v1629_v46 }
 0x997   :  { %6874 = vmatmul.msk.bf16.vlgmr.msrb.gmra.mxu0 %vm1230_vm13, %v8806_v60 }
 0x998   :  { %3636 = vmatpush.bf16.msra.mxu0 %v8650_v44 }
 0x99c   :  { %3637 = vmatpush.bf16.msra.mxu0 %v8665_v47  ;;  %v3340_v20 = vpop.f32.mrf.mxu2 }
 0x99d   :  { %v3385_v36 = vpack.c.bf16 %v3340_v20, %v3338_v5 }
 0x9a4   :  { %v3343_v43 = vpop.f32.mrf.mxu2 }
 0x9a7   :  { %6875 = vmatmul.msk.bf16.gmra.mxu0 %vm1230_vm13, %v8814_v45 }
 0x9ac   :  { %v3345_v8 = vpop.f32.mrf.mxu2 }
 0x9ad   :  { %v3386_v57 = vpack.c.bf16 %v3345_v8, %v3343_v43  ;;  %v3355_v8 = vadd.f32 %v8877_v23, %v2541_v33 }
 0x9af   :  { %3393 = vmatpush.bf16.msrb.mxu1 %v3386_v57  ;;  %v3359_v52 = vadd.f32 %v3355_v8, %v3307_v35 }
 0x9b3   :  { %3394 = vmatpush.bf16.msrb.mxu1 %v3385_v36 }
 0x9b6   :  { %6876 = vmatmul.msk.bf16.vlgmr.msrb.gmra.mxu1 %vm1230_vm13, %v8824_v25 }
 0x9b7   :  { %3655 = vmatpush.bf16.msra.mxu1 %v8705_v9 }
 0x9bb   :  { %3656 = vmatpush.bf16.msra.mxu1 %v8716_v28 }
 0x9bf   :  { %3937 = vmatpush.bf16.msrb.mxu1 %v8507_v42 }
 0x9c3   :  { %3938 = vmatpush.bf16.msrb.mxu1 %v8520_v56 }
 0x9c6   :  { %6877 = vmatmul.msk.bf16.gmra.mxu1 %vm1230_vm13, %v8834_v32 }
 0xa14   :  { %v3371_v6 = vpop.f32.mrf.mxu0 }
 0xa15   :  { %v3381_v22 = vadd.f32 %v3371_v6, %v3356_v26 }
 0xa1c   :  { %v3373_v10 = vpop.f32.mrf.mxu0 }
 0xa1d   :  { %v3382_v37 = vadd.f32 %v3373_v10, %v3357_v0 }
 0xa24   :  { %v3376_v53 = vpop.f32.mrf.mxu0 }
 0xa25   :  { %v3383_v41 = vadd.f32 %v3376_v53, %v3358_v38 }
 0xa2c   :  { %v3378_v36 = vpop.f32.mrf.mxu0 }
 0xa2d   :  { %v3384_v24 = vadd.f32 %v3378_v36, %v3359_v52 }
 0xa33   :  { %v3396_v48 = vpop.f32.mrf.mxu1 }
 0xa34   :  { %v3406_v29 = vadd.f32 %v3396_v48, %v3381_v22 }
 0xa36   :  { %v6878_v4 = vmul.f32 -1.442695, %v3406_v29  ;;  %7214 = vtanh.f32 %v3406_v29 }
 0xa38   :  { %7216 = vpow2.f32 %v6878_v4 }
 0xa3b   :  { %v3398_v34 = vpop.f32.mrf.mxu1 }
 0xa3c   :  { %v7215_v17 = vpop.eup %7214  ;;  %v3407_v16 = vadd.f32 %v3398_v34, %v3382_v37 }
 0xa3d   :  { %3498 = vrot.lane.b32.xlu2 %v7215_v17, %s7539_s28 }
 0xa3e   :  { %v7217_v61 = vpop.eup %7216  ;;  %7218 = vtanh.f32 %v3407_v16  ;;  %v6879_v10 = vmul.f32 -1.442695, %v3407_v16 }
 0xa3f   :  { %v3422_v3 = vadd.f32 1.0, %v7217_v61 }
 0xa41   :  { %7220 = vrcp.f32 %v3422_v3  ;;  %v3437_v23 = vand.u32 2147483648, %v3422_v3  ;;  %vm3431_vm1 = vweird.f32 %v3422_v3  ;;  %v3435_v26 = vand.u32 2147483647, %v3422_v3 }
 0xa43   :  { %v3401_v5 = vpop.f32.mrf.mxu1  ;;  %v3438_v19 = vor.u32 1.1754944e-38, %v3437_v23  ;;  %vm3436_vm3 = vcmp.eq.f32.partialorder %v3435_v26, 8.507059e+37 }
 0xa44   :  { %v7219_v20 = vpop.eup %7218  ;;  %v3408_v43 = vadd.f32 %v3401_v5, %v3383_v41 }
 0xa45   :  { %3500 = vrot.lane.b32.xlu0 %v7219_v20, %s7539_s28 }
 0xa46   :  { %7222 = vtanh.f32 %v3408_v43  ;;  %v6880_v48 = vmul.f32 -1.442695, %v3408_v43 }
 0xa47   :  { %v7221_v57 = vpop.eup %7220 }
 0xa48   :  { %v3427_v31 = vmul.f32 %v7221_v57, %v3422_v3  ;;  %vm3432_vm0 = vweird.f32 %v7221_v57 }
 0xa49   :  { %vm3433_vm2 = vmor %vm3431_vm1, %vm3432_vm0 }
 0xa4a   :  { %v3428_v21 = vsub.f32 1.0, %v3427_v31 }
 0xa4b   :  { %v3403_v6 = vpop.f32.mrf.mxu1 }
 0xa4c   :  { %v7223_v49 = vpop.eup %7222  ;;  %v3409_v55 = vadd.f32 %v3403_v6, %v3384_v24  ;;  %v3429_v2 = vmul.f32 %v7221_v57, %v3428_v21 }
 0xa4d   :  { %3502 = vrot.lane.b32.xlu1 %v7223_v49, %s7539_s28 }
 0xa4e   :  { %7224 = vtanh.f32 %v3409_v55  ;;  %v3430_v13 = vadd.f32 %v7221_v57, %v3429_v2  ;;  %v6881_v4 = vmul.f32 -1.442695, %v3409_v55 }
 0xa4f   :  { %7226 = vpow2.f32 %v6879_v10 }
 0xa50   :  { %v3434_v35 = vsel %vm3433_vm2, %v7221_v57, %v3430_v13  ;;  %7228 = vpow2.f32 %v6880_v48 }
 0xa51   :  { %v9066_v22 = vsel %vm3436_vm3, %v3438_v19, %v3434_v35 }
 0xa54   :  { %v7225_v15 = vpop.eup %7224 }
 0xa55   :  { %3504 = vrot.lane.b32.xlu2 %v7225_v15, %s7539_s28  ;;  %v7227_v29 = vpop.eup %7226 }
 0xa56   :  { %v3423_v12 = vadd.f32 1.0, %v7227_v29  ;;  %v7229_v27 = vpop.eup %7228 }
 0xa57   :  { %v3424_v0 = vadd.f32 1.0, %v7229_v27 }
 0xa58   :  { %7230 = vrcp.f32 %v3423_v12  ;;  %v3452_v41 = vand.u32 2147483648, %v3423_v12  ;;  %vm3446_vm5 = vweird.f32 %v3423_v12  ;;  %v3450_v5 = vand.u32 2147483647, %v3423_v12 }
 0xa59   :  { %7232 = vpow2.f32 %v6881_v4  ;;  %v3467_v24 = vand.u32 2147483648, %v3424_v0  ;;  %vm3461_vm9 = vweird.f32 %v3424_v0  ;;  %v3465_v6 = vand.u32 2147483647, %v3424_v0 }
 0xa5a   :  { %7234 = vrcp.f32 %v3424_v0  ;;  %v3453_v57 = vor.u32 1.1754944e-38, %v3452_v41  ;;  %vm3451_vm7 = vcmp.eq.f32.partialorder %v3450_v5, 8.507059e+37 }
 0xa5b   :  { %v3468_v21 = vor.u32 1.1754944e-38, %v3467_v24  ;;  %vm3466_vm11 = vcmp.eq.f32.partialorder %v3465_v6, 8.507059e+37 }
 0xa5d   :  { %3542 = vrot.lane.b32.xlu2 %v9066_v22, %s7540_s29 }
 0xa5e   :  { %v7231_v11 = vpop.eup %7230 }
 0xa5f   :  { %v7233_v37 = vpop.eup %7232  ;;  %v3442_v34 = vmul.f32 %v7231_v11, %v3423_v12  ;;  %vm3447_vm4 = vweird.f32 %v7231_v11 }
 0xa60   :  { %v3425_v17 = vadd.f32 1.0, %v7233_v37  ;;  %v7235_v61 = vpop.eup %7234  ;;  %vm3448_vm6 = vmor %vm3446_vm5, %vm3447_vm4 }
 0xa61   :  { %v3443_v53 = vsub.f32 1.0, %v3442_v34  ;;  %v3457_v16 = vmul.f32 %v7235_v61, %v3424_v0  ;;  %vm3462_vm8 = vweird.f32 %v7235_v61  ;;  %v7119_v0 = vld [vmem:[%s9954_s11 + $0x28] sm:$0xff] }
 0xa62   :  { %7236 = vrcp.f32 %v3425_v17  ;;  %vm3463_vm10 = vmor %vm3461_vm9, %vm3462_vm8  ;;  %v3482_v13 = vand.u32 2147483648, %v3425_v17  ;;  %vm3476_vm14 = vweird.f32 %v3425_v17  ;;  %v3480_v23 = vand.u32 2147483647, %v3425_v17  ;;  %3594 = vmatpush.bf16.msra.mxu3 %v7119_v0 }
 0xa63   :  { %v3444_v58 = vmul.f32 %v7231_v11, %v3443_v53  ;;  %v3458_v33 = vsub.f32 1.0, %v3457_v16 }
 0xa64   :  { %v3483_v35 = vor.u32 1.1754944e-38, %v3482_v13  ;;  %vm3481_vm0 = vcmp.eq.f32.partialorder %v3480_v23, 8.507059e+37 }
 0xa65   :  { %v3445_v59 = vadd.f32 %v7231_v11, %v3444_v58  ;;  %v3459_v8 = vmul.f32 %v7235_v61, %v3458_v33 }
 0xa67   :  { %v3449_v43 = vsel %vm3448_vm6, %v7231_v11, %v3445_v59  ;;  %v3460_v31 = vadd.f32 %v7235_v61, %v3459_v8  ;;  %v7118_v11 = vld [vmem:[%s9954_s11 + $0x20] sm:$0xff] }
 0xa68   :  { %v7237_v38 = vpop.eup %7236  ;;  %v3454_v52 = vsel %vm3451_vm7, %v3453_v57, %v3449_v43  ;;  %3595 = vmatpush.bf16.msra.mxu3 %v7118_v11 }
 0xa69   :  { %v3472_v20 = vmul.f32 %v7237_v38, %v3425_v17  ;;  %v3464_v55 = vsel %vm3463_vm10, %v7235_v61, %v3460_v31  ;;  %vm3477_vm12 = vweird.f32 %v7237_v38  ;;  %v3490_v17 = vmul.f32 %v9066_v22, %v8984_v14 }
 0xa6a   :  { %v3469_v15 = vsel %vm3466_vm11, %v3468_v21, %v3464_v55  ;;  %vm3478_vm15 = vmor %vm3476_vm14, %vm3477_vm12  ;;  %v3491_v61 = vmul.f32 %v3454_v52, %v8980_v51 }
 0xa6b   :  { %v3473_v36 = vsub.f32 1.0, %v3472_v20  ;;  %v3492_v14 = vmul.f32 %v3469_v15, %v8998_v54 }
 0xa6d   :  { %v3474_v49 = vmul.f32 %v7237_v38, %v3473_v36 }
 0xa6f   :  { %v3475_v2 = vadd.f32 %v7237_v38, %v3474_v49  ;;  %v3282_v49 = vadd.f32 %v9038_v50, %v9016_v30 }
 0xa71   :  { %v3479_v26 = vsel %vm3478_vm15, %v7237_v38, %v3475_v2 }
 0xa72   :  { %v3484_v10 = vsel %vm3481_vm0, %v3483_v35, %v3479_v26 }
 0xa97   :  { %v3499_v3 = vpop.permute.xlu2 %3498 }
 0xa98   :  { %v3510_v46 = vmul.f32 %v3499_v3, %v9066_v22 }
 0xa9a   :  { %3518 = vrot.lane.b32.xlu0 %v3510_v46, %s7539_s28  ;;  %v3493_v46 = vmul.f32 %v3484_v10, %v9001_v40 }
 0xaa2   :  { %3544 = vrot.lane.b32.xlu0 %v3454_v52, %s7540_s29 }
 0xaaa   :  { %3546 = vrot.lane.b32.xlu0 %v3469_v15, %s7540_s29 }
 0xaaf   :  { %v3505_v19 = vpop.permute.xlu2 %3504 }
 0xab0   :  { %v3513_v48 = vmul.f32 %v3505_v19, %v3484_v10 }
 0xab2   :  { %3524 = vrot.lane.b32.xlu2 %v3513_v48, %s7539_s28 }
 0xab7   :  { %v3501_v29 = vpop.permute.xlu0 %3500  ;;  %v3543_v34 = vpop.permute.xlu2 %3542 }
 0xab8   :  { %v3511_v12 = vmul.f32 %v3501_v29, %v3454_v52 }
 0xaba   :  { %3520 = vrot.lane.b32.xlu1 %v3511_v12, %s7539_s28 }
 0xabf   :  { %v3503_v4 = vpop.permute.xlu1 %3502 }
 0xac0   :  { %v3512_v27 = vmul.f32 %v3503_v4, %v3469_v15 }
 0xac2   :  { %3522 = vrot.lane.b32.xlu1 %v3512_v27, %s7539_s28 }
 0xaca   :  { %3548 = vrot.lane.b32.xlu1 %v3484_v10, %s7540_s29  ;;  %v3287_v10 = vadd.f32 %v9042_v18, %v9020_v39 }
 0xb0c   :  { %v3519_v37 = vpop.permute.xlu0 %3518  ;;  %v3525_v3 = vpop.permute.xlu2 %3524 }
 0xb0d   :  { %v9086_v53 = vadd.f32 %v3519_v37, %v3490_v17  ;;  %v9094_v38 = vadd.f32 %v3525_v3, %v3493_v46  ;;  %v10070_v37 = vld [vmem:[#allocation27_spill] sm:$0xff]  ;;  %v10072_v3 = vld [vmem:[#allocation92_spill] sm:$0xff] }
 0xb0f   :  { %7238 = vtanh.f32 %v9086_v53 }
 0xb14   :  { %v3545_v33 = vpop.permute.xlu0 %3544 }
 0xb15   :  { %v7239_v59 = vpop.eup %7238 }
 0xb16   :  { %v3554_v51 = vmul.f32 %v7239_v59, %v3543_v34  ;;  %v10071_v34 = vld [vmem:[#allocation63_spill] sm:$0xff] }
 0xb17   :  { %v1594_v17 = vadd.f32 %v10071_v34, %v10070_v37  ;;  %v9143_v59 = vld [vmem:[%s9952_s10] ss:$0 sm:$0xff] }
 0xb19   :  { %v2506_v46 = vadd.f32 %v10072_v3, %v1594_v17 }
 0xb1c   :  { %v3547_v36 = vpop.permute.xlu0 %3546 }
 0xb2c   :  { %v3521_v58 = vpop.permute.xlu1 %3520 }
 0xb2d   :  { %v9090_v16 = vadd.f32 %v3521_v58, %v3491_v61 }
 0xb2f   :  { %7240 = vtanh.f32 %v9090_v16 }
 0xb30   :  { %7242 = vtanh.f32 %v9094_v38 }
 0xb34   :  { %v3523_v22 = vpop.permute.xlu1 %3522 }
 0xb35   :  { %v7241_v41 = vpop.eup %7240  ;;  %v9097_v5 = vadd.f32 %v3523_v22, %v3492_v14  ;;  %v10073_v14 = vld [vmem:[#allocation28_spill] sm:$0xff] }
 0xb36   :  { %v3555_v20 = vmul.f32 %v7241_v41, %v3545_v33  ;;  %v7243_v40 = vpop.eup %7242  ;;  %v3672_v33 = vadd.f32 %v9143_v59, %v2506_v46  ;;  %v10074_v22 = vld [vmem:[#allocation64_spill] sm:$0xff] }
 0xb37   :  { %7244 = vtanh.f32 %v9097_v5  ;;  %v1606_v41 = vadd.f32 %v10074_v22, %v10073_v14 }
 0xb38   :  { %v3558_v43 = vpack.c.bf16 %v3555_v20, %v3554_v51 }
 0xb3a   :  { %3566 = vrot.lane.b32.xlu2 %v3558_v43, %s7540_s29 }
 0xb3c   :  { %v3549_v8 = vpop.permute.xlu1 %3548 }
 0xb3d   :  { %v7245_v57 = vpop.eup %7244  ;;  %v3557_v52 = vmul.f32 %v7243_v40, %v3549_v8  ;;  %v10075_v40 = vld [vmem:[#allocation94_spill] sm:$0xff] }
 0xb3e   :  { %v3556_v31 = vmul.f32 %v7245_v57, %v3547_v36  ;;  %v2518_v8 = vadd.f32 %v10075_v40, %v1606_v41 }
 0xb40   :  { %v3559_v54 = vpack.c.bf16 %v3557_v52, %v3556_v31  ;;  %v3673_v52 = vadd.f32 %v9143_v59, %v2518_v8 }
 0xb42   :  { %3568 = vrot.lane.b32.xlu0 %v3559_v54, %s7540_s29  ;;  %v10076_v54 = vld [vmem:[#allocation30_spill] sm:$0xff] }
 0xb94   :  { %v3567_v24 = vpop.permute.xlu2 %3566 }
 0xb95   :  { %6890 = vmatmul.msk.bf16.vlgmr.msra.gmra.mxu3 %vm1230_vm13, %v3567_v24  ;;  %6892 = vmatmul.msk.bf16.vlgmr.msra.gmra.mxu2 %vm1230_vm13, %v3567_v24 }
 0xb96   :  { %6894 = vmatmul.msk.bf16.vlgmr.msra.gmra.mxu0 %vm1230_vm13, %v3567_v24  ;;  %6896 = vmatmul.msk.bf16.vlgmr.msra.gmra.mxu1 %vm1230_vm13, %v3567_v24  ;;  %v10077_v24 = vld [vmem:[#allocation65_spill] sm:$0xff] }
 0xbb4   :  { %v3569_v6 = vpop.permute.xlu0 %3568 }
 0xbb5   :  { %6891 = vmatmul.msk.bf16.gmra.mxu3 %vm1230_vm13, %v3569_v6  ;;  %6893 = vmatmul.msk.bf16.gmra.mxu2 %vm1230_vm13, %v3569_v6 }
 0xbb6   :  { %6895 = vmatmul.msk.bf16.gmra.mxu0 %vm1230_vm13, %v3569_v6  ;;  %6897 = vmatmul.msk.bf16.gmra.mxu1 %vm1230_vm13, %v3569_v6  ;;  %v1618_v6 = vadd.f32 %v10077_v24, %v10076_v54 }
 0xc13   :  { %v3639_v2 = vpop.f32.mrf.mxu0  ;;  %v3658_v15 = vpop.f32.mrf.mxu1 }
 0xc18   :  { %v3597_v55 = vpop.f32.mrf.mxu3  ;;  %v3620_v39 = vpop.f32.mrf.mxu2 }
 0xc19   :  { %v9113_v21 = vadd.f32 %v3597_v55, %v3282_v49  ;;  %v3676_v51 = vadd.f32 %v3672_v33, %v3620_v39 }
 0xc1b   :  { %v3641_v13 = vpop.f32.mrf.mxu0  ;;  %v3660_v23 = vpop.f32.mrf.mxu1 }
 0xc1c   :  { %v3680_v27 = vpack.c.bf16 %v3641_v13, %v3639_v2  ;;  %v3705_v0 = vpack.c.bf16 %v3660_v23, %v3658_v15  ;;  %v10078_v15 = vld [vmem:[#allocation96_spill] sm:$0xff] }
 0xc1d   :  { %v2530_v13 = vadd.f32 %v10078_v15, %v1618_v6 }
 0xc20   :  { %v9115_v26 = vpop.f32.mrf.mxu3  ;;  %v3622_v18 = vpop.f32.mrf.mxu2 }
 0xc21   :  { %v3677_v49 = vadd.f32 %v3673_v52, %v3622_v18  ;;  %v10081_v18 = vld [vmem:[#allocation98_spill] sm:$0xff] }
 0xc33   :  { %v3644_v35 = vpop.f32.mrf.mxu0  ;;  %v3663_v19 = vpop.f32.mrf.mxu1 }
 0xc38   :  { %v3602_v48 = vpop.f32.mrf.mxu3  ;;  %v3625_v11 = vpop.f32.mrf.mxu2 }
 0xc39   :  { %v9119_v29 = vadd.f32 %v3602_v48, %v3287_v10  ;;  %v3674_v48 = vadd.f32 %v9143_v59, %v2530_v13 }
 0xc3b   :  { %v3646_v12 = vpop.f32.mrf.mxu0  ;;  %v3665_v4 = vpop.f32.mrf.mxu1 }
 0xc3c   :  { %v3681_v30 = vpack.c.bf16 %v3646_v12, %v3644_v35  ;;  %v3706_v50 = vpack.c.bf16 %v3665_v4, %v3663_v19  ;;  %v10079_v4 = vld [vmem:[#allocation32_spill] sm:$0xff] }
 0xc3e   :  { %3688 = vmatpush.bf16.msrb.mxu3 %v3681_v30  ;;  %3713 = vmatpush.bf16.msrb.mxu2 %v3706_v50  ;;  %v10080_v30 = vld [vmem:[#allocation66_spill] sm:$0xff] }
 0xc3f   :  { %v1630_v50 = vadd.f32 %v10080_v30, %v10079_v4 }
 0xc40   :  { %v9137_v61 = vpop.f32.mrf.mxu3  ;;  %v3627_v58 = vpop.f32.mrf.mxu2 }
 0xc41   :  { %v2542_v37 = vadd.f32 %v10081_v18, %v1630_v50 }
 0xc42   :  { %3689 = vmatpush.bf16.msrb.mxu3 %v3680_v27  ;;  %3714 = vmatpush.bf16.msrb.mxu2 %v3705_v0  ;;  %v3678_v27 = vadd.f32 %v3674_v48, %v3625_v11 }
 0xc43   :  { %v3675_v46 = vadd.f32 %v9143_v59, %v2542_v37 }
 0xc45   :  { %6898 = vmatmul.msk.bf16.vlgmr.msrb.gmra.mxu3 %vm1230_vm13, %v8806_v60  ;;  %6900 = vmatmul.msk.bf16.vlgmr.msrb.gmra.mxu2 %vm1230_vm13, %v8824_v25  ;;  %v3679_v14 = vadd.f32 %v3675_v46, %v3627_v58 }
 0xc46   :  { %3956 = vmatpush.bf16.msra.mxu3 %v8650_v44  ;;  %3975 = vmatpush.bf16.msra.mxu2 %v8705_v9 }
 0xc4a   :  { %3957 = vmatpush.bf16.msra.mxu3 %v8665_v47  ;;  %3976 = vmatpush.bf16.msra.mxu2 %v8716_v28 }
 0xc4e   :  { %4257 = vmatpush.bf16.msrb.mxu2 %v8507_v42 }
 0xc52   :  { %4258 = vmatpush.bf16.msrb.mxu2 %v8520_v56 }
 0xc55   :  { %6899 = vmatmul.msk.bf16.gmra.mxu3 %vm1230_vm13, %v8814_v45  ;;  %6901 = vmatmul.msk.bf16.gmra.mxu2 %vm1230_vm13, %v8834_v32 }
 0xcc8   :  { %v3691_v20 = vpop.f32.mrf.mxu3  ;;  %v3716_v43 = vpop.f32.mrf.mxu2 }
 0xcc9   :  { %v3701_v57 = vadd.f32 %v3691_v20, %v3676_v51 }
 0xccb   :  { %v3726_v36 = vadd.f32 %v3716_v43, %v3701_v57 }
 0xccd   :  { %v6902_v31 = vmul.f32 -1.442695, %v3726_v36  ;;  %7246 = vtanh.f32 %v3726_v36 }
 0xccf   :  { %7248 = vpow2.f32 %v6902_v31 }
 0xcd0   :  { %v3693_v55 = vpop.f32.mrf.mxu3  ;;  %v3718_v2 = vpop.f32.mrf.mxu2 }
 0xcd1   :  { %v3702_v23 = vadd.f32 %v3693_v55, %v3677_v49 }
 0xcd3   :  { %v7247_v35 = vpop.eup %7246  ;;  %v3727_v19 = vadd.f32 %v3718_v2, %v3702_v23 }
 0xcd4   :  { %3818 = vrot.lane.b32.xlu1 %v7247_v35, %s7539_s28 }
 0xcd5   :  { %v7249_v10 = vpop.eup %7248  ;;  %7250 = vtanh.f32 %v3727_v19  ;;  %v6903_v6 = vmul.f32 -1.442695, %v3727_v19 }
 0xcd6   :  { %v3742_v12 = vadd.f32 1.0, %v7249_v10 }
 0xcd8   :  { %7252 = vrcp.f32 %v3742_v12  ;;  %v3696_v0 = vpop.f32.mrf.mxu3  ;;  %v3721_v39 = vpop.f32.mrf.mxu2  ;;  %v3757_v52 = vand.u32 2147483648, %v3742_v12  ;;  %vm3751_vm2 = vweird.f32 %v3742_v12  ;;  %v3755_v31 = vand.u32 2147483647, %v3742_v12 }
 0xcd9   :  { %v3703_v34 = vadd.f32 %v3696_v0, %v3678_v27 }
 0xcda   :  { %v3758_v54 = vor.u32 1.1754944e-38, %v3757_v52  ;;  %vm3756_vm4 = vcmp.eq.f32.partialorder %v3755_v31, 8.507059e+37 }
 0xcdb   :  { %v7251_v17 = vpop.eup %7250  ;;  %v3728_v3 = vadd.f32 %v3721_v39, %v3703_v34 }
 0xcdc   :  { %3820 = vrot.lane.b32.xlu2 %v7251_v17, %s7539_s28 }
 0xcdd   :  { %7254 = vtanh.f32 %v3728_v3  ;;  %v6904_v23 = vmul.f32 -1.442695, %v3728_v3 }
 0xcde   :  { %v7253_v33 = vpop.eup %7252 }
 0xcdf   :  { %v3747_v41 = vmul.f32 %v7253_v33, %v3742_v12  ;;  %vm3752_vm1 = vweird.f32 %v7253_v33 }
 0xce0   :  { %v3698_v22 = vpop.f32.mrf.mxu3  ;;  %v3723_v20 = vpop.f32.mrf.mxu2  ;;  %vm3753_vm3 = vmor %vm3751_vm2, %vm3752_vm1 }
 0xce1   :  { %v3704_v51 = vadd.f32 %v3698_v22, %v3679_v14  ;;  %v3748_v40 = vsub.f32 1.0, %v3747_v41 }
 0xce3   :  { %v7255_v11 = vpop.eup %7254  ;;  %v3729_v43 = vadd.f32 %v3723_v20, %v3704_v51  ;;  %v3749_v8 = vmul.f32 %v7253_v33, %v3748_v40 }
 0xce4   :  { %3822 = vrot.lane.b32.xlu0 %v7255_v11, %s7539_s28 }
 0xce5   :  { %7256 = vtanh.f32 %v3729_v43  ;;  %v3750_v36 = vadd.f32 %v7253_v33, %v3749_v8  ;;  %v6905_v12 = vmul.f32 -1.442695, %v3729_v43 }
 0xce6   :  { %7258 = vpow2.f32 %v6903_v6 }
 0xce7   :  { %v3754_v58 = vsel %vm3753_vm3, %v7253_v33, %v3750_v36 }
 0xce8   :  { %v9162_v24 = vsel %vm3756_vm4, %v3758_v54, %v3754_v58 }
 0xceb   :  { %v7257_v57 = vpop.eup %7256 }
 0xcec   :  { %3824 = vrot.lane.b32.xlu1 %v7257_v57, %s7539_s28  ;;  %v7259_v49 = vpop.eup %7258 }
 0xced   :  { %v3743_v55 = vadd.f32 1.0, %v7259_v49 }
 0xcef   :  { %7260 = vrcp.f32 %v3743_v55  ;;  %v3772_v48 = vand.u32 2147483648, %v3743_v55  ;;  %vm3766_vm6 = vweird.f32 %v3743_v55  ;;  %v3770_v4 = vand.u32 2147483647, %v3743_v55 }
 0xcf0   :  { %7262 = vpow2.f32 %v6904_v23 }
 0xcf1   :  { %v3773_v19 = vor.u32 1.1754944e-38, %v3772_v48  ;;  %7264 = vpow2.f32 %v6905_v12  ;;  %vm3771_vm8 = vcmp.eq.f32.partialorder %v3770_v4, 8.507059e+37 }
 0xcf4   :  { %3862 = vrot.lane.b32.xlu1 %v9162_v24, %s7540_s29 }
 0xcf5   :  { %v7261_v2 = vpop.eup %7260 }
 0xcf6   :  { %v3762_v15 = vmul.f32 %v7261_v2, %v3743_v55  ;;  %vm3767_vm5 = vweird.f32 %v7261_v2  ;;  %v7263_v30 = vpop.eup %7262 }
 0xcf7   :  { %vm3768_vm7 = vmor %vm3766_vm6, %vm3767_vm5  ;;  %v3744_v27 = vadd.f32 1.0, %v7263_v30  ;;  %v7265_v37 = vpop.eup %7264 }
 0xcf8   :  { %v3763_v13 = vsub.f32 1.0, %v3762_v15  ;;  %v3745_v34 = vadd.f32 1.0, %v7265_v37 }
 0xcf9   :  { %7266 = vrcp.f32 %v3744_v27  ;;  %v3787_v43 = vand.u32 2147483648, %v3744_v27  ;;  %vm3781_vm10 = vweird.f32 %v3744_v27  ;;  %v3785_v40 = vand.u32 2147483647, %v3744_v27 }
 0xcfa   :  { %v3764_v35 = vmul.f32 %v7261_v2, %v3763_v13  ;;  %7268 = vrcp.f32 %v3745_v34  ;;  %v3802_v6 = vand.u32 2147483648, %v3745_v34  ;;  %vm3796_vm15 = vweird.f32 %v3745_v34 }
 0xcfb   :  { %v3788_v36 = vor.u32 1.1754944e-38, %v3787_v43  ;;  %vm3786_vm12 = vcmp.eq.f32.partialorder %v3785_v40, 8.507059e+37  ;;  %v3800_v49 = vand.u32 2147483647, %v3745_v34 }
 0xcfc   :  { %v3765_v10 = vadd.f32 %v7261_v2, %v3764_v35 }
 0xcfd   :  { %vm3801_vm1 = vcmp.eq.f32.partialorder %v3800_v49, 8.507059e+37 }
 0xcfe   :  { %v3769_v50 = vsel %vm3768_vm7, %v7261_v2, %v3765_v10  ;;  %v3803_v2 = vor.u32 1.1754944e-38, %v3802_v6  ;;  %v3810_v10 = vmul.f32 %v9162_v24, %v9086_v53  ;;  %v7121_v53 = vld [vmem:[%s9954_s11 + $0x38] sm:$0xff] }
 0xcff   :  { %v3774_v39 = vsel %vm3771_vm8, %v3773_v19, %v3769_v50  ;;  %v7267_v17 = vpop.eup %7266  ;;  %3914 = vmatpush.bf16.msrb.mxu0 %v7121_v53  ;;  %v10085_v53 = vld [vmem:[#allocation4_spill] sm:$0xff] }
 0xd00   :  { %v3777_v3 = vmul.f32 %v7267_v17, %v3744_v27  ;;  %v7269_v22 = vpop.eup %7268  ;;  %vm3782_vm9 = vweird.f32 %v7267_v17  ;;  %v3811_v12 = vmul.f32 %v3774_v39, %v9090_v16  ;;  %v7120_v16 = vld [vmem:[%s9954_s11 + $0x30] sm:$0xff] }
 0xd01   :  { %v3792_v51 = vmul.f32 %v7269_v22, %v3745_v34  ;;  %vm3783_vm11 = vmor %vm3781_vm10, %vm3782_vm9  ;;  %vm3797_vm14 = vweird.f32 %v7269_v22 }
 0xd02   :  { %v3778_v14 = vsub.f32 1.0, %v3777_v3  ;;  %vm3798_vm0 = vmor %vm3796_vm15, %vm3797_vm14 }
 0xd03   :  { %v3793_v11 = vsub.f32 1.0, %v3792_v51  ;;  %3915 = vmatpush.bf16.msrb.mxu0 %v7120_v16  ;;  %v10086_v16 = vld [vmem:[#allocation31_spill] sm:$0xff] }
 0xd04   :  { %v3779_v41 = vmul.f32 %v7267_v17, %v3778_v14 }
 0xd05   :  { %v3794_v57 = vmul.f32 %v7269_v22, %v3793_v11 }
 0xd06   :  { %v3780_v20 = vadd.f32 %v7267_v17, %v3779_v41 }
 0xd07   :  { %v3795_v54 = vadd.f32 %v7269_v22, %v3794_v57 }
 0xd08   :  { %v3784_v8 = vsel %vm3783_vm11, %v7267_v17, %v3780_v20 }
 0xd09   :  { %v3789_v31 = vsel %vm3786_vm12, %v3788_v36, %v3784_v8  ;;  %v3799_v55 = vsel %vm3798_vm0, %v7269_v22, %v3795_v54 }
 0xd0a   :  { %v3804_v13 = vsel %vm3801_vm1, %v3803_v2, %v3799_v55 }
 0xd0b   :  { %v3813_v3 = vmul.f32 %v3804_v13, %v9094_v38 }
 0xd36   :  { %v3821_v0 = vpop.permute.xlu2 %3820 }
 0xd37   :  { %v3831_v18 = vmul.f32 %v3821_v0, %v3774_v39 }
 0xd39   :  { %3840 = vrot.lane.b32.xlu0 %v3831_v18, %s7539_s28 }
 0xd46   :  { %v3819_v46 = vpop.permute.xlu1 %3818 }
 0xd47   :  { %v3830_v33 = vmul.f32 %v3819_v46, %v9162_v24 }
 0xd49   :  { %3838 = vrot.lane.b32.xlu2 %v3830_v33, %s7539_s28 }
 0xd51   :  { %3864 = vrot.lane.b32.xlu2 %v3774_v39, %s7540_s29  ;;  %v3812_v39 = vmul.f32 %v3789_v31, %v9097_v5 }
 0xd56   :  { %v3823_v52 = vpop.permute.xlu0 %3822 }
 0xd57   :  { %v3832_v58 = vmul.f32 %v3823_v52, %v3789_v31 }
 0xd59   :  { %3866 = vrot.lane.b32.xlu2 %v3789_v31, %s7540_s29  ;;  %3842 = vrot.lane.b32.xlu0 %v3832_v58, %s7539_s28 }
 0xd5e   :  { %v3825_v15 = vpop.permute.xlu1 %3824 }
 0xd5f   :  { %v3833_v23 = vmul.f32 %v3825_v15, %v3804_v13 }
 0xd61   :  { %3868 = vrot.lane.b32.xlu0 %v3804_v13, %s7540_s29  ;;  %3844 = vrot.lane.b32.xlu1 %v3833_v23, %s7539_s28 }
 0xd66   :  { %v3863_v27 = vpop.permute.xlu1 %3862 }
 0xda3   :  { %v3839_v35 = vpop.permute.xlu2 %3838 }
 0xda4   :  { %v9176_v48 = vadd.f32 %v3839_v35, %v3810_v10 }
 0xda6   :  { %7270 = vtanh.f32 %v9176_v48 }
 0xdab   :  { %v3841_v4 = vpop.permute.xlu0 %3840  ;;  %v3865_v0 = vpop.permute.xlu2 %3864 }
 0xdac   :  { %v9180_v30 = vadd.f32 %v3841_v4, %v3811_v12  ;;  %v7271_v50 = vpop.eup %7270  ;;  %v10082_v4 = vld [vmem:[#allocation3_spill] sm:$0xff] }
 0xdad   :  { %v3874_v18 = vmul.f32 %v7271_v50, %v3863_v27  ;;  %v10083_v50 = vld [vmem:[#allocation29_spill] sm:$0xff] }
 0xdae   :  { %7272 = vtanh.f32 %v9180_v30 }
 0xdb3   :  { %v3867_v41 = vpop.permute.xlu2 %3866 }
 0xdb4   :  { %v7273_v19 = vpop.eup %7272 }
 0xdb5   :  { %v3875_v37 = vmul.f32 %v7273_v19, %v3865_v0  ;;  %v1595_v19 = vadd.f32 %v10083_v50, %v10082_v4  ;;  %v10093_v50 = vld [vmem:[#allocation99_spill] sm:$0xff] }
 0xdb7   :  { %v3878_v34 = vpack.c.bf16 %v3875_v37, %v3874_v18  ;;  %v10084_v18 = vld [vmem:[#allocation93_spill] sm:$0xff] }
 0xdb8   :  { %v2507_v37 = vadd.f32 %v10084_v18, %v1595_v19 }
 0xdb9   :  { %3886 = vrot.lane.b32.xlu1 %v3878_v34, %s7540_s29 }
 0xdba   :  { %v3992_v34 = vadd.f32 %v9143_v59, %v2507_v37 }
 0xdcb   :  { %v3843_v24 = vpop.permute.xlu0 %3842 }
 0xdcc   :  { %v9191_v17 = vadd.f32 %v3843_v24, %v3812_v39  ;;  %v1607_v24 = vadd.f32 %v10086_v16, %v10085_v53 }
 0xdce   :  { %7274 = vtanh.f32 %v9191_v17 }
 0xdd3   :  { %v3845_v46 = vpop.permute.xlu1 %3844  ;;  %v3869_v51 = vpop.permute.xlu0 %3868 }
 0xdd4   :  { %v9195_v33 = vadd.f32 %v3845_v46, %v3813_v3  ;;  %v7275_v14 = vpop.eup %7274 }
 0xdd5   :  { %v3876_v20 = vmul.f32 %v7275_v14, %v3867_v41  ;;  %v10087_v14 = vld [vmem:[#allocation95_spill] sm:$0xff] }
 0xdd6   :  { %7276 = vtanh.f32 %v9195_v33 }
 0xddc   :  { %v7277_v22 = vpop.eup %7276 }
 0xddd   :  { %v3877_v11 = vmul.f32 %v7277_v22, %v3869_v51  ;;  %v2519_v22 = vadd.f32 %v10087_v14, %v1607_v24 }
 0xddf   :  { %v3879_v43 = vpack.c.bf16 %v3877_v11, %v3876_v20  ;;  %v3993_v20 = vadd.f32 %v9143_v59, %v2519_v22 }
 0xde1   :  { %3888 = vrot.lane.b32.xlu2 %v3879_v43, %s7540_s29  ;;  %v10088_v43 = vld [vmem:[#allocation5_spill] sm:$0xff] }
 0xe2b   :  { %v3887_v5 = vpop.permute.xlu1 %3886 }
 0xe2c   :  { %6914 = vmatmul.msk.bf16.vlgmr.msrb.gmra.mxu0 %vm1230_vm13, %v3887_v5  ;;  %6916 = vmatmul.msk.bf16.vlgmr.msrb.gmra.mxu1 %vm1230_vm13, %v3887_v5 }
 0xe2d   :  { %6918 = vmatmul.msk.bf16.vlgmr.msra.gmra.mxu3 %vm1230_vm13, %v3887_v5  ;;  %6920 = vmatmul.msk.bf16.vlgmr.msra.gmra.mxu2 %vm1230_vm13, %v3887_v5  ;;  %v10089_v5 = vld [vmem:[#allocation33_spill] sm:$0xff] }
 0xe3b   :  { %v3889_v38 = vpop.permute.xlu2 %3888 }
 0xe3c   :  { %6915 = vmatmul.msk.bf16.gmra.mxu0 %vm1230_vm13, %v3889_v38  ;;  %6917 = vmatmul.msk.bf16.gmra.mxu1 %vm1230_vm13, %v3889_v38 }
 0xe3d   :  { %6919 = vmatmul.msk.bf16.gmra.mxu3 %vm1230_vm13, %v3889_v38  ;;  %6921 = vmatmul.msk.bf16.gmra.mxu2 %vm1230_vm13, %v3889_v38  ;;  %v1619_v38 = vadd.f32 %v10089_v5, %v10088_v43 }
 0xea9   :  { %v3917_v40 = vpop.f32.mrf.mxu0 }
 0xeaa   :  { %v9208_v8 = vadd.f32 %v3917_v40, %v9113_v21 }
 0xeb0   :  { %v3959_v57 = vpop.f32.mrf.mxu3  ;;  %v3978_v36 = vpop.f32.mrf.mxu2 }
 0xeb1   :  { %v9210_v52 = vpop.f32.mrf.mxu0 }
 0xeb8   :  { %v3961_v31 = vpop.f32.mrf.mxu3  ;;  %v3980_v58 = vpop.f32.mrf.mxu2 }
 0xeb9   :  { %v3922_v54 = vpop.f32.mrf.mxu0  ;;  %v4000_v21 = vpack.c.bf16 %v3961_v31, %v3959_v57  ;;  %v4025_v35 = vpack.c.bf16 %v3980_v58, %v3978_v36  ;;  %v10090_v31 = vld [vmem:[#allocation97_spill] sm:$0xff] }
 0xeba   :  { %v9213_v6 = vadd.f32 %v3922_v54, %v9119_v29  ;;  %v3940_v29 = vpop.f32.mrf.mxu1  ;;  %v2531_v58 = vadd.f32 %v10090_v31, %v1619_v38 }
 0xebb   :  { %v3996_v39 = vadd.f32 %v3992_v34, %v3940_v29 }
 0xec0   :  { %v3964_v49 = vpop.f32.mrf.mxu3  ;;  %v3983_v55 = vpop.f32.mrf.mxu2 }
 0xec1   :  { %v9231_v27 = vpop.f32.mrf.mxu0 }
 0xec2   :  { %v3942_v10 = vpop.f32.mrf.mxu1 }
 0xec3   :  { %v3997_v40 = vadd.f32 %v3993_v20, %v3942_v10 }
 0xec8   :  { %v3966_v2 = vpop.f32.mrf.mxu3  ;;  %v3985_v15 = vpop.f32.mrf.mxu2 }
 0xec9   :  { %v4001_v13 = vpack.c.bf16 %v3966_v2, %v3964_v49  ;;  %v4026_v23 = vpack.c.bf16 %v3985_v15, %v3983_v55  ;;  %v3994_v15 = vadd.f32 %v9143_v59, %v2531_v58 }
 0xeca   :  { %v3945_v12 = vpop.f32.mrf.mxu1 }
 0xecb   :  { %4008 = vmatpush.bf16.msra.mxu0 %v4001_v13  ;;  %4033 = vmatpush.bf16.msra.mxu1 %v4026_v23  ;;  %v10091_v23 = vld [vmem:[#allocation6_spill] sm:$0xff]  ;;  %v3998_v29 = vadd.f32 %v3994_v15, %v3945_v12 }
 0xecf   :  { %4009 = vmatpush.bf16.msra.mxu0 %v4000_v21  ;;  %4034 = vmatpush.bf16.msra.mxu1 %v4025_v35  ;;  %v10092_v21 = vld [vmem:[#allocation35_spill] sm:$0xff] }
 0xed0   :  { %v1631_v35 = vadd.f32 %v10092_v21, %v10091_v23 }
 0xed2   :  { %6922 = vmatmul.msk.bf16.vlgmr.msra.gmra.mxu0 %vm1230_vm13, %v8806_v60  ;;  %6924 = vmatmul.msk.bf16.vlgmr.msra.gmra.mxu1 %vm1230_vm13, %v8824_v25  ;;  %v3947_v0 = vpop.f32.mrf.mxu1  ;;  %v2543_v19 = vadd.f32 %v10093_v50, %v1631_v35 }
 0xed3   :  { %4276 = vmatpush.bf16.msrb.mxu0 %v8650_v44  ;;  %4295 = vmatpush.bf16.msrb.mxu1 %v8705_v9 }
 0xed4   :  { %v3995_v53 = vadd.f32 %v9143_v59, %v2543_v19 }
 0xed6   :  { %v3999_v24 = vadd.f32 %v3995_v53, %v3947_v0 }
 0xed7   :  { %4277 = vmatpush.bf16.msrb.mxu0 %v8665_v47  ;;  %4296 = vmatpush.bf16.msrb.mxu1 %v8716_v28 }
 0xedb   :  { %4577 = vmatpush.bf16.msra.mxu1 %v8507_v42 }
 0xedf   :  { %4578 = vmatpush.bf16.msra.mxu1 %v8520_v56 }
 0xee2   :  { %6923 = vmatmul.msk.bf16.gmra.mxu0 %vm1230_vm13, %v8814_v45  ;;  %6925 = vmatmul.msk.bf16.gmra.mxu1 %vm1230_vm13, %v8834_v32 }
 0xf4f   :  { %v4011_v3 = vpop.f32.mrf.mxu0  ;;  %v4036_v46 = vpop.f32.mrf.mxu1 }
 0xf50   :  { %v4021_v41 = vadd.f32 %v4011_v3, %v3996_v39 }
 0xf52   :  { %v4046_v51 = vadd.f32 %v4036_v46, %v4021_v41 }
 0xf54   :  { %v6926_v11 = vmul.f32 -1.442695, %v4046_v51  ;;  %7278 = vtanh.f32 %v4046_v51 }
 0xf56   :  { %7280 = vpow2.f32 %v6926_v11 }
 0xf57   :  { %v4013_v57 = vpop.f32.mrf.mxu0  ;;  %v4038_v36 = vpop.f32.mrf.mxu1 }
 0xf58   :  { %v4022_v54 = vadd.f32 %v4013_v57, %v3997_v40 }
 0xf5a   :  { %v7279_v49 = vpop.eup %7278  ;;  %v4047_v55 = vadd.f32 %v4038_v36, %v4022_v54 }
 0xf5b   :  { %4138 = vrot.lane.b32.xlu0 %v7279_v49, %s7539_s28 }
 0xf5c   :  { %v7281_v2 = vpop.eup %7280  ;;  %7282 = vtanh.f32 %v4047_v55  ;;  %v6927_v57 = vmul.f32 -1.442695, %v4047_v55 }
 0xf5d   :  { %v4062_v13 = vadd.f32 1.0, %v7281_v2 }
 0xf5f   :  { %7284 = vrcp.f32 %v4062_v13  ;;  %v4016_v10 = vpop.f32.mrf.mxu0  ;;  %v4041_v4 = vpop.f32.mrf.mxu1  ;;  %v4077_v43 = vand.u32 2147483648, %v4062_v13  ;;  %vm4071_vm3 = vweird.f32 %v4062_v13  ;;  %v4075_v5 = vand.u32 2147483647, %v4062_v13 }
 0xf60   :  { %v4023_v18 = vadd.f32 %v4016_v10, %v3998_v29 }
 0xf61   :  { %v4078_v38 = vor.u32 1.1754944e-38, %v4077_v43  ;;  %vm4076_vm5 = vcmp.eq.f32.partialorder %v4075_v5, 8.507059e+37 }
 0xf62   :  { %v7283_v37 = vpop.eup %7282  ;;  %v4048_v34 = vadd.f32 %v4041_v4, %v4023_v18 }
 0xf63   :  { %4140 = vrot.lane.b32.xlu1 %v7283_v37, %s7539_s28 }
 0xf64   :  { %7286 = vtanh.f32 %v4048_v34  ;;  %v6928_v36 = vmul.f32 -1.442695, %v4048_v34 }
 0xf65   :  { %v7285_v16 = vpop.eup %7284 }
 0xf66   :  { %v4067_v3 = vmul.f32 %v7285_v16, %v4062_v13  ;;  %vm4072_vm2 = vweird.f32 %v7285_v16 }
 0xf67   :  { %v4018_v39 = vpop.f32.mrf.mxu0  ;;  %v4043_v14 = vpop.f32.mrf.mxu1  ;;  %vm4073_vm4 = vmor %vm4071_vm3, %vm4072_vm2 }
 0xf68   :  { %v4024_v46 = vadd.f32 %v4018_v39, %v3999_v24  ;;  %v4068_v41 = vsub.f32 1.0, %v4067_v3 }
 0xf6a   :  { %v7287_v12 = vpop.eup %7286  ;;  %v4049_v22 = vadd.f32 %v4043_v14, %v4024_v46  ;;  %v4069_v51 = vmul.f32 %v7285_v16, %v4068_v41 }
 0xf6b   :  { %4142 = vrot.lane.b32.xlu2 %v7287_v12, %s7539_s28 }
 0xf6c   :  { %7288 = vtanh.f32 %v4049_v22  ;;  %v4070_v11 = vadd.f32 %v7285_v16, %v4069_v51  ;;  %v6929_v54 = vmul.f32 -1.442695, %v4049_v22 }
 0xf6d   :  { %7290 = vpow2.f32 %v6927_v57 }
 0xf6e   :  { %v4074_v0 = vsel %vm4073_vm4, %v7285_v16, %v4070_v11  ;;  %7292 = vpow2.f32 %v6928_v36 }
 0xf6f   :  { %v9251_v40 = vsel %vm4076_vm5, %v4078_v38, %v4074_v0 }
 0xf72   :  { %v7289_v20 = vpop.eup %7288 }
 0xf73   :  { %4144 = vrot.lane.b32.xlu0 %v7289_v20, %s7539_s28  ;;  %v7291_v31 = vpop.eup %7290 }
 0xf74   :  { %v4063_v58 = vadd.f32 1.0, %v7291_v31  ;;  %v7293_v49 = vpop.eup %7292 }
 0xf75   :  { %v4064_v2 = vadd.f32 1.0, %v7293_v49 }
 0xf76   :  { %7294 = vrcp.f32 %v4063_v58  ;;  %v4092_v34 = vand.u32 2147483648, %v4063_v58  ;;  %vm4086_vm7 = vweird.f32 %v4063_v58  ;;  %v4090_v53 = vand.u32 2147483647, %v4063_v58 }
 0xf77   :  { %7296 = vpow2.f32 %v6929_v54  ;;  %v4107_v51 = vand.u32 2147483648, %v4064_v2  ;;  %vm4101_vm11 = vweird.f32 %v4064_v2  ;;  %v4105_v20 = vand.u32 2147483647, %v4064_v2 }
 0xf78   :  { %7298 = vrcp.f32 %v4064_v2  ;;  %v4093_v3 = vor.u32 1.1754944e-38, %v4092_v34  ;;  %vm4091_vm9 = vcmp.eq.f32.partialorder %v4090_v53, 8.507059e+37 }
 0xf79   :  { %v4108_v0 = vor.u32 1.1754944e-38, %v4107_v51  ;;  %vm4106_vm14 = vcmp.eq.f32.partialorder %v4105_v20, 8.507059e+37 }
 0xf7b   :  { %4182 = vrot.lane.b32.xlu0 %v9251_v40, %s7540_s29 }
 0xf7c   :  { %v7295_v15 = vpop.eup %7294 }
 0xf7d   :  { %v7297_v13 = vpop.eup %7296  ;;  %v4082_v23 = vmul.f32 %v7295_v15, %v4063_v58  ;;  %vm4087_vm6 = vweird.f32 %v7295_v15 }
 0xf7e   :  { %v4065_v21 = vadd.f32 1.0, %v7297_v13  ;;  %v7299_v29 = vpop.eup %7298  ;;  %vm4088_vm8 = vmor %vm4086_vm7, %vm4087_vm6 }
 0xf7f   :  { %v4083_v35 = vsub.f32 1.0, %v4082_v23  ;;  %v4097_v10 = vmul.f32 %v7299_v29, %v4064_v2  ;;  %vm4102_vm10 = vweird.f32 %v7299_v29 }
 0xf80   :  { %7300 = vrcp.f32 %v4065_v21  ;;  %vm4103_vm12 = vmor %vm4101_vm11, %vm4102_vm10  ;;  %v4122_v31 = vand.u32 2147483648, %v4065_v21  ;;  %vm4116_vm0 = vweird.f32 %v4065_v21  ;;  %v4120_v58 = vand.u32 2147483647, %v4065_v21 }
 0xf81   :  { %v4084_v55 = vmul.f32 %v7295_v15, %v4083_v35  ;;  %v4098_v50 = vsub.f32 1.0, %v4097_v10  ;;  %v4130_v10 = vmul.f32 %v9251_v40, %v9176_v48 }
 0xf82   :  { %v4123_v49 = vor.u32 1.1754944e-38, %v4122_v31  ;;  %vm4121_vm2 = vcmp.eq.f32.partialorder %v4120_v58, 8.507059e+37 }
 0xf83   :  { %v4085_v18 = vadd.f32 %v7295_v15, %v4084_v55  ;;  %v4099_v16 = vmul.f32 %v7299_v29, %v4098_v50 }
 0xf85   :  { %v4089_v24 = vsel %vm4088_vm8, %v7295_v15, %v4085_v18  ;;  %v4100_v12 = vadd.f32 %v7299_v29, %v4099_v16 }
 0xf86   :  { %v7301_v37 = vpop.eup %7300  ;;  %v4094_v14 = vsel %vm4091_vm9, %v4093_v3, %v4089_v24 }
 0xf87   :  { %v4112_v39 = vmul.f32 %v7301_v37, %v4065_v21  ;;  %v4104_v11 = vsel %vm4103_vm12, %v7299_v29, %v4100_v12  ;;  %vm4117_vm15 = vweird.f32 %v7301_v37  ;;  %v4131_v35 = vmul.f32 %v4094_v14, %v9180_v30  ;;  %v7122_v30 = vld [vmem:[%s9954_s11 + $0x40] sm:$0xff] }
 0xf88   :  { %v4109_v38 = vsel %vm4106_vm14, %v4108_v0, %v4104_v11  ;;  %vm4118_vm1 = vmor %vm4116_vm0, %vm4117_vm15 }
 0xf89   :  { %v4113_v41 = vsub.f32 1.0, %v4112_v39  ;;  %v4132_v16 = vmul.f32 %v4109_v38, %v9191_v17 }
 0xf8b   :  { %v4114_v43 = vmul.f32 %v7301_v37, %v4113_v41 }
 0xf8d   :  { %v4115_v36 = vadd.f32 %v7301_v37, %v4114_v43 }
 0xf8f   :  { %v4119_v54 = vsel %vm4118_vm1, %v7301_v37, %v4115_v36 }
 0xf90   :  { %v4124_v15 = vsel %vm4121_vm2, %v4123_v49, %v4119_v54 }
 0xf91   :  { %v4133_v39 = vmul.f32 %v4124_v15, %v9195_v33 }
 0xfc5   :  { %v4143_v5 = vpop.permute.xlu2 %4142 }
 0xfc6   :  { %v4152_v57 = vmul.f32 %v4143_v5, %v4109_v38 }
 0xfcd   :  { %v4139_v4 = vpop.permute.xlu0 %4138 }
 0xfce   :  { %v4150_v19 = vmul.f32 %v4139_v4, %v9251_v40  ;;  %v7123_v4 = vld [vmem:[%s9954_s11 + $0x48] sm:$0xff] }
 0xfcf   :  { %4234 = vmatpush.bf16.msrb.mxu3 %v7123_v4 }
 0xfd0   :  { %4158 = vrot.lane.b32.xlu1 %v4150_v19, %s7539_s28 }
 0xfd3   :  { %4235 = vmatpush.bf16.msrb.mxu3 %v7122_v30 }
 0xfd5   :  { %v4141_v46 = vpop.permute.xlu1 %4140 }
 0xfd6   :  { %v4151_v22 = vmul.f32 %v4141_v46, %v4094_v14 }
 0xfd8   :  { %4184 = vrot.lane.b32.xlu1 %v4094_v14, %s7540_s29  ;;  %4160 = vrot.lane.b32.xlu2 %v4151_v22, %s7539_s28 }
 0xfe0   :  { %4186 = vrot.lane.b32.xlu1 %v4109_v38, %s7540_s29  ;;  %4162 = vrot.lane.b32.xlu2 %v4152_v57, %s7539_s28 }
 0xfe5   :  { %v4145_v2 = vpop.permute.xlu0 %4144 }
 0xfe6   :  { %v4153_v13 = vmul.f32 %v4145_v2, %v4124_v15 }
 0xfe8   :  { %4188 = vrot.lane.b32.xlu2 %v4124_v15, %s7540_s29  ;;  %4164 = vrot.lane.b32.xlu0 %v4153_v13, %s7539_s28 }
 0xfed   :  { %v4183_v48 = vpop.permute.xlu0 %4182 }
0x1032   :  { %v4161_v23 = vpop.permute.xlu2 %4160 }
0x1033   :  { %v9264_v29 = vadd.f32 %v4161_v23, %v4131_v35 }
0x1035   :  { %7302 = vtanh.f32 %v9264_v29 }
0x103a   :  { %v4163_v53 = vpop.permute.xlu2 %4162 }
0x103b   :  { %v7303_v50 = vpop.eup %7302  ;;  %v9280_v24 = vadd.f32 %v4163_v53, %v4132_v16  ;;  %v10097_v53 = vld [vmem:[#allocation12_spill] sm:$0xff] }
0x103c   :  { %v10098_v16 = vld [vmem:[#allocation48_spill] sm:$0xff] }
0x1042   :  { %v4159_v21 = vpop.permute.xlu1 %4158  ;;  %v4189_v41 = vpop.permute.xlu2 %4188 }
0x1043   :  { %v9268_v55 = vadd.f32 %v4159_v21, %v4130_v10 }
0x1045   :  { %7304 = vtanh.f32 %v9268_v55 }
0x1046   :  { %7306 = vtanh.f32 %v9280_v24 }
0x104a   :  { %v4185_v19 = vpop.permute.xlu1 %4184 }
0x104b   :  { %v7305_v18 = vpop.eup %7304  ;;  %v4195_v40 = vmul.f32 %v7303_v50, %v4185_v19  ;;  %v10094_v50 = vld [vmem:[#allocation11_spill] sm:$0xff] }
0x104c   :  { %v4194_v37 = vmul.f32 %v7305_v18, %v4183_v48  ;;  %v7307_v12 = vpop.eup %7306  ;;  %v10095_v19 = vld [vmem:[#allocation47_spill] sm:$0xff] }
0x104d   :  { %v1596_v30 = vadd.f32 %v10095_v19, %v10094_v50 }
0x104e   :  { %v4198_v34 = vpack.c.bf16 %v4195_v40, %v4194_v37  ;;  %v10096_v40 = vld [vmem:[#allocation75_spill] sm:$0xff] }
0x104f   :  { %v2508_v37 = vadd.f32 %v10096_v40, %v1596_v30  ;;  %v10105_v40 = vld [vmem:[#allocation78_spill] sm:$0xff] }
0x1050   :  { %4206 = vrot.lane.b32.xlu0 %v4198_v34, %s7540_s29 }
0x1051   :  { %v4312_v34 = vadd.f32 %v9143_v59, %v2508_v37 }
0x1052   :  { %v4187_v14 = vpop.permute.xlu1 %4186 }
0x1053   :  { %v4196_v51 = vmul.f32 %v7307_v12, %v4187_v14 }
0x105a   :  { %v4165_v3 = vpop.permute.xlu0 %4164 }
0x105b   :  { %v9283_v46 = vadd.f32 %v4165_v3, %v4133_v39  ;;  %v1608_v39 = vadd.f32 %v10098_v16, %v10097_v53 }
0x105d   :  { %7308 = vtanh.f32 %v9283_v46 }
0x1063   :  { %v7309_v22 = vpop.eup %7308 }
0x1064   :  { %v4197_v20 = vmul.f32 %v7309_v22, %v4189_v41  ;;  %v10099_v22 = vld [vmem:[#allocation76_spill] sm:$0xff] }
0x1065   :  { %v2520_v41 = vadd.f32 %v10099_v22, %v1608_v39 }
0x1066   :  { %v4199_v11 = vpack.c.bf16 %v4197_v20, %v4196_v51 }
0x1068   :  { %4208 = vrot.lane.b32.xlu1 %v4199_v11, %s7540_s29  ;;  %v4313_v11 = vadd.f32 %v9143_v59, %v2520_v41 }
0x10c2   :  { %v4207_v17 = vpop.permute.xlu0 %4206 }
0x10c3   :  { %6938 = vmatmul.msk.bf16.vlgmr.msrb.gmra.mxu3 %vm1230_vm13, %v4207_v17  ;;  %6940 = vmatmul.msk.bf16.vlgmr.msrb.gmra.mxu2 %vm1230_vm13, %v4207_v17 }
0x10c4   :  { %6942 = vmatmul.msk.bf16.vlgmr.msrb.gmra.mxu0 %vm1230_vm13, %v4207_v17  ;;  %6944 = vmatmul.msk.bf16.vlgmr.msrb.gmra.mxu1 %vm1230_vm13, %v4207_v17 }
0x10da   :  { %v4209_v33 = vpop.permute.xlu1 %4208 }
0x10db   :  { %6939 = vmatmul.msk.bf16.gmra.mxu3 %vm1230_vm13, %v4209_v33  ;;  %6941 = vmatmul.msk.bf16.gmra.mxu2 %vm1230_vm13, %v4209_v33 }
0x10dc   :  { %6943 = vmatmul.msk.bf16.gmra.mxu0 %vm1230_vm13, %v4209_v33  ;;  %6945 = vmatmul.msk.bf16.gmra.mxu1 %vm1230_vm13, %v4209_v33  ;;  %v10100_v33 = vld [vmem:[#allocation13_spill] sm:$0xff] }
0x1141   :  { %v4279_v5 = vpop.f32.mrf.mxu0  ;;  %v4298_v0 = vpop.f32.mrf.mxu1 }
0x1146   :  { %v4237_v43 = vpop.f32.mrf.mxu3 }
0x1147   :  { %v9297_v38 = vadd.f32 %v4237_v43, %v9208_v8  ;;  %v4260_v8 = vpop.f32.mrf.mxu2  ;;  %v10101_v43 = vld [vmem:[#allocation49_spill] sm:$0xff] }
0x1148   :  { %v4316_v3 = vadd.f32 %v4312_v34, %v4260_v8  ;;  %v10104_v8 = vld [vmem:[#allocation50_spill] sm:$0xff] }
0x1149   :  { %v4281_v57 = vpop.f32.mrf.mxu0  ;;  %v4300_v36 = vpop.f32.mrf.mxu1 }
0x114a   :  { %v4320_v10 = vpack.c.bf16 %v4281_v57, %v4279_v5  ;;  %v4345_v21 = vpack.c.bf16 %v4300_v36, %v4298_v0  ;;  %v1620_v5 = vadd.f32 %v10101_v43, %v10100_v33 }
0x114e   :  { %v9299_v31 = vpop.f32.mrf.mxu3 }
0x1159   :  { %v4284_v58 = vpop.f32.mrf.mxu0  ;;  %v4303_v54 = vpop.f32.mrf.mxu1 }
0x115e   :  { %v4242_v49 = vpop.f32.mrf.mxu3 }
0x115f   :  { %v9302_v2 = vadd.f32 %v4242_v49, %v9213_v6  ;;  %v4262_v6 = vpop.f32.mrf.mxu2 }
0x1160   :  { %v4317_v0 = vadd.f32 %v4313_v11, %v4262_v6 }
0x1161   :  { %v4286_v15 = vpop.f32.mrf.mxu0  ;;  %v4305_v13 = vpop.f32.mrf.mxu1 }
0x1162   :  { %v4321_v23 = vpack.c.bf16 %v4286_v15, %v4284_v58  ;;  %v4346_v35 = vpack.c.bf16 %v4305_v13, %v4303_v54  ;;  %v10102_v58 = vld [vmem:[#allocation77_spill] sm:$0xff] }
0x1163   :  { %v2532_v54 = vadd.f32 %v10102_v58, %v1620_v5 }
0x1164   :  { %4328 = vmatpush.bf16.msra.mxu3 %v4321_v23  ;;  %4353 = vmatpush.bf16.msra.mxu2 %v4346_v35 }
0x1165   :  { %v4314_v35 = vadd.f32 %v9143_v59, %v2532_v54 }
0x1166   :  { %v9320_v18 = vpop.f32.mrf.mxu3 }
0x1167   :  { %v4265_v4 = vpop.f32.mrf.mxu2 }
0x1168   :  { %4329 = vmatpush.bf16.msra.mxu3 %v4320_v10  ;;  %4354 = vmatpush.bf16.msra.mxu2 %v4345_v21  ;;  %v10103_v21 = vld [vmem:[#allocation14_spill] sm:$0xff]  ;;  %v4318_v19 = vadd.f32 %v4314_v35, %v4265_v4 }
0x1169   :  { %v1632_v50 = vadd.f32 %v10104_v8, %v10103_v21 }
0x116b   :  { %6946 = vmatmul.msk.bf16.vlgmr.msra.gmra.mxu3 %vm1230_vm13, %v8806_v60  ;;  %6948 = vmatmul.msk.bf16.vlgmr.msra.gmra.mxu2 %vm1230_vm13, %v8824_v25  ;;  %v2544_v37 = vadd.f32 %v10105_v40, %v1632_v50 }
0x116c   :  { %4596 = vmatpush.bf16.msrb.mxu3 %v8650_v44  ;;  %4615 = vmatpush.bf16.msrb.mxu2 %v8705_v9 }
0x116d   :  { %v4315_v39 = vadd.f32 %v9143_v59, %v2544_v37 }
0x116f   :  { %v4267_v48 = vpop.f32.mrf.mxu2 }
0x1170   :  { %4597 = vmatpush.bf16.msrb.mxu3 %v8665_v47  ;;  %4616 = vmatpush.bf16.msrb.mxu2 %v8716_v28 }
0x1174   :  { %4897 = vmatpush.bf16.msra.mxu2 %v8507_v42 }
0x1178   :  { %4898 = vmatpush.bf16.msra.mxu2 %v8520_v56 }
0x117b   :  { %6947 = vmatmul.msk.bf16.gmra.mxu3 %vm1230_vm13, %v8814_v45  ;;  %6949 = vmatmul.msk.bf16.gmra.mxu2 %vm1230_vm13, %v8834_v32 }
0x11ee   :  { %v4331_v14 = vpop.f32.mrf.mxu3  ;;  %v4356_v12 = vpop.f32.mrf.mxu2 }
0x11ef   :  { %v4341_v51 = vadd.f32 %v4331_v14, %v4316_v3  ;;  %v4319_v14 = vadd.f32 %v4315_v39, %v4267_v48 }
0x11f1   :  { %v4366_v20 = vadd.f32 %v4356_v12, %v4341_v51 }
0x11f3   :  { %v6950_v17 = vmul.f32 -1.442695, %v4366_v20  ;;  %7310 = vtanh.f32 %v4366_v20 }
0x11f5   :  { %7312 = vpow2.f32 %v6950_v17 }
0x11f6   :  { %v4333_v57 = vpop.f32.mrf.mxu3  ;;  %v4358_v36 = vpop.f32.mrf.mxu2 }
0x11f7   :  { %v4342_v49 = vadd.f32 %v4333_v57, %v4317_v0 }
0x11f9   :  { %v7311_v15 = vpop.eup %7310  ;;  %v4367_v13 = vadd.f32 %v4358_v36, %v4342_v49 }
0x11fa   :  { %4458 = vrot.lane.b32.xlu2 %v7311_v15, %s7539_s28 }
0x11fb   :  { %v7313_v23 = vpop.eup %7312  ;;  %7314 = vtanh.f32 %v4367_v13  ;;  %v6951_v36 = vmul.f32 -1.442695, %v4367_v13 }
0x11fc   :  { %v4382_v10 = vadd.f32 1.0, %v7313_v23 }
0x11fe   :  { %7316 = vrcp.f32 %v4382_v10  ;;  %v4336_v6 = vpop.f32.mrf.mxu3  ;;  %v4361_v30 = vpop.f32.mrf.mxu2  ;;  %v4397_v59 = vand.u32 2147483648, %v4382_v10  ;;  %vm4391_vm4 = vweird.f32 %v4382_v10  ;;  %v4395_v5 = vand.u32 2147483647, %v4382_v10 }
0x11ff   :  { %v4343_v34 = vadd.f32 %v4336_v6, %v4318_v19 }
0x1200   :  { %v4398_v0 = vor.u32 1.1754944e-38, %v4397_v59  ;;  %vm4396_vm6 = vcmp.eq.f32.partialorder %v4395_v5, 8.507059e+37 }
0x1201   :  { %v7315_v53 = vpop.eup %7314  ;;  %v4368_v16 = vadd.f32 %v4361_v30, %v4343_v34 }
0x1202   :  { %4460 = vrot.lane.b32.xlu0 %v7315_v53, %s7539_s28 }
0x1203   :  { %7318 = vtanh.f32 %v4368_v16  ;;  %v6952_v58 = vmul.f32 -1.442695, %v4368_v16 }
0x1204   :  { %v7317_v3 = vpop.eup %7316 }
0x1205   :  { %v4387_v22 = vmul.f32 %v7317_v3, %v4382_v10  ;;  %vm4392_vm3 = vweird.f32 %v7317_v3 }
0x1206   :  { %v4338_v12 = vpop.f32.mrf.mxu3  ;;  %v4363_v51 = vpop.f32.mrf.mxu2  ;;  %vm4393_vm5 = vmor %vm4391_vm4, %vm4392_vm3 }
0x1207   :  { %v4344_v41 = vadd.f32 %v4338_v12, %v4319_v14  ;;  %v4388_v11 = vsub.f32 1.0, %v4387_v22 }
0x1209   :  { %v7319_v4 = vpop.eup %7318  ;;  %v4369_v20 = vadd.f32 %v4363_v51, %v4344_v41  ;;  %v4389_v17 = vmul.f32 %v7317_v3, %v4388_v11 }
0x120a   :  { %4462 = vrot.lane.b32.xlu1 %v7319_v4, %s7539_s28 }
0x120b   :  { %7320 = vtanh.f32 %v4369_v20  ;;  %v4390_v43 = vadd.f32 %v7317_v3, %v4389_v17  ;;  %v6953_v15 = vmul.f32 -1.442695, %v4369_v20 }
0x120c   :  { %7322 = vpow2.f32 %v6951_v36 }
0x120d   :  { %v4394_v48 = vsel %vm4393_vm5, %v7317_v3, %v4390_v43  ;;  %7324 = vpow2.f32 %v6952_v58 }
0x120e   :  { %v9340_v57 = vsel %vm4396_vm6, %v4398_v0, %v4394_v48 }
0x1211   :  { %v7321_v33 = vpop.eup %7320 }
0x1212   :  { %4464 = vrot.lane.b32.xlu2 %v7321_v33, %s7539_s28  ;;  %v7323_v54 = vpop.eup %7322 }
0x1213   :  { %v4383_v49 = vadd.f32 1.0, %v7323_v54  ;;  %v7325_v23 = vpop.eup %7324 }
0x1214   :  { %v4384_v35 = vadd.f32 1.0, %v7325_v23 }
0x1215   :  { %7326 = vrcp.f32 %v4383_v49  ;;  %v4412_v39 = vand.u32 2147483648, %v4383_v49  ;;  %vm4406_vm8 = vweird.f32 %v4383_v49  ;;  %v4410_v3 = vand.u32 2147483647, %v4383_v49 }
0x1216   :  { %7328 = vpow2.f32 %v6953_v15  ;;  %v4427_v11 = vand.u32 2147483648, %v4384_v35  ;;  %vm4421_vm12 = vweird.f32 %v4384_v35  ;;  %v4425_v17 = vand.u32 2147483647, %v4384_v35 }
0x1217   :  { %7330 = vrcp.f32 %v4384_v35  ;;  %v4413_v41 = vor.u32 1.1754944e-38, %v4412_v39  ;;  %vm4411_vm10 = vcmp.eq.f32.partialorder %v4410_v3, 8.507059e+37 }
0x1218   :  { %v4428_v59 = vor.u32 1.1754944e-38, %v4427_v11  ;;  %vm4426_vm15 = vcmp.eq.f32.partialorder %v4425_v17, 8.507059e+37 }
0x121a   :  { %4502 = vrot.lane.b32.xlu2 %v9340_v57, %s7540_s29 }
0x121b   :  { %v7327_v10 = vpop.eup %7326 }
0x121c   :  { %v7329_v21 = vpop.eup %7328  ;;  %v4402_v8 = vmul.f32 %v7327_v10, %v4383_v49  ;;  %vm4407_vm7 = vweird.f32 %v7327_v10 }
0x121d   :  { %v4385_v50 = vadd.f32 1.0, %v7329_v21  ;;  %v7331_v6 = vpop.eup %7330  ;;  %vm4408_vm9 = vmor %vm4406_vm8, %vm4407_vm7 }
0x121e   :  { %v4403_v19 = vsub.f32 1.0, %v4402_v8  ;;  %v4417_v13 = vmul.f32 %v7331_v6, %v4384_v35  ;;  %vm4422_vm11 = vweird.f32 %v7331_v6 }
0x121f   :  { %7332 = vrcp.f32 %v4385_v50  ;;  %vm4423_vm14 = vmor %vm4421_vm12, %vm4422_vm11  ;;  %v4442_v0 = vand.u32 2147483648, %v4385_v50  ;;  %vm4436_vm1 = vweird.f32 %v4385_v50  ;;  %v4440_v36 = vand.u32 2147483647, %v4385_v50 }
0x1220   :  { %v4404_v30 = vmul.f32 %v7327_v10, %v4403_v19  ;;  %v4418_v16 = vsub.f32 1.0, %v4417_v13  ;;  %v7124_v19 = vld [vmem:[%s9954_s11 + $0x50] sm:$0xff]  ;;  %v4450_v13 = vmul.f32 %v9340_v57, %v9268_v55 }
0x1221   :  { %v4443_v54 = vor.u32 1.1754944e-38, %v4442_v0  ;;  %vm4441_vm3 = vcmp.eq.f32.partialorder %v4440_v36, 8.507059e+37 }
0x1222   :  { %v4405_v53 = vadd.f32 %v7327_v10, %v4404_v30  ;;  %v4419_v22 = vmul.f32 %v7331_v6, %v4418_v16 }
0x1224   :  { %v4409_v12 = vsel %vm4408_vm9, %v7327_v10, %v4405_v53  ;;  %v4420_v20 = vadd.f32 %v7331_v6, %v4419_v22 }
0x1225   :  { %v7333_v34 = vpop.eup %7332  ;;  %v4414_v4 = vsel %vm4411_vm10, %v4413_v41, %v4409_v12 }
0x1226   :  { %v4432_v14 = vmul.f32 %v7333_v34, %v4385_v50  ;;  %v4424_v43 = vsel %vm4423_vm14, %v7331_v6, %v4420_v20  ;;  %vm4437_vm0 = vweird.f32 %v7333_v34  ;;  %v7125_v50 = vld [vmem:[%s9954_s11 + $0x58] sm:$0xff] }
0x1227   :  { %v4429_v48 = vsel %vm4426_vm15, %v4428_v59, %v4424_v43  ;;  %vm4438_vm2 = vmor %vm4436_vm1, %vm4437_vm0  ;;  %4554 = vmatpush.bf16.msra.mxu0 %v7125_v50 }
0x1228   :  { %v4433_v51 = vsub.f32 1.0, %v4432_v14  ;;  %v4452_v55 = vmul.f32 %v4429_v48, %v9280_v24 }
0x122a   :  { %v4434_v33 = vmul.f32 %v7333_v34, %v4433_v51 }
0x122b   :  { %4555 = vmatpush.bf16.msra.mxu0 %v7124_v19 }
0x122c   :  { %v4435_v5 = vadd.f32 %v7333_v34, %v4434_v33 }
0x122e   :  { %v4439_v58 = vsel %vm4438_vm2, %v7333_v34, %v4435_v5 }
0x122f   :  { %v4444_v15 = vsel %vm4441_vm3, %v4443_v54, %v4439_v58 }
0x1230   :  { %v4453_v39 = vmul.f32 %v4444_v15, %v9283_v46 }
0x1254   :  { %v4459_v40 = vpop.permute.xlu2 %4458 }
0x1255   :  { %v4470_v37 = vmul.f32 %v4459_v40, %v9340_v57 }
0x1257   :  { %4478 = vrot.lane.b32.xlu0 %v4470_v37, %s7539_s28  ;;  %v4451_v37 = vmul.f32 %v4414_v4, %v9264_v29 }
0x125f   :  { %4504 = vrot.lane.b32.xlu0 %v4414_v4, %s7540_s29 }
0x1267   :  { %4506 = vrot.lane.b32.xlu0 %v4429_v48, %s7540_s29 }
0x126c   :  { %v4465_v49 = vpop.permute.xlu2 %4464 }
0x126d   :  { %v4473_v23 = vmul.f32 %v4465_v49, %v4444_v15 }
0x126f   :  { %4484 = vrot.lane.b32.xlu2 %v4473_v23, %s7539_s28 }
0x1274   :  { %v4461_v35 = vpop.permute.xlu0 %4460  ;;  %v4503_v30 = vpop.permute.xlu2 %4502 }
0x1275   :  { %v4471_v10 = vmul.f32 %v4461_v35, %v4414_v4 }
0x1277   :  { %4480 = vrot.lane.b32.xlu1 %v4471_v10, %s7539_s28 }
0x127c   :  { %v4463_v21 = vpop.permute.xlu1 %4462 }
0x127d   :  { %v4472_v8 = vmul.f32 %v4463_v21, %v4429_v48 }
0x127f   :  { %4482 = vrot.lane.b32.xlu1 %v4472_v8, %s7539_s28 }
0x1287   :  { %4508 = vrot.lane.b32.xlu1 %v4444_v15, %s7540_s29 }
0x12c9   :  { %v4479_v6 = vpop.permute.xlu0 %4478  ;;  %v4485_v16 = vpop.permute.xlu2 %4484 }
0x12ca   :  { %v9360_v40 = vadd.f32 %v4479_v6, %v4450_v13  ;;  %v9368_v3 = vadd.f32 %v4485_v16, %v4453_v39  ;;  %v10107_v16 = vld [vmem:[#allocation52_spill] sm:$0xff] }
0x12cc   :  { %7334 = vtanh.f32 %v9360_v40 }
0x12d1   :  { %v4505_v12 = vpop.permute.xlu0 %4504 }
0x12d2   :  { %v7335_v14 = vpop.eup %7334 }
0x12d3   :  { %v4514_v29 = vmul.f32 %v7335_v14, %v4503_v30 }
0x12d9   :  { %v4507_v17 = vpop.permute.xlu0 %4506 }
0x12e9   :  { %v4481_v34 = vpop.permute.xlu1 %4480 }
0x12ea   :  { %v9364_v53 = vadd.f32 %v4481_v34, %v4451_v37  ;;  %v10106_v34 = vld [vmem:[#allocation16_spill] sm:$0xff] }
0x12eb   :  { %v1597_v39 = vadd.f32 %v10107_v16, %v10106_v34  ;;  %v10115_v34 = vld [vmem:[#allocation22_spill] sm:$0xff] }
0x12ec   :  { %7336 = vtanh.f32 %v9364_v53  ;;  %v10116_v16 = vld [vmem:[#allocation58_spill] sm:$0xff] }
0x12ed   :  { %7338 = vtanh.f32 %v9368_v3 }
0x12f1   :  { %v4483_v57 = vpop.permute.xlu1 %4482 }
0x12f2   :  { %v7337_v22 = vpop.eup %7336  ;;  %v9371_v41 = vadd.f32 %v4483_v57, %v4452_v55  ;;  %v10108_v55 = vld [vmem:[#allocation81_spill] sm:$0xff] }
0x12f3   :  { %v4515_v51 = vmul.f32 %v7337_v22, %v4505_v12  ;;  %v7339_v46 = vpop.eup %7338  ;;  %v2509_v57 = vadd.f32 %v10108_v55, %v1597_v39  ;;  %v9415_v22 = vld [vmem:[%s9952_s10] ss:$0 sm:$0xff]  ;;  %v1633_v39 = vadd.f32 %v10116_v16, %v10115_v34 }
0x12f4   :  { %7340 = vtanh.f32 %v9371_v41 }
0x12f5   :  { %v4518_v4 = vpack.c.bf16 %v4515_v51, %v4514_v29  ;;  %v4632_v29 = vadd.f32 %v9415_v22, %v2509_v57  ;;  %v10109_v51 = vld [vmem:[#allocation18_spill] sm:$0xff] }
0x12f7   :  { %4526 = vrot.lane.b32.xlu2 %v4518_v4, %s7540_s29  ;;  %v10110_v4 = vld [vmem:[#allocation54_spill] sm:$0xff] }
0x12f9   :  { %v4509_v20 = vpop.permute.xlu1 %4508 }
0x12fa   :  { %v7341_v11 = vpop.eup %7340  ;;  %v4517_v33 = vmul.f32 %v7339_v46, %v4509_v20  ;;  %v1609_v46 = vadd.f32 %v10110_v4, %v10109_v51 }
0x12fb   :  { %v4516_v43 = vmul.f32 %v7341_v11, %v4507_v17 }
0x12fd   :  { %v4519_v24 = vpack.c.bf16 %v4517_v33, %v4516_v43  ;;  %v10111_v33 = vld [vmem:[#allocation83_spill] sm:$0xff] }
0x12fe   :  { %v2521_v43 = vadd.f32 %v10111_v33, %v1609_v46 }
0x12ff   :  { %4528 = vrot.lane.b32.xlu0 %v4519_v24, %s7540_s29 }
0x1351   :  { %v4527_v59 = vpop.permute.xlu2 %4526 }
0x1352   :  { %6962 = vmatmul.msk.bf16.vlgmr.msra.gmra.mxu0 %vm1230_vm13, %v4527_v59  ;;  %6964 = vmatmul.msk.bf16.vlgmr.msra.gmra.mxu1 %vm1230_vm13, %v4527_v59 }
0x1353   :  { %6966 = vmatmul.msk.bf16.vlgmr.msrb.gmra.mxu3 %vm1230_vm13, %v4527_v59  ;;  %6968 = vmatmul.msk.bf16.vlgmr.msrb.gmra.mxu2 %vm1230_vm13, %v4527_v59 }
0x1371   :  { %v4529_v5 = vpop.permute.xlu0 %4528 }
0x1372   :  { %6963 = vmatmul.msk.bf16.gmra.mxu0 %vm1230_vm13, %v4529_v5  ;;  %6965 = vmatmul.msk.bf16.gmra.mxu1 %vm1230_vm13, %v4529_v5 }
0x1373   :  { %6967 = vmatmul.msk.bf16.gmra.mxu3 %vm1230_vm13, %v4529_v5  ;;  %6969 = vmatmul.msk.bf16.gmra.mxu2 %vm1230_vm13, %v4529_v5  ;;  %v4633_v5 = vadd.f32 %v9415_v22, %v2521_v43 }
0x13cf   :  { %v4557_v48 = vpop.f32.mrf.mxu0 }
0x13d0   :  { %v9386_v0 = vadd.f32 %v4557_v48, %v9297_v38 }
0x13d6   :  { %v4599_v36 = vpop.f32.mrf.mxu3  ;;  %v4618_v58 = vpop.f32.mrf.mxu2 }
0x13d7   :  { %v9388_v54 = vpop.f32.mrf.mxu0 }
0x13de   :  { %v4601_v49 = vpop.f32.mrf.mxu3  ;;  %v4620_v15 = vpop.f32.mrf.mxu2 }
0x13df   :  { %v4640_v38 = vpack.c.bf16 %v4601_v49, %v4599_v36  ;;  %v4665_v30 = vpack.c.bf16 %v4620_v15, %v4618_v58  ;;  %v10112_v36 = vld [vmem:[#allocation20_spill] sm:$0xff] }
0x13e0   :  { %v10113_v58 = vld [vmem:[#allocation56_spill] sm:$0xff] }
0x13e1   :  { %v1621_v49 = vadd.f32 %v10113_v58, %v10112_v36 }
0x13ef   :  { %v4562_v23 = vpop.f32.mrf.mxu0 }
0x13f0   :  { %v9391_v35 = vadd.f32 %v4562_v23, %v9302_v2  ;;  %v4580_v2 = vpop.f32.mrf.mxu1 }
0x13f1   :  { %v4636_v20 = vadd.f32 %v4632_v29, %v4580_v2  ;;  %v10117_v29 = vld [vmem:[#allocation87_spill] sm:$0xff] }
0x13f2   :  { %v2545_v51 = vadd.f32 %v10117_v29, %v1633_v39 }
0x13f6   :  { %v4604_v10 = vpop.f32.mrf.mxu3  ;;  %v4623_v21 = vpop.f32.mrf.mxu2 }
0x13f7   :  { %v9409_v14 = vpop.f32.mrf.mxu0 }
0x13f8   :  { %v4582_v13 = vpop.f32.mrf.mxu1 }
0x13f9   :  { %v4637_v15 = vadd.f32 %v4633_v5, %v4582_v13 }
0x13fe   :  { %v4606_v8 = vpop.f32.mrf.mxu3  ;;  %v4625_v50 = vpop.f32.mrf.mxu2 }
0x13ff   :  { %v4641_v19 = vpack.c.bf16 %v4606_v8, %v4604_v10  ;;  %v4666_v6 = vpack.c.bf16 %v4625_v50, %v4623_v21  ;;  %v10114_v21 = vld [vmem:[#allocation85_spill] sm:$0xff] }
0x1400   :  { %v4585_v37 = vpop.f32.mrf.mxu1  ;;  %v2533_v8 = vadd.f32 %v10114_v21, %v1621_v49 }
0x1401   :  { %4648 = vmatpush.bf16.msrb.mxu0 %v4641_v19  ;;  %4673 = vmatpush.bf16.msrb.mxu1 %v4666_v6 }
0x1405   :  { %4649 = vmatpush.bf16.msrb.mxu0 %v4640_v38  ;;  %4674 = vmatpush.bf16.msrb.mxu1 %v4665_v30  ;;  %v4634_v30 = vadd.f32 %v9415_v22, %v2533_v8 }
0x1407   :  { %v4638_v55 = vadd.f32 %v4634_v30, %v4585_v37 }
0x1408   :  { %6970 = vmatmul.msk.bf16.vlgmr.msrb.gmra.mxu0 %vm1230_vm13, %v8806_v60  ;;  %6972 = vmatmul.msk.bf16.vlgmr.msrb.gmra.mxu1 %vm1230_vm13, %v8824_v25  ;;  %v4587_v12 = vpop.f32.mrf.mxu1 }
0x1409   :  { %4916 = vmatpush.bf16.msra.mxu0 %v8650_v44  ;;  %4935 = vmatpush.bf16.msra.mxu1 %v8705_v9 }
0x140d   :  { %4917 = vmatpush.bf16.msra.mxu0 %v8665_v47  ;;  %4936 = vmatpush.bf16.msra.mxu1 %v8716_v28 }
0x1411   :  { %5217 = vmatpush.bf16.msrb.mxu1 %v8507_v42 }
0x1415   :  { %5218 = vmatpush.bf16.msrb.mxu1 %v8520_v56 }
0x1418   :  { %6971 = vmatmul.msk.bf16.gmra.mxu0 %vm1230_vm13, %v8814_v45  ;;  %6973 = vmatmul.msk.bf16.gmra.mxu1 %vm1230_vm13, %v8834_v32 }
0x1485   :  { %v4651_v11 = vpop.f32.mrf.mxu0  ;;  %v4676_v17 = vpop.f32.mrf.mxu1 }
0x1486   :  { %v4661_v24 = vadd.f32 %v4651_v11, %v4636_v20  ;;  %v4635_v11 = vadd.f32 %v9415_v22, %v2545_v51 }
0x1488   :  { %v4686_v59 = vadd.f32 %v4676_v17, %v4661_v24  ;;  %v4639_v33 = vadd.f32 %v4635_v11, %v4587_v12 }
0x148a   :  { %v6974_v48 = vmul.f32 -1.442695, %v4686_v59  ;;  %7342 = vtanh.f32 %v4686_v59 }
0x148c   :  { %7344 = vpow2.f32 %v6974_v48 }
0x148d   :  { %v4653_v23 = vpop.f32.mrf.mxu0  ;;  %v4678_v10 = vpop.f32.mrf.mxu1 }
0x148e   :  { %v4662_v50 = vadd.f32 %v4653_v23, %v4637_v15 }
0x1490   :  { %v7343_v19 = vpop.eup %7342  ;;  %v4687_v6 = vadd.f32 %v4678_v10, %v4662_v50 }
0x1491   :  { %4778 = vrot.lane.b32.xlu1 %v7343_v19, %s7539_s28 }
0x1492   :  { %v7345_v38 = vpop.eup %7344  ;;  %7346 = vtanh.f32 %v4687_v6  ;;  %v6975_v50 = vmul.f32 -1.442695, %v4687_v6 }
0x1493   :  { %v4702_v2 = vadd.f32 1.0, %v7345_v38 }
0x1495   :  { %7348 = vrcp.f32 %v4702_v2  ;;  %v4656_v13 = vpop.f32.mrf.mxu0  ;;  %v4681_v57 = vpop.f32.mrf.mxu1  ;;  %v4717_v23 = vand.u32 2147483648, %v4702_v2  ;;  %vm4711_vm5 = vweird.f32 %v4702_v2  ;;  %v4715_v10 = vand.u32 2147483647, %v4702_v2 }
0x1496   :  { %v4663_v4 = vadd.f32 %v4656_v13, %v4638_v55 }
0x1497   :  { %v4718_v21 = vor.u32 1.1754944e-38, %v4717_v23  ;;  %vm4716_vm7 = vcmp.eq.f32.partialorder %v4715_v10, 8.507059e+37 }
0x1498   :  { %v7347_v46 = vpop.eup %7346  ;;  %v4688_v20 = vadd.f32 %v4681_v57, %v4663_v4 }
0x1499   :  { %4780 = vrot.lane.b32.xlu2 %v7347_v46, %s7539_s28 }
0x149a   :  { %7350 = vtanh.f32 %v4688_v20  ;;  %v6976_v39 = vmul.f32 -1.442695, %v4688_v20 }
0x149b   :  { %v7349_v17 = vpop.eup %7348 }
0x149c   :  { %v4707_v24 = vmul.f32 %v7349_v17, %v4702_v2  ;;  %vm4712_vm4 = vweird.f32 %v7349_v17 }
0x149d   :  { %v4658_v43 = vpop.f32.mrf.mxu0  ;;  %v4683_v5 = vpop.f32.mrf.mxu1  ;;  %vm4713_vm6 = vmor %vm4711_vm5, %vm4712_vm4 }
0x149e   :  { %v4664_v59 = vadd.f32 %v4658_v43, %v4639_v33  ;;  %v4708_v36 = vsub.f32 1.0, %v4707_v24 }
0x14a0   :  { %v7351_v37 = vpop.eup %7350  ;;  %v4689_v48 = vadd.f32 %v4683_v5, %v4664_v59  ;;  %v4709_v58 = vmul.f32 %v7349_v17, %v4708_v36 }
0x14a1   :  { %4782 = vrot.lane.b32.xlu0 %v7351_v37, %s7539_s28 }
0x14a2   :  { %7352 = vtanh.f32 %v4689_v48  ;;  %v4710_v15 = vadd.f32 %v7349_v17, %v4709_v58  ;;  %v6977_v57 = vmul.f32 -1.442695, %v4689_v48 }
0x14a3   :  { %7354 = vpow2.f32 %v6975_v50 }
0x14a4   :  { %v4714_v12 = vsel %vm4713_vm6, %v7349_v17, %v4710_v15 }
0x14a5   :  { %v9434_v8 = vsel %vm4716_vm7, %v4718_v21, %v4714_v12 }
0x14a8   :  { %v7353_v49 = vpop.eup %7352 }
0x14a9   :  { %4784 = vrot.lane.b32.xlu1 %v7353_v49, %s7539_s28  ;;  %v7355_v19 = vpop.eup %7354 }
0x14aa   :  { %v4703_v38 = vadd.f32 1.0, %v7355_v19 }
0x14ac   :  { %7356 = vrcp.f32 %v4703_v38  ;;  %v4732_v13 = vand.u32 2147483648, %v4703_v38  ;;  %vm4726_vm9 = vweird.f32 %v4703_v38  ;;  %v4730_v29 = vand.u32 2147483647, %v4703_v38 }
0x14ad   :  { %7358 = vpow2.f32 %v6976_v39 }
0x14ae   :  { %v4733_v6 = vor.u32 1.1754944e-38, %v4732_v13  ;;  %7360 = vpow2.f32 %v6977_v57  ;;  %vm4731_vm11 = vcmp.eq.f32.partialorder %v4730_v29, 8.507059e+37 }
0x14b1   :  { %4822 = vrot.lane.b32.xlu1 %v9434_v8, %s7540_s29 }
0x14b2   :  { %v7357_v30 = vpop.eup %7356 }
0x14b3   :  { %v4722_v34 = vmul.f32 %v7357_v30, %v4703_v38  ;;  %vm4727_vm8 = vweird.f32 %v7357_v30  ;;  %v7359_v51 = vpop.eup %7358 }
0x14b4   :  { %vm4728_vm10 = vmor %vm4726_vm9, %vm4727_vm8  ;;  %v4704_v46 = vadd.f32 1.0, %v7359_v51  ;;  %v7361_v20 = vpop.eup %7360 }
0x14b5   :  { %v4723_v16 = vsub.f32 1.0, %v4722_v34  ;;  %v4705_v43 = vadd.f32 1.0, %v7361_v20 }
0x14b6   :  { %7362 = vrcp.f32 %v4704_v46  ;;  %v4747_v10 = vand.u32 2147483648, %v4704_v46  ;;  %vm4741_vm14 = vweird.f32 %v4704_v46  ;;  %v4745_v12 = vand.u32 2147483647, %v4704_v46 }
0x14b7   :  { %v4724_v55 = vmul.f32 %v7357_v30, %v4723_v16  ;;  %7364 = vrcp.f32 %v4705_v43  ;;  %v4762_v39 = vand.u32 2147483648, %v4705_v43  ;;  %vm4756_vm2 = vweird.f32 %v4705_v43 }
0x14b8   :  { %v4748_v19 = vor.u32 1.1754944e-38, %v4747_v10  ;;  %vm4746_vm0 = vcmp.eq.f32.partialorder %v4745_v12, 8.507059e+37 }
0x14b9   :  { %v4725_v2 = vadd.f32 %v7357_v30, %v4724_v55  ;;  %v4760_v55 = vand.u32 2147483647, %v4705_v43  ;;  %v4763_v13 = vor.u32 1.1754944e-38, %v4762_v39 }
0x14bb   :  { %v4729_v4 = vsel %vm4728_vm10, %v7357_v30, %v4725_v2  ;;  %vm4761_vm4 = vcmp.eq.f32.partialorder %v4760_v55, 8.507059e+37 }
0x14bc   :  { %v4734_v17 = vsel %vm4731_vm11, %v4733_v6, %v4729_v4  ;;  %v7363_v24 = vpop.eup %7362  ;;  %v4770_v6 = vmul.f32 %v9434_v8, %v9360_v40  ;;  %v7127_v40 = vld [vmem:[%s9954_s11 + $0x68] sm:$0xff] }
0x14bd   :  { %v4737_v59 = vmul.f32 %v7363_v24, %v4704_v46  ;;  %v7365_v36 = vpop.eup %7364  ;;  %vm4742_vm12 = vweird.f32 %v7363_v24  ;;  %4874 = vmatpush.bf16.msra.mxu3 %v7127_v40 }
0x14be   :  { %v4752_v49 = vmul.f32 %v7365_v36, %v4705_v43  ;;  %vm4743_vm15 = vmor %vm4741_vm14, %vm4742_vm12  ;;  %vm4757_vm1 = vweird.f32 %v7365_v36 }
0x14bf   :  { %v4738_v48 = vsub.f32 1.0, %v4737_v59  ;;  %vm4758_vm3 = vmor %vm4756_vm2, %vm4757_vm1 }
0x14c0   :  { %v4753_v23 = vsub.f32 1.0, %v4752_v49 }
0x14c1   :  { %v4739_v58 = vmul.f32 %v7363_v24, %v4738_v48 }
0x14c2   :  { %v4754_v50 = vmul.f32 %v7365_v36, %v4753_v23 }
0x14c3   :  { %v4740_v15 = vadd.f32 %v7363_v24, %v4739_v58 }
0x14c4   :  { %v4755_v16 = vadd.f32 %v7365_v36, %v4754_v50 }
0x14c5   :  { %v4744_v21 = vsel %vm4743_vm15, %v7363_v24, %v4740_v15 }
0x14c6   :  { %v4749_v30 = vsel %vm4746_vm0, %v4748_v19, %v4744_v21  ;;  %v4759_v2 = vsel %vm4758_vm3, %v7365_v36, %v4755_v16 }
0x14c7   :  { %v4764_v29 = vsel %vm4761_vm4, %v4763_v13, %v4759_v2 }
0x14c8   :  { %v4773_v49 = vmul.f32 %v4764_v29, %v9368_v3 }
0x14f3   :  { %v4781_v11 = vpop.permute.xlu2 %4780 }
0x14f4   :  { %v4791_v33 = vmul.f32 %v4781_v11, %v4734_v17  ;;  %v4771_v11 = vmul.f32 %v4734_v17, %v9364_v53  ;;  %v7126_v53 = vld [vmem:[%s9954_s11 + $0x60] sm:$0xff] }
0x14f5   :  { %4875 = vmatpush.bf16.msra.mxu3 %v7126_v53 }
0x14f6   :  { %4800 = vrot.lane.b32.xlu0 %v4791_v33, %s7539_s28 }
0x1503   :  { %v4779_v5 = vpop.permute.xlu1 %4778 }
0x1504   :  { %v4790_v37 = vmul.f32 %v4779_v5, %v9434_v8 }
0x1506   :  { %4798 = vrot.lane.b32.xlu2 %v4790_v37, %s7539_s28 }
0x150e   :  { %4824 = vrot.lane.b32.xlu2 %v4734_v17, %s7540_s29  ;;  %v4772_v17 = vmul.f32 %v4749_v30, %v9371_v41 }
0x1513   :  { %v4783_v38 = vpop.permute.xlu0 %4782 }
0x1514   :  { %v4792_v34 = vmul.f32 %v4783_v38, %v4749_v30 }
0x1516   :  { %4826 = vrot.lane.b32.xlu2 %v4749_v30, %s7540_s29  ;;  %4802 = vrot.lane.b32.xlu0 %v4792_v34, %s7539_s28 }
0x151b   :  { %v4785_v57 = vpop.permute.xlu1 %4784 }
0x151c   :  { %v4793_v51 = vmul.f32 %v4785_v57, %v4764_v29 }
0x151e   :  { %4828 = vrot.lane.b32.xlu0 %v4764_v29, %s7540_s29  ;;  %4804 = vrot.lane.b32.xlu1 %v4793_v51, %s7539_s28 }
0x1523   :  { %v4823_v59 = vpop.permute.xlu1 %4822 }
0x1560   :  { %v4799_v4 = vpop.permute.xlu2 %4798 }
0x1561   :  { %v9448_v46 = vadd.f32 %v4799_v4, %v4770_v6 }
0x1563   :  { %7366 = vtanh.f32 %v9448_v46 }
0x1568   :  { %v4801_v33 = vpop.permute.xlu0 %4800  ;;  %v4825_v5 = vpop.permute.xlu2 %4824 }
0x1569   :  { %v9452_v20 = vadd.f32 %v4801_v33, %v4771_v11  ;;  %v7367_v43 = vpop.eup %7366 }
0x156a   :  { %v4834_v37 = vmul.f32 %v7367_v43, %v4823_v59 }
0x156b   :  { %7368 = vtanh.f32 %v9452_v20 }
0x1570   :  { %v4827_v21 = vpop.permute.xlu2 %4826 }
0x1571   :  { %v7369_v24 = vpop.eup %7368 }
0x1572   :  { %v4835_v48 = vmul.f32 %v7369_v24, %v4825_v5 }
0x1574   :  { %v4838_v36 = vpack.c.bf16 %v4835_v48, %v4834_v37  ;;  %v10118_v48 = vld [vmem:[#allocation34_spill] sm:$0xff] }
0x1576   :  { %4846 = vrot.lane.b32.xlu1 %v4838_v36, %s7540_s29  ;;  %v10119_v36 = vld [vmem:[#allocation67_spill] sm:$0xff] }
0x1577   :  { %v1598_v40 = vadd.f32 %v10119_v36, %v10118_v48 }
0x1588   :  { %v4803_v8 = vpop.permute.xlu0 %4802 }
0x1589   :  { %v9463_v58 = vadd.f32 %v4803_v8, %v4772_v17  ;;  %v10120_v17 = vld [vmem:[#allocation100_spill] sm:$0xff] }
0x158b   :  { %7370 = vtanh.f32 %v9463_v58 }
0x1590   :  { %v4805_v15 = vpop.permute.xlu1 %4804  ;;  %v4829_v50 = vpop.permute.xlu0 %4828 }
0x1591   :  { %v9467_v23 = vadd.f32 %v4805_v15, %v4773_v49  ;;  %v7371_v10 = vpop.eup %7370  ;;  %v2510_v49 = vadd.f32 %v10120_v17, %v1598_v40  ;;  %v10127_v40 = vld [vmem:[#allocation40_spill] sm:$0xff]  ;;  %v10128_v17 = vld [vmem:[#allocation70_spill] sm:$0xff] }
0x1592   :  { %v4836_v19 = vmul.f32 %v7371_v10, %v4827_v21  ;;  %v10121_v10 = vld [vmem:[#allocation36_spill] sm:$0xff] }
0x1593   :  { %7372 = vtanh.f32 %v9467_v23  ;;  %v4952_v15 = vadd.f32 %v9415_v22, %v2510_v49  ;;  %v1634_v49 = vadd.f32 %v10128_v17, %v10127_v40 }
0x1599   :  { %v7373_v12 = vpop.eup %7372 }
0x159a   :  { %v4837_v38 = vmul.f32 %v7373_v12, %v4829_v50  ;;  %v10122_v12 = vld [vmem:[#allocation68_spill] sm:$0xff] }
0x159b   :  { %v1610_v21 = vadd.f32 %v10122_v12, %v10121_v10  ;;  %v10129_v12 = vld [vmem:[#allocation106_spill] sm:$0xff] }
0x159c   :  { %v4839_v34 = vpack.c.bf16 %v4837_v38, %v4836_v19 }
0x159e   :  { %4848 = vrot.lane.b32.xlu2 %v4839_v34, %s7540_s29  ;;  %v10123_v34 = vld [vmem:[#allocation102_spill] sm:$0xff] }
0x15e8   :  { %v4847_v41 = vpop.permute.xlu1 %4846 }
0x15e9   :  { %6986 = vmatmul.msk.bf16.vlgmr.msra.gmra.mxu3 %vm1230_vm13, %v4847_v41  ;;  %6988 = vmatmul.msk.bf16.vlgmr.msra.gmra.mxu2 %vm1230_vm13, %v4847_v41 }
0x15ea   :  { %6990 = vmatmul.msk.bf16.vlgmr.msra.gmra.mxu0 %vm1230_vm13, %v4847_v41  ;;  %6992 = vmatmul.msk.bf16.vlgmr.msra.gmra.mxu1 %vm1230_vm13, %v4847_v41  ;;  %v2522_v41 = vadd.f32 %v10123_v34, %v1610_v21  ;;  %v2546_v21 = vadd.f32 %v10129_v12, %v1634_v49 }
0x15ec   :  { %v4955_v34 = vadd.f32 %v9415_v22, %v2546_v21 }
0x15f8   :  { %v4849_v3 = vpop.permute.xlu2 %4848 }
0x15f9   :  { %6987 = vmatmul.msk.bf16.gmra.mxu3 %vm1230_vm13, %v4849_v3  ;;  %6989 = vmatmul.msk.bf16.gmra.mxu2 %vm1230_vm13, %v4849_v3 }
0x15fa   :  { %6991 = vmatmul.msk.bf16.gmra.mxu0 %vm1230_vm13, %v4849_v3  ;;  %6993 = vmatmul.msk.bf16.gmra.mxu1 %vm1230_vm13, %v4849_v3 }
0x1667   :  { %v4919_v30 = vpop.f32.mrf.mxu0  ;;  %v4938_v16 = vpop.f32.mrf.mxu1 }
0x166c   :  { %v4877_v39 = vpop.f32.mrf.mxu3 }
0x166d   :  { %v9480_v55 = vadd.f32 %v4877_v39, %v9386_v0  ;;  %v4900_v0 = vpop.f32.mrf.mxu2 }
0x166e   :  { %v4956_v50 = vadd.f32 %v4952_v15, %v4900_v0 }
0x166f   :  { %v4921_v2 = vpop.f32.mrf.mxu0  ;;  %v4940_v13 = vpop.f32.mrf.mxu1 }
0x1670   :  { %v4960_v59 = vpack.c.bf16 %v4921_v2, %v4919_v30  ;;  %v4985_v5 = vpack.c.bf16 %v4940_v13, %v4938_v16  ;;  %v4953_v16 = vadd.f32 %v9415_v22, %v2522_v41  ;;  %v10124_v2 = vld [vmem:[#allocation38_spill] sm:$0xff]  ;;  %v10125_v13 = vld [vmem:[#allocation69_spill] sm:$0xff] }
0x1674   :  { %v9482_v57 = vpop.f32.mrf.mxu3 }
0x1677   :  { %v4924_v29 = vpop.f32.mrf.mxu0  ;;  %v4943_v51 = vpop.f32.mrf.mxu1 }
0x167c   :  { %v4882_v4 = vpop.f32.mrf.mxu3 }
0x167d   :  { %v9485_v6 = vadd.f32 %v4882_v4, %v9391_v35  ;;  %v4902_v35 = vpop.f32.mrf.mxu2 }
0x167f   :  { %v4926_v11 = vpop.f32.mrf.mxu0  ;;  %v4945_v33 = vpop.f32.mrf.mxu1 }
0x1680   :  { %v4961_v43 = vpack.c.bf16 %v4926_v11, %v4924_v29  ;;  %v4986_v24 = vpack.c.bf16 %v4945_v33, %v4943_v51  ;;  %v1622_v29 = vadd.f32 %v10125_v13, %v10124_v2  ;;  %v4957_v51 = vadd.f32 %v4953_v16, %v4902_v35  ;;  %v10126_v33 = vld [vmem:[#allocation104_spill] sm:$0xff] }
0x1682   :  { %4968 = vmatpush.bf16.msrb.mxu3 %v4961_v43  ;;  %4993 = vmatpush.bf16.msrb.mxu2 %v4986_v24  ;;  %v2534_v43 = vadd.f32 %v10126_v33, %v1622_v29 }
0x1684   :  { %v9503_v53 = vpop.f32.mrf.mxu3  ;;  %v4954_v48 = vadd.f32 %v9415_v22, %v2534_v43 }
0x1685   :  { %v4905_v37 = vpop.f32.mrf.mxu2 }
0x1686   :  { %4969 = vmatpush.bf16.msrb.mxu3 %v4960_v59  ;;  %4994 = vmatpush.bf16.msrb.mxu2 %v4985_v5  ;;  %v4958_v15 = vadd.f32 %v4954_v48, %v4905_v37 }
0x1689   :  { %6994 = vmatmul.msk.bf16.vlgmr.msrb.gmra.mxu3 %vm1230_vm13, %v8806_v60  ;;  %6996 = vmatmul.msk.bf16.vlgmr.msrb.gmra.mxu2 %vm1230_vm13, %v8824_v25 }
0x168a   :  { %5236 = vmatpush.bf16.msra.mxu3 %v8650_v44  ;;  %5255 = vmatpush.bf16.msra.mxu2 %v8705_v9 }
0x168d   :  { %v4907_v8 = vpop.f32.mrf.mxu2 }
0x168e   :  { %5237 = vmatpush.bf16.msra.mxu3 %v8665_v47  ;;  %5256 = vmatpush.bf16.msra.mxu2 %v8716_v28 }
0x1692   :  { %5537 = vmatpush.bf16.msrb.mxu2 %v8507_v42 }
0x1696   :  { %5538 = vmatpush.bf16.msrb.mxu2 %v8520_v56 }
0x1699   :  { %6995 = vmatmul.msk.bf16.gmra.mxu3 %vm1230_vm13, %v8814_v45  ;;  %6997 = vmatmul.msk.bf16.gmra.mxu2 %vm1230_vm13, %v8834_v32 }
0x170c   :  { %v4971_v19 = vpop.f32.mrf.mxu3  ;;  %v4996_v38 = vpop.f32.mrf.mxu2 }
0x170d   :  { %v4981_v3 = vadd.f32 %v4971_v19, %v4956_v50 }
0x170f   :  { %v5006_v30 = vadd.f32 %v4996_v38, %v4981_v3  ;;  %v4959_v3 = vadd.f32 %v4955_v34, %v4907_v8 }
0x1711   :  { %v6998_v39 = vmul.f32 -1.442695, %v5006_v30  ;;  %7374 = vtanh.f32 %v5006_v30 }
0x1713   :  { %7376 = vpow2.f32 %v6998_v39 }
0x1714   :  { %v4973_v4 = vpop.f32.mrf.mxu3  ;;  %v4998_v11 = vpop.f32.mrf.mxu2 }
0x1715   :  { %v4982_v24 = vadd.f32 %v4973_v4, %v4957_v51 }
0x1717   :  { %v7375_v59 = vpop.eup %7374  ;;  %v5007_v5 = vadd.f32 %v4998_v11, %v4982_v24 }
0x1718   :  { %5098 = vrot.lane.b32.xlu0 %v7375_v59, %s7539_s28 }
0x1719   :  { %v7377_v0 = vpop.eup %7376  ;;  %7378 = vtanh.f32 %v5007_v5 }
0x171a   :  { %v5022_v36 = vadd.f32 1.0, %v7377_v0  ;;  %v6999_v0 = vmul.f32 -1.442695, %v5007_v5 }
0x171c   :  { %7380 = vrcp.f32 %v5022_v36  ;;  %v4976_v35 = vpop.f32.mrf.mxu3  ;;  %v5001_v10 = vpop.f32.mrf.mxu2  ;;  %v5037_v33 = vand.u32 2147483648, %v5022_v36  ;;  %vm5031_vm6 = vweird.f32 %v5022_v36  ;;  %v5035_v43 = vand.u32 2147483647, %v5022_v36 }
0x171d   :  { %v4983_v50 = vadd.f32 %v4976_v35, %v4958_v15 }
0x171e   :  { %v5038_v24 = vor.u32 1.1754944e-38, %v5037_v33  ;;  %vm5036_vm8 = vcmp.eq.f32.partialorder %v5035_v43, 8.507059e+37 }
0x171f   :  { %v7379_v19 = vpop.eup %7378  ;;  %v5008_v38 = vadd.f32 %v5001_v10, %v4983_v50 }
0x1720   :  { %5100 = vrot.lane.b32.xlu1 %v7379_v19, %s7539_s28 }
0x1721   :  { %7382 = vtanh.f32 %v5008_v38  ;;  %v7000_v48 = vmul.f32 -1.442695, %v5008_v38 }
0x1722   :  { %v7381_v41 = vpop.eup %7380 }
0x1723   :  { %v5027_v16 = vmul.f32 %v7381_v41, %v5022_v36  ;;  %vm5032_vm5 = vweird.f32 %v7381_v41 }
0x1724   :  { %v4978_v30 = vpop.f32.mrf.mxu3  ;;  %v5003_v2 = vpop.f32.mrf.mxu2  ;;  %vm5033_vm7 = vmor %vm5031_vm6, %vm5032_vm5 }
0x1725   :  { %v4984_v39 = vadd.f32 %v4978_v30, %v4959_v3  ;;  %v5028_v29 = vsub.f32 1.0, %v5027_v16 }
0x1727   :  { %v7383_v37 = vpop.eup %7382  ;;  %v5009_v13 = vadd.f32 %v5003_v2, %v4984_v39  ;;  %v5029_v51 = vmul.f32 %v7381_v41, %v5028_v29 }
0x1728   :  { %5102 = vrot.lane.b32.xlu2 %v7383_v37, %s7539_s28 }
0x1729   :  { %7384 = vtanh.f32 %v5009_v13  ;;  %v5030_v11 = vadd.f32 %v7381_v41, %v5029_v51  ;;  %v7001_v49 = vmul.f32 -1.442695, %v5009_v13 }
0x172a   :  { %7386 = vpow2.f32 %v6999_v0 }
0x172b   :  { %v5034_v8 = vsel %vm5033_vm7, %v7381_v41, %v5030_v11  ;;  %7388 = vpow2.f32 %v7000_v48 }
0x172c   :  { %v9523_v59 = vsel %vm5036_vm8, %v5038_v24, %v5034_v8 }
0x172f   :  { %v7385_v4 = vpop.eup %7384 }
0x1730   :  { %5104 = vrot.lane.b32.xlu0 %v7385_v4, %s7539_s28  ;;  %v7387_v40 = vpop.eup %7386 }
0x1731   :  { %v5023_v17 = vadd.f32 1.0, %v7387_v40  ;;  %v7389_v15 = vpop.eup %7388 }
0x1732   :  { %v5024_v36 = vadd.f32 1.0, %v7389_v15 }
0x1733   :  { %7390 = vrcp.f32 %v5023_v17  ;;  %v5052_v39 = vand.u32 2147483648, %v5023_v17  ;;  %vm5046_vm10 = vweird.f32 %v5023_v17  ;;  %v5050_v2 = vand.u32 2147483647, %v5023_v17 }
0x1734   :  { %7392 = vpow2.f32 %v7001_v49  ;;  %v5067_v24 = vand.u32 2147483648, %v5024_v36  ;;  %vm5061_vm15 = vweird.f32 %v5024_v36  ;;  %v5065_v0 = vand.u32 2147483647, %v5024_v36 }
0x1735   :  { %7394 = vrcp.f32 %v5024_v36  ;;  %v5053_v51 = vor.u32 1.1754944e-38, %v5052_v39  ;;  %vm5051_vm12 = vcmp.eq.f32.partialorder %v5050_v2, 8.507059e+37  ;;  %v5090_v39 = vmul.f32 %v9523_v59, %v9448_v46 }
0x1736   :  { %v5068_v49 = vor.u32 1.1754944e-38, %v5067_v24  ;;  %vm5066_vm1 = vcmp.eq.f32.partialorder %v5065_v0, 8.507059e+37 }
0x1738   :  { %5142 = vrot.lane.b32.xlu0 %v9523_v59, %s7540_s29 }
0x1739   :  { %v7391_v35 = vpop.eup %7390 }
0x173a   :  { %v7393_v10 = vpop.eup %7392  ;;  %v5042_v12 = vmul.f32 %v7391_v35, %v5023_v17  ;;  %vm5047_vm9 = vweird.f32 %v7391_v35 }
0x173b   :  { %v5025_v21 = vadd.f32 1.0, %v7393_v10  ;;  %v7395_v19 = vpop.eup %7394  ;;  %vm5048_vm11 = vmor %vm5046_vm10, %vm5047_vm9 }
0x173c   :  { %v5043_v50 = vsub.f32 1.0, %v5042_v12  ;;  %v5057_v34 = vmul.f32 %v7395_v19, %v5024_v36  ;;  %vm5062_vm14 = vweird.f32 %v7395_v19 }
0x173d   :  { %7396 = vrcp.f32 %v5025_v21  ;;  %vm5063_vm0 = vmor %vm5061_vm15, %vm5062_vm14  ;;  %v5082_v12 = vand.u32 2147483648, %v5025_v21  ;;  %vm5076_vm3 = vweird.f32 %v5025_v21  ;;  %v5080_v36 = vand.u32 2147483647, %v5025_v21 }
0x173e   :  { %v5044_v5 = vmul.f32 %v7391_v35, %v5043_v50  ;;  %v5058_v38 = vsub.f32 1.0, %v5057_v34 }
0x173f   :  { %v5083_v34 = vor.u32 1.1754944e-38, %v5082_v12  ;;  %vm5081_vm5 = vcmp.eq.f32.partialorder %v5080_v36, 8.507059e+37 }
0x1740   :  { %v5045_v30 = vadd.f32 %v7391_v35, %v5044_v5  ;;  %v5059_v37 = vmul.f32 %v7395_v19, %v5058_v38 }
0x1742   :  { %v5049_v13 = vsel %vm5048_vm11, %v7391_v35, %v5045_v30  ;;  %v5060_v33 = vadd.f32 %v7395_v19, %v5059_v37 }
0x1743   :  { %v7397_v16 = vpop.eup %7396  ;;  %v5054_v11 = vsel %vm5051_vm12, %v5053_v51, %v5049_v13 }
0x1744   :  { %v5072_v29 = vmul.f32 %v7397_v16, %v5025_v21  ;;  %v5064_v48 = vsel %vm5063_vm0, %v7395_v19, %v5060_v33  ;;  %vm5077_vm2 = vweird.f32 %v7397_v16 }
0x1745   :  { %v5069_v15 = vsel %vm5066_vm1, %v5068_v49, %v5064_v48  ;;  %vm5078_vm4 = vmor %vm5076_vm3, %vm5077_vm2 }
0x1746   :  { %v5073_v8 = vsub.f32 1.0, %v5072_v29  ;;  %v5092_v33 = vmul.f32 %v5069_v15, %v9463_v58 }
0x1748   :  { %v5074_v40 = vmul.f32 %v7397_v16, %v5073_v8 }
0x174a   :  { %v5075_v10 = vadd.f32 %v7397_v16, %v5074_v40 }
0x174c   :  { %v5079_v50 = vsel %vm5078_vm4, %v7397_v16, %v5075_v10  ;;  %v7129_v16 = vld [vmem:[%s9954_s11 + $0x78] sm:$0xff] }
0x174d   :  { %v5084_v5 = vsel %vm5081_vm5, %v5083_v34, %v5079_v50  ;;  %5194 = vmatpush.bf16.msrb.mxu0 %v7129_v16 }
0x174e   :  { %v5093_v8 = vmul.f32 %v5084_v5, %v9467_v23 }
0x1782   :  { %v5103_v17 = vpop.permute.xlu2 %5102 }
0x1783   :  { %v5112_v35 = vmul.f32 %v5103_v17, %v5069_v15 }
0x178a   :  { %v5099_v41 = vpop.permute.xlu0 %5098 }
0x178b   :  { %v5110_v3 = vmul.f32 %v5099_v41, %v9523_v59 }
0x178d   :  { %5118 = vrot.lane.b32.xlu1 %v5110_v3, %s7539_s28  ;;  %v5091_v3 = vmul.f32 %v5054_v11, %v9452_v20  ;;  %v7128_v20 = vld [vmem:[%s9954_s11 + $0x70] sm:$0xff] }
0x178e   :  { %5195 = vmatpush.bf16.msrb.mxu0 %v7128_v20 }
0x1792   :  { %v5101_v4 = vpop.permute.xlu1 %5100 }
0x1793   :  { %v5111_v43 = vmul.f32 %v5101_v4, %v5054_v11 }
0x1795   :  { %5144 = vrot.lane.b32.xlu1 %v5054_v11, %s7540_s29  ;;  %5120 = vrot.lane.b32.xlu2 %v5111_v43, %s7539_s28 }
0x179d   :  { %5146 = vrot.lane.b32.xlu1 %v5069_v15, %s7540_s29  ;;  %5122 = vrot.lane.b32.xlu2 %v5112_v35, %s7539_s28 }
0x17a2   :  { %v5105_v19 = vpop.permute.xlu0 %5104 }
0x17a3   :  { %v5113_v41 = vmul.f32 %v5105_v19, %v5084_v5 }
0x17a5   :  { %5148 = vrot.lane.b32.xlu2 %v5084_v5, %s7540_s29  ;;  %5124 = vrot.lane.b32.xlu0 %v5113_v41, %s7539_s28 }
0x17aa   :  { %v5143_v46 = vpop.permute.xlu0 %5142 }
0x17ef   :  { %v5121_v38 = vpop.permute.xlu2 %5120 }
0x17f0   :  { %v9536_v30 = vadd.f32 %v5121_v38, %v5091_v3 }
0x17f2   :  { %7398 = vtanh.f32 %v9536_v30 }
0x17f7   :  { %v5123_v11 = vpop.permute.xlu2 %5122 }
0x17f8   :  { %v7399_v37 = vpop.eup %7398  ;;  %v9552_v43 = vadd.f32 %v5123_v11, %v5092_v33 }
0x17ff   :  { %v5119_v21 = vpop.permute.xlu1 %5118  ;;  %v5149_v49 = vpop.permute.xlu2 %5148 }
0x1800   :  { %v9540_v2 = vadd.f32 %v5119_v21, %v5090_v39 }
0x1802   :  { %7400 = vtanh.f32 %v9540_v2 }
0x1803   :  { %7402 = vtanh.f32 %v9552_v43 }
0x1807   :  { %v5145_v13 = vpop.permute.xlu1 %5144 }
0x1808   :  { %v7401_v29 = vpop.eup %7400  ;;  %v5155_v59 = vmul.f32 %v7399_v37, %v5145_v13 }
0x1809   :  { %v5154_v51 = vmul.f32 %v7401_v29, %v5143_v46  ;;  %v7403_v40 = vpop.eup %7402 }
0x180b   :  { %v5158_v4 = vpack.c.bf16 %v5155_v59, %v5154_v51  ;;  %v10130_v51 = vld [vmem:[#allocation7_spill] sm:$0xff] }
0x180d   :  { %5166 = vrot.lane.b32.xlu0 %v5158_v4, %s7540_s29  ;;  %v10131_v4 = vld [vmem:[#allocation37_spill] sm:$0xff] }
0x180e   :  { %v1599_v11 = vadd.f32 %v10131_v4, %v10130_v51 }
0x180f   :  { %v5147_v48 = vpop.permute.xlu1 %5146 }
0x1810   :  { %v5156_v35 = vmul.f32 %v7403_v40, %v5147_v48 }
0x1817   :  { %v5125_v24 = vpop.permute.xlu0 %5124 }
0x1818   :  { %v9555_v0 = vadd.f32 %v5125_v24, %v5093_v8  ;;  %v10132_v24 = vld [vmem:[#allocation101_spill] sm:$0xff] }
0x1819   :  { %v2511_v48 = vadd.f32 %v10132_v24, %v1599_v11 }
0x181a   :  { %7404 = vtanh.f32 %v9555_v0 }
0x181b   :  { %v5272_v40 = vadd.f32 %v9415_v22, %v2511_v48  ;;  %v10139_v48 = vld [vmem:[#allocation10_spill] sm:$0xff] }
0x1820   :  { %v7405_v17 = vpop.eup %7404 }
0x1821   :  { %v5157_v10 = vmul.f32 %v7405_v17, %v5149_v49  ;;  %v10133_v17 = vld [vmem:[#allocation8_spill] sm:$0xff]  ;;  %v10134_v49 = vld [vmem:[#allocation39_spill] sm:$0xff] }
0x1823   :  { %v5159_v12 = vpack.c.bf16 %v5157_v10, %v5156_v35  ;;  %v1611_v35 = vadd.f32 %v10134_v49, %v10133_v17 }
0x1825   :  { %5168 = vrot.lane.b32.xlu1 %v5159_v12, %s7540_s29 }
0x187f   :  { %v5167_v58 = vpop.permute.xlu0 %5166 }
0x1880   :  { %7010 = vmatmul.msk.bf16.vlgmr.msrb.gmra.mxu0 %vm1230_vm13, %v5167_v58  ;;  %7012 = vmatmul.msk.bf16.vlgmr.msrb.gmra.mxu1 %vm1230_vm13, %v5167_v58 }
0x1881   :  { %7014 = vmatmul.msk.bf16.vlgmr.msra.gmra.mxu3 %vm1230_vm13, %v5167_v58  ;;  %7016 = vmatmul.msk.bf16.vlgmr.msra.gmra.mxu2 %vm1230_vm13, %v5167_v58 }
0x1897   :  { %v5169_v23 = vpop.permute.xlu1 %5168 }
0x1898   :  { %7011 = vmatmul.msk.bf16.gmra.mxu0 %vm1230_vm13, %v5169_v23  ;;  %7013 = vmatmul.msk.bf16.gmra.mxu1 %vm1230_vm13, %v5169_v23 }
0x1899   :  { %7015 = vmatmul.msk.bf16.gmra.mxu3 %vm1230_vm13, %v5169_v23  ;;  %7017 = vmatmul.msk.bf16.gmra.mxu2 %vm1230_vm13, %v5169_v23  ;;  %v10135_v23 = vld [vmem:[#allocation103_spill] sm:$0xff] }
0x18fd   :  { %v5197_v15 = vpop.f32.mrf.mxu0 }
0x18fe   :  { %v9569_v36 = vadd.f32 %v5197_v15, %v9480_v55  ;;  %v2523_v15 = vadd.f32 %v10135_v23, %v1611_v35 }
0x1904   :  { %v5239_v50 = vpop.f32.mrf.mxu3  ;;  %v5258_v34 = vpop.f32.mrf.mxu2 }
0x1905   :  { %v9571_v19 = vpop.f32.mrf.mxu0 }
0x190c   :  { %v5241_v5 = vpop.f32.mrf.mxu3  ;;  %v5260_v41 = vpop.f32.mrf.mxu2 }
0x190d   :  { %v5280_v55 = vpack.c.bf16 %v5241_v5, %v5239_v50  ;;  %v5305_v29 = vpack.c.bf16 %v5260_v41, %v5258_v34  ;;  %v5273_v5 = vadd.f32 %v9415_v22, %v2523_v15 }
0x1915   :  { %v5202_v38 = vpop.f32.mrf.mxu0 }
0x1916   :  { %v9574_v3 = vadd.f32 %v5202_v38, %v9485_v6  ;;  %v5220_v6 = vpop.f32.mrf.mxu1  ;;  %v10136_v38 = vld [vmem:[#allocation9_spill] sm:$0xff] }
0x1917   :  { %v5276_v10 = vadd.f32 %v5272_v40, %v5220_v6  ;;  %v10140_v40 = vld [vmem:[#allocation43_spill] sm:$0xff] }
0x1918   :  { %v1635_v17 = vadd.f32 %v10140_v40, %v10139_v48 }
0x191c   :  { %v5244_v39 = vpop.f32.mrf.mxu3  ;;  %v5263_v21 = vpop.f32.mrf.mxu2 }
0x191d   :  { %v9592_v33 = vpop.f32.mrf.mxu0 }
0x191e   :  { %v5222_v46 = vpop.f32.mrf.mxu1 }
0x1924   :  { %v5246_v16 = vpop.f32.mrf.mxu3  ;;  %v5265_v37 = vpop.f32.mrf.mxu2 }
0x1925   :  { %v5281_v13 = vpack.c.bf16 %v5246_v16, %v5244_v39  ;;  %v5306_v20 = vpack.c.bf16 %v5265_v37, %v5263_v21  ;;  %v10137_v39 = vld [vmem:[#allocation41_spill] sm:$0xff]  ;;  %v5277_v16 = vadd.f32 %v5273_v5, %v5222_v46 }
0x1926   :  { %v5225_v59 = vpop.f32.mrf.mxu1  ;;  %v1623_v21 = vadd.f32 %v10137_v39, %v10136_v38 }
0x1927   :  { %5288 = vmatpush.bf16.msra.mxu0 %v5281_v13  ;;  %5313 = vmatpush.bf16.msra.mxu1 %v5306_v20  ;;  %v10138_v20 = vld [vmem:[#allocation105_spill] sm:$0xff] }
0x192b   :  { %5289 = vmatpush.bf16.msra.mxu0 %v5280_v55  ;;  %5314 = vmatpush.bf16.msra.mxu1 %v5305_v29  ;;  %v2535_v55 = vadd.f32 %v10138_v20, %v1623_v21 }
0x192d   :  { %v5274_v11 = vadd.f32 %v9415_v22, %v2535_v55 }
0x192e   :  { %7018 = vmatmul.msk.bf16.vlgmr.msra.gmra.mxu0 %vm1230_vm13, %v8806_v60  ;;  %7020 = vmatmul.msk.bf16.vlgmr.msra.gmra.mxu1 %vm1230_vm13, %v8824_v25  ;;  %v5227_v8 = vpop.f32.mrf.mxu1 }
0x192f   :  { %5556 = vmatpush.bf16.msrb.mxu0 %v8650_v44  ;;  %5575 = vmatpush.bf16.msrb.mxu1 %v8705_v9  ;;  %v5278_v49 = vadd.f32 %v5274_v11, %v5225_v59 }
0x1933   :  { %5557 = vmatpush.bf16.msrb.mxu0 %v8665_v47  ;;  %5576 = vmatpush.bf16.msrb.mxu1 %v8716_v28 }
0x1937   :  { %5857 = vmatpush.bf16.msra.mxu1 %v8507_v42 }
0x193b   :  { %5858 = vmatpush.bf16.msra.mxu1 %v8520_v56 }
0x193e   :  { %7019 = vmatmul.msk.bf16.gmra.mxu0 %vm1230_vm13, %v8814_v45  ;;  %7021 = vmatmul.msk.bf16.gmra.mxu1 %vm1230_vm13, %v8834_v32 }
0x19ab   :  { %v5291_v12 = vpop.f32.mrf.mxu0  ;;  %v5316_v58 = vpop.f32.mrf.mxu1 }
0x19ac   :  { %v5301_v50 = vadd.f32 %v5291_v12, %v5276_v10  ;;  %v10141_v10 = vld [vmem:[#allocation107_spill] sm:$0xff] }
0x19ad   :  { %v2547_v12 = vadd.f32 %v10141_v10, %v1635_v17 }
0x19ae   :  { %v5326_v34 = vadd.f32 %v5316_v58, %v5301_v50 }
0x19af   :  { %v5275_v50 = vadd.f32 %v9415_v22, %v2547_v12 }
0x19b0   :  { %v7022_v41 = vmul.f32 -1.442695, %v5326_v34  ;;  %7406 = vtanh.f32 %v5326_v34 }
0x19b1   :  { %v5279_v5 = vadd.f32 %v5275_v50, %v5227_v8 }
0x19b2   :  { %7408 = vpow2.f32 %v7022_v41 }
0x19b3   :  { %v5293_v37 = vpop.f32.mrf.mxu0  ;;  %v5318_v13 = vpop.f32.mrf.mxu1 }
0x19b4   :  { %v5302_v29 = vadd.f32 %v5293_v37, %v5277_v16 }
0x19b6   :  { %v7407_v6 = vpop.eup %7406  ;;  %v5327_v51 = vadd.f32 %v5318_v13, %v5302_v29 }
0x19b7   :  { %5418 = vrot.lane.b32.xlu2 %v7407_v6, %s7539_s28 }
0x19b8   :  { %v7409_v4 = vpop.eup %7408  ;;  %7410 = vtanh.f32 %v5327_v51  ;;  %v7023_v11 = vmul.f32 -1.442695, %v5327_v51 }
0x19b9   :  { %v5342_v24 = vadd.f32 1.0, %v7409_v4 }
0x19bb   :  { %7412 = vrcp.f32 %v5342_v24  ;;  %v5296_v46 = vpop.f32.mrf.mxu0  ;;  %v5321_v35 = vpop.f32.mrf.mxu1  ;;  %v5357_v22 = vand.u32 2147483648, %v5342_v24  ;;  %vm5351_vm7 = vweird.f32 %v5342_v24  ;;  %v5355_v29 = vand.u32 2147483647, %v5342_v24 }
0x19bc   :  { %v5303_v58 = vadd.f32 %v5296_v46, %v5278_v49 }
0x19bd   :  { %v5358_v6 = vor.u32 1.1754944e-38, %v5357_v22  ;;  %vm5356_vm9 = vcmp.eq.f32.partialorder %v5355_v29, 8.507059e+37 }
0x19be   :  { %v7411_v23 = vpop.eup %7410  ;;  %v5328_v15 = vadd.f32 %v5321_v35, %v5303_v58 }
0x19bf   :  { %5420 = vrot.lane.b32.xlu0 %v7411_v23, %s7539_s28 }
0x19c0   :  { %7414 = vtanh.f32 %v5328_v15  ;;  %v7024_v48 = vmul.f32 -1.442695, %v5328_v15 }
0x19c1   :  { %v7413_v34 = vpop.eup %7412 }
0x19c2   :  { %v5347_v38 = vmul.f32 %v7413_v34, %v5342_v24  ;;  %vm5352_vm6 = vweird.f32 %v7413_v34 }
0x19c3   :  { %v5298_v41 = vpop.f32.mrf.mxu0  ;;  %v5323_v21 = vpop.f32.mrf.mxu1  ;;  %vm5353_vm8 = vmor %vm5351_vm7, %vm5352_vm6 }
0x19c4   :  { %v5304_v39 = vadd.f32 %v5298_v41, %v5279_v5  ;;  %v5348_v37 = vsub.f32 1.0, %v5347_v38 }
0x19c6   :  { %v7415_v59 = vpop.eup %7414  ;;  %v5329_v16 = vadd.f32 %v5323_v21, %v5304_v39  ;;  %v5349_v13 = vmul.f32 %v7413_v34, %v5348_v37 }
0x19c7   :  { %5422 = vrot.lane.b32.xlu1 %v7415_v59, %s7539_s28 }
0x19c8   :  { %7416 = vtanh.f32 %v5329_v16  ;;  %v5350_v55 = vadd.f32 %v7413_v34, %v5349_v13  ;;  %v7025_v49 = vmul.f32 -1.442695, %v5329_v16 }
0x19c9   :  { %7418 = vpow2.f32 %v7023_v11 }
0x19ca   :  { %v5354_v8 = vsel %vm5353_vm8, %v7413_v34, %v5350_v55  ;;  %7420 = vpow2.f32 %v7024_v48 }
0x19cb   :  { %v9612_v4 = vsel %vm5356_vm9, %v5358_v6, %v5354_v8 }
0x19ce   :  { %v7417_v20 = vpop.eup %7416 }
0x19cf   :  { %5424 = vrot.lane.b32.xlu2 %v7417_v20, %s7539_s28  ;;  %v7419_v40 = vpop.eup %7418 }
0x19d0   :  { %v5343_v17 = vadd.f32 1.0, %v7419_v40  ;;  %v7421_v46 = vpop.eup %7420 }
0x19d1   :  { %v5344_v24 = vadd.f32 1.0, %v7421_v46 }
0x19d2   :  { %7422 = vrcp.f32 %v5343_v17  ;;  %v5372_v21 = vand.u32 2147483648, %v5343_v17  ;;  %vm5366_vm11 = vweird.f32 %v5343_v17  ;;  %v5370_v59 = vand.u32 2147483647, %v5343_v17 }
0x19d3   :  { %7424 = vpow2.f32 %v7025_v49  ;;  %v5387_v8 = vand.u32 2147483648, %v5344_v24  ;;  %vm5381_vm0 = vweird.f32 %v5344_v24  ;;  %v5385_v6 = vand.u32 2147483647, %v5344_v24 }
0x19d4   :  { %7426 = vrcp.f32 %v5344_v24  ;;  %v5373_v20 = vor.u32 1.1754944e-38, %v5372_v21  ;;  %vm5371_vm14 = vcmp.eq.f32.partialorder %v5370_v59, 8.507059e+37  ;;  %v5410_v21 = vmul.f32 %v9612_v4, %v9540_v2 }
0x19d5   :  { %v5388_v40 = vor.u32 1.1754944e-38, %v5387_v8  ;;  %vm5386_vm2 = vcmp.eq.f32.partialorder %v5385_v6, 8.507059e+37 }
0x19d7   :  { %5462 = vrot.lane.b32.xlu2 %v9612_v4, %s7540_s29 }
0x19d8   :  { %v7423_v35 = vpop.eup %7422 }
0x19d9   :  { %v7425_v10 = vpop.eup %7424  ;;  %v5362_v12 = vmul.f32 %v7423_v35, %v5343_v17  ;;  %vm5367_vm10 = vweird.f32 %v7423_v35 }
0x19da   :  { %v5345_v58 = vadd.f32 1.0, %v7425_v10  ;;  %v7427_v50 = vpop.eup %7426  ;;  %vm5368_vm12 = vmor %vm5366_vm11, %vm5367_vm10 }
0x19db   :  { %v5363_v23 = vsub.f32 1.0, %v5362_v12  ;;  %v5377_v51 = vmul.f32 %v7427_v50, %v5344_v24  ;;  %vm5382_vm15 = vweird.f32 %v7427_v50 }
0x19dc   :  { %7428 = vrcp.f32 %v5345_v58  ;;  %vm5383_vm1 = vmor %vm5381_vm0, %vm5382_vm15  ;;  %v5402_v46 = vand.u32 2147483648, %v5345_v58  ;;  %vm5396_vm4 = vweird.f32 %v5345_v58 }
0x19dd   :  { %v5364_v34 = vmul.f32 %v7423_v35, %v5363_v23  ;;  %v5378_v39 = vsub.f32 1.0, %v5377_v51 }
0x19de   :  { %v5403_v12 = vor.u32 1.1754944e-38, %v5402_v46 }
0x19df   :  { %v5365_v38 = vadd.f32 %v7423_v35, %v5364_v34  ;;  %v5379_v13 = vmul.f32 %v7427_v50, %v5378_v39 }
0x19e1   :  { %v5369_v37 = vsel %vm5368_vm12, %v7423_v35, %v5365_v38  ;;  %v5380_v29 = vadd.f32 %v7427_v50, %v5379_v13  ;;  %v5400_v35 = vand.u32 2147483647, %v5345_v58 }
0x19e2   :  { %v7429_v41 = vpop.eup %7428  ;;  %v5374_v22 = vsel %vm5371_vm14, %v5373_v20, %v5369_v37 }
0x19e3   :  { %v5392_v16 = vmul.f32 %v7429_v41, %v5345_v58  ;;  %v5384_v48 = vsel %vm5383_vm1, %v7427_v50, %v5380_v29  ;;  %vm5397_vm3 = vweird.f32 %v7429_v41  ;;  %vm5401_vm6 = vcmp.eq.f32.partialorder %v5400_v35, 8.507059e+37  ;;  %v7131_v58 = vld [vmem:[%s9954_s11 + $0x88] sm:$0xff] }
0x19e4   :  { %v5389_v49 = vsel %vm5386_vm2, %v5388_v40, %v5384_v48  ;;  %vm5398_vm5 = vmor %vm5396_vm4, %vm5397_vm3  ;;  %5514 = vmatpush.bf16.msrb.mxu3 %v7131_v58 }
0x19e5   :  { %v5393_v55 = vsub.f32 1.0, %v5392_v16  ;;  %v5411_v16 = vmul.f32 %v5374_v22, %v9536_v30  ;;  %v5412_v2 = vmul.f32 %v5389_v49, %v9552_v43 }
0x19e7   :  { %v5394_v11 = vmul.f32 %v7429_v41, %v5393_v55 }
0x19e9   :  { %v5395_v17 = vadd.f32 %v7429_v41, %v5394_v11 }
0x19eb   :  { %v5399_v10 = vsel %vm5398_vm5, %v7429_v41, %v5395_v17  ;;  %v7130_v41 = vld [vmem:[%s9954_s11 + $0x80] sm:$0xff] }
0x19ec   :  { %v5404_v34 = vsel %vm5401_vm6, %v5403_v12, %v5399_v10  ;;  %5515 = vmatpush.bf16.msrb.mxu3 %v7130_v41 }
0x19ed   :  { %v5413_v55 = vmul.f32 %v5404_v34, %v9555_v0 }
0x1a11   :  { %v5419_v5 = vpop.permute.xlu2 %5418 }
0x1a12   :  { %v5430_v15 = vmul.f32 %v5419_v5, %v9612_v4 }
0x1a14   :  { %5438 = vrot.lane.b32.xlu0 %v5430_v15, %s7539_s28 }
0x1a1c   :  { %5464 = vrot.lane.b32.xlu0 %v5374_v22, %s7540_s29 }
0x1a24   :  { %5466 = vrot.lane.b32.xlu0 %v5389_v49, %s7540_s29 }
0x1a29   :  { %v5425_v23 = vpop.permute.xlu2 %5424 }
0x1a2a   :  { %v5433_v24 = vmul.f32 %v5425_v23, %v5404_v34 }
0x1a2c   :  { %5444 = vrot.lane.b32.xlu2 %v5433_v24, %s7539_s28 }
0x1a31   :  { %v5421_v50 = vpop.permute.xlu0 %5420  ;;  %v5463_v39 = vpop.permute.xlu2 %5462 }
0x1a32   :  { %v5431_v51 = vmul.f32 %v5421_v50, %v5374_v22 }
0x1a34   :  { %5440 = vrot.lane.b32.xlu1 %v5431_v51, %s7539_s28 }
0x1a39   :  { %v5423_v5 = vpop.permute.xlu1 %5422 }
0x1a3a   :  { %v5432_v15 = vmul.f32 %v5423_v5, %v5389_v49 }
0x1a3c   :  { %5442 = vrot.lane.b32.xlu1 %v5432_v15, %s7539_s28 }
0x1a44   :  { %5468 = vrot.lane.b32.xlu1 %v5404_v34, %s7540_s29 }
0x1a86   :  { %v5439_v38 = vpop.permute.xlu0 %5438  ;;  %v5445_v20 = vpop.permute.xlu2 %5444 }
0x1a87   :  { %v9632_v59 = vadd.f32 %v5439_v38, %v5410_v21  ;;  %v9640_v29 = vadd.f32 %v5445_v20, %v5413_v55 }
0x1a89   :  { %7430 = vtanh.f32 %v9632_v59 }
0x1a8e   :  { %v5465_v6 = vpop.permute.xlu0 %5464 }
0x1a8f   :  { %v7431_v8 = vpop.eup %7430 }
0x1a90   :  { %v5474_v30 = vmul.f32 %v7431_v8, %v5463_v39 }
0x1a96   :  { %v5467_v35 = vpop.permute.xlu0 %5466 }
0x1aa6   :  { %v5441_v37 = vpop.permute.xlu1 %5440 }
0x1aa7   :  { %v9636_v13 = vadd.f32 %v5441_v37, %v5411_v16 }
0x1aa9   :  { %7432 = vtanh.f32 %v9636_v13 }
0x1aaa   :  { %7434 = vtanh.f32 %v9640_v29 }
0x1aae   :  { %v5443_v4 = vpop.permute.xlu1 %5442 }
0x1aaf   :  { %v7433_v11 = vpop.eup %7432  ;;  %v9643_v48 = vadd.f32 %v5443_v4, %v5412_v2  ;;  %v10142_v4 = vld [vmem:[#allocation15_spill] sm:$0xff] }
0x1ab0   :  { %v5475_v22 = vmul.f32 %v7433_v11, %v5465_v6  ;;  %v7435_v0 = vpop.eup %7434  ;;  %v10143_v11 = vld [vmem:[#allocation51_spill] sm:$0xff] }
0x1ab1   :  { %7436 = vtanh.f32 %v9643_v48 }
0x1ab2   :  { %v5478_v40 = vpack.c.bf16 %v5475_v22, %v5474_v30  ;;  %v1600_v30 = vadd.f32 %v10143_v11, %v10142_v4 }
0x1ab4   :  { %5486 = vrot.lane.b32.xlu2 %v5478_v40, %s7540_s29 }
0x1ab6   :  { %v5469_v17 = vpop.permute.xlu1 %5468 }
0x1ab7   :  { %v7437_v46 = vpop.eup %7436  ;;  %v5477_v10 = vmul.f32 %v7435_v0, %v5469_v17  ;;  %v10144_v0 = vld [vmem:[#allocation80_spill] sm:$0xff] }
0x1ab8   :  { %v5476_v12 = vmul.f32 %v7437_v46, %v5467_v35  ;;  %v2512_v17 = vadd.f32 %v10144_v0, %v1600_v30  ;;  %v10145_v46 = vld [vmem:[#allocation17_spill] sm:$0xff] }
0x1ab9   :  { %v10146_v35 = vld [vmem:[#allocation53_spill] sm:$0xff] }
0x1aba   :  { %v5479_v43 = vpack.c.bf16 %v5477_v10, %v5476_v12  ;;  %v1612_v10 = vadd.f32 %v10146_v35, %v10145_v46 }
0x1abc   :  { %5488 = vrot.lane.b32.xlu0 %v5479_v43, %s7540_s29 }
0x1b0e   :  { %v5487_v49 = vpop.permute.xlu2 %5486 }
0x1b0f   :  { %7034 = vmatmul.msk.bf16.vlgmr.msrb.gmra.mxu3 %vm1230_vm13, %v5487_v49  ;;  %7036 = vmatmul.msk.bf16.vlgmr.msrb.gmra.mxu2 %vm1230_vm13, %v5487_v49 }
0x1b10   :  { %7038 = vmatmul.msk.bf16.vlgmr.msrb.gmra.mxu0 %vm1230_vm13, %v5487_v49  ;;  %7040 = vmatmul.msk.bf16.vlgmr.msrb.gmra.mxu1 %vm1230_vm13, %v5487_v49 }
0x1b2e   :  { %v5489_v23 = vpop.permute.xlu0 %5488 }
0x1b2f   :  { %7035 = vmatmul.msk.bf16.gmra.mxu3 %vm1230_vm13, %v5489_v23  ;;  %7037 = vmatmul.msk.bf16.gmra.mxu2 %vm1230_vm13, %v5489_v23 }
0x1b30   :  { %7039 = vmatmul.msk.bf16.gmra.mxu0 %vm1230_vm13, %v5489_v23  ;;  %7041 = vmatmul.msk.bf16.gmra.mxu1 %vm1230_vm13, %v5489_v23  ;;  %v10147_v23 = vld [vmem:[#allocation82_spill] sm:$0xff] }
0x1b8d   :  { %v5559_v50 = vpop.f32.mrf.mxu0  ;;  %v5578_v51 = vpop.f32.mrf.mxu1 }
0x1b92   :  { %v5517_v34 = vpop.f32.mrf.mxu3 }
0x1b93   :  { %v9658_v24 = vadd.f32 %v5517_v34, %v9569_v36  ;;  %v2524_v34 = vadd.f32 %v10147_v23, %v1612_v10 }
0x1b95   :  { %v5561_v5 = vpop.f32.mrf.mxu0  ;;  %v5580_v15 = vpop.f32.mrf.mxu1 }
0x1b96   :  { %v5600_v36 = vpack.c.bf16 %v5561_v5, %v5559_v50  ;;  %v5625_v8 = vpack.c.bf16 %v5580_v15, %v5578_v51 }
0x1b9a   :  { %v9660_v58 = vpop.f32.mrf.mxu3 }
0x1bad   :  { %v5564_v41 = vpop.f32.mrf.mxu0  ;;  %v5583_v38 = vpop.f32.mrf.mxu1 }
0x1bb2   :  { %v5522_v39 = vpop.f32.mrf.mxu3 }
0x1bb3   :  { %v9663_v21 = vadd.f32 %v5522_v39, %v9574_v3  ;;  %v5540_v3 = vpop.f32.mrf.mxu2 }
0x1bb5   :  { %v5566_v16 = vpop.f32.mrf.mxu0  ;;  %v5585_v37 = vpop.f32.mrf.mxu1 }
0x1bb6   :  { %v5601_v20 = vpack.c.bf16 %v5566_v16, %v5564_v41  ;;  %v5626_v55 = vpack.c.bf16 %v5585_v37, %v5583_v38  ;;  %v10148_v41 = vld [vmem:[#allocation19_spill] sm:$0xff] }
0x1bb7   :  { %v10149_v38 = vld [vmem:[#allocation55_spill] sm:$0xff] }
0x1bb8   :  { %5608 = vmatpush.bf16.msra.mxu3 %v5601_v20  ;;  %5633 = vmatpush.bf16.msra.mxu2 %v5626_v55  ;;  %v1624_v39 = vadd.f32 %v10149_v38, %v10148_v41  ;;  %v10150_v55 = vld [vmem:[#allocation84_spill] sm:$0xff] }
0x1bba   :  { %v9681_v22 = vpop.f32.mrf.mxu3 }
0x1bbb   :  { %v5542_v6 = vpop.f32.mrf.mxu2 }
0x1bbc   :  { %5609 = vmatpush.bf16.msra.mxu3 %v5600_v36  ;;  %5634 = vmatpush.bf16.msra.mxu2 %v5625_v8  ;;  %v2536_v36 = vadd.f32 %v10150_v55, %v1624_v39 }
0x1bbf   :  { %7042 = vmatmul.msk.bf16.vlgmr.msra.gmra.mxu3 %vm1230_vm13, %v8806_v60  ;;  %7044 = vmatmul.msk.bf16.vlgmr.msra.gmra.mxu2 %vm1230_vm13, %v8824_v25 }
0x1bc0   :  { %5876 = vmatpush.bf16.msrb.mxu3 %v8650_v44  ;;  %5895 = vmatpush.bf16.msrb.mxu2 %v8705_v9 }
0x1bc3   :  { %v5545_v2 = vpop.f32.mrf.mxu2 }
0x1bc4   :  { %5877 = vmatpush.bf16.msrb.mxu3 %v8665_v47  ;;  %5896 = vmatpush.bf16.msrb.mxu2 %v8716_v28 }
0x1bc8   :  { %6177 = vmatpush.bf16.msra.mxu2 %v8507_v42  ;;  %v9687_v42 = vld [vmem:[%s9952_s10] ss:$0 sm:$0xff] }
0x1bc9   :  { %v5593_v5 = vadd.f32 %v9687_v42, %v2524_v34  ;;  %v5594_v30 = vadd.f32 %v9687_v42, %v2536_v36 }
0x1bcb   :  { %v5547_v40 = vpop.f32.mrf.mxu2  ;;  %v5597_v16 = vadd.f32 %v5593_v5, %v5542_v6  ;;  %v5598_v35 = vadd.f32 %v5594_v30, %v5545_v2 }
0x1bcc   :  { %6178 = vmatpush.bf16.msra.mxu2 %v8520_v56  ;;  %v5592_v56 = vadd.f32 %v9687_v42, %v2512_v17  ;;  %v10151_v17 = vld [vmem:[#allocation21_spill] sm:$0xff] }
0x1bce   :  { %v5596_v12 = vadd.f32 %v5592_v56, %v5540_v3  ;;  %v10152_v56 = vld [vmem:[#allocation57_spill] sm:$0xff] }
0x1bcf   :  { %7043 = vmatmul.msk.bf16.gmra.mxu3 %vm1230_vm13, %v8814_v45  ;;  %7045 = vmatmul.msk.bf16.gmra.mxu2 %vm1230_vm13, %v8834_v32  ;;  %v1636_v46 = vadd.f32 %v10152_v56, %v10151_v17 }
0x1c42   :  { %v5611_v43 = vpop.f32.mrf.mxu3  ;;  %v5636_v49 = vpop.f32.mrf.mxu2 }
0x1c43   :  { %v5621_v50 = vadd.f32 %v5611_v43, %v5596_v12  ;;  %v10153_v12 = vld [vmem:[#allocation86_spill] sm:$0xff] }
0x1c44   :  { %v2548_v43 = vadd.f32 %v10153_v12, %v1636_v46 }
0x1c45   :  { %v5646_v51 = vadd.f32 %v5636_v49, %v5621_v50 }
0x1c46   :  { %v5595_v50 = vadd.f32 %v9687_v42, %v2548_v43 }
0x1c47   :  { %v7046_v15 = vmul.f32 -1.442695, %v5646_v51  ;;  %7438 = vtanh.f32 %v5646_v51 }
0x1c48   :  { %v5599_v5 = vadd.f32 %v5595_v50, %v5547_v40 }
0x1c49   :  { %7440 = vpow2.f32 %v7046_v15 }
0x1c4a   :  { %v5613_v37 = vpop.f32.mrf.mxu3  ;;  %v5638_v20 = vpop.f32.mrf.mxu2 }
0x1c4b   :  { %v5622_v8 = vadd.f32 %v5613_v37, %v5597_v16 }
0x1c4d   :  { %v7439_v3 = vpop.eup %7438  ;;  %v5647_v4 = vadd.f32 %v5638_v20, %v5622_v8 }
0x1c4e   :  { %5738 = vrot.lane.b32.xlu1 %v7439_v3, %s7539_s28 }
0x1c4f   :  { %v7441_v11 = vpop.eup %7440  ;;  %7442 = vtanh.f32 %v5647_v4  ;;  %v7047_v17 = vmul.f32 -1.442695, %v5647_v4 }
0x1c50   :  { %v5662_v0 = vadd.f32 1.0, %v7441_v11 }
0x1c52   :  { %7444 = vrcp.f32 %v5662_v0  ;;  %v5616_v6 = vpop.f32.mrf.mxu3  ;;  %v5641_v10 = vpop.f32.mrf.mxu2  ;;  %v5677_v8 = vand.u32 2147483648, %v5662_v0  ;;  %vm5671_vm8 = vweird.f32 %v5662_v0  ;;  %v5675_v3 = vand.u32 2147483647, %v5662_v0 }
0x1c53   :  { %v5623_v49 = vadd.f32 %v5616_v6, %v5598_v35 }
0x1c54   :  { %v5678_v11 = vor.u32 1.1754944e-38, %v5677_v8  ;;  %vm5676_vm10 = vcmp.eq.f32.partialorder %v5675_v3, 8.507059e+37 }
0x1c55   :  { %v7443_v23 = vpop.eup %7442  ;;  %v5648_v34 = vadd.f32 %v5641_v10, %v5623_v49 }
0x1c56   :  { %5740 = vrot.lane.b32.xlu2 %v7443_v23, %s7539_s28 }
0x1c57   :  { %7446 = vtanh.f32 %v5648_v34  ;;  %v7048_v12 = vmul.f32 -1.442695, %v5648_v34 }
0x1c58   :  { %v7445_v51 = vpop.eup %7444 }
0x1c59   :  { %v5667_v41 = vmul.f32 %v7445_v51, %v5662_v0  ;;  %vm5672_vm7 = vweird.f32 %v7445_v51 }
0x1c5a   :  { %v5618_v15 = vpop.f32.mrf.mxu3  ;;  %v5643_v39 = vpop.f32.mrf.mxu2  ;;  %vm5673_vm9 = vmor %vm5671_vm8, %vm5672_vm7 }
0x1c5b   :  { %v5624_v38 = vadd.f32 %v5618_v15, %v5599_v5  ;;  %v5668_v37 = vsub.f32 1.0, %v5667_v41 }
0x1c5d   :  { %v7447_v2 = vpop.eup %7446  ;;  %v5649_v16 = vadd.f32 %v5643_v39, %v5624_v38  ;;  %v5669_v20 = vmul.f32 %v7445_v51, %v5668_v37 }
0x1c5e   :  { %5742 = vrot.lane.b32.xlu0 %v7447_v2, %s7539_s28 }
0x1c5f   :  { %7448 = vtanh.f32 %v5649_v16  ;;  %v5670_v36 = vadd.f32 %v7445_v51, %v5669_v20  ;;  %v7049_v23 = vmul.f32 -1.442695, %v5649_v16 }
0x1c60   :  { %7450 = vpow2.f32 %v7047_v17 }
0x1c61   :  { %v5674_v40 = vsel %vm5673_vm9, %v7445_v51, %v5670_v36 }
0x1c62   :  { %v9706_v30 = vsel %vm5676_vm10, %v5678_v11, %v5674_v40 }
0x1c65   :  { %v7449_v55 = vpop.eup %7448 }
0x1c66   :  { %5744 = vrot.lane.b32.xlu1 %v7449_v55, %s7539_s28  ;;  %v7451_v56 = vpop.eup %7450 }
0x1c67   :  { %v5663_v46 = vadd.f32 1.0, %v7451_v56 }
0x1c69   :  { %7452 = vrcp.f32 %v5663_v46  ;;  %v5692_v49 = vand.u32 2147483648, %v5663_v46  ;;  %vm5686_vm12 = vweird.f32 %v5663_v46  ;;  %v5690_v50 = vand.u32 2147483647, %v5663_v46 }
0x1c6a   :  { %7454 = vpow2.f32 %v7048_v12 }
0x1c6b   :  { %v5693_v4 = vor.u32 1.1754944e-38, %v5692_v49  ;;  %7456 = vpow2.f32 %v7049_v23  ;;  %vm5691_vm15 = vcmp.eq.f32.partialorder %v5690_v50, 8.507059e+37 }
0x1c6e   :  { %5782 = vrot.lane.b32.xlu1 %v9706_v30, %s7540_s29 }
0x1c6f   :  { %v7453_v35 = vpop.eup %7452 }
0x1c70   :  { %v5682_v6 = vmul.f32 %v7453_v35, %v5663_v46  ;;  %vm5687_vm11 = vweird.f32 %v7453_v35  ;;  %v7455_v51 = vpop.eup %7454 }
0x1c71   :  { %vm5688_vm14 = vmor %vm5686_vm12, %vm5687_vm11  ;;  %v5664_v15 = vadd.f32 1.0, %v7455_v51  ;;  %v7457_v34 = vpop.eup %7456 }
0x1c72   :  { %v5683_v10 = vsub.f32 1.0, %v5682_v6  ;;  %v5665_v2 = vadd.f32 1.0, %v7457_v34  ;;  %v5730_v34 = vmul.f32 %v9706_v30, %v9632_v59  ;;  %v7133_v59 = vld [vmem:[%s9954_s11 + $0x98] sm:$0xff] }
0x1c73   :  { %7458 = vrcp.f32 %v5664_v15  ;;  %v5707_v56 = vand.u32 2147483648, %v5664_v15  ;;  %vm5701_vm1 = vweird.f32 %v5664_v15  ;;  %v5705_v46 = vand.u32 2147483647, %v5664_v15  ;;  %5834 = vmatpush.bf16.msra.mxu0 %v7133_v59 }
0x1c74   :  { %v5684_v43 = vmul.f32 %v7453_v35, %v5683_v10  ;;  %7460 = vrcp.f32 %v5665_v2  ;;  %v5722_v23 = vand.u32 2147483648, %v5665_v2  ;;  %vm5716_vm5 = vweird.f32 %v5665_v2 }
0x1c75   :  { %v5708_v10 = vor.u32 1.1754944e-38, %v5707_v56  ;;  %vm5706_vm3 = vcmp.eq.f32.partialorder %v5705_v46, 8.507059e+37  ;;  %v5720_v50 = vand.u32 2147483647, %v5665_v2 }
0x1c76   :  { %v5685_v0 = vadd.f32 %v7453_v35, %v5684_v43 }
0x1c77   :  { %vm5721_vm7 = vcmp.eq.f32.partialorder %v5720_v50, 8.507059e+37 }
0x1c78   :  { %v5689_v5 = vsel %vm5688_vm14, %v7453_v35, %v5685_v0 }
0x1c79   :  { %v5694_v38 = vsel %vm5691_vm15, %v5693_v4, %v5689_v5  ;;  %v7459_v37 = vpop.eup %7458  ;;  %v5723_v5 = vor.u32 1.1754944e-38, %v5722_v23 }
0x1c7a   :  { %v5697_v16 = vmul.f32 %v7459_v37, %v5664_v15  ;;  %v7461_v8 = vpop.eup %7460  ;;  %vm5702_vm0 = vweird.f32 %v7459_v37 }
0x1c7b   :  { %v5712_v40 = vmul.f32 %v7461_v8, %v5665_v2  ;;  %vm5703_vm2 = vmor %vm5701_vm1, %vm5702_vm0  ;;  %vm5717_vm4 = vweird.f32 %v7461_v8 }
0x1c7c   :  { %v5698_v36 = vsub.f32 1.0, %v5697_v16  ;;  %vm5718_vm6 = vmor %vm5716_vm5, %vm5717_vm4  ;;  %v5731_v16 = vmul.f32 %v5694_v38, %v9636_v13  ;;  %v7132_v13 = vld [vmem:[%s9954_s11 + $0x90] sm:$0xff] }
0x1c7d   :  { %v5713_v17 = vsub.f32 1.0, %v5712_v40  ;;  %5835 = vmatpush.bf16.msra.mxu0 %v7132_v13  ;;  %v10155_v13 = vld [vmem:[#allocation59_spill] sm:$0xff] }
0x1c7e   :  { %v5699_v3 = vmul.f32 %v7459_v37, %v5698_v36 }
0x1c7f   :  { %v5714_v6 = vmul.f32 %v7461_v8, %v5713_v17 }
0x1c80   :  { %v5700_v11 = vadd.f32 %v7459_v37, %v5699_v3 }
0x1c81   :  { %v5715_v49 = vadd.f32 %v7461_v8, %v5714_v6 }
0x1c82   :  { %v5704_v35 = vsel %vm5703_vm2, %v7459_v37, %v5700_v11 }
0x1c83   :  { %v5709_v43 = vsel %vm5706_vm3, %v5708_v10, %v5704_v35  ;;  %v5719_v51 = vsel %vm5718_vm6, %v7461_v8, %v5715_v49 }
0x1c84   :  { %v5724_v15 = vsel %vm5721_vm7, %v5723_v5, %v5719_v51 }
0x1c85   :  { %v5733_v46 = vmul.f32 %v5724_v15, %v9640_v29 }
0x1cb0   :  { %v5741_v41 = vpop.permute.xlu2 %5740 }
0x1cb1   :  { %v5751_v39 = vmul.f32 %v5741_v41, %v5694_v38 }
0x1cb3   :  { %5760 = vrot.lane.b32.xlu0 %v5751_v39, %s7539_s28 }
0x1cc0   :  { %v5739_v20 = vpop.permute.xlu1 %5738 }
0x1cc1   :  { %v5750_v55 = vmul.f32 %v5739_v20, %v9706_v30 }
0x1cc3   :  { %5758 = vrot.lane.b32.xlu2 %v5750_v55, %s7539_s28 }
0x1ccb   :  { %5784 = vrot.lane.b32.xlu2 %v5694_v38, %s7540_s29  ;;  %v5732_v38 = vmul.f32 %v5709_v43, %v9643_v48 }
0x1cd0   :  { %v5743_v12 = vpop.permute.xlu0 %5742 }
0x1cd1   :  { %v5752_v0 = vmul.f32 %v5743_v12, %v5709_v43 }
0x1cd3   :  { %5786 = vrot.lane.b32.xlu2 %v5709_v43, %s7540_s29  ;;  %5762 = vrot.lane.b32.xlu0 %v5752_v0, %s7539_s28  ;;  %v3284_v43 = vadd.f32 %v9040_v63, %v9018_v1 }
0x1cd5   :  { %v3608_v5 = vadd.f32 %v9115_v26, %v3284_v43 }
0x1cd8   :  { %v5745_v4 = vpop.permute.xlu1 %5744 }
0x1cd9   :  { %v5753_v41 = vmul.f32 %v5745_v4, %v5724_v15  ;;  %v3928_v4 = vadd.f32 %v9210_v52, %v3608_v5 }
0x1cdb   :  { %5788 = vrot.lane.b32.xlu0 %v5724_v15, %s7540_s29  ;;  %5764 = vrot.lane.b32.xlu1 %v5753_v41, %s7539_s28  ;;  %v4248_v15 = vadd.f32 %v9299_v31, %v3928_v4 }
0x1ce0   :  { %v5783_v8 = vpop.permute.xlu1 %5782 }
0x1d1d   :  { %v5759_v39 = vpop.permute.xlu2 %5758 }
0x1d1e   :  { %v9720_v37 = vadd.f32 %v5759_v39, %v5730_v34  ;;  %v4568_v39 = vadd.f32 %v9388_v54, %v4248_v15  ;;  %v10160_v15 = vld [vmem:[#allocation25_spill] sm:$0xff] }
0x1d20   :  { %7462 = vtanh.f32 %v9720_v37 }
0x1d25   :  { %v5761_v2 = vpop.permute.xlu0 %5760  ;;  %v5785_v3 = vpop.permute.xlu2 %5784 }
0x1d26   :  { %v9724_v20 = vadd.f32 %v5761_v2, %v5731_v16  ;;  %v7463_v55 = vpop.eup %7462  ;;  %v4888_v16 = vadd.f32 %v9482_v57, %v4568_v39 }
0x1d27   :  { %v5794_v40 = vmul.f32 %v7463_v55, %v5783_v8 }
0x1d28   :  { %7464 = vtanh.f32 %v9724_v20  ;;  %v5208_v2 = vadd.f32 %v9571_v19, %v4888_v16 }
0x1d2a   :  { %v5528_v55 = vadd.f32 %v9660_v58, %v5208_v2 }
0x1d2d   :  { %v5787_v0 = vpop.permute.xlu2 %5786 }
0x1d2e   :  { %v7465_v36 = vpop.eup %7464 }
0x1d2f   :  { %v5795_v11 = vmul.f32 %v7465_v36, %v5785_v3 }
0x1d31   :  { %v5798_v17 = vpack.c.bf16 %v5795_v11, %v5794_v40 }
0x1d33   :  { %5806 = vrot.lane.b32.xlu1 %v5798_v17, %s7540_s29 }
0x1d45   :  { %v5763_v30 = vpop.permute.xlu0 %5762 }
0x1d46   :  { %v9735_v56 = vadd.f32 %v5763_v30, %v5732_v38 }
0x1d48   :  { %7466 = vtanh.f32 %v9735_v56 }
0x1d4d   :  { %v5765_v35 = vpop.permute.xlu1 %5764  ;;  %v5789_v49 = vpop.permute.xlu0 %5788 }
0x1d4e   :  { %v9739_v6 = vadd.f32 %v5765_v35, %v5733_v46  ;;  %v7467_v10 = vpop.eup %7466  ;;  %v10156_v35 = vld [vmem:[#allocation88_spill] sm:$0xff] }
0x1d4f   :  { %v5796_v23 = vmul.f32 %v7467_v10, %v5787_v0 }
0x1d50   :  { %7468 = vtanh.f32 %v9739_v6 }
0x1d56   :  { %v7469_v12 = vpop.eup %7468 }
0x1d57   :  { %v5797_v50 = vmul.f32 %v7469_v12, %v5789_v49  ;;  %v10158_v12 = vld [vmem:[#allocation60_spill] sm:$0xff] }
0x1d59   :  { %v5799_v51 = vpack.c.bf16 %v5797_v50, %v5796_v23 }
0x1d5b   :  { %5808 = vrot.lane.b32.xlu2 %v5799_v51, %s7540_s29  ;;  %v10159_v51 = vld [vmem:[#allocation89_spill] sm:$0xff] }
0x1da5   :  { %v5807_v48 = vpop.permute.xlu1 %5806 }
0x1da6   :  { %7058 = vmatmul.msk.bf16.vlgmr.msra.gmra.mxu0 %vm1230_vm13, %v5807_v48  ;;  %7060 = vmatmul.msk.bf16.vlgmr.msra.gmra.mxu1 %vm1230_vm13, %v5807_v48 }
0x1da7   :  { %7062 = vmatmul.msk.bf16.vlgmr.msrb.gmra.mxu3 %vm1230_vm13, %v5807_v48  ;;  %7064 = vmatmul.msk.bf16.vlgmr.msrb.gmra.mxu2 %vm1230_vm13, %v5807_v48 }
0x1db5   :  { %v5809_v29 = vpop.permute.xlu2 %5808 }
0x1db6   :  { %7059 = vmatmul.msk.bf16.gmra.mxu0 %vm1230_vm13, %v5809_v29  ;;  %7061 = vmatmul.msk.bf16.gmra.mxu1 %vm1230_vm13, %v5809_v29 }
0x1db7   :  { %7063 = vmatmul.msk.bf16.gmra.mxu3 %vm1230_vm13, %v5809_v29  ;;  %7065 = vmatmul.msk.bf16.gmra.mxu2 %vm1230_vm13, %v5809_v29 }
0x1e23   :  { %v5837_v41 = vpop.f32.mrf.mxu0 }
0x1e24   :  { %v9758_v34 = vadd.f32 %v5837_v41, %v9658_v24  ;;  %v10161_v41 = vld [vmem:[#allocation61_spill] sm:$0xff] }
0x1e25   :  { %v1625_v39 = vadd.f32 %v10161_v41, %v10160_v15 }
0x1e2a   :  { %v5879_v36 = vpop.f32.mrf.mxu3  ;;  %v5898_v1 = vpop.f32.mrf.mxu2 }
0x1e2b   :  { %v5839_v63 = vpop.f32.mrf.mxu0 }
0x1e2c   :  { %v9763_v26 = vadd.f32 %v5839_v63, %v5528_v55 }
0x1e32   :  { %v5881_v52 = vpop.f32.mrf.mxu3  ;;  %v5900_v8 = vpop.f32.mrf.mxu2 }
0x1e33   :  { %v5842_v31 = vpop.f32.mrf.mxu0  ;;  %v5920_v19 = vpack.c.bf16 %v5881_v52, %v5879_v36  ;;  %v5945_v58 = vpack.c.bf16 %v5900_v8, %v5898_v1  ;;  %v10162_v36 = vld [vmem:[#allocation90_spill] sm:$0xff] }
0x1e34   :  { %v9766_v3 = vadd.f32 %v5842_v31, %v9663_v21  ;;  %v5860_v21 = vpop.f32.mrf.mxu1  ;;  %v2537_v1 = vadd.f32 %v10162_v36, %v1625_v39 }
0x1e3a   :  { %v5884_v54 = vpop.f32.mrf.mxu3  ;;  %v5903_v24 = vpop.f32.mrf.mxu2 }
0x1e3b   :  { %v9782_v38 = vpop.f32.mrf.mxu0 }
0x1e42   :  { %v5886_v40 = vpop.f32.mrf.mxu3  ;;  %v5905_v11 = vpop.f32.mrf.mxu2 }
0x1e43   :  { %v5921_v57 = vpack.c.bf16 %v5886_v40, %v5884_v54  ;;  %v5946_v17 = vpack.c.bf16 %v5905_v11, %v5903_v24  ;;  %v5914_v54 = vadd.f32 %v9687_v42, %v2537_v1  ;;  %v10163_v40 = vld [vmem:[#allocation26_spill] sm:$0xff] }
0x1e44   :  { %v10164_v11 = vld [vmem:[#allocation62_spill] sm:$0xff] }
0x1e45   :  { %5928 = vmatpush.bf16.msrb.mxu0 %v5921_v57  ;;  %5953 = vmatpush.bf16.msrb.mxu1 %v5946_v17  ;;  %v1637_v57 = vadd.f32 %v10164_v11, %v10163_v40 }
0x1e49   :  { %5929 = vmatpush.bf16.msrb.mxu0 %v5920_v19  ;;  %5954 = vmatpush.bf16.msrb.mxu1 %v5945_v58 }
0x1e4c   :  { %7066 = vmatmul.msk.bf16.vlgmr.msrb.gmra.mxu0 %vm1230_vm13, %v8806_v60  ;;  %7068 = vmatmul.msk.bf16.vlgmr.msrb.gmra.mxu1 %vm1230_vm13, %v8824_v25 }
0x1e4d   :  { %6196 = vmatpush.bf16.msra.mxu0 %v8650_v44  ;;  %6215 = vmatpush.bf16.msra.mxu1 %v8705_v9  ;;  %v5862_v44 = vpop.f32.mrf.mxu1  ;;  %v10154_v9 = vld [vmem:[#allocation23_spill] sm:$0xff] }
0x1e4e   :  { %v1601_v30 = vadd.f32 %v10155_v13, %v10154_v9 }
0x1e50   :  { %v2513_v10 = vadd.f32 %v10156_v35, %v1601_v30 }
0x1e51   :  { %6197 = vmatpush.bf16.msra.mxu0 %v8665_v47  ;;  %6216 = vmatpush.bf16.msra.mxu1 %v8716_v28  ;;  %v10157_v28 = vld [vmem:[#allocation24_spill] sm:$0xff] }
0x1e52   :  { %v5912_v47 = vadd.f32 %v9687_v42, %v2513_v10  ;;  %v1613_v0 = vadd.f32 %v10158_v12, %v10157_v28 }
0x1e54   :  { %v5916_v49 = vadd.f32 %v5912_v47, %v5860_v21  ;;  %v2525_v48 = vadd.f32 %v10159_v51, %v1613_v0  ;;  %v10165_v21 = vld [vmem:[#allocation91_spill] sm:$0xff] }
0x1e55   :  { %v5865_v59 = vpop.f32.mrf.mxu1 }
0x1e56   :  { %v5913_v5 = vadd.f32 %v9687_v42, %v2525_v48  ;;  %v5918_v17 = vadd.f32 %v5914_v54, %v5865_v59 }
0x1e58   :  { %v5917_v16 = vadd.f32 %v5913_v5, %v5862_v44  ;;  %v2549_v44 = vadd.f32 %v10165_v21, %v1637_v57 }
0x1e5a   :  { %v5915_v35 = vadd.f32 %v9687_v42, %v2549_v44 }
0x1e5c   :  { %7067 = vmatmul.msk.bf16.gmra.mxu0 %vm1230_vm13, %v8814_v45  ;;  %7069 = vmatmul.msk.bf16.gmra.mxu1 %vm1230_vm13, %v8834_v32 }
0x1e5d   :  { %v5867_v46 = vpop.f32.mrf.mxu1 }
0x1e5e   :  { %v5919_v47 = vadd.f32 %v5915_v35, %v5867_v46 }
0x1ec9   :  { %v5931_v23 = vpop.f32.mrf.mxu0  ;;  %v5956_v50 = vpop.f32.mrf.mxu1 }
0x1eca   :  { %v5941_v29 = vadd.f32 %v5931_v23, %v5916_v49 }
0x1ecc   :  { %v5966_v43 = vadd.f32 %v5956_v50, %v5941_v29 }
0x1ece   :  { %v7070_v4 = vmul.f32 -1.442695, %v5966_v43  ;;  %7470 = vtanh.f32 %v5966_v43 }
0x1ed0   :  { %7472 = vpow2.f32 %v7070_v4 }
0x1ed1   :  { %v5933_v2 = vpop.f32.mrf.mxu0  ;;  %v5958_v55 = vpop.f32.mrf.mxu1 }
0x1ed2   :  { %v5942_v63 = vadd.f32 %v5933_v2, %v5917_v16 }
0x1ed4   :  { %v7471_v52 = vpop.eup %7470  ;;  %v5967_v8 = vadd.f32 %v5958_v55, %v5942_v63 }
0x1ed5   :  { %6058 = vrot.lane.b32.xlu0 %v7471_v52, %s7539_s28 }
0x1ed6   :  { %v7473_v31 = vpop.eup %7472  ;;  %7474 = vtanh.f32 %v5967_v8  ;;  %v7071_v41 = vmul.f32 -1.442695, %v5967_v8 }
0x1ed7   :  { %v5982_v24 = vadd.f32 1.0, %v7473_v31 }
0x1ed9   :  { %7476 = vrcp.f32 %v5982_v24  ;;  %v5936_v19 = vpop.f32.mrf.mxu0  ;;  %v5961_v58 = vpop.f32.mrf.mxu1  ;;  %v5997_v43 = vand.u32 2147483648, %v5982_v24  ;;  %vm5991_vm9 = vweird.f32 %v5982_v24  ;;  %v5995_v5 = vand.u32 2147483647, %v5982_v24 }
0x1eda   :  { %v5943_v9 = vadd.f32 %v5936_v19, %v5918_v17 }
0x1edb   :  { %v5998_v4 = vor.u32 1.1754944e-38, %v5997_v43  ;;  %vm5996_vm11 = vcmp.eq.f32.partialorder %v5995_v5, 8.507059e+37 }
0x1edc   :  { %v7475_v13 = vpop.eup %7474  ;;  %v5968_v30 = vadd.f32 %v5961_v58, %v5943_v9 }
0x1edd   :  { %6060 = vrot.lane.b32.xlu1 %v7475_v13, %s7539_s28 }
0x1ede   :  { %7478 = vtanh.f32 %v5968_v30  ;;  %v7072_v39 = vmul.f32 -1.442695, %v5968_v30 }
0x1edf   :  { %v7477_v10 = vpop.eup %7476 }
0x1ee0   :  { %v5987_v12 = vmul.f32 %v7477_v10, %v5982_v24  ;;  %vm5992_vm8 = vweird.f32 %v7477_v10 }
0x1ee1   :  { %v5938_v28 = vpop.f32.mrf.mxu0  ;;  %v5963_v49 = vpop.f32.mrf.mxu1  ;;  %vm5993_vm10 = vmor %vm5991_vm9, %vm5992_vm8 }
0x1ee2   :  { %v5944_v0 = vadd.f32 %v5938_v28, %v5919_v47  ;;  %v5988_v50 = vsub.f32 1.0, %v5987_v12 }
0x1ee4   :  { %v7479_v59 = vpop.eup %7478  ;;  %v5969_v23 = vadd.f32 %v5963_v49, %v5944_v0  ;;  %v5989_v51 = vmul.f32 %v7477_v10, %v5988_v50 }
0x1ee5   :  { %6062 = vrot.lane.b32.xlu2 %v7479_v59, %s7539_s28 }
0x1ee6   :  { %7480 = vtanh.f32 %v5969_v23  ;;  %v5990_v29 = vadd.f32 %v7477_v10, %v5989_v51  ;;  %v7073_v55 = vmul.f32 -1.442695, %v5969_v23 }
0x1ee7   :  { %7482 = vpow2.f32 %v7071_v41 }
0x1ee8   :  { %v5994_v46 = vsel %vm5993_vm10, %v7477_v10, %v5990_v29  ;;  %7484 = vpow2.f32 %v7072_v39 }
0x1ee9   :  { %v9802_v15 = vsel %vm5996_vm11, %v5998_v4, %v5994_v46 }
0x1eec   :  { %v7481_v48 = vpop.eup %7480 }
0x1eed   :  { %6064 = vrot.lane.b32.xlu0 %v7481_v48, %s7539_s28  ;;  %v7483_v16 = vpop.eup %7482 }
0x1eee   :  { %v5983_v2 = vadd.f32 1.0, %v7483_v16  ;;  %v7485_v36 = vpop.eup %7484 }
0x1eef   :  { %v5984_v1 = vadd.f32 1.0, %v7485_v36 }
0x1ef0   :  { %7486 = vrcp.f32 %v5983_v2  ;;  %v6012_v44 = vand.u32 2147483648, %v5983_v2  ;;  %vm6006_vm14 = vweird.f32 %v5983_v2  ;;  %v6010_v9 = vand.u32 2147483647, %v5983_v2 }
0x1ef1   :  { %7488 = vpow2.f32 %v7073_v55  ;;  %v6027_v59 = vand.u32 2147483648, %v5984_v1  ;;  %vm6021_vm2 = vweird.f32 %v5984_v1  ;;  %v6025_v23 = vand.u32 2147483647, %v5984_v1 }
0x1ef2   :  { %7490 = vrcp.f32 %v5984_v1  ;;  %v6013_v10 = vor.u32 1.1754944e-38, %v6012_v44  ;;  %vm6011_vm0 = vcmp.eq.f32.partialorder %v6010_v9, 8.507059e+37 }
0x1ef3   :  { %v6028_v29 = vor.u32 1.1754944e-38, %v6027_v59  ;;  %vm6026_vm4 = vcmp.eq.f32.partialorder %v6025_v23, 8.507059e+37 }
0x1ef5   :  { %6102 = vrot.lane.b32.xlu0 %v9802_v15, %s7540_s29 }
0x1ef6   :  { %v7487_v63 = vpop.eup %7486 }
0x1ef7   :  { %v7489_v52 = vpop.eup %7488  ;;  %v6002_v31 = vmul.f32 %v7487_v63, %v5983_v2  ;;  %vm6007_vm12 = vweird.f32 %v7487_v63 }
0x1ef8   :  { %v5985_v54 = vadd.f32 1.0, %v7489_v52  ;;  %v7491_v40 = vpop.eup %7490  ;;  %vm6008_vm15 = vmor %vm6006_vm14, %vm6007_vm12 }
0x1ef9   :  { %v6003_v24 = vsub.f32 1.0, %v6002_v31  ;;  %v6017_v11 = vmul.f32 %v7491_v40, %v5984_v1  ;;  %vm6022_vm1 = vweird.f32 %v7491_v40  ;;  %v6050_v31 = vmul.f32 %v9802_v15, %v9720_v37 }
0x1efa   :  { %7492 = vrcp.f32 %v5985_v54  ;;  %vm6023_vm3 = vmor %vm6021_vm2, %vm6022_vm1  ;;  %v6042_v4 = vand.u32 2147483648, %v5985_v54  ;;  %vm6036_vm6 = vweird.f32 %v5985_v54  ;;  %v6040_v41 = vand.u32 2147483647, %v5985_v54 }
0x1efb   :  { %v6004_v8 = vmul.f32 %v7487_v63, %v6003_v24  ;;  %v6018_v17 = vsub.f32 1.0, %v6017_v11 }
0x1efc   :  { %v6043_v16 = vor.u32 1.1754944e-38, %v6042_v4  ;;  %vm6041_vm8 = vcmp.eq.f32.partialorder %v6040_v41, 8.507059e+37 }
0x1efd   :  { %v6005_v58 = vadd.f32 %v7487_v63, %v6004_v8  ;;  %v6019_v13 = vmul.f32 %v7491_v40, %v6018_v17 }
0x1eff   :  { %v6009_v30 = vsel %vm6008_vm15, %v7487_v63, %v6005_v58  ;;  %v6020_v12 = vadd.f32 %v7491_v40, %v6019_v13 }
0x1f00   :  { %v7493_v21 = vpop.eup %7492  ;;  %v6014_v28 = vsel %vm6011_vm0, %v6013_v10, %v6009_v30 }
0x1f01   :  { %v6032_v35 = vmul.f32 %v7493_v21, %v5985_v54  ;;  %v6024_v50 = vsel %vm6023_vm3, %v7491_v40, %v6020_v12  ;;  %vm6037_vm5 = vweird.f32 %v7493_v21  ;;  %v6051_v63 = vmul.f32 %v6014_v28, %v9724_v20  ;;  %v7135_v40 = vld [vmem:[%s9954_s11 + $0xa8] sm:$0xff]  ;;  %v7134_v20 = vld [vmem:[%s9954_s11 + $0xa0] sm:$0xff] }
0x1f02   :  { %v6029_v43 = vsel %vm6026_vm4, %v6028_v29, %v6024_v50  ;;  %vm6038_vm7 = vmor %vm6036_vm6, %vm6037_vm5  ;;  %6154 = vmatpush.bf16.msra.mxu3 %v7135_v40 }
0x1f03   :  { %v6033_v49 = vsub.f32 1.0, %v6032_v35 }
0x1f05   :  { %v6034_v51 = vmul.f32 %v7493_v21, %v6033_v49 }
0x1f06   :  { %6155 = vmatpush.bf16.msra.mxu3 %v7134_v20  ;;  %v10168_v20 = vld [vmem:[#allocation108_spill] sm:$0xff] }
0x1f07   :  { %v6035_v46 = vadd.f32 %v7493_v21, %v6034_v51 }
0x1f09   :  { %v6039_v39 = vsel %vm6038_vm7, %v7493_v21, %v6035_v46  ;;  %v6052_v21 = vmul.f32 %v6029_v43, %v9735_v56 }
0x1f0a   :  { %v6044_v55 = vsel %vm6041_vm8, %v6043_v16, %v6039_v39 }
0x1f0b   :  { %v6053_v9 = vmul.f32 %v6044_v55, %v9739_v6 }
0x1f3f   :  { %v6063_v48 = vpop.permute.xlu2 %6062 }
0x1f40   :  { %v6072_v5 = vmul.f32 %v6063_v48, %v6029_v43 }
0x1f47   :  { %v6059_v57 = vpop.permute.xlu0 %6058 }
0x1f48   :  { %v6070_v19 = vmul.f32 %v6059_v57, %v9802_v15 }
0x1f4a   :  { %6078 = vrot.lane.b32.xlu1 %v6070_v19, %s7539_s28 }
0x1f4f   :  { %v6061_v47 = vpop.permute.xlu1 %6060 }
0x1f50   :  { %v6071_v0 = vmul.f32 %v6061_v47, %v6014_v28 }
0x1f52   :  { %6104 = vrot.lane.b32.xlu1 %v6014_v28, %s7540_s29  ;;  %6080 = vrot.lane.b32.xlu2 %v6071_v0, %s7539_s28 }
0x1f5a   :  { %6106 = vrot.lane.b32.xlu1 %v6029_v43, %s7540_s29  ;;  %6082 = vrot.lane.b32.xlu2 %v6072_v5, %s7539_s28 }
0x1f5f   :  { %v6065_v2 = vpop.permute.xlu0 %6064 }
0x1f60   :  { %v6073_v36 = vmul.f32 %v6065_v2, %v6044_v55 }
0x1f62   :  { %6108 = vrot.lane.b32.xlu2 %v6044_v55, %s7540_s29  ;;  %6084 = vrot.lane.b32.xlu0 %v6073_v36, %s7539_s28 }
0x1f67   :  { %v6103_v37 = vpop.permute.xlu0 %6102 }
0x1fac   :  { %v6081_v1 = vpop.permute.xlu2 %6080 }
0x1fad   :  { %v9815_v52 = vadd.f32 %v6081_v1, %v6051_v63 }
0x1faf   :  { %7494 = vtanh.f32 %v9815_v52 }
0x1fb4   :  { %v6083_v58 = vpop.permute.xlu2 %6082 }
0x1fb5   :  { %v7495_v11 = vpop.eup %7494  ;;  %v9831_v44 = vadd.f32 %v6083_v58, %v6052_v21 }
0x1fbc   :  { %v6079_v54 = vpop.permute.xlu1 %6078  ;;  %v6109_v28 = vpop.permute.xlu2 %6108 }
0x1fbd   :  { %v9819_v24 = vadd.f32 %v6079_v54, %v6050_v31  ;;  %v10166_v31 = vld [vmem:[#allocation42_spill] sm:$0xff]  ;;  %v10167_v54 = vld [vmem:[#allocation71_spill] sm:$0xff] }
0x1fbe   :  { %v1602_v40 = vadd.f32 %v10167_v54, %v10166_v31 }
0x1fbf   :  { %7496 = vtanh.f32 %v9819_v24 }
0x1fc0   :  { %7498 = vtanh.f32 %v9831_v44 }
0x1fc4   :  { %v6105_v8 = vpop.permute.xlu1 %6104 }
0x1fc5   :  { %v7497_v57 = vpop.eup %7496  ;;  %v6115_v15 = vmul.f32 %v7495_v11, %v6105_v8 }
0x1fc6   :  { %v6114_v17 = vmul.f32 %v7497_v57, %v6103_v37  ;;  %v7499_v10 = vpop.eup %7498  ;;  %v10170_v37 = vld [vmem:[#allocation72_spill] sm:$0xff] }
0x1fc8   :  { %v6118_v19 = vpack.c.bf16 %v6115_v15, %v6114_v17 }
0x1fca   :  { %6126 = vrot.lane.b32.xlu0 %v6118_v19, %s7540_s29 }
0x1fcc   :  { %v6107_v35 = vpop.permute.xlu1 %6106 }
0x1fcd   :  { %v6116_v12 = vmul.f32 %v7499_v10, %v6107_v35  ;;  %v10172_v10 = vld [vmem:[#allocation45_spill] sm:$0xff] }
0x1fd4   :  { %v6085_v13 = vpop.permute.xlu0 %6084 }
0x1fd5   :  { %v9834_v30 = vadd.f32 %v6085_v13, %v6053_v9 }
0x1fd7   :  { %7500 = vtanh.f32 %v9834_v30 }
0x1fdd   :  { %v7501_v47 = vpop.eup %7500 }
0x1fde   :  { %v6117_v0 = vmul.f32 %v7501_v47, %v6109_v28  ;;  %v10173_v47 = vld [vmem:[#allocation73_spill] sm:$0xff] }
0x1fdf   :  { %v1626_v28 = vadd.f32 %v10173_v47, %v10172_v10 }
0x1fe0   :  { %v6119_v49 = vpack.c.bf16 %v6117_v0, %v6116_v12 }
0x1fe2   :  { %6128 = vrot.lane.b32.xlu1 %v6119_v49, %s7540_s29 }
0x203c   :  { %v6127_v56 = vpop.permute.xlu0 %6126 }
0x203d   :  { %7082 = vmatmul.msk.bf16.vlgmr.msra.gmra.mxu3 %vm1230_vm13, %v6127_v56  ;;  %7084 = vmatmul.msk.bf16.vlgmr.msra.gmra.mxu2 %vm1230_vm13, %v6127_v56 }
0x203e   :  { %7086 = vmatmul.msk.bf16.vlgmr.msra.gmra.mxu0 %vm1230_vm13, %v6127_v56  ;;  %7088 = vmatmul.msk.bf16.vlgmr.msra.gmra.mxu1 %vm1230_vm13, %v6127_v56  ;;  %v10174_v56 = vld [vmem:[#allocation110_spill] sm:$0xff] }
0x2054   :  { %v6129_v6 = vpop.permute.xlu1 %6128 }
0x2055   :  { %7083 = vmatmul.msk.bf16.gmra.mxu3 %vm1230_vm13, %v6129_v6  ;;  %7085 = vmatmul.msk.bf16.gmra.mxu2 %vm1230_vm13, %v6129_v6 }
0x2056   :  { %7087 = vmatmul.msk.bf16.gmra.mxu0 %vm1230_vm13, %v6129_v6  ;;  %7089 = vmatmul.msk.bf16.gmra.mxu1 %vm1230_vm13, %v6129_v6  ;;  %v2538_v6 = vadd.f32 %v10174_v56, %v1626_v28 }
0x20bb   :  { %v6199_v23 = vpop.f32.mrf.mxu0  ;;  %v6218_v50 = vpop.f32.mrf.mxu1 }
0x20c0   :  { %v6157_v59 = vpop.f32.mrf.mxu3 }
0x20c1   :  { %v9848_v51 = vadd.f32 %v6157_v59, %v9758_v34 }
0x20c3   :  { %v6201_v43 = vpop.f32.mrf.mxu0  ;;  %v6220_v5 = vpop.f32.mrf.mxu1 }
0x20c4   :  { %v6240_v34 = vpack.c.bf16 %v6201_v43, %v6199_v23  ;;  %v6265_v1 = vpack.c.bf16 %v6220_v5, %v6218_v50  ;;  %v6234_v43 = vadd.f32 %v9687_v42, %v2538_v6 }
0x20c8   :  { %v6159_v48 = vpop.f32.mrf.mxu3 }
0x20c9   :  { %v9851_v29 = vadd.f32 %v6159_v48, %v9763_v26  ;;  %v6180_v26 = vpop.f32.mrf.mxu2 }
0x20d3   :  { %v6204_v46 = vpop.f32.mrf.mxu0  ;;  %v6223_v4 = vpop.f32.mrf.mxu1 }
0x20d8   :  { %v6162_v41 = vpop.f32.mrf.mxu3 }
0x20d9   :  { %v9854_v39 = vadd.f32 %v6162_v41, %v9766_v3  ;;  %v6182_v3 = vpop.f32.mrf.mxu2 }
0x20db   :  { %v6206_v16 = vpop.f32.mrf.mxu0  ;;  %v6225_v2 = vpop.f32.mrf.mxu1 }
0x20dc   :  { %v6241_v55 = vpack.c.bf16 %v6206_v16, %v6204_v46  ;;  %v6266_v36 = vpack.c.bf16 %v6225_v2, %v6223_v4  ;;  %v10175_v46 = vld [vmem:[#allocation46_spill] sm:$0xff] }
0x20dd   :  { %v10176_v4 = vld [vmem:[#allocation74_spill] sm:$0xff] }
0x20de   :  { %6248 = vmatpush.bf16.msrb.mxu3 %v6241_v55  ;;  %6273 = vmatpush.bf16.msrb.mxu2 %v6266_v36  ;;  %v1638_v41 = vadd.f32 %v10176_v4, %v10175_v46  ;;  %v10177_v36 = vld [vmem:[#allocation111_spill] sm:$0xff] }
0x20e0   :  { %v9866_v11 = vpop.f32.mrf.mxu3 }
0x20e1   :  { %v6185_v63 = vpop.f32.mrf.mxu2 }
0x20e2   :  { %6249 = vmatpush.bf16.msrb.mxu3 %v6240_v34  ;;  %6274 = vmatpush.bf16.msrb.mxu2 %v6265_v1  ;;  %v6238_v16 = vadd.f32 %v6234_v43, %v6185_v63  ;;  %v2550_v34 = vadd.f32 %v10177_v36, %v1638_v41 }
0x20e4   :  { %v6235_v31 = vadd.f32 %v9687_v42, %v2550_v34 }
0x20e5   :  { %7090 = vmatmul.msk.bf16.vlgmr.msrb.gmra.mxu3 %vm1230_vm13, %v8806_v60  ;;  %7092 = vmatmul.msk.bf16.vlgmr.msrb.gmra.mxu2 %vm1230_vm13, %v8824_v25  ;;  %v2514_v60 = vadd.f32 %v10168_v20, %v1602_v40  ;;  %v10169_v25 = vld [vmem:[#allocation44_spill] sm:$0xff] }
0x20e6   :  { %v1614_v15 = vadd.f32 %v10170_v37, %v10169_v25 }
0x20e7   :  { %v6232_v57 = vadd.f32 %v9687_v42, %v2514_v60 }
0x20e9   :  { %v6187_v8 = vpop.f32.mrf.mxu2 }
0x20ea   :  { %v6239_v40 = vadd.f32 %v6235_v31, %v6187_v8 }
0x20f5   :  { %7091 = vmatmul.msk.bf16.gmra.mxu3 %vm1230_vm13, %v8814_v45  ;;  %7093 = vmatmul.msk.bf16.gmra.mxu2 %vm1230_vm13, %v8834_v32  ;;  %v6236_v45 = vadd.f32 %v6232_v57, %v6180_v26  ;;  %v10171_v32 = vld [vmem:[#allocation109_spill] sm:$0xff] }
0x20f6   :  { %v2526_v58 = vadd.f32 %v10171_v32, %v1614_v15 }
0x20f8   :  { %v6233_v13 = vadd.f32 %v9687_v42, %v2526_v58 }
0x20fa   :  { %v6237_v12 = vadd.f32 %v6233_v13, %v6182_v3 }
0x2168   :  { %v6251_v17 = vpop.f32.mrf.mxu3  ;;  %v6276_v19 = vpop.f32.mrf.mxu2 }
0x2169   :  { %v6261_v21 = vadd.f32 %v6251_v17, %v6236_v45 }
0x216b   :  { %v6286_v9 = vadd.f32 %v6276_v19, %v6261_v21 }
0x216d   :  { %v7094_v35 = vmul.f32 -1.442695, %v6286_v9  ;;  %7502 = vtanh.f32 %v6286_v9 }
0x216f   :  { %7504 = vpow2.f32 %v7094_v35 }
0x2170   :  { %v6253_v0 = vpop.f32.mrf.mxu3  ;;  %v6278_v49 = vpop.f32.mrf.mxu2 }
0x2171   :  { %v6262_v59 = vadd.f32 %v6253_v0, %v6237_v12 }
0x2173   :  { %v7503_v23 = vpop.eup %7502  ;;  %v6287_v50 = vadd.f32 %v6278_v49, %v6262_v59 }
0x2174   :  { %6378 = vrot.lane.b32.xlu2 %v7503_v23, %s7539_s28 }
0x2175   :  { %v7505_v48 = vpop.eup %7504  ;;  %7506 = vtanh.f32 %v6287_v50  ;;  %v7095_v9 = vmul.f32 -1.442695, %v6287_v50 }
0x2176   :  { %v6302_v5 = vadd.f32 1.0, %v7505_v48 }
0x2178   :  { %7508 = vrcp.f32 %v6302_v5  ;;  %v6256_v2 = vpop.f32.mrf.mxu3  ;;  %v6281_v55 = vpop.f32.mrf.mxu2  ;;  %v6317_v42 = vand.u32 2147483648, %v6302_v5  ;;  %vm6311_vm10 = vweird.f32 %v6302_v5  ;;  %v6315_v32 = vand.u32 2147483647, %v6302_v5 }
0x2179   :  { %v6263_v1 = vadd.f32 %v6256_v2, %v6238_v16 }
0x217a   :  { %v6318_v58 = vor.u32 1.1754944e-38, %v6317_v42  ;;  %vm6316_vm12 = vcmp.eq.f32.partialorder %v6315_v32, 8.507059e+37 }
0x217b   :  { %v7507_v26 = vpop.eup %7506  ;;  %v6288_v3 = vadd.f32 %v6281_v55, %v6263_v1 }
0x217c   :  { %6380 = vrot.lane.b32.xlu0 %v7507_v26, %s7539_s28 }
0x217d   :  { %7510 = vtanh.f32 %v6288_v3  ;;  %v7096_v13 = vmul.f32 -1.442695, %v6288_v3 }
0x217e   :  { %v7509_v54 = vpop.eup %7508 }
0x217f   :  { %v6307_v60 = vmul.f32 %v7509_v54, %v6302_v5  ;;  %vm6312_vm9 = vweird.f32 %v7509_v54 }
0x2180   :  { %v6258_v20 = vpop.f32.mrf.mxu3  ;;  %v6283_v25 = vpop.f32.mrf.mxu2  ;;  %vm6313_vm11 = vmor %vm6311_vm10, %vm6312_vm9 }
0x2181   :  { %v6264_v57 = vadd.f32 %v6258_v20, %v6239_v40  ;;  %v6308_v15 = vsub.f32 1.0, %v6307_v60 }
0x2183   :  { %v7511_v63 = vpop.eup %7510  ;;  %v6289_v37 = vadd.f32 %v6283_v25, %v6264_v57  ;;  %v6309_v45 = vmul.f32 %v7509_v54, %v6308_v15 }
0x2184   :  { %6382 = vrot.lane.b32.xlu1 %v7511_v63, %s7539_s28 }
0x2185   :  { %7512 = vtanh.f32 %v6289_v37  ;;  %v6310_v19 = vadd.f32 %v7509_v54, %v6309_v45  ;;  %v7097_v47 = vmul.f32 -1.442695, %v6289_v37 }
0x2186   :  { %7514 = vpow2.f32 %v7095_v9 }
0x2187   :  { %v6314_v8 = vsel %vm6313_vm11, %v7509_v54, %v6310_v19  ;;  %7516 = vpow2.f32 %v7096_v13 }
0x2188   :  { %v9886_v21 = vsel %vm6316_vm12, %v6318_v58, %v6314_v8 }
0x218b   :  { %v7513_v17 = vpop.eup %7512 }
0x218c   :  { %6384 = vrot.lane.b32.xlu2 %v7513_v17, %s7539_s28  ;;  %v7515_v35 = vpop.eup %7514 }
0x218d   :  { %v6303_v10 = vadd.f32 1.0, %v7515_v35  ;;  %v7517_v28 = vpop.eup %7516  ;;  %v7137_v35 = vld [vmem:[%s9954_s11 + $0xb8] sm:$0xff] }
0x218e   :  { %v6304_v12 = vadd.f32 1.0, %v7517_v28  ;;  %6474 = vmatpush.bf16.msrb.mxu0 %v7137_v35 }
0x218f   :  { %7518 = vrcp.f32 %v6303_v10  ;;  %v6332_v16 = vand.u32 2147483648, %v6303_v10  ;;  %vm6326_vm15 = vweird.f32 %v6303_v10  ;;  %v6330_v2 = vand.u32 2147483647, %v6303_v10 }
0x2190   :  { %7520 = vpow2.f32 %v7097_v47  ;;  %v6347_v54 = vand.u32 2147483648, %v6304_v12  ;;  %vm6341_vm3 = vweird.f32 %v6304_v12  ;;  %v6345_v40 = vand.u32 2147483647, %v6304_v12 }
0x2191   :  { %7522 = vrcp.f32 %v6304_v12  ;;  %v6333_v1 = vor.u32 1.1754944e-38, %v6332_v16  ;;  %vm6331_vm1 = vcmp.eq.f32.partialorder %v6330_v2, 8.507059e+37 }
0x2192   :  { %v6348_v57 = vor.u32 1.1754944e-38, %v6347_v54  ;;  %vm6346_vm5 = vcmp.eq.f32.partialorder %v6345_v40, 8.507059e+37 }
0x2194   :  { %6422 = vrot.lane.b32.xlu2 %v9886_v21, %s7540_s29 }
0x2195   :  { %v7519_v0 = vpop.eup %7518 }
0x2196   :  { %v7521_v49 = vpop.eup %7520  ;;  %v6322_v56 = vmul.f32 %v7519_v0, %v6303_v10  ;;  %vm6327_vm14 = vweird.f32 %v7519_v0  ;;  %v7136_v10 = vld [vmem:[%s9954_s11 + $0xb0] sm:$0xff] }
0x2197   :  { %v6305_v6 = vadd.f32 1.0, %v7521_v49  ;;  %v7523_v23 = vpop.eup %7522  ;;  %vm6328_vm0 = vmor %vm6326_vm15, %vm6327_vm14  ;;  %6475 = vmatpush.bf16.msrb.mxu0 %v7136_v10 }
0x2198   :  { %v6323_v59 = vsub.f32 1.0, %v6322_v56  ;;  %v6337_v50 = vmul.f32 %v7523_v23, %v6304_v12  ;;  %vm6342_vm2 = vweird.f32 %v7523_v23  ;;  %v6370_v12 = vmul.f32 %v9886_v21, %v9819_v24 }
0x2199   :  { %7524 = vrcp.f32 %v6305_v6  ;;  %vm6343_vm4 = vmor %vm6341_vm3, %vm6342_vm2  ;;  %v6362_v37 = vand.u32 2147483648, %v6305_v6  ;;  %vm6356_vm7 = vweird.f32 %v6305_v6  ;;  %v6360_v15 = vand.u32 2147483647, %v6305_v6 }
0x219a   :  { %v6324_v48 = vmul.f32 %v7519_v0, %v6323_v59  ;;  %v6338_v41 = vsub.f32 1.0, %v6337_v50 }
0x219b   :  { %v6363_v17 = vor.u32 1.1754944e-38, %v6362_v37  ;;  %vm6361_vm9 = vcmp.eq.f32.partialorder %v6360_v15, 8.507059e+37 }
0x219c   :  { %v6325_v4 = vadd.f32 %v7519_v0, %v6324_v48  ;;  %v6339_v34 = vmul.f32 %v7523_v23, %v6338_v41 }
0x219e   :  { %v6329_v36 = vsel %vm6328_vm0, %v7519_v0, %v6325_v4  ;;  %v6340_v31 = vadd.f32 %v7523_v23, %v6339_v34 }
0x219f   :  { %v7525_v46 = vpop.eup %7524  ;;  %v6334_v3 = vsel %vm6331_vm1, %v6333_v1, %v6329_v36 }
0x21a0   :  { %v6352_v55 = vmul.f32 %v7525_v46, %v6305_v6  ;;  %v6344_v60 = vsel %vm6343_vm4, %v7523_v23, %v6340_v31  ;;  %vm6357_vm6 = vweird.f32 %v7525_v46  ;;  %v6371_v49 = vmul.f32 %v6334_v3, %v9815_v52 }
0x21a1   :  { %v6349_v63 = vsel %vm6346_vm5, %v6348_v57, %v6344_v60  ;;  %vm6358_vm8 = vmor %vm6356_vm7, %vm6357_vm6 }
0x21a2   :  { %v6353_v26 = vsub.f32 1.0, %v6352_v55 }
0x21a4   :  { %v6354_v20 = vmul.f32 %v7525_v46, %v6353_v26 }
0x21a6   :  { %v6355_v25 = vadd.f32 %v7525_v46, %v6354_v20 }
0x21a8   :  { %v6359_v45 = vsel %vm6358_vm8, %v7525_v46, %v6355_v25  ;;  %v3289_v25 = vadd.f32 %v9044_v7, %v9022_v62 }
0x21a9   :  { %v6364_v42 = vsel %vm6361_vm9, %v6363_v17, %v6359_v45 }
0x21aa   :  { %v6373_v23 = vmul.f32 %v6364_v42, %v9834_v30 }
0x21ce   :  { %v6379_v43 = vpop.permute.xlu2 %6378 }
0x21cf   :  { %v6390_v5 = vmul.f32 %v6379_v43, %v9886_v21 }
0x21d1   :  { %6398 = vrot.lane.b32.xlu0 %v6390_v5, %s7539_s28  ;;  %v6372_v5 = vmul.f32 %v6349_v63, %v9831_v44 }
0x21d9   :  { %6424 = vrot.lane.b32.xlu0 %v6334_v3, %s7540_s29 }
0x21e1   :  { %6426 = vrot.lane.b32.xlu0 %v6349_v63, %s7540_s29 }
0x21e6   :  { %v6385_v19 = vpop.permute.xlu2 %6384 }
0x21e7   :  { %v6393_v32 = vmul.f32 %v6385_v19, %v6364_v42 }
0x21e9   :  { %6404 = vrot.lane.b32.xlu2 %v6393_v32, %s7539_s28 }
0x21ee   :  { %v6381_v8 = vpop.permute.xlu0 %6380  ;;  %v6423_v28 = vpop.permute.xlu2 %6422 }
0x21ef   :  { %v6391_v58 = vmul.f32 %v6381_v8, %v6334_v3  ;;  %v7145_v3 = vld [vmem:[%s9955_s12] ss:$0 sm:$0xff] }
0x21f1   :  { %6400 = vrot.lane.b32.xlu1 %v6391_v58, %s7539_s28 }
0x21f6   :  { %v6383_v9 = vpop.permute.xlu1 %6382 }
0x21f7   :  { %v6392_v13 = vmul.f32 %v6383_v9, %v6349_v63  ;;  %v3610_v63 = vadd.f32 %v9137_v61, %v3289_v25 }
0x21f9   :  { %6402 = vrot.lane.b32.xlu1 %v6392_v13, %s7539_s28 }
0x2201   :  { %6428 = vrot.lane.b32.xlu1 %v6364_v42, %s7540_s29 }
0x2243   :  { %v6399_v47 = vpop.permute.xlu0 %6398  ;;  %v6405_v59 = vpop.permute.xlu2 %6404 }
0x2244   :  { %v6410_v0 = vadd.f32 %v6399_v47, %v6370_v12  ;;  %v6413_v48 = vadd.f32 %v6405_v59, %v6373_v23 }
0x2246   :  { %7526 = vtanh.f32 %v6410_v0 }
0x224b   :  { %v6425_v43 = vpop.permute.xlu0 %6424 }
0x224c   :  { %v7527_v50 = vpop.eup %7526 }
0x224d   :  { %v6434_v24 = vmul.f32 %v7527_v50, %v6423_v28 }
0x2253   :  { %v6427_v36 = vpop.permute.xlu0 %6426 }
0x2263   :  { %v6401_v56 = vpop.permute.xlu1 %6400 }
0x2264   :  { %v6411_v6 = vadd.f32 %v6401_v56, %v6371_v49 }
0x2266   :  { %7528 = vtanh.f32 %v6411_v6 }
0x2267   :  { %7530 = vtanh.f32 %v6413_v48 }
0x226b   :  { %v6403_v46 = vpop.permute.xlu1 %6402 }
0x226c   :  { %v7529_v4 = vpop.eup %7528  ;;  %v6412_v41 = vadd.f32 %v6403_v46, %v6372_v5 }
0x226d   :  { %v6435_v21 = vmul.f32 %v7529_v4, %v6425_v43  ;;  %v7531_v16 = vpop.eup %7530 }
0x226e   :  { %7532 = vtanh.f32 %v6412_v41 }
0x226f   :  { %v6438_v52 = vpack.c.bf16 %v6435_v21, %v6434_v24 }
0x2271   :  { %6446 = vrot.lane.b32.xlu2 %v6438_v52, %s7540_s29 }
0x2273   :  { %v6429_v2 = vpop.permute.xlu1 %6428 }
0x2274   :  { %v7533_v55 = vpop.eup %7532  ;;  %v6437_v30 = vmul.f32 %v7531_v16, %v6429_v2 }
0x2275   :  { %v6436_v34 = vmul.f32 %v7533_v55, %v6427_v36 }
0x2277   :  { %v6439_v1 = vpack.c.bf16 %v6437_v30, %v6436_v34 }
0x2279   :  { %6448 = vrot.lane.b32.xlu0 %v6439_v1, %s7540_s29 }
0x22cb   :  { %v6447_v44 = vpop.permute.xlu2 %6446 }
0x22cc   :  { %7106 = vmatmul.msk.bf16.vlgmr.msrb.gmra.mxu0 %vm1230_vm13, %v6447_v44 }
0x22eb   :  { %v6449_v26 = vpop.permute.xlu0 %6448 }
0x22ec   :  { %7107 = vmatmul.msk.bf16.gmra.mxu0 %vm1230_vm13, %v6449_v26 }
0x2349   :  { %v6477_v31 = vpop.f32.mrf.mxu0 }
0x234a   :  { %v6487_v54 = vadd.f32 %v6477_v31, %v9848_v51  ;;  %v3930_v51 = vadd.f32 %v9231_v27, %v3610_v63 }
0x234c   :  { %v6494_v40 = vadd.f32 %v7145_v3, %v6487_v54  ;;  %v4250_v37 = vadd.f32 %v9320_v18, %v3930_v51 }
0x234e   :  { %6498 = vst [vmem:[%s9956_s14] sm:$0xff] %v6494_v40  ;;  %v4570_v15 = vadd.f32 %v9409_v14, %v4250_v37 }
0x2350   :  { %v4890_v45 = vadd.f32 %v9503_v53, %v4570_v15 }
0x2351   :  { %v6479_v20 = vpop.f32.mrf.mxu0 }
0x2352   :  { %v6488_v60 = vadd.f32 %v6479_v20, %v9851_v29  ;;  %v5210_v29 = vadd.f32 %v9592_v33, %v4890_v45 }
0x2354   :  { %v6495_v57 = vadd.f32 %v7145_v3, %v6488_v60  ;;  %v5530_v42 = vadd.f32 %v9681_v22, %v5210_v29 }
0x2356   :  { %6499 = vst [vmem:[%s9956_s14 + $0x8] sm:$0xff] %v6495_v57  ;;  %v5850_v62 = vadd.f32 %v9782_v38, %v5530_v42 }
0x2358   :  { %v6170_v7 = vadd.f32 %v9866_v11, %v5850_v62 }
0x2369   :  { %v6482_v17 = vpop.f32.mrf.mxu0 }
0x236a   :  { %v6489_v19 = vadd.f32 %v6482_v17, %v9854_v39 }
0x236c   :  { %v6496_v32 = vadd.f32 %v7145_v3, %v6489_v19 }
0x236e   :  { %6500 = vst [vmem:[%s9956_s14 + $0x10] sm:$0xff] %v6496_v32 }
0x2371   :  { %v6484_v61 = vpop.f32.mrf.mxu0 }
0x2372   :  { %v6490_v27 = vadd.f32 %v6484_v61, %v6170_v7 }
0x2374   :  { %v6497_v18 = vadd.f32 %v7145_v3, %v6490_v27 }
0x2376   :  { %6501 = vst [vmem:[%s9956_s14 + $0x18] sm:$0xff] %v6497_v18 }

</bundles_post_ra>
